<compile_context>
chip_gen: v5e
topology: v5e:2x2
jax: 0.10.0
libtpu: 0.0.40
codegen_flags: <defaults>
</compile_context>

<pallas_src>
import functools

import jax
import jax.numpy as jnp
from jax import lax
from jax.experimental import pallas as pl
from jax.experimental.pallas import tpu as pltpu


# ----------------------------------------------------------------------------
# In-kernel building blocks (single sample, (rows, C) tiles, rows = i*W + j)
# ----------------------------------------------------------------------------
def _conv3x3_relu(x, w9, b, H, W, mask_cache):
    """3x3 conv, stride 1, replicate padding, + bias + ReLU, one bf16 MXU matmul.

    x : (H*W, Cin) f32, w9 : (9*Cin, Cout) bf16 with row = (dh*3+dw)*Cin + cin,
    b : (1, Cout) f32.
    """
    R, Cin = x.shape
    key = (H, W)
    if key not in mask_cache:                       # (R,1) masks, built once per size
        ridx = lax.broadcasted_iota(jnp.int32, (R, 1), 0)
        mask_cache[key] = (ridx < W,                # i == 0
                           ridx >= R - W,           # i == H-1
                           (ridx % W) == 0,         # j == 0
                           (ridx % W) == W - 1)     # j == W-1
    top, bot, left, right = mask_cache[key]

    taps = []
    for dh in (-1, 0, 1):                           # vertical offset (edge-clamped)
        if dh == -1:
            v = jnp.where(top, x, jnp.roll(x, W, axis=0))
        elif dh == 0:
            v = x
        else:
            v = jnp.where(bot, x, jnp.roll(x, -W, axis=0))
        for dw in (-1, 0, 1):                       # horizontal offset (edge-clamped)
            if dw == -1:
                t = jnp.where(left, v, jnp.roll(v, 1, axis=0))
            elif dw == 0:
                t = v
            else:
                t = jnp.where(right, v, jnp.roll(v, -1, axis=0))
            taps.append(t)
    x9 = jnp.concatenate(taps, axis=1).astype(jnp.bfloat16)     # (R, 9*Cin) bf16
    y = jnp.dot(x9, w9, preferred_element_type=jnp.float32) + b
    return jnp.maximum(y, 0.0)


def _maxpool2x2(x, H, W, scratch):
    """2x2 / stride-2 max pool, (H*W, C) -> (Ho*Wo, C), no selection matmuls."""
    R, C = x.shape
    Ho, Wo = H // 2, W // 2
    a = jnp.maximum(x, jnp.roll(x, -1, axis=0))     # pair (j, j+1)  (valid at even j)
    m = jnp.maximum(a, jnp.roll(a, -W, axis=0))     # pair (i, i+1)  (valid at even i)
    scratch[pl.ds(0, R), :] = m
    # output row (i', j') <- m row 2*i'*W + 2*j' : per i'-band, Wo rows with stride 2
    bands = [scratch[pl.ds(2 * ip * W, Wo, 2), :] for ip in range(Ho)]
    return bands[0] if Ho == 1 else jnp.concatenate(bands, axis=0)


def _groupnorm(y, gmat, gmat_t, eps):
    """GroupNorm(G, eps, no affine) for one sample; two-pass variance.

    y : (R, C); gmat : (C, G) 0/1 group membership; gmat_t : (G, C)."""
    R, C = y.shape
    G = gmat.shape[1]
    count = float(R * (C // G))
    mean_g = jnp.dot(jnp.sum(y, axis=0, keepdims=True), gmat,
                     preferred_element_type=jnp.float32) / count        # (1, G)
    mean_c = jnp.dot(mean_g, gmat_t, preferred_element_type=jnp.float32)  # (1, C)
    yc = y - mean_c
    var_g = jnp.dot(jnp.sum(yc * yc, axis=0, keepdims=True), gmat,
                    preferred_element_type=jnp.float32) / count         # (1, G)
    inv_c = jnp.dot(lax.rsqrt(var_g + eps), gmat_t,
                    preferred_element_type=jnp.float32)                 # (1, C)
    return yc * inv_c


# ----------------------------------------------------------------------------
# The fused kernel: whole forward pass for ONE batch element per grid step
# ----------------------------------------------------------------------------
def clas_fused_kernel(x_ref, w0_ref, b0_ref, wr_ref, br_ref, wd_ref, bd_ref,
                      wc_ref, gmat_ref, gmatt_ref, *rest, H, W, n_layers, eps):
    out_refs, pool_scratch = rest[:-1], rest[-1]
    mask_cache = {}
    gmat, gmat_t = gmat_ref[...], gmatt_ref[...]

    h = _conv3x3_relu(x_ref[0], w0_ref[...], b0_ref[...], H, W, mask_cache)
    out_refs[0][0] = h                                            # dropout = identity
    Hs, Ws = H, W
    for li in range(n_layers):
        c = _conv3x3_relu(h, wr_ref[li], br_ref[li], Hs, Ws, mask_cache)
        p = _maxpool2x2(c, Hs, Ws, pool_scratch)
        Hs, Ws = Hs // 2, Ws // 2
        h = _groupnorm(p, gmat, gmat_t, eps)                      # dropout = identity
        out_refs[1 + li][0] = h

    # AdaptiveAvgPool2d(2) is the identity on the final 2x2 map; the PyTorch
    # NCHW flatten order is folded into the dense-weight layout (row = s*C + c).
    hrow = jnp.concatenate([h[s:s + 1, :] for s in range(4)], axis=1)   # (1, 4*C)
    z = jnp.dot(hrow, wd_ref[...], preferred_element_type=jnp.float32) + bd_ref[...]

    # AddMarginProduct "cos": F.normalize(z) @ F.normalize(W).T   (f32 throughout)
    zn = z / jnp.maximum(jnp.sqrt(jnp.sum(z * z, axis=1, keepdims=True)), 1e-12)
    wc = wc_ref[...]
    wcn = wc / jnp.maximum(jnp.sqrt(jnp.sum(wc * wc, axis=1, keepdims=True)), 1e-12)
    cos = lax.dot_general(zn, wcn, (((1,), (1,)), ((), ())),
                          preferred_element_type=jnp.float32)            # (1, O)
    out_refs[n_layers + 1][0] = z
    out_refs[n_layers + 2][0] = cos


# ----------------------------------------------------------------------------
# Forward wrapper (mode='cos')
# ----------------------------------------------------------------------------
def clas_model_forward(params, data_nchw, label=None, s=30.0, m=0.1,
                       groups=4, eps=1e-10):
    x = jnp.transpose(data_nchw, (0, 2, 3, 1)).astype(jnp.float32)       # NCHW -> NHWC
    N, H, W, Cin = x.shape
    hidden = params["conv0_w"].shape[-1]
    n_layers = len(params["convs_w"])
    L = params["dense_w"].shape[1]
    O = params["cos_w"].shape[0]
    assert n_layers >= 1
    assert H // (2 ** n_layers) == 2 and W // (2 ** n_layers) == 2, \
        "AdaptiveAvgPool2d(2) is an identity only for a final 2x2 map"
    # TODO(synk): general (non-identity) AdaptiveAvgPool2d(2) is not implemented.
    assert params["dense_w"].shape[0] == hidden * 4
    assert hidden % groups == 0

    # --- weight / input plumbing (pure layout, done once in XLA) ---
    x3 = x.reshape(N, H * W, Cin)
    w0 = params["conv0_w"].reshape(9 * Cin, hidden).astype(jnp.bfloat16)
    b0 = params["conv0_b"].reshape(1, hidden).astype(jnp.float32)
    wr = jnp.stack([wi.reshape(9 * hidden, hidden)
                    for wi in params["convs_w"]]).astype(jnp.bfloat16)
    br = jnp.stack([bi.reshape(1, hidden)
                    for bi in params["convs_b"]]).astype(jnp.float32)
    # dense weight (F = hidden*4, L) with F index = c*4 + s  ->  row = s*hidden + c
    wd = params["dense_w"].reshape(hidden, 4, L).transpose(1, 0, 2).reshape(4 * hidden, L)
    bd = params["dense_b"].reshape(1, L)
    wc = params["cos_w"]
    gsz = hidden // groups
    gmat = (jnp.arange(hidden)[:, None] // gsz
            == jnp.arange(groups)[None, :]).astype(jnp.float32)          # (C, G)
    gmat_t = jnp.transpose(gmat)                                          # (G, C)

    def const_spec(shape):
        nd = len(shape)
        return pl.BlockSpec(shape, lambda n, nd=nd: (0,) * nd)

    in_arrays = (x3, w0, b0, wr, br, wd, bd, wc, gmat, gmat_t)
    in_specs = ([pl.BlockSpec((1, H * W, Cin), lambda n: (n, 0, 0))]
                + [const_spec(a.shape) for a in in_arrays[1:]])

    out_shapes = [jax.ShapeDtypeStruct((N, H * W, hidden), jnp.float32)]
    out_specs = [pl.BlockSpec((1, H * W, hidden), lambda n: (n, 0, 0))]
    Hs, Ws = H, W
    for _ in range(n_layers):
        Hs, Ws = Hs // 2, Ws // 2
        out_shapes.append(jax.ShapeDtypeStruct((N, Hs * Ws, hidden), jnp.float32))
        out_specs.append(pl.BlockSpec((1, Hs * Ws, hidden), lambda n: (n, 0, 0)))
    out_shapes += [jax.ShapeDtypeStruct((N, 1, L), jnp.float32),
                   jax.ShapeDtypeStruct((N, 1, O), jnp.float32)]
    out_specs += [pl.BlockSpec((1, 1, L), lambda n: (n, 0, 0)),
                  pl.BlockSpec((1, 1, O), lambda n: (n, 0, 0))]

    outs = pl.pallas_call(
        functools.partial(clas_fused_kernel, H=H, W=W, n_layers=n_layers, eps=eps),
        out_shape=tuple(out_shapes),
        grid=(N,),
        in_specs=in_specs,
        out_specs=tuple(out_specs),
        scratch_shapes=[pltpu.VMEM((H * W, hidden), jnp.float32)],   # pool compaction
        compiler_params=pltpu.CompilerParams(
            dimension_semantics=("parallel",)),
    )(*in_arrays)

    hs = outs[:n_layers + 1]
    z = outs[n_layers + 1][:, 0, :]
    cos = outs[n_layers + 2][:, 0, :]

    # rebuild the hiddens list (NHWC feature maps, then flatten, then dense out)
    hiddens = []
    Hs, Ws = H, W
    hiddens.append(hs[0].reshape(N, Hs, Ws, hidden))
    for li in range(n_layers):
        Hs, Ws = Hs // 2, Ws // 2
        hiddens.append(hs[1 + li].reshape(N, Hs, Ws, hidden))
    gap = hiddens[-1]                                     # 2x2 -> AdaptiveAvgPool2d(2) id
    flat = jnp.transpose(gap, (0, 3, 1, 2)).reshape(N, -1)  # PyTorch NCHW flatten order
    hiddens.append(flat)
    hiddens.append(z)

    if label is None:
        return cos, hiddens
    one_hot = jax.nn.one_hot(label, cos.shape[1], dtype=cos.dtype)
    loss = (one_hot * (cos - m) + (1.0 - one_hot) * cos) * s
    return cos, loss, hiddens


# ----------------------------------------------------------------------------
# Pure-JAX (XLA) reference of the same forward, for a numerical sanity check
# ----------------------------------------------------------------------------
def reference_forward(params, data_nchw, label=None, s=30.0, m=0.1):
    x = jnp.transpose(data_nchw, (0, 2, 3, 1)).astype(jnp.float32)

    def conv(x, w, b):
        xp = jnp.pad(x, ((0, 0), (1, 1), (1, 1), (0, 0)), mode="edge")
        y = lax.conv_general_dilated(xp, w, (1, 1), "VALID",
                                     dimension_numbers=("NHWC", "HWIO", "NHWC"),
                                     precision=lax.Precision.HIGHEST)
        return jnp.maximum(y + b, 0.0)

    def pool(x):
        return lax.reduce_window(x, -jnp.inf, lax.max, (1, 2, 2, 1), (1, 2, 2, 1), "VALID")

    def gn(x, G=4, eps=1e-10):
        n, h, w, c = x.shape
        xg = x.reshape(n, h, w, G, c // G)
        mu = jnp.mean(xg, axis=(1, 2, 4), keepdims=True)
        var = jnp.mean((xg - mu) ** 2, axis=(1, 2, 4), keepdims=True)
        return ((xg - mu) / jnp.sqrt(var + eps)).reshape(n, h, w, c)

    h = conv(x, params["conv0_w"], params["conv0_b"])
    for wi, bi in zip(params["convs_w"], params["convs_b"]):
        h = gn(pool(conv(h, wi, bi)))
    n = x.shape[0]
    flat = jnp.transpose(h, (0, 3, 1, 2)).reshape(n, -1)
    z = jnp.dot(flat, params["dense_w"], precision=lax.Precision.HIGHEST) + params["dense_b"]
    zn = z / jnp.maximum(jnp.sqrt(jnp.sum(z * z, axis=1, keepdims=True)), 1e-12)
    wc = params["cos_w"]
    wcn = wc / jnp.maximum(jnp.sqrt(jnp.sum(wc * wc, axis=1, keepdims=True)), 1e-12)
    cos = jnp.dot(zn, wcn.T, precision=lax.Precision.HIGHEST)
    if label is None:
        return cos, z
    one_hot = jax.nn.one_hot(label, cos.shape[1], dtype=cos.dtype)
    loss = (one_hot * (cos - m) + (1.0 - one_hot) * cos) * s
    return cos, z, loss


# ----------------------------------------------------------------------------
# Deterministic synthetic parameters (shapes follow the module __init__)
# ----------------------------------------------------------------------------
def init_params(key, in_ch, hidden, n_layers, latent, out_features):
    ks = jax.random.split(key, n_layers + 3)

    def xavier(k, shape, fan_in, fan_out):
        limit = (6.0 / (fan_in + fan_out)) ** 0.5
        return jax.random.uniform(k, shape, jnp.float32, -limit, limit)

    return {
        "conv0_w": xavier(ks[0], (3, 3, in_ch, hidden), 9 * in_ch, 9 * hidden),
        "conv0_b": jnp.zeros((hidden,), jnp.float32),
        "convs_w": [xavier(ks[1 + i], (3, 3, hidden, hidden), 9 * hidden, 9 * hidden)
                    for i in range(n_layers)],
        "convs_b": [jnp.zeros((hidden,), jnp.float32) for _ in range(n_layers)],
        "dense_w": xavier(ks[1 + n_layers], (hidden * 4, latent), hidden * 4, latent),
        "dense_b": jnp.zeros((latent,), jnp.float32),
        "cos_w": xavier(ks[2 + n_layers], (out_features, latent), latent, out_features),
    }


if __name__ == "__main__":
    # small shapes: batch=2, in_channels=4, spatial=16x16, hidden=32, latent=3, classes=10
    IN_CH, HIDDEN, N_LAYERS, LATENT, OUT = 4, 32, 3, 3, 10
    N, H, W = 2, 16, 16
    x = jax.random.normal(jax.random.PRNGKey(0), (N, IN_CH, H, W), dtype=jnp.float32)
    params = init_params(jax.random.PRNGKey(1), IN_CH, HIDDEN, N_LAYERS, LATENT, OUT)

    # label=None path: (pred, hiddens)
    fwd = jax.jit(lambda p, d: clas_model_forward(p, d))
    pred, hiddens = fwd(params, x)
    jax.block_until_ready(pred)

    # labeled path: (pred, loss, hiddens)
    label = jnp.array([1, 7], dtype=jnp.int32)
    fwd_l = jax.jit(lambda p, d, y: clas_model_forward(p, d, label=y))
    pred2, loss, _ = fwd_l(params, x, label)
    jax.block_until_ready(loss)

    # sanity check vs. pure-JAX f32 reference (tolerance covers bf16 conv operands)
    cos_ref, z_ref, loss_ref = reference_forward(params, x, label=label)
    assert pred.shape == (N, OUT) and loss.shape == (N, OUT)
    assert bool(jnp.allclose(pred, cos_ref, atol=5e-2, rtol=5e-2))
    assert bool(jnp.allclose(hiddens[-1], z_ref, atol=5e-2, rtol=5e-2))

    print("KERNEL_OK")
</pallas_src>

<mosaic_0001>
module attributes {stable_mosaic.version = 11 : i64} {
  func.func @clas_fused_kernel(%arg0: i32, %arg1: memref<1x256x4xf32, #tpu.memory_space<vmem>>, %arg2: memref<36x32xbf16, #tpu.memory_space<vmem>>, %arg3: memref<1x32xf32, #tpu.memory_space<vmem>>, %arg4: memref<3x288x32xbf16, #tpu.memory_space<vmem>>, %arg5: memref<3x1x32xf32, #tpu.memory_space<vmem>>, %arg6: memref<128x3xf32, #tpu.memory_space<vmem>>, %arg7: memref<1x3xf32, #tpu.memory_space<vmem>>, %arg8: memref<10x3xf32, #tpu.memory_space<vmem>>, %arg9: memref<32x4xf32, #tpu.memory_space<vmem>>, %arg10: memref<4x32xf32, #tpu.memory_space<vmem>>, %arg11: memref<1x256x32xf32, #tpu.memory_space<vmem>>, %arg12: memref<1x64x32xf32, #tpu.memory_space<vmem>>, %arg13: memref<1x16x32xf32, #tpu.memory_space<vmem>>, %arg14: memref<1x4x32xf32, #tpu.memory_space<vmem>>, %arg15: memref<1x1x3xf32, #tpu.memory_space<vmem>>, %arg16: memref<1x1x10xf32, #tpu.memory_space<vmem>>, %arg17: memref<256x32xf32, #tpu.memory_space<vmem>>) attributes {dimension_semantics = [#tpu.dimension_semantics<parallel>], iteration_bounds = array<i64: 2>, scalar_prefetch = 0 : i64, scratch_operands = 1 : i64, tpu.core_type = #tpu.core_type<tc>, window_params = [{transform_indices = @transform_0, window_bounds = array<i64: 1, 256, 4>}, {pipeline_mode = #tpu.pipeline_mode<synchronous>, transform_indices = @transform_1, window_bounds = array<i64: 36, 32>}, {pipeline_mode = #tpu.pipeline_mode<synchronous>, transform_indices = @transform_2, window_bounds = array<i64: 1, 32>}, {pipeline_mode = #tpu.pipeline_mode<synchronous>, transform_indices = @transform_3, window_bounds = array<i64: 3, 288, 32>}, {pipeline_mode = #tpu.pipeline_mode<synchronous>, transform_indices = @transform_4, window_bounds = array<i64: 3, 1, 32>}, {pipeline_mode = #tpu.pipeline_mode<synchronous>, transform_indices = @transform_5, window_bounds = array<i64: 128, 3>}, {pipeline_mode = #tpu.pipeline_mode<synchronous>, transform_indices = @transform_6, window_bounds = array<i64: 1, 3>}, {pipeline_mode = #tpu.pipeline_mode<synchronous>, transform_indices = @transform_7, window_bounds = array<i64: 10, 3>}, {pipeline_mode = #tpu.pipeline_mode<synchronous>, transform_indices = @transform_8, window_bounds = array<i64: 32, 4>}, {pipeline_mode = #tpu.pipeline_mode<synchronous>, transform_indices = @transform_9, window_bounds = array<i64: 4, 32>}, {transform_indices = @transform_10, window_bounds = array<i64: 1, 256, 32>}, {transform_indices = @transform_11, window_bounds = array<i64: 1, 64, 32>}, {transform_indices = @transform_12, window_bounds = array<i64: 1, 16, 32>}, {transform_indices = @transform_13, window_bounds = array<i64: 1, 4, 32>}, {transform_indices = @transform_14, window_bounds = array<i64: 1, 1, 3>}, {transform_indices = @transform_15, window_bounds = array<i64: 1, 1, 10>}]} {
    %c0 = arith.constant 0 : index
    %c0_0 = arith.constant 0 : index
    %0 = vector.load %arg9[%c0, %c0_0] : memref<32x4xf32, #tpu.memory_space<vmem>>, vector<32x4xf32>
    %c0_1 = arith.constant 0 : index
    %c0_2 = arith.constant 0 : index
    %1 = vector.load %arg10[%c0_1, %c0_2] : memref<4x32xf32, #tpu.memory_space<vmem>>, vector<4x32xf32>
    %c0_3 = arith.constant 0 : index
    %c0_4 = arith.constant 0 : index
    %c0_5 = arith.constant 0 : index
    %2 = vector.load %arg1[%c0_3, %c0_4, %c0_5] : memref<1x256x4xf32, #tpu.memory_space<vmem>>, vector<1x256x4xf32>
    %3 = vector.shape_cast %2 : vector<1x256x4xf32> to vector<256x4xf32>
    %c0_6 = arith.constant 0 : index
    %c0_7 = arith.constant 0 : index
    %4 = vector.load %arg2[%c0_6, %c0_7] : memref<36x32xbf16, #tpu.memory_space<vmem>>, vector<36x32xbf16>
    %c0_8 = arith.constant 0 : index
    %c0_9 = arith.constant 0 : index
    %5 = vector.load %arg3[%c0_8, %c0_9] : memref<1x32xf32, #tpu.memory_space<vmem>>, vector<1x32xf32>
    %6 = tpu.iota {dimensions = array<i32: 0>} : vector<256x1xi32>
    %c16_i32 = arith.constant 16 : i32
    %7 = vector.broadcast %c16_i32 : i32 to vector<256x1xi32>
    %8 = arith.cmpi slt, %6, %7 : vector<256x1xi32>
    %c240_i32 = arith.constant 240 : i32
    %9 = vector.broadcast %c240_i32 : i32 to vector<256x1xi32>
    %10 = arith.cmpi sge, %6, %9 : vector<256x1xi32>
    %c16_i32_10 = arith.constant 16 : i32
    %c0_i32 = arith.constant 0 : i32
    %11 = arith.cmpi eq, %c16_i32_10, %c0_i32 : i32
    %c1_i32 = arith.constant 1 : i32
    %12 = arith.select %11, %c1_i32, %c16_i32_10 : i32
    %13 = vector.broadcast %12 : i32 to vector<256x1xi32>
    %14 = arith.remsi %6, %13 : vector<256x1xi32>
    %c0_i32_11 = arith.constant 0 : i32
    %15 = vector.broadcast %c0_i32_11 : i32 to vector<256x1xi32>
    %16 = arith.cmpi ne, %14, %15 : vector<256x1xi32>
    %c0_i32_12 = arith.constant 0 : i32
    %17 = vector.broadcast %c0_i32_12 : i32 to vector<256x1xi32>
    %18 = arith.cmpi slt, %14, %17 : vector<256x1xi32>
    %c0_i32_13 = arith.constant 0 : i32
    %19 = arith.cmpi slt, %12, %c0_i32_13 : i32
    %20 = vector.broadcast %19 : i1 to vector<256x1xi1>
    %21 = vector.broadcast %20 : vector<256x1xi1> to vector<256x1xi1>
    %22 = arith.xori %18, %21 : vector<256x1xi1>
    %23 = arith.andi %22, %16 : vector<256x1xi1>
    %24 = vector.broadcast %12 : i32 to vector<256x1xi32>
    %25 = arith.addi %14, %24 : vector<256x1xi32>
    %26 = arith.select %23, %25, %14 : vector<256x1xi1>, vector<256x1xi32>
    %c0_i32_14 = arith.constant 0 : i32
    %27 = vector.broadcast %c0_i32_14 : i32 to vector<256x1xi32>
    %28 = arith.cmpi eq, %26, %27 : vector<256x1xi32>
    %c16_i32_15 = arith.constant 16 : i32
    %c0_i32_16 = arith.constant 0 : i32
    %29 = arith.cmpi eq, %c16_i32_15, %c0_i32_16 : i32
    %c1_i32_17 = arith.constant 1 : i32
    %30 = arith.select %29, %c1_i32_17, %c16_i32_15 : i32
    %31 = vector.broadcast %30 : i32 to vector<256x1xi32>
    %32 = arith.remsi %6, %31 : vector<256x1xi32>
    %c0_i32_18 = arith.constant 0 : i32
    %33 = vector.broadcast %c0_i32_18 : i32 to vector<256x1xi32>
    %34 = arith.cmpi ne, %32, %33 : vector<256x1xi32>
    %c0_i32_19 = arith.constant 0 : i32
    %35 = vector.broadcast %c0_i32_19 : i32 to vector<256x1xi32>
    %36 = arith.cmpi slt, %32, %35 : vector<256x1xi32>
    %c0_i32_20 = arith.constant 0 : i32
    %37 = arith.cmpi slt, %30, %c0_i32_20 : i32
    %38 = vector.broadcast %37 : i1 to vector<256x1xi1>
    %39 = vector.broadcast %38 : vector<256x1xi1> to vector<256x1xi1>
    %40 = arith.xori %36, %39 : vector<256x1xi1>
    %41 = arith.andi %40, %34 : vector<256x1xi1>
    %42 = vector.broadcast %30 : i32 to vector<256x1xi32>
    %43 = arith.addi %32, %42 : vector<256x1xi32>
    %44 = arith.select %41, %43, %32 : vector<256x1xi1>, vector<256x1xi32>
    %c15_i32 = arith.constant 15 : i32
    %45 = vector.broadcast %c15_i32 : i32 to vector<256x1xi32>
    %46 = arith.cmpi eq, %44, %45 : vector<256x1xi32>
    %47 = vector.extract_strided_slice %3 {offsets = [240, 0], sizes = [16, 4], strides = [1, 1]} : vector<256x4xf32> to vector<16x4xf32>
    %48 = vector.extract_strided_slice %3 {offsets = [0, 0], sizes = [240, 4], strides = [1, 1]} : vector<256x4xf32> to vector<240x4xf32>
    %49 = tpu.concatenate %47, %48 in 0 : vector<16x4xf32>, vector<240x4xf32> -> vector<256x4xf32>
    %50 = vector.shape_cast %8 : vector<256x1xi1> to vector<256x1xi1>
    %51 = vector.broadcast %50 : vector<256x1xi1> to vector<256x4xi1>
    %52 = arith.select %51, %3, %49 : vector<256x4xi1>, vector<256x4xf32>
    %53 = vector.extract_strided_slice %52 {offsets = [255, 0], sizes = [1, 4], strides = [1, 1]} : vector<256x4xf32> to vector<1x4xf32>
    %54 = vector.extract_strided_slice %52 {offsets = [0, 0], sizes = [255, 4], strides = [1, 1]} : vector<256x4xf32> to vector<255x4xf32>
    %55 = tpu.concatenate %53, %54 in 0 : vector<1x4xf32>, vector<255x4xf32> -> vector<256x4xf32>
    %56 = vector.shape_cast %28 : vector<256x1xi1> to vector<256x1xi1>
    %57 = vector.broadcast %56 : vector<256x1xi1> to vector<256x4xi1>
    %58 = arith.select %57, %52, %55 : vector<256x4xi1>, vector<256x4xf32>
    %59 = vector.extract_strided_slice %52 {offsets = [1, 0], sizes = [255, 4], strides = [1, 1]} : vector<256x4xf32> to vector<255x4xf32>
    %60 = vector.extract_strided_slice %52 {offsets = [0, 0], sizes = [1, 4], strides = [1, 1]} : vector<256x4xf32> to vector<1x4xf32>
    %61 = tpu.concatenate %59, %60 in 0 : vector<255x4xf32>, vector<1x4xf32> -> vector<256x4xf32>
    %62 = vector.shape_cast %46 : vector<256x1xi1> to vector<256x1xi1>
    %63 = vector.broadcast %62 : vector<256x1xi1> to vector<256x4xi1>
    %64 = arith.select %63, %52, %61 : vector<256x4xi1>, vector<256x4xf32>
    %65 = vector.extract_strided_slice %3 {offsets = [255, 0], sizes = [1, 4], strides = [1, 1]} : vector<256x4xf32> to vector<1x4xf32>
    %66 = vector.extract_strided_slice %3 {offsets = [0, 0], sizes = [255, 4], strides = [1, 1]} : vector<256x4xf32> to vector<255x4xf32>
    %67 = tpu.concatenate %65, %66 in 0 : vector<1x4xf32>, vector<255x4xf32> -> vector<256x4xf32>
    %68 = vector.shape_cast %28 : vector<256x1xi1> to vector<256x1xi1>
    %69 = vector.broadcast %68 : vector<256x1xi1> to vector<256x4xi1>
    %70 = arith.select %69, %3, %67 : vector<256x4xi1>, vector<256x4xf32>
    %71 = vector.extract_strided_slice %3 {offsets = [1, 0], sizes = [255, 4], strides = [1, 1]} : vector<256x4xf32> to vector<255x4xf32>
    %72 = vector.extract_strided_slice %3 {offsets = [0, 0], sizes = [1, 4], strides = [1, 1]} : vector<256x4xf32> to vector<1x4xf32>
    %73 = tpu.concatenate %71, %72 in 0 : vector<255x4xf32>, vector<1x4xf32> -> vector<256x4xf32>
    %74 = vector.shape_cast %46 : vector<256x1xi1> to vector<256x1xi1>
    %75 = vector.broadcast %74 : vector<256x1xi1> to vector<256x4xi1>
    %76 = arith.select %75, %3, %73 : vector<256x4xi1>, vector<256x4xf32>
    %77 = vector.extract_strided_slice %3 {offsets = [16, 0], sizes = [240, 4], strides = [1, 1]} : vector<256x4xf32> to vector<240x4xf32>
    %78 = vector.extract_strided_slice %3 {offsets = [0, 0], sizes = [16, 4], strides = [1, 1]} : vector<256x4xf32> to vector<16x4xf32>
    %79 = tpu.concatenate %77, %78 in 0 : vector<240x4xf32>, vector<16x4xf32> -> vector<256x4xf32>
    %80 = vector.shape_cast %10 : vector<256x1xi1> to vector<256x1xi1>
    %81 = vector.broadcast %80 : vector<256x1xi1> to vector<256x4xi1>
    %82 = arith.select %81, %3, %79 : vector<256x4xi1>, vector<256x4xf32>
    %83 = vector.extract_strided_slice %82 {offsets = [255, 0], sizes = [1, 4], strides = [1, 1]} : vector<256x4xf32> to vector<1x4xf32>
    %84 = vector.extract_strided_slice %82 {offsets = [0, 0], sizes = [255, 4], strides = [1, 1]} : vector<256x4xf32> to vector<255x4xf32>
    %85 = tpu.concatenate %83, %84 in 0 : vector<1x4xf32>, vector<255x4xf32> -> vector<256x4xf32>
    %86 = vector.shape_cast %28 : vector<256x1xi1> to vector<256x1xi1>
    %87 = vector.broadcast %86 : vector<256x1xi1> to vector<256x4xi1>
    %88 = arith.select %87, %82, %85 : vector<256x4xi1>, vector<256x4xf32>
    %89 = vector.extract_strided_slice %82 {offsets = [1, 0], sizes = [255, 4], strides = [1, 1]} : vector<256x4xf32> to vector<255x4xf32>
    %90 = vector.extract_strided_slice %82 {offsets = [0, 0], sizes = [1, 4], strides = [1, 1]} : vector<256x4xf32> to vector<1x4xf32>
    %91 = tpu.concatenate %89, %90 in 0 : vector<255x4xf32>, vector<1x4xf32> -> vector<256x4xf32>
    %92 = vector.shape_cast %46 : vector<256x1xi1> to vector<256x1xi1>
    %93 = vector.broadcast %92 : vector<256x1xi1> to vector<256x4xi1>
    %94 = arith.select %93, %82, %91 : vector<256x4xi1>, vector<256x4xf32>
    %95 = tpu.concatenate %58, %52, %64, %70, %3, %76, %88, %82, %94 in 1 : vector<256x4xf32>, vector<256x4xf32>, vector<256x4xf32>, vector<256x4xf32>, vector<256x4xf32>, vector<256x4xf32>, vector<256x4xf32>, vector<256x4xf32>, vector<256x4xf32> -> vector<256x36xf32>
    %96 = arith.truncf %95 : vector<256x36xf32> to vector<256x36xbf16>
    %cst = arith.constant dense<0.000000e+00> : vector<256x32xf32>
    %97 = tpu.matmul %96, %4, %cst {dimension_numbers = #tpu.dot_dimension_numbers<[1], [0], [0], [1], [0, 0, 1, 1], [], []>} : vector<256x36xbf16>, vector<36x32xbf16>, vector<256x32xf32> -> vector<256x32xf32>
    %98 = vector.broadcast %5 : vector<1x32xf32> to vector<256x32xf32>
    %99 = arith.addf %97, %98 : vector<256x32xf32>
    %cst_21 = arith.constant 0.000000e+00 : f32
    %100 = vector.broadcast %cst_21 : f32 to vector<256x32xf32>
    %101 = arith.maximumf %99, %100 : vector<256x32xf32>
    %c0_22 = arith.constant 0 : index
    %c0_23 = arith.constant 0 : index
    %c0_24 = arith.constant 0 : index
    %102 = vector.load %arg11[%c0_22, %c0_23, %c0_24] : memref<1x256x32xf32, #tpu.memory_space<vmem>>, vector<1x256x32xf32>
    %103 = vector.shape_cast %102 : vector<1x256x32xf32> to vector<256x32xf32>
    %104 = vector.shape_cast %101 : vector<256x32xf32> to vector<1x256x32xf32>
    tpu.vector_store %arg11[%c0_22, %c0_23, %c0_24], %104 {strides = array<i32>} : memref<1x256x32xf32, #tpu.memory_space<vmem>>, vector<1x256x32xf32>,
    %c0_25 = arith.constant 0 : index
    %c0_26 = arith.constant 0 : index
    %c0_27 = arith.constant 0 : index
    %105 = vector.load %arg4[%c0_25, %c0_26, %c0_27] : memref<3x288x32xbf16, #tpu.memory_space<vmem>>, vector<1x288x32xbf16>
    %106 = vector.shape_cast %105 : vector<1x288x32xbf16> to vector<288x32xbf16>
    %c0_28 = arith.constant 0 : index
    %c0_29 = arith.constant 0 : index
    %c0_30 = arith.constant 0 : index
    %107 = vector.load %arg5[%c0_28, %c0_29, %c0_30] : memref<3x1x32xf32, #tpu.memory_space<vmem>>, vector<1x1x32xf32>
    %108 = vector.shape_cast %107 : vector<1x1x32xf32> to vector<1x32xf32>
    %109 = vector.extract_strided_slice %101 {offsets = [240, 0], sizes = [16, 32], strides = [1, 1]} : vector<256x32xf32> to vector<16x32xf32>
    %110 = vector.extract_strided_slice %101 {offsets = [0, 0], sizes = [240, 32], strides = [1, 1]} : vector<256x32xf32> to vector<240x32xf32>
    %111 = tpu.concatenate %109, %110 in 0 : vector<16x32xf32>, vector<240x32xf32> -> vector<256x32xf32>
    %112 = vector.shape_cast %8 : vector<256x1xi1> to vector<256x1xi1>
    %113 = vector.broadcast %112 : vector<256x1xi1> to vector<256x32xi1>
    %114 = arith.select %113, %101, %111 : vector<256x32xi1>, vector<256x32xf32>
    %115 = vector.extract_strided_slice %114 {offsets = [255, 0], sizes = [1, 32], strides = [1, 1]} : vector<256x32xf32> to vector<1x32xf32>
    %116 = vector.extract_strided_slice %114 {offsets = [0, 0], sizes = [255, 32], strides = [1, 1]} : vector<256x32xf32> to vector<255x32xf32>
    %117 = tpu.concatenate %115, %116 in 0 : vector<1x32xf32>, vector<255x32xf32> -> vector<256x32xf32>
    %118 = vector.shape_cast %28 : vector<256x1xi1> to vector<256x1xi1>
    %119 = vector.broadcast %118 : vector<256x1xi1> to vector<256x32xi1>
    %120 = arith.select %119, %114, %117 : vector<256x32xi1>, vector<256x32xf32>
    %121 = vector.extract_strided_slice %114 {offsets = [1, 0], sizes = [255, 32], strides = [1, 1]} : vector<256x32xf32> to vector<255x32xf32>
    %122 = vector.extract_strided_slice %114 {offsets = [0, 0], sizes = [1, 32], strides = [1, 1]} : vector<256x32xf32> to vector<1x32xf32>
    %123 = tpu.concatenate %121, %122 in 0 : vector<255x32xf32>, vector<1x32xf32> -> vector<256x32xf32>
    %124 = vector.shape_cast %46 : vector<256x1xi1> to vector<256x1xi1>
    %125 = vector.broadcast %124 : vector<256x1xi1> to vector<256x32xi1>
    %126 = arith.select %125, %114, %123 : vector<256x32xi1>, vector<256x32xf32>
    %127 = vector.extract_strided_slice %101 {offsets = [255, 0], sizes = [1, 32], strides = [1, 1]} : vector<256x32xf32> to vector<1x32xf32>
    %128 = vector.extract_strided_slice %101 {offsets = [0, 0], sizes = [255, 32], strides = [1, 1]} : vector<256x32xf32> to vector<255x32xf32>
    %129 = tpu.concatenate %127, %128 in 0 : vector<1x32xf32>, vector<255x32xf32> -> vector<256x32xf32>
    %130 = vector.shape_cast %28 : vector<256x1xi1> to vector<256x1xi1>
    %131 = vector.broadcast %130 : vector<256x1xi1> to vector<256x32xi1>
    %132 = arith.select %131, %101, %129 : vector<256x32xi1>, vector<256x32xf32>
    %133 = vector.extract_strided_slice %101 {offsets = [1, 0], sizes = [255, 32], strides = [1, 1]} : vector<256x32xf32> to vector<255x32xf32>
    %134 = vector.extract_strided_slice %101 {offsets = [0, 0], sizes = [1, 32], strides = [1, 1]} : vector<256x32xf32> to vector<1x32xf32>
    %135 = tpu.concatenate %133, %134 in 0 : vector<255x32xf32>, vector<1x32xf32> -> vector<256x32xf32>
    %136 = vector.shape_cast %46 : vector<256x1xi1> to vector<256x1xi1>
    %137 = vector.broadcast %136 : vector<256x1xi1> to vector<256x32xi1>
    %138 = arith.select %137, %101, %135 : vector<256x32xi1>, vector<256x32xf32>
    %139 = vector.extract_strided_slice %101 {offsets = [16, 0], sizes = [240, 32], strides = [1, 1]} : vector<256x32xf32> to vector<240x32xf32>
    %140 = vector.extract_strided_slice %101 {offsets = [0, 0], sizes = [16, 32], strides = [1, 1]} : vector<256x32xf32> to vector<16x32xf32>
    %141 = tpu.concatenate %139, %140 in 0 : vector<240x32xf32>, vector<16x32xf32> -> vector<256x32xf32>
    %142 = vector.shape_cast %10 : vector<256x1xi1> to vector<256x1xi1>
    %143 = vector.broadcast %142 : vector<256x1xi1> to vector<256x32xi1>
    %144 = arith.select %143, %101, %141 : vector<256x32xi1>, vector<256x32xf32>
    %145 = vector.extract_strided_slice %144 {offsets = [255, 0], sizes = [1, 32], strides = [1, 1]} : vector<256x32xf32> to vector<1x32xf32>
    %146 = vector.extract_strided_slice %144 {offsets = [0, 0], sizes = [255, 32], strides = [1, 1]} : vector<256x32xf32> to vector<255x32xf32>
    %147 = tpu.concatenate %145, %146 in 0 : vector<1x32xf32>, vector<255x32xf32> -> vector<256x32xf32>
    %148 = vector.shape_cast %28 : vector<256x1xi1> to vector<256x1xi1>
    %149 = vector.broadcast %148 : vector<256x1xi1> to vector<256x32xi1>
    %150 = arith.select %149, %144, %147 : vector<256x32xi1>, vector<256x32xf32>
    %151 = vector.extract_strided_slice %144 {offsets = [1, 0], sizes = [255, 32], strides = [1, 1]} : vector<256x32xf32> to vector<255x32xf32>
    %152 = vector.extract_strided_slice %144 {offsets = [0, 0], sizes = [1, 32], strides = [1, 1]} : vector<256x32xf32> to vector<1x32xf32>
    %153 = tpu.concatenate %151, %152 in 0 : vector<255x32xf32>, vector<1x32xf32> -> vector<256x32xf32>
    %154 = vector.shape_cast %46 : vector<256x1xi1> to vector<256x1xi1>
    %155 = vector.broadcast %154 : vector<256x1xi1> to vector<256x32xi1>
    %156 = arith.select %155, %144, %153 : vector<256x32xi1>, vector<256x32xf32>
    %157 = tpu.concatenate %120, %114, %126, %132, %101, %138, %150, %144, %156 in 1 : vector<256x32xf32>, vector<256x32xf32>, vector<256x32xf32>, vector<256x32xf32>, vector<256x32xf32>, vector<256x32xf32>, vector<256x32xf32>, vector<256x32xf32>, vector<256x32xf32> -> vector<256x288xf32>
    %158 = arith.truncf %157 : vector<256x288xf32> to vector<256x288xbf16>
    %cst_31 = arith.constant dense<0.000000e+00> : vector<256x32xf32>
    %159 = tpu.matmul %158, %106, %cst_31 {dimension_numbers = #tpu.dot_dimension_numbers<[1], [0], [0], [1], [0, 0, 1, 1], [], []>} : vector<256x288xbf16>, vector<288x32xbf16>, vector<256x32xf32> -> vector<256x32xf32>
    %160 = vector.broadcast %108 : vector<1x32xf32> to vector<256x32xf32>
    %161 = arith.addf %159, %160 : vector<256x32xf32>
    %cst_32 = arith.constant 0.000000e+00 : f32
    %162 = vector.broadcast %cst_32 : f32 to vector<256x32xf32>
    %163 = arith.maximumf %161, %162 : vector<256x32xf32>
    %164 = vector.extract_strided_slice %163 {offsets = [1, 0], sizes = [255, 32], strides = [1, 1]} : vector<256x32xf32> to vector<255x32xf32>
    %165 = vector.extract_strided_slice %163 {offsets = [0, 0], sizes = [1, 32], strides = [1, 1]} : vector<256x32xf32> to vector<1x32xf32>
    %166 = tpu.concatenate %164, %165 in 0 : vector<255x32xf32>, vector<1x32xf32> -> vector<256x32xf32>
    %167 = arith.maximumf %163, %166 : vector<256x32xf32>
    %168 = vector.extract_strided_slice %167 {offsets = [16, 0], sizes = [240, 32], strides = [1, 1]} : vector<256x32xf32> to vector<240x32xf32>
    %169 = vector.extract_strided_slice %167 {offsets = [0, 0], sizes = [16, 32], strides = [1, 1]} : vector<256x32xf32> to vector<16x32xf32>
    %170 = tpu.concatenate %168, %169 in 0 : vector<240x32xf32>, vector<16x32xf32> -> vector<256x32xf32>
    %171 = arith.maximumf %167, %170 : vector<256x32xf32>
    %c0_33 = arith.constant 0 : index
    %c0_34 = arith.constant 0 : index
    %172 = vector.load %arg17[%c0_33, %c0_34] : memref<256x32xf32, #tpu.memory_space<vmem>>, vector<256x32xf32>
    tpu.vector_store %arg17[%c0_33, %c0_34], %171 {strides = array<i32>} : memref<256x32xf32, #tpu.memory_space<vmem>>, vector<256x32xf32>,
    %c0_35 = arith.constant 0 : index
    %c0_36 = arith.constant 0 : index
    %173 = tpu.strided_load %arg17[%c0_35, %c0_36] {strides = array<i32: 2, 1>} : memref<256x32xf32, #tpu.memory_space<vmem>>, vector<8x32xf32>
    %c32 = arith.constant 32 : index
    %c0_37 = arith.constant 0 : index
    %174 = tpu.strided_load %arg17[%c32, %c0_37] {strides = array<i32: 2, 1>} : memref<256x32xf32, #tpu.memory_space<vmem>>, vector<8x32xf32>
    %c64 = arith.constant 64 : index
    %c0_38 = arith.constant 0 : index
    %175 = tpu.strided_load %arg17[%c64, %c0_38] {strides = array<i32: 2, 1>} : memref<256x32xf32, #tpu.memory_space<vmem>>, vector<8x32xf32>
    %c96 = arith.constant 96 : index
    %c0_39 = arith.constant 0 : index
    %176 = tpu.strided_load %arg17[%c96, %c0_39] {strides = array<i32: 2, 1>} : memref<256x32xf32, #tpu.memory_space<vmem>>, vector<8x32xf32>
    %c128 = arith.constant 128 : index
    %c0_40 = arith.constant 0 : index
    %177 = tpu.strided_load %arg17[%c128, %c0_40] {strides = array<i32: 2, 1>} : memref<256x32xf32, #tpu.memory_space<vmem>>, vector<8x32xf32>
    %c160 = arith.constant 160 : index
    %c0_41 = arith.constant 0 : index
    %178 = tpu.strided_load %arg17[%c160, %c0_41] {strides = array<i32: 2, 1>} : memref<256x32xf32, #tpu.memory_space<vmem>>, vector<8x32xf32>
    %c192 = arith.constant 192 : index
    %c0_42 = arith.constant 0 : index
    %179 = tpu.strided_load %arg17[%c192, %c0_42] {strides = array<i32: 2, 1>} : memref<256x32xf32, #tpu.memory_space<vmem>>, vector<8x32xf32>
    %c224 = arith.constant 224 : index
    %c0_43 = arith.constant 0 : index
    %180 = tpu.strided_load %arg17[%c224, %c0_43] {strides = array<i32: 2, 1>} : memref<256x32xf32, #tpu.memory_space<vmem>>, vector<8x32xf32>
    %181 = tpu.concatenate %173, %174, %175, %176, %177, %178, %179, %180 in 0 : vector<8x32xf32>, vector<8x32xf32>, vector<8x32xf32>, vector<8x32xf32>, vector<8x32xf32>, vector<8x32xf32>, vector<8x32xf32>, vector<8x32xf32> -> vector<64x32xf32>
    %cst_44 = arith.constant dense<0.000000e+00> : vector<32xf32>
    %182 = vector.multi_reduction <add>, %181, %cst_44 [0] : vector<64x32xf32> to vector<32xf32>
    %183 = vector.shape_cast %182 : vector<32xf32> to vector<1x32xf32>
    %cst_45 = arith.constant dense<0.000000e+00> : vector<1x4xf32>
    %184 = tpu.matmul %183, %0, %cst_45 {dimension_numbers = #tpu.dot_dimension_numbers<[1], [0], [0], [1], [0, 0, 1, 1], [], []>} : vector<1x32xf32>, vector<32x4xf32>, vector<1x4xf32> -> vector<1x4xf32>
    %cst_46 = arith.constant 5.120000e+02 : f32
    %185 = vector.broadcast %cst_46 : f32 to vector<1x4xf32>
    %186 = arith.divf %184, %185 : vector<1x4xf32>
    %cst_47 = arith.constant dense<0.000000e+00> : vector<1x32xf32>
    %187 = tpu.matmul %186, %1, %cst_47 {dimension_numbers = #tpu.dot_dimension_numbers<[1], [0], [0], [1], [0, 0, 1, 1], [], []>} : vector<1x4xf32>, vector<4x32xf32>, vector<1x32xf32> -> vector<1x32xf32>
    %188 = vector.broadcast %187 : vector<1x32xf32> to vector<64x32xf32>
    %189 = arith.subf %181, %188 : vector<64x32xf32>
    %190 = arith.mulf %189, %189 : vector<64x32xf32>
    %cst_48 = arith.constant dense<0.000000e+00> : vector<32xf32>
    %191 = vector.multi_reduction <add>, %190, %cst_48 [0] : vector<64x32xf32> to vector<32xf32>
    %192 = vector.shape_cast %191 : vector<32xf32> to vector<1x32xf32>
    %cst_49 = arith.constant dense<0.000000e+00> : vector<1x4xf32>
    %193 = tpu.matmul %192, %0, %cst_49 {dimension_numbers = #tpu.dot_dimension_numbers<[1], [0], [0], [1], [0, 0, 1, 1], [], []>} : vector<1x32xf32>, vector<32x4xf32>, vector<1x4xf32> -> vector<1x4xf32>
    %cst_50 = arith.constant 5.120000e+02 : f32
    %194 = vector.broadcast %cst_50 : f32 to vector<1x4xf32>
    %195 = arith.divf %193, %194 : vector<1x4xf32>
    %cst_51 = arith.constant 1.000000e-10 : f32
    %196 = vector.broadcast %cst_51 : f32 to vector<1x4xf32>
    %197 = arith.addf %195, %196 : vector<1x4xf32>
    %198 = math.rsqrt %197 : vector<1x4xf32>
    %cst_52 = arith.constant dense<0.000000e+00> : vector<1x32xf32>
    %199 = tpu.matmul %198, %1, %cst_52 {dimension_numbers = #tpu.dot_dimension_numbers<[1], [0], [0], [1], [0, 0, 1, 1], [], []>} : vector<1x4xf32>, vector<4x32xf32>, vector<1x32xf32> -> vector<1x32xf32>
    %200 = vector.broadcast %199 : vector<1x32xf32> to vector<64x32xf32>
    %201 = arith.mulf %189, %200 : vector<64x32xf32>
    %c0_53 = arith.constant 0 : index
    %c0_54 = arith.constant 0 : index
    %c0_55 = arith.constant 0 : index
    %202 = vector.load %arg12[%c0_53, %c0_54, %c0_55] : memref<1x64x32xf32, #tpu.memory_space<vmem>>, vector<1x64x32xf32>
    %203 = vector.shape_cast %202 : vector<1x64x32xf32> to vector<64x32xf32>
    %204 = vector.shape_cast %201 : vector<64x32xf32> to vector<1x64x32xf32>
    tpu.vector_store %arg12[%c0_53, %c0_54, %c0_55], %204 {strides = array<i32>} : memref<1x64x32xf32, #tpu.memory_space<vmem>>, vector<1x64x32xf32>,
    %c1 = arith.constant 1 : index
    %c0_56 = arith.constant 0 : index
    %c0_57 = arith.constant 0 : index
    %205 = vector.load %arg4[%c1, %c0_56, %c0_57] : memref<3x288x32xbf16, #tpu.memory_space<vmem>>, vector<1x288x32xbf16>
    %206 = vector.shape_cast %205 : vector<1x288x32xbf16> to vector<288x32xbf16>
    %c1_58 = arith.constant 1 : index
    %c0_59 = arith.constant 0 : index
    %c0_60 = arith.constant 0 : index
    %207 = vector.load %arg5[%c1_58, %c0_59, %c0_60] : memref<3x1x32xf32, #tpu.memory_space<vmem>>, vector<1x1x32xf32>
    %208 = vector.shape_cast %207 : vector<1x1x32xf32> to vector<1x32xf32>
    %209 = tpu.iota {dimensions = array<i32: 0>} : vector<64x1xi32>
    %c8_i32 = arith.constant 8 : i32
    %210 = vector.broadcast %c8_i32 : i32 to vector<64x1xi32>
    %211 = arith.cmpi slt, %209, %210 : vector<64x1xi32>
    %c56_i32 = arith.constant 56 : i32
    %212 = vector.broadcast %c56_i32 : i32 to vector<64x1xi32>
    %213 = arith.cmpi sge, %209, %212 : vector<64x1xi32>
    %c8_i32_61 = arith.constant 8 : i32
    %c0_i32_62 = arith.constant 0 : i32
    %214 = arith.cmpi eq, %c8_i32_61, %c0_i32_62 : i32
    %c1_i32_63 = arith.constant 1 : i32
    %215 = arith.select %214, %c1_i32_63, %c8_i32_61 : i32
    %216 = vector.broadcast %215 : i32 to vector<64x1xi32>
    %217 = arith.remsi %209, %216 : vector<64x1xi32>
    %c0_i32_64 = arith.constant 0 : i32
    %218 = vector.broadcast %c0_i32_64 : i32 to vector<64x1xi32>
    %219 = arith.cmpi ne, %217, %218 : vector<64x1xi32>
    %c0_i32_65 = arith.constant 0 : i32
    %220 = vector.broadcast %c0_i32_65 : i32 to vector<64x1xi32>
    %221 = arith.cmpi slt, %217, %220 : vector<64x1xi32>
    %c0_i32_66 = arith.constant 0 : i32
    %222 = arith.cmpi slt, %215, %c0_i32_66 : i32
    %223 = vector.broadcast %222 : i1 to vector<64x1xi1>
    %224 = vector.broadcast %223 : vector<64x1xi1> to vector<64x1xi1>
    %225 = arith.xori %221, %224 : vector<64x1xi1>
    %226 = arith.andi %225, %219 : vector<64x1xi1>
    %227 = vector.broadcast %215 : i32 to vector<64x1xi32>
    %228 = arith.addi %217, %227 : vector<64x1xi32>
    %229 = arith.select %226, %228, %217 : vector<64x1xi1>, vector<64x1xi32>
    %c0_i32_67 = arith.constant 0 : i32
    %230 = vector.broadcast %c0_i32_67 : i32 to vector<64x1xi32>
    %231 = arith.cmpi eq, %229, %230 : vector<64x1xi32>
    %c8_i32_68 = arith.constant 8 : i32
    %c0_i32_69 = arith.constant 0 : i32
    %232 = arith.cmpi eq, %c8_i32_68, %c0_i32_69 : i32
    %c1_i32_70 = arith.constant 1 : i32
    %233 = arith.select %232, %c1_i32_70, %c8_i32_68 : i32
    %234 = vector.broadcast %233 : i32 to vector<64x1xi32>
    %235 = arith.remsi %209, %234 : vector<64x1xi32>
    %c0_i32_71 = arith.constant 0 : i32
    %236 = vector.broadcast %c0_i32_71 : i32 to vector<64x1xi32>
    %237 = arith.cmpi ne, %235, %236 : vector<64x1xi32>
    %c0_i32_72 = arith.constant 0 : i32
    %238 = vector.broadcast %c0_i32_72 : i32 to vector<64x1xi32>
    %239 = arith.cmpi slt, %235, %238 : vector<64x1xi32>
    %c0_i32_73 = arith.constant 0 : i32
    %240 = arith.cmpi slt, %233, %c0_i32_73 : i32
    %241 = vector.broadcast %240 : i1 to vector<64x1xi1>
    %242 = vector.broadcast %241 : vector<64x1xi1> to vector<64x1xi1>
    %243 = arith.xori %239, %242 : vector<64x1xi1>
    %244 = arith.andi %243, %237 : vector<64x1xi1>
    %245 = vector.broadcast %233 : i32 to vector<64x1xi32>
    %246 = arith.addi %235, %245 : vector<64x1xi32>
    %247 = arith.select %244, %246, %235 : vector<64x1xi1>, vector<64x1xi32>
    %c7_i32 = arith.constant 7 : i32
    %248 = vector.broadcast %c7_i32 : i32 to vector<64x1xi32>
    %249 = arith.cmpi eq, %247, %248 : vector<64x1xi32>
    %250 = vector.extract_strided_slice %201 {offsets = [56, 0], sizes = [8, 32], strides = [1, 1]} : vector<64x32xf32> to vector<8x32xf32>
    %251 = vector.extract_strided_slice %201 {offsets = [0, 0], sizes = [56, 32], strides = [1, 1]} : vector<64x32xf32> to vector<56x32xf32>
    %252 = tpu.concatenate %250, %251 in 0 : vector<8x32xf32>, vector<56x32xf32> -> vector<64x32xf32>
    %253 = vector.shape_cast %211 : vector<64x1xi1> to vector<64x1xi1>
    %254 = vector.broadcast %253 : vector<64x1xi1> to vector<64x32xi1>
    %255 = arith.select %254, %201, %252 : vector<64x32xi1>, vector<64x32xf32>
    %256 = vector.extract_strided_slice %255 {offsets = [63, 0], sizes = [1, 32], strides = [1, 1]} : vector<64x32xf32> to vector<1x32xf32>
    %257 = vector.extract_strided_slice %255 {offsets = [0, 0], sizes = [63, 32], strides = [1, 1]} : vector<64x32xf32> to vector<63x32xf32>
    %258 = tpu.concatenate %256, %257 in 0 : vector<1x32xf32>, vector<63x32xf32> -> vector<64x32xf32>
    %259 = vector.shape_cast %231 : vector<64x1xi1> to vector<64x1xi1>
    %260 = vector.broadcast %259 : vector<64x1xi1> to vector<64x32xi1>
    %261 = arith.select %260, %255, %258 : vector<64x32xi1>, vector<64x32xf32>
    %262 = vector.extract_strided_slice %255 {offsets = [1, 0], sizes = [63, 32], strides = [1, 1]} : vector<64x32xf32> to vector<63x32xf32>
    %263 = vector.extract_strided_slice %255 {offsets = [0, 0], sizes = [1, 32], strides = [1, 1]} : vector<64x32xf32> to vector<1x32xf32>
    %264 = tpu.concatenate %262, %263 in 0 : vector<63x32xf32>, vector<1x32xf32> -> vector<64x32xf32>
    %265 = vector.shape_cast %249 : vector<64x1xi1> to vector<64x1xi1>
    %266 = vector.broadcast %265 : vector<64x1xi1> to vector<64x32xi1>
    %267 = arith.select %266, %255, %264 : vector<64x32xi1>, vector<64x32xf32>
    %268 = vector.extract_strided_slice %201 {offsets = [63, 0], sizes = [1, 32], strides = [1, 1]} : vector<64x32xf32> to vector<1x32xf32>
    %269 = vector.extract_strided_slice %201 {offsets = [0, 0], sizes = [63, 32], strides = [1, 1]} : vector<64x32xf32> to vector<63x32xf32>
    %270 = tpu.concatenate %268, %269 in 0 : vector<1x32xf32>, vector<63x32xf32> -> vector<64x32xf32>
    %271 = vector.shape_cast %231 : vector<64x1xi1> to vector<64x1xi1>
    %272 = vector.broadcast %271 : vector<64x1xi1> to vector<64x32xi1>
    %273 = arith.select %272, %201, %270 : vector<64x32xi1>, vector<64x32xf32>
    %274 = vector.extract_strided_slice %201 {offsets = [1, 0], sizes = [63, 32], strides = [1, 1]} : vector<64x32xf32> to vector<63x32xf32>
    %275 = vector.extract_strided_slice %201 {offsets = [0, 0], sizes = [1, 32], strides = [1, 1]} : vector<64x32xf32> to vector<1x32xf32>
    %276 = tpu.concatenate %274, %275 in 0 : vector<63x32xf32>, vector<1x32xf32> -> vector<64x32xf32>
    %277 = vector.shape_cast %249 : vector<64x1xi1> to vector<64x1xi1>
    %278 = vector.broadcast %277 : vector<64x1xi1> to vector<64x32xi1>
    %279 = arith.select %278, %201, %276 : vector<64x32xi1>, vector<64x32xf32>
    %280 = vector.extract_strided_slice %201 {offsets = [8, 0], sizes = [56, 32], strides = [1, 1]} : vector<64x32xf32> to vector<56x32xf32>
    %281 = vector.extract_strided_slice %201 {offsets = [0, 0], sizes = [8, 32], strides = [1, 1]} : vector<64x32xf32> to vector<8x32xf32>
    %282 = tpu.concatenate %280, %281 in 0 : vector<56x32xf32>, vector<8x32xf32> -> vector<64x32xf32>
    %283 = vector.shape_cast %213 : vector<64x1xi1> to vector<64x1xi1>
    %284 = vector.broadcast %283 : vector<64x1xi1> to vector<64x32xi1>
    %285 = arith.select %284, %201, %282 : vector<64x32xi1>, vector<64x32xf32>
    %286 = vector.extract_strided_slice %285 {offsets = [63, 0], sizes = [1, 32], strides = [1, 1]} : vector<64x32xf32> to vector<1x32xf32>
    %287 = vector.extract_strided_slice %285 {offsets = [0, 0], sizes = [63, 32], strides = [1, 1]} : vector<64x32xf32> to vector<63x32xf32>
    %288 = tpu.concatenate %286, %287 in 0 : vector<1x32xf32>, vector<63x32xf32> -> vector<64x32xf32>
    %289 = vector.shape_cast %231 : vector<64x1xi1> to vector<64x1xi1>
    %290 = vector.broadcast %289 : vector<64x1xi1> to vector<64x32xi1>
    %291 = arith.select %290, %285, %288 : vector<64x32xi1>, vector<64x32xf32>
    %292 = vector.extract_strided_slice %285 {offsets = [1, 0], sizes = [63, 32], strides = [1, 1]} : vector<64x32xf32> to vector<63x32xf32>
    %293 = vector.extract_strided_slice %285 {offsets = [0, 0], sizes = [1, 32], strides = [1, 1]} : vector<64x32xf32> to vector<1x32xf32>
    %294 = tpu.concatenate %292, %293 in 0 : vector<63x32xf32>, vector<1x32xf32> -> vector<64x32xf32>
    %295 = vector.shape_cast %249 : vector<64x1xi1> to vector<64x1xi1>
    %296 = vector.broadcast %295 : vector<64x1xi1> to vector<64x32xi1>
    %297 = arith.select %296, %285, %294 : vector<64x32xi1>, vector<64x32xf32>
    %298 = tpu.concatenate %261, %255, %267, %273, %201, %279, %291, %285, %297 in 1 : vector<64x32xf32>, vector<64x32xf32>, vector<64x32xf32>, vector<64x32xf32>, vector<64x32xf32>, vector<64x32xf32>, vector<64x32xf32>, vector<64x32xf32>, vector<64x32xf32> -> vector<64x288xf32>
    %299 = arith.truncf %298 : vector<64x288xf32> to vector<64x288xbf16>
    %cst_74 = arith.constant dense<0.000000e+00> : vector<64x32xf32>
    %300 = tpu.matmul %299, %206, %cst_74 {dimension_numbers = #tpu.dot_dimension_numbers<[1], [0], [0], [1], [0, 0, 1, 1], [], []>} : vector<64x288xbf16>, vector<288x32xbf16>, vector<64x32xf32> -> vector<64x32xf32>
    %301 = vector.broadcast %208 : vector<1x32xf32> to vector<64x32xf32>
    %302 = arith.addf %300, %301 : vector<64x32xf32>
    %cst_75 = arith.constant 0.000000e+00 : f32
    %303 = vector.broadcast %cst_75 : f32 to vector<64x32xf32>
    %304 = arith.maximumf %302, %303 : vector<64x32xf32>
    %305 = vector.extract_strided_slice %304 {offsets = [1, 0], sizes = [63, 32], strides = [1, 1]} : vector<64x32xf32> to vector<63x32xf32>
    %306 = vector.extract_strided_slice %304 {offsets = [0, 0], sizes = [1, 32], strides = [1, 1]} : vector<64x32xf32> to vector<1x32xf32>
    %307 = tpu.concatenate %305, %306 in 0 : vector<63x32xf32>, vector<1x32xf32> -> vector<64x32xf32>
    %308 = arith.maximumf %304, %307 : vector<64x32xf32>
    %309 = vector.extract_strided_slice %308 {offsets = [8, 0], sizes = [56, 32], strides = [1, 1]} : vector<64x32xf32> to vector<56x32xf32>
    %310 = vector.extract_strided_slice %308 {offsets = [0, 0], sizes = [8, 32], strides = [1, 1]} : vector<64x32xf32> to vector<8x32xf32>
    %311 = tpu.concatenate %309, %310 in 0 : vector<56x32xf32>, vector<8x32xf32> -> vector<64x32xf32>
    %312 = arith.maximumf %308, %311 : vector<64x32xf32>
    %c0_76 = arith.constant 0 : index
    %c0_77 = arith.constant 0 : index
    %313 = vector.load %arg17[%c0_76, %c0_77] : memref<256x32xf32, #tpu.memory_space<vmem>>, vector<64x32xf32>
    tpu.vector_store %arg17[%c0_76, %c0_77], %312 {strides = array<i32>} : memref<256x32xf32, #tpu.memory_space<vmem>>, vector<64x32xf32>,
    %c0_78 = arith.constant 0 : index
    %c0_79 = arith.constant 0 : index
    %314 = tpu.strided_load %arg17[%c0_78, %c0_79] {strides = array<i32: 2, 1>} : memref<256x32xf32, #tpu.memory_space<vmem>>, vector<4x32xf32>
    %c16 = arith.constant 16 : index
    %c0_80 = arith.constant 0 : index
    %315 = tpu.strided_load %arg17[%c16, %c0_80] {strides = array<i32: 2, 1>} : memref<256x32xf32, #tpu.memory_space<vmem>>, vector<4x32xf32>
    %c32_81 = arith.constant 32 : index
    %c0_82 = arith.constant 0 : index
    %316 = tpu.strided_load %arg17[%c32_81, %c0_82] {strides = array<i32: 2, 1>} : memref<256x32xf32, #tpu.memory_space<vmem>>, vector<4x32xf32>
    %c48 = arith.constant 48 : index
    %c0_83 = arith.constant 0 : index
    %317 = tpu.strided_load %arg17[%c48, %c0_83] {strides = array<i32: 2, 1>} : memref<256x32xf32, #tpu.memory_space<vmem>>, vector<4x32xf32>
    %318 = tpu.concatenate %314, %315, %316, %317 in 0 : vector<4x32xf32>, vector<4x32xf32>, vector<4x32xf32>, vector<4x32xf32> -> vector<16x32xf32>
    %cst_84 = arith.constant dense<0.000000e+00> : vector<32xf32>
    %319 = vector.multi_reduction <add>, %318, %cst_84 [0] : vector<16x32xf32> to vector<32xf32>
    %320 = vector.shape_cast %319 : vector<32xf32> to vector<1x32xf32>
    %cst_85 = arith.constant dense<0.000000e+00> : vector<1x4xf32>
    %321 = tpu.matmul %320, %0, %cst_85 {dimension_numbers = #tpu.dot_dimension_numbers<[1], [0], [0], [1], [0, 0, 1, 1], [], []>} : vector<1x32xf32>, vector<32x4xf32>, vector<1x4xf32> -> vector<1x4xf32>
    %cst_86 = arith.constant 1.280000e+02 : f32
    %322 = vector.broadcast %cst_86 : f32 to vector<1x4xf32>
    %323 = arith.divf %321, %322 : vector<1x4xf32>
    %cst_87 = arith.constant dense<0.000000e+00> : vector<1x32xf32>
    %324 = tpu.matmul %323, %1, %cst_87 {dimension_numbers = #tpu.dot_dimension_numbers<[1], [0], [0], [1], [0, 0, 1, 1], [], []>} : vector<1x4xf32>, vector<4x32xf32>, vector<1x32xf32> -> vector<1x32xf32>
    %325 = vector.broadcast %324 : vector<1x32xf32> to vector<16x32xf32>
    %326 = arith.subf %318, %325 : vector<16x32xf32>
    %327 = arith.mulf %326, %326 : vector<16x32xf32>
    %cst_88 = arith.constant dense<0.000000e+00> : vector<32xf32>
    %328 = vector.multi_reduction <add>, %327, %cst_88 [0] : vector<16x32xf32> to vector<32xf32>
    %329 = vector.shape_cast %328 : vector<32xf32> to vector<1x32xf32>
    %cst_89 = arith.constant dense<0.000000e+00> : vector<1x4xf32>
    %330 = tpu.matmul %329, %0, %cst_89 {dimension_numbers = #tpu.dot_dimension_numbers<[1], [0], [0], [1], [0, 0, 1, 1], [], []>} : vector<1x32xf32>, vector<32x4xf32>, vector<1x4xf32> -> vector<1x4xf32>
    %cst_90 = arith.constant 1.280000e+02 : f32
    %331 = vector.broadcast %cst_90 : f32 to vector<1x4xf32>
    %332 = arith.divf %330, %331 : vector<1x4xf32>
    %cst_91 = arith.constant 1.000000e-10 : f32
    %333 = vector.broadcast %cst_91 : f32 to vector<1x4xf32>
    %334 = arith.addf %332, %333 : vector<1x4xf32>
    %335 = math.rsqrt %334 : vector<1x4xf32>
    %cst_92 = arith.constant dense<0.000000e+00> : vector<1x32xf32>
    %336 = tpu.matmul %335, %1, %cst_92 {dimension_numbers = #tpu.dot_dimension_numbers<[1], [0], [0], [1], [0, 0, 1, 1], [], []>} : vector<1x4xf32>, vector<4x32xf32>, vector<1x32xf32> -> vector<1x32xf32>
    %337 = vector.broadcast %336 : vector<1x32xf32> to vector<16x32xf32>
    %338 = arith.mulf %326, %337 : vector<16x32xf32>
    %c0_93 = arith.constant 0 : index
    %c0_94 = arith.constant 0 : index
    %c0_95 = arith.constant 0 : index
    %339 = vector.load %arg13[%c0_93, %c0_94, %c0_95] : memref<1x16x32xf32, #tpu.memory_space<vmem>>, vector<1x16x32xf32>
    %340 = vector.shape_cast %339 : vector<1x16x32xf32> to vector<16x32xf32>
    %341 = vector.shape_cast %338 : vector<16x32xf32> to vector<1x16x32xf32>
    tpu.vector_store %arg13[%c0_93, %c0_94, %c0_95], %341 {strides = array<i32>} : memref<1x16x32xf32, #tpu.memory_space<vmem>>, vector<1x16x32xf32>,
    %c2 = arith.constant 2 : index
    %c0_96 = arith.constant 0 : index
    %c0_97 = arith.constant 0 : index
    %342 = vector.load %arg4[%c2, %c0_96, %c0_97] : memref<3x288x32xbf16, #tpu.memory_space<vmem>>, vector<1x288x32xbf16>
    %343 = vector.shape_cast %342 : vector<1x288x32xbf16> to vector<288x32xbf16>
    %c2_98 = arith.constant 2 : index
    %c0_99 = arith.constant 0 : index
    %c0_100 = arith.constant 0 : index
    %344 = vector.load %arg5[%c2_98, %c0_99, %c0_100] : memref<3x1x32xf32, #tpu.memory_space<vmem>>, vector<1x1x32xf32>
    %345 = vector.shape_cast %344 : vector<1x1x32xf32> to vector<1x32xf32>
    %346 = tpu.iota {dimensions = array<i32: 0>} : vector<16x1xi32>
    %c4_i32 = arith.constant 4 : i32
    %347 = vector.broadcast %c4_i32 : i32 to vector<16x1xi32>
    %348 = arith.cmpi slt, %346, %347 : vector<16x1xi32>
    %c12_i32 = arith.constant 12 : i32
    %349 = vector.broadcast %c12_i32 : i32 to vector<16x1xi32>
    %350 = arith.cmpi sge, %346, %349 : vector<16x1xi32>
    %c4_i32_101 = arith.constant 4 : i32
    %c0_i32_102 = arith.constant 0 : i32
    %351 = arith.cmpi eq, %c4_i32_101, %c0_i32_102 : i32
    %c1_i32_103 = arith.constant 1 : i32
    %352 = arith.select %351, %c1_i32_103, %c4_i32_101 : i32
    %353 = vector.broadcast %352 : i32 to vector<16x1xi32>
    %354 = arith.remsi %346, %353 : vector<16x1xi32>
    %c0_i32_104 = arith.constant 0 : i32
    %355 = vector.broadcast %c0_i32_104 : i32 to vector<16x1xi32>
    %356 = arith.cmpi ne, %354, %355 : vector<16x1xi32>
    %c0_i32_105 = arith.constant 0 : i32
    %357 = vector.broadcast %c0_i32_105 : i32 to vector<16x1xi32>
    %358 = arith.cmpi slt, %354, %357 : vector<16x1xi32>
    %c0_i32_106 = arith.constant 0 : i32
    %359 = arith.cmpi slt, %352, %c0_i32_106 : i32
    %360 = vector.broadcast %359 : i1 to vector<16x1xi1>
    %361 = vector.broadcast %360 : vector<16x1xi1> to vector<16x1xi1>
    %362 = arith.xori %358, %361 : vector<16x1xi1>
    %363 = arith.andi %362, %356 : vector<16x1xi1>
    %364 = vector.broadcast %352 : i32 to vector<16x1xi32>
    %365 = arith.addi %354, %364 : vector<16x1xi32>
    %366 = arith.select %363, %365, %354 : vector<16x1xi1>, vector<16x1xi32>
    %c0_i32_107 = arith.constant 0 : i32
    %367 = vector.broadcast %c0_i32_107 : i32 to vector<16x1xi32>
    %368 = arith.cmpi eq, %366, %367 : vector<16x1xi32>
    %c4_i32_108 = arith.constant 4 : i32
    %c0_i32_109 = arith.constant 0 : i32
    %369 = arith.cmpi eq, %c4_i32_108, %c0_i32_109 : i32
    %c1_i32_110 = arith.constant 1 : i32
    %370 = arith.select %369, %c1_i32_110, %c4_i32_108 : i32
    %371 = vector.broadcast %370 : i32 to vector<16x1xi32>
    %372 = arith.remsi %346, %371 : vector<16x1xi32>
    %c0_i32_111 = arith.constant 0 : i32
    %373 = vector.broadcast %c0_i32_111 : i32 to vector<16x1xi32>
    %374 = arith.cmpi ne, %372, %373 : vector<16x1xi32>
    %c0_i32_112 = arith.constant 0 : i32
    %375 = vector.broadcast %c0_i32_112 : i32 to vector<16x1xi32>
    %376 = arith.cmpi slt, %372, %375 : vector<16x1xi32>
    %c0_i32_113 = arith.constant 0 : i32
    %377 = arith.cmpi slt, %370, %c0_i32_113 : i32
    %378 = vector.broadcast %377 : i1 to vector<16x1xi1>
    %379 = vector.broadcast %378 : vector<16x1xi1> to vector<16x1xi1>
    %380 = arith.xori %376, %379 : vector<16x1xi1>
    %381 = arith.andi %380, %374 : vector<16x1xi1>
    %382 = vector.broadcast %370 : i32 to vector<16x1xi32>
    %383 = arith.addi %372, %382 : vector<16x1xi32>
    %384 = arith.select %381, %383, %372 : vector<16x1xi1>, vector<16x1xi32>
    %c3_i32 = arith.constant 3 : i32
    %385 = vector.broadcast %c3_i32 : i32 to vector<16x1xi32>
    %386 = arith.cmpi eq, %384, %385 : vector<16x1xi32>
    %387 = vector.extract_strided_slice %338 {offsets = [12, 0], sizes = [4, 32], strides = [1, 1]} : vector<16x32xf32> to vector<4x32xf32>
    %388 = vector.extract_strided_slice %338 {offsets = [0, 0], sizes = [12, 32], strides = [1, 1]} : vector<16x32xf32> to vector<12x32xf32>
    %389 = tpu.concatenate %387, %388 in 0 : vector<4x32xf32>, vector<12x32xf32> -> vector<16x32xf32>
    %390 = vector.shape_cast %348 : vector<16x1xi1> to vector<16x1xi1>
    %391 = vector.broadcast %390 : vector<16x1xi1> to vector<16x32xi1>
    %392 = arith.select %391, %338, %389 : vector<16x32xi1>, vector<16x32xf32>
    %393 = vector.extract_strided_slice %392 {offsets = [15, 0], sizes = [1, 32], strides = [1, 1]} : vector<16x32xf32> to vector<1x32xf32>
    %394 = vector.extract_strided_slice %392 {offsets = [0, 0], sizes = [15, 32], strides = [1, 1]} : vector<16x32xf32> to vector<15x32xf32>
    %395 = tpu.concatenate %393, %394 in 0 : vector<1x32xf32>, vector<15x32xf32> -> vector<16x32xf32>
    %396 = vector.shape_cast %368 : vector<16x1xi1> to vector<16x1xi1>
    %397 = vector.broadcast %396 : vector<16x1xi1> to vector<16x32xi1>
    %398 = arith.select %397, %392, %395 : vector<16x32xi1>, vector<16x32xf32>
    %399 = vector.extract_strided_slice %392 {offsets = [1, 0], sizes = [15, 32], strides = [1, 1]} : vector<16x32xf32> to vector<15x32xf32>
    %400 = vector.extract_strided_slice %392 {offsets = [0, 0], sizes = [1, 32], strides = [1, 1]} : vector<16x32xf32> to vector<1x32xf32>
    %401 = tpu.concatenate %399, %400 in 0 : vector<15x32xf32>, vector<1x32xf32> -> vector<16x32xf32>
    %402 = vector.shape_cast %386 : vector<16x1xi1> to vector<16x1xi1>
    %403 = vector.broadcast %402 : vector<16x1xi1> to vector<16x32xi1>
    %404 = arith.select %403, %392, %401 : vector<16x32xi1>, vector<16x32xf32>
    %405 = vector.extract_strided_slice %338 {offsets = [15, 0], sizes = [1, 32], strides = [1, 1]} : vector<16x32xf32> to vector<1x32xf32>
    %406 = vector.extract_strided_slice %338 {offsets = [0, 0], sizes = [15, 32], strides = [1, 1]} : vector<16x32xf32> to vector<15x32xf32>
    %407 = tpu.concatenate %405, %406 in 0 : vector<1x32xf32>, vector<15x32xf32> -> vector<16x32xf32>
    %408 = vector.shape_cast %368 : vector<16x1xi1> to vector<16x1xi1>
    %409 = vector.broadcast %408 : vector<16x1xi1> to vector<16x32xi1>
    %410 = arith.select %409, %338, %407 : vector<16x32xi1>, vector<16x32xf32>
    %411 = vector.extract_strided_slice %338 {offsets = [1, 0], sizes = [15, 32], strides = [1, 1]} : vector<16x32xf32> to vector<15x32xf32>
    %412 = vector.extract_strided_slice %338 {offsets = [0, 0], sizes = [1, 32], strides = [1, 1]} : vector<16x32xf32> to vector<1x32xf32>
    %413 = tpu.concatenate %411, %412 in 0 : vector<15x32xf32>, vector<1x32xf32> -> vector<16x32xf32>
    %414 = vector.shape_cast %386 : vector<16x1xi1> to vector<16x1xi1>
    %415 = vector.broadcast %414 : vector<16x1xi1> to vector<16x32xi1>
    %416 = arith.select %415, %338, %413 : vector<16x32xi1>, vector<16x32xf32>
    %417 = vector.extract_strided_slice %338 {offsets = [4, 0], sizes = [12, 32], strides = [1, 1]} : vector<16x32xf32> to vector<12x32xf32>
    %418 = vector.extract_strided_slice %338 {offsets = [0, 0], sizes = [4, 32], strides = [1, 1]} : vector<16x32xf32> to vector<4x32xf32>
    %419 = tpu.concatenate %417, %418 in 0 : vector<12x32xf32>, vector<4x32xf32> -> vector<16x32xf32>
    %420 = vector.shape_cast %350 : vector<16x1xi1> to vector<16x1xi1>
    %421 = vector.broadcast %420 : vector<16x1xi1> to vector<16x32xi1>
    %422 = arith.select %421, %338, %419 : vector<16x32xi1>, vector<16x32xf32>
    %423 = vector.extract_strided_slice %422 {offsets = [15, 0], sizes = [1, 32], strides = [1, 1]} : vector<16x32xf32> to vector<1x32xf32>
    %424 = vector.extract_strided_slice %422 {offsets = [0, 0], sizes = [15, 32], strides = [1, 1]} : vector<16x32xf32> to vector<15x32xf32>
    %425 = tpu.concatenate %423, %424 in 0 : vector<1x32xf32>, vector<15x32xf32> -> vector<16x32xf32>
    %426 = vector.shape_cast %368 : vector<16x1xi1> to vector<16x1xi1>
    %427 = vector.broadcast %426 : vector<16x1xi1> to vector<16x32xi1>
    %428 = arith.select %427, %422, %425 : vector<16x32xi1>, vector<16x32xf32>
    %429 = vector.extract_strided_slice %422 {offsets = [1, 0], sizes = [15, 32], strides = [1, 1]} : vector<16x32xf32> to vector<15x32xf32>
    %430 = vector.extract_strided_slice %422 {offsets = [0, 0], sizes = [1, 32], strides = [1, 1]} : vector<16x32xf32> to vector<1x32xf32>
    %431 = tpu.concatenate %429, %430 in 0 : vector<15x32xf32>, vector<1x32xf32> -> vector<16x32xf32>
    %432 = vector.shape_cast %386 : vector<16x1xi1> to vector<16x1xi1>
    %433 = vector.broadcast %432 : vector<16x1xi1> to vector<16x32xi1>
    %434 = arith.select %433, %422, %431 : vector<16x32xi1>, vector<16x32xf32>
    %435 = tpu.concatenate %398, %392, %404, %410, %338, %416, %428, %422, %434 in 1 : vector<16x32xf32>, vector<16x32xf32>, vector<16x32xf32>, vector<16x32xf32>, vector<16x32xf32>, vector<16x32xf32>, vector<16x32xf32>, vector<16x32xf32>, vector<16x32xf32> -> vector<16x288xf32>
    %436 = arith.truncf %435 : vector<16x288xf32> to vector<16x288xbf16>
    %cst_114 = arith.constant dense<0.000000e+00> : vector<16x32xf32>
    %437 = tpu.matmul %436, %343, %cst_114 {dimension_numbers = #tpu.dot_dimension_numbers<[1], [0], [0], [1], [0, 0, 1, 1], [], []>} : vector<16x288xbf16>, vector<288x32xbf16>, vector<16x32xf32> -> vector<16x32xf32>
    %438 = vector.broadcast %345 : vector<1x32xf32> to vector<16x32xf32>
    %439 = arith.addf %437, %438 : vector<16x32xf32>
    %cst_115 = arith.constant 0.000000e+00 : f32
    %440 = vector.broadcast %cst_115 : f32 to vector<16x32xf32>
    %441 = arith.maximumf %439, %440 : vector<16x32xf32>
    %442 = vector.extract_strided_slice %441 {offsets = [1, 0], sizes = [15, 32], strides = [1, 1]} : vector<16x32xf32> to vector<15x32xf32>
    %443 = vector.extract_strided_slice %441 {offsets = [0, 0], sizes = [1, 32], strides = [1, 1]} : vector<16x32xf32> to vector<1x32xf32>
    %444 = tpu.concatenate %442, %443 in 0 : vector<15x32xf32>, vector<1x32xf32> -> vector<16x32xf32>
    %445 = arith.maximumf %441, %444 : vector<16x32xf32>
    %446 = vector.extract_strided_slice %445 {offsets = [4, 0], sizes = [12, 32], strides = [1, 1]} : vector<16x32xf32> to vector<12x32xf32>
    %447 = vector.extract_strided_slice %445 {offsets = [0, 0], sizes = [4, 32], strides = [1, 1]} : vector<16x32xf32> to vector<4x32xf32>
    %448 = tpu.concatenate %446, %447 in 0 : vector<12x32xf32>, vector<4x32xf32> -> vector<16x32xf32>
    %449 = arith.maximumf %445, %448 : vector<16x32xf32>
    %c0_116 = arith.constant 0 : index
    %c0_117 = arith.constant 0 : index
    %450 = vector.load %arg17[%c0_116, %c0_117] : memref<256x32xf32, #tpu.memory_space<vmem>>, vector<16x32xf32>
    tpu.vector_store %arg17[%c0_116, %c0_117], %449 {strides = array<i32>} : memref<256x32xf32, #tpu.memory_space<vmem>>, vector<16x32xf32>,
    %c0_118 = arith.constant 0 : index
    %c0_119 = arith.constant 0 : index
    %451 = tpu.strided_load %arg17[%c0_118, %c0_119] {strides = array<i32: 2, 1>} : memref<256x32xf32, #tpu.memory_space<vmem>>, vector<2x32xf32>
    %c8 = arith.constant 8 : index
    %c0_120 = arith.constant 0 : index
    %452 = tpu.strided_load %arg17[%c8, %c0_120] {strides = array<i32: 2, 1>} : memref<256x32xf32, #tpu.memory_space<vmem>>, vector<2x32xf32>
    %453 = tpu.concatenate %451, %452 in 0 : vector<2x32xf32>, vector<2x32xf32> -> vector<4x32xf32>
    %cst_121 = arith.constant dense<0.000000e+00> : vector<32xf32>
    %454 = vector.multi_reduction <add>, %453, %cst_121 [0] : vector<4x32xf32> to vector<32xf32>
    %455 = vector.shape_cast %454 : vector<32xf32> to vector<1x32xf32>
    %cst_122 = arith.constant dense<0.000000e+00> : vector<1x4xf32>
    %456 = tpu.matmul %455, %0, %cst_122 {dimension_numbers = #tpu.dot_dimension_numbers<[1], [0], [0], [1], [0, 0, 1, 1], [], []>} : vector<1x32xf32>, vector<32x4xf32>, vector<1x4xf32> -> vector<1x4xf32>
    %cst_123 = arith.constant 3.200000e+01 : f32
    %457 = vector.broadcast %cst_123 : f32 to vector<1x4xf32>
    %458 = arith.divf %456, %457 : vector<1x4xf32>
    %cst_124 = arith.constant dense<0.000000e+00> : vector<1x32xf32>
    %459 = tpu.matmul %458, %1, %cst_124 {dimension_numbers = #tpu.dot_dimension_numbers<[1], [0], [0], [1], [0, 0, 1, 1], [], []>} : vector<1x4xf32>, vector<4x32xf32>, vector<1x32xf32> -> vector<1x32xf32>
    %460 = vector.broadcast %459 : vector<1x32xf32> to vector<4x32xf32>
    %461 = arith.subf %453, %460 : vector<4x32xf32>
    %462 = arith.mulf %461, %461 : vector<4x32xf32>
    %cst_125 = arith.constant dense<0.000000e+00> : vector<32xf32>
    %463 = vector.multi_reduction <add>, %462, %cst_125 [0] : vector<4x32xf32> to vector<32xf32>
    %464 = vector.shape_cast %463 : vector<32xf32> to vector<1x32xf32>
    %cst_126 = arith.constant dense<0.000000e+00> : vector<1x4xf32>
    %465 = tpu.matmul %464, %0, %cst_126 {dimension_numbers = #tpu.dot_dimension_numbers<[1], [0], [0], [1], [0, 0, 1, 1], [], []>} : vector<1x32xf32>, vector<32x4xf32>, vector<1x4xf32> -> vector<1x4xf32>
    %cst_127 = arith.constant 3.200000e+01 : f32
    %466 = vector.broadcast %cst_127 : f32 to vector<1x4xf32>
    %467 = arith.divf %465, %466 : vector<1x4xf32>
    %cst_128 = arith.constant 1.000000e-10 : f32
    %468 = vector.broadcast %cst_128 : f32 to vector<1x4xf32>
    %469 = arith.addf %467, %468 : vector<1x4xf32>
    %470 = math.rsqrt %469 : vector<1x4xf32>
    %cst_129 = arith.constant dense<0.000000e+00> : vector<1x32xf32>
    %471 = tpu.matmul %470, %1, %cst_129 {dimension_numbers = #tpu.dot_dimension_numbers<[1], [0], [0], [1], [0, 0, 1, 1], [], []>} : vector<1x4xf32>, vector<4x32xf32>, vector<1x32xf32> -> vector<1x32xf32>
    %472 = vector.broadcast %471 : vector<1x32xf32> to vector<4x32xf32>
    %473 = arith.mulf %461, %472 : vector<4x32xf32>
    %c0_130 = arith.constant 0 : index
    %c0_131 = arith.constant 0 : index
    %c0_132 = arith.constant 0 : index
    %474 = vector.load %arg14[%c0_130, %c0_131, %c0_132] : memref<1x4x32xf32, #tpu.memory_space<vmem>>, vector<1x4x32xf32>
    %475 = vector.shape_cast %474 : vector<1x4x32xf32> to vector<4x32xf32>
    %476 = vector.shape_cast %473 : vector<4x32xf32> to vector<1x4x32xf32>
    tpu.vector_store %arg14[%c0_130, %c0_131, %c0_132], %476 {strides = array<i32>} : memref<1x4x32xf32, #tpu.memory_space<vmem>>, vector<1x4x32xf32>,
    %477 = vector.extract_strided_slice %473 {offsets = [0, 0], sizes = [1, 32], strides = [1, 1]} : vector<4x32xf32> to vector<1x32xf32>
    %478 = vector.extract_strided_slice %473 {offsets = [1, 0], sizes = [1, 32], strides = [1, 1]} : vector<4x32xf32> to vector<1x32xf32>
    %479 = vector.extract_strided_slice %473 {offsets = [2, 0], sizes = [1, 32], strides = [1, 1]} : vector<4x32xf32> to vector<1x32xf32>
    %480 = vector.extract_strided_slice %473 {offsets = [3, 0], sizes = [1, 32], strides = [1, 1]} : vector<4x32xf32> to vector<1x32xf32>
    %481 = tpu.concatenate %477, %478, %479, %480 in 1 : vector<1x32xf32>, vector<1x32xf32>, vector<1x32xf32>, vector<1x32xf32> -> vector<1x128xf32>
    %c0_133 = arith.constant 0 : index
    %c0_134 = arith.constant 0 : index
    %482 = vector.load %arg6[%c0_133, %c0_134] : memref<128x3xf32, #tpu.memory_space<vmem>>, vector<128x3xf32>
    %cst_135 = arith.constant dense<0.000000e+00> : vector<1x3xf32>
    %483 = tpu.matmul %481, %482, %cst_135 {dimension_numbers = #tpu.dot_dimension_numbers<[1], [0], [0], [1], [0, 0, 1, 1], [], []>} : vector<1x128xf32>, vector<128x3xf32>, vector<1x3xf32> -> vector<1x3xf32>
    %c0_136 = arith.constant 0 : index
    %c0_137 = arith.constant 0 : index
    %484 = vector.load %arg7[%c0_136, %c0_137] : memref<1x3xf32, #tpu.memory_space<vmem>>, vector<1x3xf32>
    %485 = arith.addf %483, %484 : vector<1x3xf32>
    %486 = arith.mulf %485, %485 : vector<1x3xf32>
    %cst_138 = arith.constant dense<0.000000e+00> : vector<1xf32>
    %487 = vector.multi_reduction <add>, %486, %cst_138 [1] : vector<1x3xf32> to vector<1xf32>
    %488 = vector.shape_cast %487 : vector<1xf32> to vector<1x1xf32>
    %489 = math.sqrt %488 : vector<1x1xf32>
    %cst_139 = arith.constant 9.99999996E-13 : f32
    %490 = vector.broadcast %cst_139 : f32 to vector<1x1xf32>
    %491 = arith.maximumf %489, %490 : vector<1x1xf32>
    %492 = vector.broadcast %491 : vector<1x1xf32> to vector<1x3xf32>
    %493 = arith.divf %485, %492 : vector<1x3xf32>
    %c0_140 = arith.constant 0 : index
    %c0_141 = arith.constant 0 : index
    %494 = vector.load %arg8[%c0_140, %c0_141] : memref<10x3xf32, #tpu.memory_space<vmem>>, vector<10x3xf32>
    %495 = arith.mulf %494, %494 : vector<10x3xf32>
    %cst_142 = arith.constant dense<0.000000e+00> : vector<10xf32>
    %496 = vector.multi_reduction <add>, %495, %cst_142 [1] : vector<10x3xf32> to vector<10xf32>
    %497 = vector.shape_cast %496 : vector<10xf32> to vector<10x1xf32>
    %498 = math.sqrt %497 : vector<10x1xf32>
    %cst_143 = arith.constant 9.99999996E-13 : f32
    %499 = vector.broadcast %cst_143 : f32 to vector<10x1xf32>
    %500 = arith.maximumf %498, %499 : vector<10x1xf32>
    %501 = vector.broadcast %500 : vector<10x1xf32> to vector<10x3xf32>
    %502 = arith.divf %494, %501 : vector<10x3xf32>
    %cst_144 = arith.constant dense<0.000000e+00> : vector<1x10xf32>
    %503 = tpu.matmul %493, %502, %cst_144 {dimension_numbers = #tpu.dot_dimension_numbers<[1], [1], [0], [0], [0, 0, 1, 0], [], []>} : vector<1x3xf32>, vector<10x3xf32>, vector<1x10xf32> -> vector<1x10xf32>
    %c0_145 = arith.constant 0 : index
    %c0_146 = arith.constant 0 : index
    %c0_147 = arith.constant 0 : index
    %504 = vector.load %arg15[%c0_145, %c0_146, %c0_147] : memref<1x1x3xf32, #tpu.memory_space<vmem>>, vector<1x1x3xf32>
    %505 = vector.shape_cast %504 : vector<1x1x3xf32> to vector<1x3xf32>
    %506 = vector.shape_cast %485 : vector<1x3xf32> to vector<1x1x3xf32>
    tpu.vector_store %arg15[%c0_145, %c0_146, %c0_147], %506 {strides = array<i32>} : memref<1x1x3xf32, #tpu.memory_space<vmem>>, vector<1x1x3xf32>,
    %c0_148 = arith.constant 0 : index
    %c0_149 = arith.constant 0 : index
    %c0_150 = arith.constant 0 : index
    %507 = vector.load %arg16[%c0_148, %c0_149, %c0_150] : memref<1x1x10xf32, #tpu.memory_space<vmem>>, vector<1x1x10xf32>
    %508 = vector.shape_cast %507 : vector<1x1x10xf32> to vector<1x10xf32>
    %509 = vector.shape_cast %503 : vector<1x10xf32> to vector<1x1x10xf32>
    tpu.vector_store %arg16[%c0_148, %c0_149, %c0_150], %509 {strides = array<i32>} : memref<1x1x10xf32, #tpu.memory_space<vmem>>, vector<1x1x10xf32>,
    return
  }
  func.func @transform_0(%arg0: i32) -> (i32, i32, i32) {
    %c0_i32 = arith.constant 0 : i32
    %c0_i32_0 = arith.constant 0 : i32
    %c0_i32_1 = arith.constant 0 : i32
    return %arg0, %c0_i32, %c0_i32_0 : i32, i32, i32
  }
  func.func @transform_1(%arg0: i32) -> (i32, i32) {
    %c0_i32 = arith.constant 0 : i32
    %c0_i32_0 = arith.constant 0 : i32
    %c0_i32_1 = arith.constant 0 : i32
    return %c0_i32, %c0_i32_0 : i32, i32
  }
  func.func @transform_2(%arg0: i32) -> (i32, i32) {
    %c0_i32 = arith.constant 0 : i32
    %c0_i32_0 = arith.constant 0 : i32
    %c0_i32_1 = arith.constant 0 : i32
    return %c0_i32, %c0_i32_0 : i32, i32
  }
  func.func @transform_3(%arg0: i32) -> (i32, i32, i32) {
    %c0_i32 = arith.constant 0 : i32
    %c0_i32_0 = arith.constant 0 : i32
    %c0_i32_1 = arith.constant 0 : i32
    %c0_i32_2 = arith.constant 0 : i32
    return %c0_i32, %c0_i32_0, %c0_i32_1 : i32, i32, i32
  }
  func.func @transform_4(%arg0: i32) -> (i32, i32, i32) {
    %c0_i32 = arith.constant 0 : i32
    %c0_i32_0 = arith.constant 0 : i32
    %c0_i32_1 = arith.constant 0 : i32
    %c0_i32_2 = arith.constant 0 : i32
    return %c0_i32, %c0_i32_0, %c0_i32_1 : i32, i32, i32
  }
  func.func @transform_5(%arg0: i32) -> (i32, i32) {
    %c0_i32 = arith.constant 0 : i32
    %c0_i32_0 = arith.constant 0 : i32
    %c0_i32_1 = arith.constant 0 : i32
    return %c0_i32, %c0_i32_0 : i32, i32
  }
  func.func @transform_6(%arg0: i32) -> (i32, i32) {
    %c0_i32 = arith.constant 0 : i32
    %c0_i32_0 = arith.constant 0 : i32
    %c0_i32_1 = arith.constant 0 : i32
    return %c0_i32, %c0_i32_0 : i32, i32
  }
  func.func @transform_7(%arg0: i32) -> (i32, i32) {
    %c0_i32 = arith.constant 0 : i32
    %c0_i32_0 = arith.constant 0 : i32
    %c0_i32_1 = arith.constant 0 : i32
    return %c0_i32, %c0_i32_0 : i32, i32
  }
  func.func @transform_8(%arg0: i32) -> (i32, i32) {
    %c0_i32 = arith.constant 0 : i32
    %c0_i32_0 = arith.constant 0 : i32
    %c0_i32_1 = arith.constant 0 : i32
    return %c0_i32, %c0_i32_0 : i32, i32
  }
  func.func @transform_9(%arg0: i32) -> (i32, i32) {
    %c0_i32 = arith.constant 0 : i32
    %c0_i32_0 = arith.constant 0 : i32
    %c0_i32_1 = arith.constant 0 : i32
    return %c0_i32, %c0_i32_0 : i32, i32
  }
  func.func @transform_10(%arg0: i32) -> (i32, i32, i32) {
    %c0_i32 = arith.constant 0 : i32
    %c0_i32_0 = arith.constant 0 : i32
    %c0_i32_1 = arith.constant 0 : i32
    return %arg0, %c0_i32, %c0_i32_0 : i32, i32, i32
  }
  func.func @transform_11(%arg0: i32) -> (i32, i32, i32) {
    %c0_i32 = arith.constant 0 : i32
    %c0_i32_0 = arith.constant 0 : i32
    %c0_i32_1 = arith.constant 0 : i32
    return %arg0, %c0_i32, %c0_i32_0 : i32, i32, i32
  }
  func.func @transform_12(%arg0: i32) -> (i32, i32, i32) {
    %c0_i32 = arith.constant 0 : i32
    %c0_i32_0 = arith.constant 0 : i32
    %c0_i32_1 = arith.constant 0 : i32
    return %arg0, %c0_i32, %c0_i32_0 : i32, i32, i32
  }
  func.func @transform_13(%arg0: i32) -> (i32, i32, i32) {
    %c0_i32 = arith.constant 0 : i32
    %c0_i32_0 = arith.constant 0 : i32
    %c0_i32_1 = arith.constant 0 : i32
    return %arg0, %c0_i32, %c0_i32_0 : i32, i32, i32
  }
  func.func @transform_14(%arg0: i32) -> (i32, i32, i32) {
    %c0_i32 = arith.constant 0 : i32
    %c0_i32_0 = arith.constant 0 : i32
    %c0_i32_1 = arith.constant 0 : i32
    return %arg0, %c0_i32, %c0_i32_0 : i32, i32, i32
  }
  func.func @transform_15(%arg0: i32) -> (i32, i32, i32) {
    %c0_i32 = arith.constant 0 : i32
    %c0_i32_0 = arith.constant 0 : i32
    %c0_i32_1 = arith.constant 0 : i32
    return %arg0, %c0_i32, %c0_i32_0 : i32, i32, i32
  }
}

</mosaic_0001>

<bundles_post_ra>
// kernel: _lambda_.1
= control target key start
LH: loop header
LB: loop body
LE: loop exit
PB: predicated region body
PF: predicated region fallthrough
CT: control target
= control target key end

     0   :  { %s15564_s0 = inlined_call_operand.vmem [shape: f32[2,256,4], index: 0, kind: input, shape index: {}]   ;;  %s15565_s1 = inlined_call_operand.vmem [shape: bf16[36,32], index: 1, kind: input, shape index: {}]   ;;  %s15566_s2 = inlined_call_operand.vmem [shape: f32[1,32], index: 2, kind: input, shape index: {}]   ;;  %s15567_s3 = inlined_call_operand.vmem [shape: bf16[3,288,32], index: 3, kind: input, shape index: {}]   ;;  %s15568_s4 = inlined_call_operand.vmem [shape: f32[3,1,32], index: 4, kind: input, shape index: {}]   ;;  %s15569_s5 = inlined_call_operand.vmem [shape: f32[128,3], index: 5, kind: input, shape index: {}]   ;;  %s15570_s6 = inlined_call_operand.vmem [shape: f32[1,3], index: 6, kind: input, shape index: {}]   ;;  %s15571_s7 = inlined_call_operand.vmem [shape: f32[10,3], index: 7, kind: input, shape index: {}]   ;;  %s15572_s8 = inlined_call_operand.vmem [shape: f32[32,4], index: 8, kind: input, shape index: {}]   ;;  %s15573_s9 = inlined_call_operand.vmem [shape: f32[4,32], index: 9, kind: input, shape index: {}]   ;;  %s15574_s10 = inlined_call_operand.hbm [shape: f32[2,256,32], index: 10, kind: output, shape index: {0}]   ;;  %s15575_s11 = inlined_call_operand.hbm [shape: f32[2,64,32], index: 11, kind: output, shape index: {1}]   ;;  %s15576_s12 = inlined_call_operand.hbm [shape: f32[2,16,32], index: 12, kind: output, shape index: {2}]   ;;  %s15577_s13 = inlined_call_operand.vmem [shape: f32[2,4,32], index: 13, kind: output, shape index: {3}]   ;;  %s15578_s14 = inlined_call_operand.hbm [shape: f32[2,1,3], index: 14, kind: output, shape index: {4}]   ;;  %s15579_s15 = inlined_call_operand.hbm [shape: f32[2,1,10], index: 15, kind: output, shape index: {5}]  }
   0x1   :  { %15818 = sst [smem:[#allocation86_spill]] %s15564_s0 }
   0x2   :  { %15819 = sst [smem:[#allocation87_spill]] %s15565_s1 }
   0x3   :  { %15820 = sst [smem:[#allocation88_spill]] %s15566_s2 }
   0x4   :  { %15821 = sst [smem:[#allocation89_spill]] %s15567_s3 }
   0x5   :  { %15822 = sst [smem:[#allocation90_spill]] %s15568_s4 }
   0x6   :  { %15823 = sst [smem:[#allocation91_spill]] %s15572_s8 }
   0x7   :  { %15824 = sst [smem:[#allocation92_spill]] %s15573_s9 }
   0x8   :  { %15825 = sst [smem:[#allocation93_spill]] %s15579_s15 }
   0x9   :  { %21 = vsyncpa [#allocation4], 0 }
   0xa   :  { %23 = vsyncpa [#allocation4 + $0x1], 0 }
   0xb   :  { %24 = vsyncpa [#allocation6], 0 }
   0xc   :  { %26 = vsyncpa [#allocation6 + $0x1], 0 }
   0xd   :  { %27 = vsyncpa [#allocation9], 0 }
   0xe   :  { %29 = vsyncpa [#allocation9 + $0x1], 0  ;;  %s10815_s18 = smov 0   ;;  %s10817_s19 = smov 0  }
   0xf   :  { %s10819_s20 = smov 0   ;;  %s10821_s21 = smov 0  }
  0x10 LB: > { %15826 = sst [smem:[#allocation14_spill]] %s10707_s18  ;;  %s10836_s22 = sadd.s32 4294967295, %s10719_s21   ;;  %s10719_s21 = sphi %s10821_s21, %s17022_s21   ;;  %s10715_s20 = sphi %s10819_s20, %s17025_s20   ;;  %s10711_s19 = sphi %s10817_s19, %s17024_s19   ;;  %s10707_s18 = sphi %s10815_s18, %s17023_s18  }
  0x11   : > { %15827 = sst [smem:[#allocation15_spill]] %s10711_s19  ;;  %s15580_s23 = sadd.s32 4294967294, %s10719_s21  }
  0x12   : > { %15828 = sst [smem:[#allocation16_spill]] %s10715_s20  ;;  %s10840_s24 = sadd.s32 1, %s10719_s21  }
  0x13   : > { %15829 = sst [smem:[#allocation17_spill]] %s10719_s21  ;;  %s257_s25 = sadd.s32 1, %s10715_s20 }
  0x14   : > { %15830 = sst [smem:[#allocation18_spill]] %s10840_s24  ;;  %s254_s26 = ssub.s32 %s10719_s21, %s10840_s24 }
  0x15   : > { %p267_p0 = scmp.ne.s32.totalorder %s10715_s20, %s10711_s19  ;;  %p255_p1 = scmp.eq.s32.totalorder %s254_s26, 0 }
  0x16   : > { %p268_p2 = scmp.eq.s32.totalorder %s10836_s22, 1  ;;  %p273_p3 = scmp.ne.s32.totalorder %s10711_s19, %s10707_s18 }
  0x17   : > { %p274_p4 = scmp.eq.s32.totalorder %s15580_s23, 1  ;;  %p8721_p7 = scmp.ge.s32.totalorder %s10719_s21, 1 }
  0x18   : > { %s10853_s27 = scalar_select %p255_p1, %s10715_s20, %s257_s25  }
  0x19   : > { %p10855_p5 = por %p268_p2, %p267_p0  ;;  %p10859_p6 = por %p274_p4, %p273_p3 }
  0x1a   : > { %15831 = sst [smem:[#allocation19_spill]] %s10853_s27  ;;  %p457_p8 = scmp.lt.s32.totalorder %s10719_s21, 3 }
  0x1b   : > { %s15833_s29 = scalar_select %p10859_p6, 1, 0 }
  0x1c   : > { %p458_p9 = pnand %p8721_p7, %p457_p8 }
  0x1d   : > { %15834 = sst [smem:[#allocation20_spill]] %s15833_s29 }
  0x1e   : > { %461 = sbr.rel (%p458_p9) target bundleno = 4101 (0x1005), region = 60 }
  0x23   : > { %p527_p10 = scmp.lt.s32.totalorder %s10836_s22, 1  ;;  %v580_v0 = vlaneseq  ;;  %s15837_s0 = sld [smem:[#allocation86_spill]]  ;;  %vm15620_vm0 = vcmask 1046528   ;;  %vm15621_vm1 = vcmask 1040384   ;;  %v15838_v8 = vmov 0 }
  0x24   : > { %v15842_v13 = vmov 0  ;;  %s15593_s17 = smov 4   ;;  %s15581_s25 = smov 20   ;;  %v15851_v44 = vmov 0  ;;  %v15854_v56 = vmov 0  ;;  %v15857_v59 = vmov 0 }
  0x25   : > { %s10867_s30 = scalar_select %p527_p10, %s10836_s22, 1  ;;  %v10869_v1 = vshrl.u32 %v580_v0, 7  ;;  %v15860_v60 = vmov 0  ;;  %v15892_v58 = vmov 0  ;;  %vm15604_vm15 = vcmask 1041408  }
  0x26   : > { %s15587_s23 = smov 8   ;;  %s15875_s27 = smov 28  }
  0x27   : > { %15835 = vst [vmem:[#allocation21_spill] sm:$0xff] %v10869_v1  ;;  %s9095_s16 = sshll.u32 %s10867_s30, 8  ;;  %v10873_v2 = vadd.s32 8, %v10869_v1  ;;  %v681_v3 = vand.u32 15, %v10869_v1  ;;  %v10952_v29 = vadd.s32 32, %v10869_v1  ;;  %v10964_v37 = vadd.s32 24, %v10869_v1 }
  0x28   : > { %v10973_v40 = vadd.s32 16, %v10869_v1  ;;  %v10982_v43 = vadd.s32 48, %v10869_v1  ;;  %s15876_s20 = smov 32   ;;  %s15877_s24 = smov 4  }
  0x29   : > { %15836 = vst [vmem:[#allocation22_spill] sm:$0xff] %v10873_v2  ;;  %s10879_s26 = scalar_lea.vmem %s15837_s0, %s9095_s16  ;;  %v688_v7 = vand.u32 15, %v10873_v2  ;;  %vm10891_vm2 = vcmp.eq.s32.totalorder %v681_v3, 0  ;;  %s15583_s16 = smov 16   ;;  %v709_v41 = vand.u32 15, %v10952_v29  ;;  %v702_v50 = vand.u32 15, %v10964_v37 }
  0x2a   : > { %v10882_v4 = vld [vmem:[%s10879_s26] sm:$0xff]  ;;  %v10885_v5 = vld [vmem:[%s10879_s26 + $0x8] sm:$0xff]  ;;  %v10888_v6 = vld [vmem:[%s10879_s26 + $0x10] sm:$0xff]  ;;  %v15839_v8 = vsel %vm10891_vm2, 4294967295, %v15838_v8  ;;  %15847 = vst [vmem:[#allocation28_spill] sm:$0xff] %v10952_v29  ;;  %v695_v51 = vand.u32 15, %v10973_v40 }
  0x2b   : > { %15840 = vst [vmem:[#allocation23_spill] sm:$0xff] %v15839_v8  ;;  %v10897_v9 = vpack.i.bf16 %v10885_v5, %v10882_v4  ;;  %v10900_v10 = vrot.slane %v10882_v4, 1  ;;  %v1449_v11 = vrot.slane %v10885_v5, 1  ;;  %v573_v12 = vld [vmem:[%s10879_s26 + $0xf8] sm:$0xff]  ;;  %vm10904_vm3 = vcmp.eq.s32.totalorder %v688_v7, 15  ;;  %v10949_v28 = vld [vmem:[%s10879_s26 + $0x20] sm:$0xff] }
  0x2c   : > { %v15843_v13 = vsel %vm10904_vm3, 4294967295, %v15842_v13  ;;  %v10909_v14 = vrot.slane %v10888_v6, 1  ;;  %v10912_v15 = vrot.slane %v10882_v4, 7  ;;  %v10915_v16 = vrot.slane %v10885_v5, 7  ;;  %v10918_v17 = vld [vmem:[%s10879_s26 + $0x18] sm:$0xff]  ;;  %15848 = vst [vmem:[#allocation29_spill] sm:$0xff] %v10964_v37 }
  0x2d   : > { %15841 = vst [vmem:[#allocation24_spill] sm:$0xff] %v10900_v10  ;;  %9234 = vrot.lane.b32.xlu1 %v10897_v9, %s15583_s16  ;;  %9229 = vrot.lane.b32.xlu0 %v10897_v9, %s15593_s17  ;;  %v1450_v18 = vsel %vm15620_vm0, %v10900_v10, %v1449_v11  ;;  %v1452_v19 = vsel %vm15620_vm0, %v1449_v11, %v10900_v10  ;;  %v10928_v20 = vrot.slane %v573_v12, 7  ;;  %v1263_v21 = vrot.slane %v10888_v6, 7  ;;  %s15595_s16 = smov 24   ;;  %v11041_v63 = vld [vmem:[%s10879_s26 + $0x28] sm:$0xff]  ;;  %v11045_v7 = vld [vmem:[%s10879_s26 + $0x30] sm:$0xff] }
  0x2e   : > { %15844 = vst [vmem:[#allocation25_spill] sm:$0xff] %v15843_v13  ;;  %v1456_v22 = vsel %vm15620_vm0, %v1449_v11, %v10909_v14  ;;  %v1610_v23 = vsel %vm10904_vm3, %v10885_v5, %v1452_v19  ;;  %v10939_v24 = vsel %vm15621_vm1, %v10912_v15, %v10915_v16  ;;  %v1265_v27 = vrot.slane %v10918_v17, 7  ;;  %s15871_s0 = smov 24   ;;  %s15891_s1 = sld [smem:[#allocation87_spill]]  ;;  %v11426_v10 = vld [vmem:[%s10879_s26 + $0x78] sm:$0xff] }
  0x2f   : > { %15845 = vst [vmem:[#allocation26_spill] sm:$0xff] %v10909_v14  ;;  %v1900_v25 = vsel %vm10904_vm3, %v10885_v5, %v1456_v22  ;;  %v1769_v26 = vsel %vm15621_vm1, %v10928_v20, %v10912_v15  ;;  %v2155_v32 = vsel %vm15621_vm1, %v10928_v20, %v1263_v21  ;;  %v9238_v33 = vpack.i.bf16 %v1610_v23, %v1450_v18  ;;  %s12162_s18 = sand.u32 1, %s10711_s19   ;;  %s16097_s2 = sld [smem:[#allocation88_spill]] }
  0x30   : > { %15846 = vst [vmem:[#allocation27_spill] sm:$0xff] %v10928_v20  ;;  %v9253_v30 = vpack.i.bf16 %v1900_v25, %v1450_v18  ;;  %v1770_v31 = vsel %vm10891_vm2, %v10882_v4, %v1769_v26  ;;  %v1457_v35 = vrot.slane %v10918_v17, 1  ;;  %v1459_v36 = vrot.slane %v10949_v28, 1  ;;  %s8722_s19 = sshll.u32 %s12162_s18, 8  ;;  %s16122_s3 = sld [smem:[#allocation89_spill]] }
  0x31   : > { %v9248_v34 = vpack.i.bf16 %v10939_v24, %v1770_v31  ;;  %v10967_v38 = vsel %vm15621_vm1, %v1263_v21, %v1265_v27  ;;  %v2156_v39 = vsel %vm10891_vm2, %v10888_v6, %v2155_v32  ;;  %15849 = vst [vmem:[#allocation30_spill] sm:$0xff] %v10973_v40  ;;  %vm10986_vm4 = vcmp.eq.s32.totalorder %v709_v41, 0  ;;  %s16494_s29 = smov 96   ;;  %s16675_s8 = sld [smem:[#allocation91_spill]] }
  0x32   : > { %9254 = vrot.lane.b32.xlu2 %v9253_v30, %s15581_s25  ;;  %v10979_v42 = vsel %vm15620_vm0, %v1457_v35, %v1459_v36  ;;  %15850 = vst [vmem:[#allocation31_spill] sm:$0xff] %v10982_v43  ;;  %s15585_s25 = smov 12   ;;  %v15852_v44 = vsel %vm10986_vm4, 4294967295, %v15851_v44  ;;  %v10992_v45 = vsel %vm15621_vm1, %v10915_v16, %v1263_v21  ;;  %v9258_v46 = vpack.i.bf16 %v10967_v38, %v2156_v39  ;;  %s16676_s4 = sld [smem:[#allocation90_spill]] }
  0x33   : > { %15853 = vst [vmem:[#allocation32_spill] sm:$0xff] %v15852_v44  ;;  %v1458_v47 = vsel %vm15620_vm0, %v10909_v14, %v1457_v35  ;;  %v2286_v48 = vsel %vm10904_vm3, %v10918_v17, %v10979_v42  ;;  %v723_v52 = vand.u32 15, %v10982_v43  ;;  %v1267_v53 = vrot.slane %v10949_v28, 7  ;;  %s16786_s9 = sld [smem:[#allocation92_spill]] }
  0x34   : > { %v9243_v54 = vpack.i.bf16 %v10918_v17, %v10888_v6  ;;  %v9263_v55 = vpack.i.bf16 %v2286_v48, %v1458_v47  ;;  %vm11023_vm6 = vcmp.eq.s32.totalorder %v702_v50, 15  ;;  %vm11027_vm7 = vcmp.eq.s32.totalorder %v695_v51, 0  ;;  %v11105_v51 = vld [vmem:[%s10879_s26 + $0x38] sm:$0xff] }
  0x35   : > { %9239 = vrot.lane.b32.xlu0 %v9238_v33, %s15587_s23  ;;  %9249 = vrot.lane.b32.xlu1 %v9248_v34, %s15585_s25  ;;  %vm11011_vm5 = vcmp.eq.s32.totalorder %v723_v52, 0  ;;  %v11016_v57 = vsel %vm15621_vm1, %v1265_v27, %v1267_v53  ;;  %v15858_v59 = vsel %vm11023_vm6, 4294967295, %v15857_v59  ;;  %v15861_v60 = vsel %vm11027_vm7, 4294967295, %v15860_v60  ;;  %s15591_s25 = smov 28   ;;  %s15589_s23 = smov 32   ;;  %v11108_v52 = vld [vmem:[%s10879_s26 + $0x40] sm:$0xff] }
  0x36   : > { %v15855_v56 = vsel %vm11011_vm5, 4294967295, %v15854_v56  ;;  %15859 = vst [vmem:[#allocation34_spill] sm:$0xff] %v15858_v59  ;;  %v1612_v61 = vsel %vm11023_vm6, %v10885_v5, %v1456_v22  ;;  %v1772_v62 = vsel %vm11027_vm7, %v10888_v6, %v10992_v45  ;;  %v1269_v11 = vrot.slane %v11041_v63, 7 }
  0x37   : > { %15856 = vst [vmem:[#allocation33_spill] sm:$0xff] %v15855_v56  ;;  %v9273_v0 = vpack.i.bf16 %v1612_v61, %v1450_v18  ;;  %v9278_v3 = vpack.i.bf16 %v10967_v38, %v1772_v62  ;;  %v589_v12 = vadd.s32 64, %v10869_v1  ;;  %v1271_v5 = vrot.slane %v11045_v7, 7 }
  0x38   : > { %15862 = vst [vmem:[#allocation35_spill] sm:$0xff] %v15861_v60  ;;  %v1902_v18 = vsel %vm11023_vm6, %v10918_v17, %v10979_v42  ;;  %v11059_v21 = vsel %vm15621_vm1, %v1267_v53, %v1269_v11  ;;  %v15865_v22 = vmov 0  ;;  %v1461_v25 = vrot.slane %v11041_v63, 1 }
  0x39   : > { %v737_v19 = vand.u32 15, %v589_v12  ;;  %v11070_v23 = vsel %vm15621_vm1, %v1269_v11, %v1271_v5  ;;  %v1463_v26 = vrot.slane %v11045_v7, 1  ;;  %v11079_v30 = vadd.s32 40, %v10869_v1 }
  0x3a   : > { %9259 = vrot.lane.b32.xlu2 %v9258_v46, %s15595_s16  ;;  %v9288_v31 = vpack.i.bf16 %v1902_v18, %v1458_v47  ;;  %s15870_s16 = smov 20   ;;  %v9298_v35 = vpack.i.bf16 %v11041_v63, %v10949_v28  ;;  %v1462_v39 = vsel %vm15620_vm0, %v1459_v36, %v1461_v25  ;;  %v15872_v46 = vmov 0 }
  0x3b   : > { %vm11065_vm8 = vcmp.eq.s32.totalorder %v737_v19, 0  ;;  %15868 = vst [vmem:[#allocation37_spill] sm:$0xff] %v11079_v30  ;;  %v1464_v33 = vsel %vm15620_vm0, %v1461_v25, %v1463_v26  ;;  %v716_v34 = vand.u32 15, %v11079_v30  ;;  %v591_v36 = vadd.s32 80, %v10869_v1 }
  0x3c   : > { %v15866_v22 = vsel %vm11065_vm8, 4294967295, %v15865_v22  ;;  %v2288_v41 = vsel %vm11023_vm6, %v11041_v63, %v1464_v33  ;;  %v1275_v53 = vrot.slane %v11108_v52, 7  ;;  %v1774_v61 = vsel %vm10986_vm4, %v10949_v28, %v11016_v57 }
  0x3d   : > { %9244 = vrot.lane.b32.xlu0 %v9243_v54, %s15591_s25  ;;  %9264 = vrot.lane.b32.xlu1 %v9263_v55, %s15589_s23  ;;  %s15863_s23 = smov 8   ;;  %s15864_s25 = smov 12   ;;  %15867 = vst [vmem:[#allocation36_spill] sm:$0xff] %v15866_v22  ;;  %vm11095_vm9 = vcmp.eq.s32.totalorder %v716_v34, 15  ;;  %v9303_v48 = vpack.i.bf16 %v2288_v41, %v1462_v39  ;;  %v9318_v62 = vpack.i.bf16 %v11059_v21, %v1774_v61  ;;  %v11136_v11 = vadd.s32 56, %v10869_v1 }
  0x3e   : > { %v15873_v46 = vsel %vm11095_vm9, 4294967295, %v15872_v46  ;;  %v1614_v50 = vsel %vm11095_vm9, %v10918_v17, %v10979_v42  ;;  %v1273_v17 = vrot.slane %v11105_v51, 7  ;;  %v751_v42 = vand.u32 15, %v591_v36 }
  0x3f   : > { %15874 = vst [vmem:[#allocation38_spill] sm:$0xff] %v15873_v46  ;;  %v9313_v55 = vpack.i.bf16 %v1614_v50, %v1458_v47  ;;  %v1465_v12 = vrot.slane %v11105_v51, 1  ;;  %v1467_v19 = vrot.slane %v11108_v52, 1  ;;  %v2160_v25 = vsel %vm10986_vm4, %v11045_v7, %v11070_v23 }
  0x40   : > { %vm11120_vm10 = vcmp.eq.s32.totalorder %v751_v42, 0  ;;  %15881 = vst [vmem:[#allocation40_spill] sm:$0xff] %v11136_v11  ;;  %v9338_v41 = vpack.i.bf16 %v11105_v51, %v11045_v7  ;;  %v15882_v50 = vmov 0  ;;  %v11177_v42 = vld [vmem:[%s10879_s26 + $0x50] sm:$0xff]  ;;  %v592_v27 = vadd.s32 88, %v10869_v1 }
  0x41   : > { %vm15915_vm6 = vcmask 97280  }
  0x42   : > { %9269 = vrot.lane.b32.xlu2 %v10897_v9, %s15593_s17  ;;  %v2158_v9 = vsel %vm11027_vm7, %v10949_v28, %v11016_v57  ;;  %s15869_s17 = smov 16   ;;  %vm15916_vm3 = vmmov %vm15915_vm6 }
  0x43   : > { %v9293_v32 = vpack.i.bf16 %v11059_v21, %v2158_v9  ;;  %v11143_v9 = vsel %vm15621_vm1, %v1271_v5, %v1273_v17  ;;  %v1466_v5 = vsel %vm15620_vm0, %v1463_v26, %v1465_v12  ;;  %v1776_v26 = vsel %vm11011_vm5, %v11045_v7, %v11070_v23 }
  0x44   : > { %v9333_v34 = vpack.i.bf16 %v11143_v9, %v2160_v25 }
  0x45   : > { %9274 = vrot.lane.b32.xlu0 %v9273_v0, %s15863_s23  ;;  %9279 = vrot.lane.b32.xlu1 %v9278_v3, %s15864_s25  ;;  %v15878_v0 = vmov 0  ;;  %v1904_v3 = vsel %vm11095_vm9, %v11041_v63, %v1464_v33 }
  0x46   : > { %v15879_v0 = vsel %vm11120_vm10, 4294967295, %v15878_v0  ;;  %v9328_v18 = vpack.i.bf16 %v1904_v3, %v1462_v39 }
  0x47   : > { %15880 = vst [vmem:[#allocation39_spill] sm:$0xff] %v15879_v0 }
  0x4a   : > { %9284 = vrot.lane.b32.xlu2 %v9243_v54, %s15869_s17 }
  0x4d   : > { %9289 = vrot.lane.b32.xlu0 %v9288_v31, %s15870_s16  ;;  %9294 = vrot.lane.b32.xlu1 %v9293_v32, %s15871_s0  ;;  %v730_v31 = vand.u32 15, %v11136_v11  ;;  %v1468_v32 = vsel %vm15620_vm0, %v1465_v12, %v1467_v19 }
  0x4f   : > { %vm11159_vm11 = vcmp.eq.s32.totalorder %v730_v31, 15  ;;  %v15885_v31 = vmov 0 }
  0x50   : > { %v15883_v50 = vsel %vm11159_vm11, 4294967295, %v15882_v50 }
  0x51   : > { %15884 = vst [vmem:[#allocation41_spill] sm:$0xff] %v15883_v50 }
  0x52   : > { %9299 = vrot.lane.b32.xlu2 %v9298_v35, %s15875_s27 }
  0x55   : > { %9304 = vrot.lane.b32.xlu0 %v9303_v48, %s15876_s20  ;;  %9309 = vrot.lane.b32.xlu1 %v9243_v54, %s15877_s24  ;;  %v11125_v54 = vsel %vm15621_vm1, %v1273_v17, %v1275_v53  ;;  %v2290_v48 = vsel %vm11095_vm9, %v11105_v51, %v1468_v32  ;;  %v11174_v17 = vld [vmem:[%s10879_s26 + $0x48] sm:$0xff]  ;;  %vm15910_vm9 = vcmask 1040384  }
  0x56   : > { %v9343_v36 = vpack.i.bf16 %v2290_v48, %v1466_v5  ;;  %v1277_v3 = vrot.slane %v11174_v17, 7  ;;  %v1469_v12 = vrot.slane %v11174_v17, 1  ;;  %v15888_v48 = vmov 0 }
  0x5a   : > { %9314 = vrot.lane.b32.xlu2 %v9313_v55, %s15863_s23  ;;  %v1616_v55 = vsel %vm11159_vm11, %v11041_v63, %v1464_v33  ;;  %v1279_v63 = vrot.slane %v11177_v42, 7  ;;  %v9358_v33 = vpack.i.bf16 %v11143_v9, %v1776_v26  ;;  %v590_v26 = vadd.s32 72, %v10869_v1 }
  0x5b   : > { %v9353_v61 = vpack.i.bf16 %v1616_v55, %v1462_v39  ;;  %v1906_v39 = vsel %vm11159_vm11, %v11105_v51, %v1468_v32  ;;  %v2162_v55 = vsel %vm11011_vm5, %v11108_v52, %v11125_v54 }
  0x5d   : > { %9319 = vrot.lane.b32.xlu0 %v9318_v62, %s15864_s25  ;;  %9324 = vrot.lane.b32.xlu1 %v9298_v35, %s15869_s17  ;;  %v593_v62 = vadd.s32 96, %v10869_v1 }
  0x5f   : > { %v765_v25 = vand.u32 15, %v593_v62 }
  0x61   : > { %vm11190_vm12 = vcmp.eq.s32.totalorder %v765_v25, 0 }
  0x62   : > { %9329 = vrot.lane.b32.xlu2 %v9328_v18, %s15870_s16  ;;  %v1471_v18 = vrot.slane %v11177_v42, 1  ;;  %v15886_v31 = vsel %vm11190_vm12, 4294967295, %v15885_v31 }
  0x63   : > { %15887 = vst [vmem:[#allocation42_spill] sm:$0xff] %v15886_v31 }
  0x65   : > { %9334 = vrot.lane.b32.xlu0 %v9333_v34, %s15871_s0  ;;  %9339 = vrot.lane.b32.xlu1 %v9338_v41, %s15875_s27  ;;  %v11195_v34 = vsel %vm15621_vm1, %v1277_v3, %v1279_v63 }
  0x6a   : > { %9344 = vrot.lane.b32.xlu2 %v9343_v36, %s15876_s20  ;;  %v11203_v36 = vsel %vm15621_vm1, %v1275_v53, %v1277_v3  ;;  %v1470_v53 = vsel %vm15620_vm0, %v1467_v19, %v1469_v12  ;;  %v9378_v3 = vpack.i.bf16 %v11174_v17, %v11108_v52 }
  0x6b   : > { %v9373_v62 = vpack.i.bf16 %v11203_v36, %v2162_v55 }
  0x6d   : > { %9349 = vrot.lane.b32.xlu0 %v9298_v35, %s15877_s24  ;;  %9354 = vrot.lane.b32.xlu1 %v9353_v61, %s15863_s23  ;;  %v9368_v35 = vpack.i.bf16 %v1906_v39, %v1466_v5  ;;  %v11210_v61 = vsel %vm15620_vm0, %v1469_v12, %v1471_v18  ;;  %v744_v39 = vand.u32 15, %v590_v26  ;;  %v1778_v12 = vsel %vm11065_vm8, %v11108_v52, %v11125_v54 }
  0x6e   : > { %v9398_v26 = vpack.i.bf16 %v11203_v36, %v1778_v12 }
  0x6f   : > { %vm11224_vm13 = vcmp.eq.s32.totalorder %v744_v39, 15 }
  0x70   : > { %v15889_v48 = vsel %vm11224_vm13, 4294967295, %v15888_v48  ;;  %v1618_v19 = vsel %vm11224_vm13, %v11105_v51, %v1468_v32  ;;  %v1908_v51 = vsel %vm11224_vm13, %v11174_v17, %v11210_v61  ;;  %v595_v32 = vadd.s32 112, %v10869_v1 }
  0x71   : > { %15890 = vst [vmem:[#allocation43_spill] sm:$0xff] %v15889_v48  ;;  %v9393_v55 = vpack.i.bf16 %v1618_v19, %v1466_v5  ;;  %v9408_v47 = vpack.i.bf16 %v1908_v51, %v1470_v53 }
  0x72   : > { %9359 = vrot.lane.b32.xlu2 %v9358_v33, %s15864_s25  ;;  %v2292_v33 = vsel %vm11159_vm11, %v11174_v17, %v11210_v61  ;;  %vm15911_vm11 = vcmask 31744  }
  0x73   : > { %v9383_v25 = vpack.i.bf16 %v2292_v33, %v1470_v53  ;;  %v11244_v33 = vld [vmem:[%s10879_s26 + $0x60] sm:$0xff] }
  0x74   : > { %v1283_v5 = vrot.slane %v11244_v33, 7  ;;  %v15605_v12 = vrot.slane %v11244_v33, 1 }
  0x75   : > { %9364 = vrot.lane.b32.xlu0 %v9338_v41, %s15869_s17  ;;  %9369 = vrot.lane.b32.xlu1 %v9368_v35, %s15870_s16  ;;  %v11238_v35 = vld [vmem:[%s10879_s26 + $0x58] sm:$0xff] }
  0x76   : > { %v1473_v19 = vrot.slane %v11238_v35, 1 }
  0x78   : > { %v11283_v51 = vsel %vm15620_vm0, %v1473_v19, %v15605_v12 }
  0x7a   : > { %9374 = vrot.lane.b32.xlu2 %v9373_v62, %s15871_s0  ;;  %v1281_v62 = vrot.slane %v11238_v35, 7 }
  0x7c   : > { %v11255_v39 = vsel %vm15621_vm1, %v1279_v63, %v1281_v62  ;;  %v11273_v49 = vsel %vm15621_vm1, %v1281_v62, %v1283_v5  ;;  %v758_v62 = vand.u32 15, %v592_v27  ;;  %v2294_v27 = vsel %vm11224_vm13, %v11238_v35, %v11283_v51 }
  0x7d   : > { %9379 = vrot.lane.b32.xlu0 %v9378_v3, %s15875_s27  ;;  %9384 = vrot.lane.b32.xlu1 %v9383_v25, %s15876_s20  ;;  %v578_v25 = vld [vmem:[%s15891_s1 + $0x10] sm:$0x3] }
  0x82   : > { %9389 = vrot.lane.b32.xlu2 %v9338_v41, %s15877_s24  ;;  %v2164_v41 = vsel %vm11065_vm8, %v11177_v42, %v11195_v34 }
  0x83   : > { %v9413_v63 = vpack.i.bf16 %v11255_v39, %v2164_v41 }
  0x85   : > { %9394 = vrot.lane.b32.xlu0 %v9393_v55, %s15863_s23  ;;  %9399 = vrot.lane.b32.xlu1 %v9398_v26, %s15864_s25  ;;  %v779_v55 = vand.u32 15, %v595_v32  ;;  %v3537_v26 = vunpack.c.l.b16 %v578_v25  ;;  %v11330_v32 = vld [vmem:[%s10879_s26 + $0x70] sm:$0xff] }
  0x86   : > { %v15899_v30 = vrot.slane %v11330_v32, 1 }
  0x87   : > { %vm11268_vm14 = vcmp.eq.s32.totalorder %v779_v55, 0  ;;  %v3540_v11 = vpack.c.b16 %v3537_v26, %v3537_v26  ;;  %v9097_v55 = vld [vmem:[%s15891_s1 + $0x8] sm:$0xff]  ;;  %v11295_v26 = vpack.i.bf16 %v11238_v35, %v11177_v42 }
  0x88   : > { %v15893_v58 = vsel %vm11268_vm14, 4294967295, %v15892_v58 }
  0x89   : > { %15894 = vst [vmem:[#allocation44_spill] sm:$0xff] %v15893_v58  ;;  %v3594_v41 = vsel %vm15604_vm15, %v3540_v11, 0  ;;  %v11298_v11 = vsel %vm15620_vm0, %v1471_v18, %v1473_v19  ;;  %vm11304_vm15 = vcmp.eq.s32.totalorder %v758_v62, 15  ;;  %v9096_v18 = vld [vmem:[%s15891_s1] sm:$0xff]  ;;  %s12224_s1 = scalar_lea.vmem [#allocation3], %s8722_s19  ;;  %v9115_v58 = vld [vmem:[%s16122_s3 + $0x88] sm:$0xff] }
  0x8a   : > { %9404 = vrot.lane.b32.xlu2 %v9378_v3, %s15869_s17  ;;  %3601 = vmatpush.bf16.msra.mxu0 %v3594_v41  ;;  %v1620_v19 = vsel %vm11304_vm15, %v11174_v17, %v11210_v61  ;;  %v571_v17 = vld [vmem:[%s10879_s26 + $0xe8] sm:$0xff]  ;;  %v594_v61 = vadd.s32 104, %v10869_v1 }
  0x8b   : > { %v9433_v62 = vpack.i.bf16 %v1620_v19, %v1470_v53  ;;  %v1910_v53 = vsel %vm11304_vm15, %v11238_v35, %v11283_v51  ;;  %v597_v19 = vadd.s32 128, %v10869_v1  ;;  %6009 = vmatpush.bf16.msra.mxu3 %v9115_v58 }
  0x8c   : > { %v11286_v25 = vpop.permute.xlu2 %9254  ;;  %v9448_v37 = vpack.i.bf16 %v1910_v53, %v11298_v11  ;;  %v15900_v53 = vmov 0 }
  0x8d   : > { %9409 = vrot.lane.b32.xlu0 %v9408_v47, %s15870_s16  ;;  %9414 = vrot.lane.b32.xlu1 %v9413_v63, %s15871_s0  ;;  %v15895_v47 = vmov 0  ;;  %v9423_v63 = vpack.i.bf16 %v2294_v27, %v11298_v11  ;;  %v11327_v27 = vld [vmem:[%s10879_s26 + $0x68] sm:$0xff]  ;;  %v793_v29 = vand.u32 15, %v597_v19 }
  0x8e   : > { %v15896_v47 = vsel %vm11304_vm15, 4294967295, %v15895_v47  ;;  %3602 = vmatpush.bf16.msra.mxu0 %v9097_v55  ;;  %v1780_v55 = vsel %vm11120_vm10, %v11177_v42, %v11195_v34  ;;  %v11380_v50 = vpack.i.bf16 %v11327_v27, %v11244_v33 }
  0x8f   : > { %15897 = vst [vmem:[#allocation45_spill] sm:$0xff] %v15896_v47  ;;  %v9438_v12 = vpack.i.bf16 %v11255_v39, %v1780_v55  ;;  %v11346_v55 = vrot.slane %v571_v17, 7  ;;  %v2166_v17 = vsel %vm11120_vm10, %v11244_v33, %v11273_v49  ;;  %vm11368_vm13 = vcmp.eq.s32.totalorder %v793_v29, 0 }
  0x90   : > { %v15901_v53 = vsel %vm11368_vm13, 4294967295, %v15900_v53  ;;  %vm15662_vm10 = vcmask 228352  }
  0x91   : > { %15898 = vst [vmem:[#allocation46_spill] sm:$0xff] %v11346_v55 }
  0x92   : > { %9419 = vrot.lane.b32.xlu2 %v11295_v26, %s15875_s27  ;;  %3603 = vmatpush.bf16.msra.mxu0 %v9096_v18  ;;  %15902 = vst [vmem:[#allocation47_spill] sm:$0xff] %v15901_v53 }
  0x94   : > { %v11318_v41 = vpop.permute.xlu2 %9259 }
  0x95   : > { %9424 = vrot.lane.b32.xlu0 %v9423_v63, %s15876_s20  ;;  %9429 = vrot.lane.b32.xlu1 %v9378_v3, %s15877_s24  ;;  %v1285_v63 = vrot.slane %v11327_v27, 7  ;;  %v1477_v3 = vrot.slane %v11327_v27, 1 }
  0x97   : > { %v11354_v40 = vsel %vm15621_vm1, %v1283_v5, %v1285_v63  ;;  %v15903_v5 = vrot.slane %v11330_v32, 7 }
  0x98   : > { %v9453_v48 = vpack.i.bf16 %v11354_v40, %v2166_v17  ;;  %v11403_v17 = vsel %vm15910_vm9, %v10915_v16, %v10912_v15  ;;  %v1782_v16 = vsel %vm11190_vm12, %v11244_v33, %v11273_v49  ;;  %vm15912_vm9 = vmmov %vm15911_vm11 }
  0x99   : > { %v11375_v19 = vsel %vm15621_vm1, %v1285_v63, %v15903_v5  ;;  %v15908_v63 = vrot.slane %v11244_v33, 1  ;;  %v9478_v13 = vpack.i.bf16 %v11354_v40, %v1782_v16 }
  0x9a   : > { %9434 = vrot.lane.b32.xlu2 %v9433_v62, %s15863_s23  ;;  %v772_v62 = vand.u32 15, %v594_v61  ;;  %v1350_v61 = vsel %vm15621_vm1, %v11346_v55, %v10912_v15  ;;  %15904 = vst [vmem:[#allocation48_spill] sm:$0xff] %v11375_v19  ;;  %vm15909_vm1 = vcmask 1046528  }
  0x9b   : > { %v11394_v5 = vsel %vm15909_vm1, %v15908_v63, %v1477_v3  ;;  %vm15660_vm1 = vcmask 195584  }
  0x9c   : > { %v11344_v43 = vpop.permute.xlu2 %9269 }
  0x9d   : > { %9439 = vrot.lane.b32.xlu0 %v9438_v12, %s15864_s25  ;;  %9444 = vrot.lane.b32.xlu1 %v11295_v26, %s15869_s17  ;;  %v11363_v12 = vsel %vm15620_vm0, %v1477_v3, %v15899_v30  ;;  %vm11382_vm0 = vcmp.eq.s32.totalorder %v772_v62, 15  ;;  %v15905_v30 = vmov 0 }
  0x9e   : > { %v15906_v30 = vsel %vm11382_vm0, 4294967295, %v15905_v30  ;;  %v2296_v62 = vsel %vm11304_vm15, %v11327_v27, %v11363_v12  ;;  %v1622_v3 = vsel %vm11382_vm0, %v11238_v35, %v11283_v51  ;;  %v9257_v35 = vunpack.i.h.bf16 %v11286_v25 }
  0x9f   : > { %v9235_v18 = vpop.permute.xlu1 %9234  ;;  %v9230_v2 = vpop.permute.xlu0 %9229  ;;  %15907 = vst [vmem:[#allocation49_spill] sm:$0xff] %v15906_v30  ;;  %v9463_v15 = vpack.i.bf16 %v2296_v62, %v11394_v5  ;;  %vm15913_vm15 = vcmask 64512  }
  0xa0   : > { %v9232_v63 = vunpack.i.h.bf16 %v9230_v2  ;;  %v9231_v47 = vunpack.i.l.bf16 %v9230_v2  ;;  %v9256_v2 = vunpack.i.l.bf16 %v11286_v25  ;;  %v9237_v25 = vunpack.i.h.bf16 %v9235_v18 }
  0xa1   : > { %v9236_v55 = vunpack.i.l.bf16 %v9235_v18 }
  0xa2   : > { %9449 = vrot.lane.b32.xlu2 %v9448_v37, %s15870_s16  ;;  %v1415_v37 = vsel %vm10891_vm2, %v10882_v4, %v1350_v61  ;;  %v9473_v61 = vpack.i.bf16 %v1622_v3, %v11298_v11  ;;  %v3247_v20 = vsel %vm15912_vm9, %v10939_v24, %v9232_v63  ;;  %vm15914_vm2 = vmmov %vm15913_vm15 }
  0xa3   : > { %v3246_v59 = vsel %vm15911_vm11, %v1415_v37, %v9231_v47  ;;  %v1289_v47 = vrot.slane %v11426_v10, 7  ;;  %v11439_v37 = vld [vmem:[%s10879_s26 + $0x80] sm:$0xff]  ;;  %vm15917_vm11 = vcmask 130048  }
  0xa4   : > { %v11408_v29 = vpop.permute.xlu2 %9284  ;;  %vm15918_vm9 = vmmov %vm15917_vm11 }
  0xa5   : > { %9454 = vrot.lane.b32.xlu0 %v9453_v48, %s15871_s0  ;;  %9459 = vrot.lane.b32.xlu1 %v11380_v50, %s15875_s27 }
  0xa7   : > { %v9240_v51 = vpop.permute.xlu0 %9239  ;;  %v9250_v48 = vpop.permute.xlu1 %9249 }
  0xa8   : > { %v9242_v8 = vunpack.i.h.bf16 %v9240_v51  ;;  %v9241_v14 = vunpack.i.l.bf16 %v9240_v51  ;;  %v9252_v46 = vunpack.i.h.bf16 %v9250_v48  ;;  %v9251_v62 = vunpack.i.l.bf16 %v9250_v48 }
  0xaa   : > { %v3279_v11 = vsel %vm15913_vm15, %v3246_v59, %v9241_v14  ;;  %v3280_v3 = vsel %vm15914_vm2, %v3247_v20, %v9242_v8  ;;  %9464 = vrot.lane.b32.xlu2 %v9463_v15, %s15876_s20  ;;  %v1912_v8 = vsel %vm11382_vm0, %v11327_v27, %v11363_v12  ;;  %vm15654_vm2 = vcmask 261120  }
  0xab   : > { %v3312_v51 = vsel %vm15915_vm6, %v3279_v11, %v9251_v62  ;;  %v3313_v48 = vsel %vm15916_vm3, %v3280_v3, %v9252_v46  ;;  %v9262_v14 = vunpack.i.h.bf16 %v11318_v41  ;;  %v9261_v20 = vunpack.i.l.bf16 %v11318_v41 }
  0xac   : > { %v3345_v63 = vsel %vm15917_vm11, %v3312_v51, %v9236_v55  ;;  %v3346_v16 = vsel %vm15918_vm9, %v3313_v48, %v9237_v25  ;;  %v11443_v18 = vpop.permute.xlu2 %9299  ;;  %v1481_v59 = vrot.slane %v11426_v10, 1  ;;  %vm15919_vm3 = vcmask 162816  }
  0xad   : > { %9469 = vrot.lane.b32.xlu0 %v11295_v26, %s15877_s24  ;;  %9474 = vrot.lane.b32.xlu1 %v9473_v61, %s15863_s23  ;;  %v3378_v46 = vsel %vm15919_vm3, %v3345_v63, %v9256_v2  ;;  %vm15920_vm6 = vmmov %vm15919_vm3  ;;  %v599_v62 = vadd.s32 144, %v10869_v1  ;;  %v9488_v3 = vpack.i.bf16 %v1912_v8, %v11394_v5  ;;  %vm15653_vm15 = vcmask 293888  }
  0xae   : > { %v3379_v55 = vsel %vm15920_vm6, %v3346_v16, %v9257_v35  ;;  %v15921_v41 = vrot.slane %v11330_v32, 7  ;;  %vm15922_vm11 = vcmask 1040384   ;;  %v3411_v63 = vsel %vm15660_vm1, %v3378_v46, %v9261_v20 }
  0xaf   : > { %v9245_v25 = vpop.permute.xlu0 %9244  ;;  %v9265_v11 = vpop.permute.xlu1 %9264  ;;  %v3412_v16 = vsel %vm15660_vm1, %v3379_v55, %v9262_v14  ;;  %v2168_v8 = vsel %vm11190_vm12, %v11330_v32, %v11375_v19  ;;  %v807_v15 = vand.u32 15, %v599_v62  ;;  %vm15924_vm9 = vcmask 1046528   ;;  %vm15929_vm6 = vmmov %vm15922_vm11 }
  0xb0   : > { %v11463_v26 = vsel %vm15922_vm11, %v15921_v41, %v1289_v47  ;;  %v9247_v51 = vunpack.i.h.bf16 %v9245_v25  ;;  %v9246_v2 = vunpack.i.l.bf16 %v9245_v25  ;;  %v9267_v48 = vunpack.i.h.bf16 %v9265_v11  ;;  %vm15931_vm11 = vmmov %vm15924_vm9 }
  0xb1   : > { %v9266_v35 = vunpack.i.l.bf16 %v9265_v11  ;;  %v15923_v25 = vrot.slane %v11439_v37, 1  ;;  %v596_v20 = vadd.s32 120, %v10869_v1  ;;  %vm11483_vm3 = vcmp.eq.s32.totalorder %v807_v15, 0 }
  0xb2   : > { %9479 = vrot.lane.b32.xlu2 %v9478_v13, %s15864_s25  ;;  %v3444_v41 = vsel %vm15662_vm10, %v3411_v63, %v9246_v2  ;;  %v3445_v61 = vsel %vm15662_vm10, %v3412_v16, %v9247_v51  ;;  %v15925_v55 = vmov 0  ;;  %v15928_v13 = vrot.slane %v11439_v37, 7 }
  0xb3   : > { %v11478_v11 = vsel %vm15924_vm9, %v1481_v59, %v15923_v25  ;;  %v3477_v14 = vsel %vm15654_vm2, %v3444_v41, %v9266_v35  ;;  %v3478_v46 = vsel %vm15654_vm2, %v3445_v61, %v9267_v48  ;;  %v15926_v55 = vsel %vm11483_vm3, 4294967295, %v15925_v55 }
  0xb4   : > { %15927 = vst [vmem:[#allocation50_spill] sm:$0xff] %v15926_v55  ;;  %v11490_v62 = vsel %vm15929_vm6, %v1289_v47, %v15928_v13  ;;  %v11492_v51 = vpop.permute.xlu2 %9314  ;;  %v3509_v2 = vpack.c.bf16 %v3478_v46, %v3477_v14  ;;  %v9272_v35 = vunpack.i.h.bf16 %v11344_v43  ;;  %v9271_v15 = vunpack.i.l.bf16 %v11344_v43 }
  0xb5   : > { %9484 = vrot.lane.b32.xlu0 %v11380_v50, %s15869_s17  ;;  %9489 = vrot.lane.b32.xlu1 %v9488_v3, %s15870_s16  ;;  %v1417_v47 = vsel %vm11027_vm7, %v10882_v4, %v11403_v17  ;;  %v9493_v61 = vpack.i.bf16 %v11463_v26, %v2168_v8  ;;  %v15930_v48 = vrot.slane %v11330_v32, 1  ;;  %v2298_v43 = vsel %vm11382_vm0, %v11426_v10, %v11478_v11 }
  0xb6   : > { %8736 = vmatmul.msk.bf16.vlgmr.msra.gmra.mxu0 %vm15653_vm15, %v3509_v2  ;;  %v786_v25 = vand.u32 15, %v596_v20  ;;  %vm15932_vm9 = vcmask 31744   ;;  %v15934_v20 = vmov 0  ;;  %vm15937_vm15 = vcmask 64512  }
  0xb7   : > { %v11512_v16 = vsel %vm15931_vm11, %v15930_v48, %v1481_v59  ;;  %v9275_v3 = vpop.permute.xlu0 %9274  ;;  %v9280_v41 = vpop.permute.xlu1 %9279  ;;  %v3248_v17 = vsel %vm15932_vm9, %v1417_v47, %v9271_v15  ;;  %vm15933_vm6 = vmmov %vm15932_vm9  ;;  %v11523_v59 = vpack.i.bf16 %v11426_v10, %v11330_v32  ;;  %vm16009_vm7 = vcmask 228352  }
  0xb8   : > { %v9277_v14 = vunpack.i.h.bf16 %v9275_v3  ;;  %v9276_v4 = vunpack.i.l.bf16 %v9275_v3  ;;  %v3249_v8 = vsel %vm15933_vm6, %v10939_v24, %v9272_v35  ;;  %v9503_v46 = vpack.i.bf16 %v2298_v43, %v11512_v16  ;;  %vm15938_vm9 = vmmov %vm15937_vm15  ;;  %v11539_v24 = vld [vmem:[%s10879_s26 + $0x88] sm:$0xff] }
  0xb9   : > { %v9282_v13 = vunpack.i.h.bf16 %v9280_v41  ;;  %v9281_v2 = vunpack.i.l.bf16 %v9280_v41  ;;  %vm11527_vm11 = vcmp.eq.s32.totalorder %v786_v25, 15  ;;  %v9287_v35 = vunpack.i.h.bf16 %v11408_v29 }
  0xba   : > { %9494 = vrot.lane.b32.xlu2 %v9493_v61, %s15871_s0  ;;  %v15935_v20 = vsel %vm11527_vm11, 4294967295, %v15934_v20  ;;  %v3281_v48 = vsel %vm15937_vm15, %v3248_v17, %v9276_v4  ;;  %v3282_v15 = vsel %vm15938_vm9, %v3249_v8, %v9277_v14  ;;  %v9286_v61 = vunpack.i.l.bf16 %v11408_v29 }
  0xbb   : > { %15936 = vst [vmem:[#allocation51_spill] sm:$0xff] %v15935_v20  ;;  %v1624_v43 = vsel %vm11527_vm11, %v11327_v27, %v11363_v12  ;;  %v1784_v3 = vsel %vm11268_vm14, %v11330_v32, %v11375_v19  ;;  %vm15939_vm15 = vcmask 97280   ;;  %v1293_v29 = vrot.slane %v11539_v24, 7 }
  0xbc   : > { %v11533_v47 = vpop.permute.xlu2 %9329  ;;  %v3314_v41 = vsel %vm15939_vm15, %v3281_v48, %v9281_v2  ;;  %vm15940_vm6 = vmmov %vm15939_vm15  ;;  %v9518_v27 = vpack.i.bf16 %v11463_v26, %v1784_v3  ;;  %vm15941_vm9 = vcmask 130048   ;;  %vm15943_vm15 = vcmask 162816  }
  0xbd   : > { %9499 = vrot.lane.b32.xlu0 %v11523_v59, %s15875_s27  ;;  %9504 = vrot.lane.b32.xlu1 %v9503_v46, %s15876_s20  ;;  %v3315_v25 = vsel %vm15940_vm6, %v3282_v15, %v9282_v13  ;;  %v9513_v46 = vpack.i.bf16 %v1624_v43, %v11394_v5  ;;  %v3347_v12 = vsel %vm15941_vm9, %v3314_v41, %v9286_v61  ;;  %vm15942_vm2 = vmmov %vm15941_vm9  ;;  %v11561_v13 = vld [vmem:[%s10879_s26 + $0x90] sm:$0xff]  ;;  %v9302_v15 = vunpack.i.h.bf16 %v11443_v18 }
  0xbe   : > { %v3348_v63 = vsel %vm15942_vm2, %v3315_v25, %v9287_v35  ;;  %vm15944_vm6 = vmmov %vm15943_vm15  ;;  %v1914_v35 = vsel %vm11527_vm11, %v11426_v10, %v11478_v11  ;;  %v15945_v61 = vrot.slane %v11439_v37, 7  ;;  %vm15946_vm2 = vcmask 1040384  }
  0xbf   : > { %v9290_v14 = vpop.permute.xlu0 %9289  ;;  %v9295_v4 = vpop.permute.xlu1 %9294  ;;  %v601_v41 = vadd.s32 160, %v10869_v1  ;;  %v598_v3 = vadd.s32 136, %v10869_v1  ;;  %vm15948_vm9 = vcmask 1046528  }
  0xc0   : > { %v9292_v17 = vunpack.i.h.bf16 %v9290_v14  ;;  %v9291_v8 = vunpack.i.l.bf16 %v9290_v14  ;;  %v9297_v60 = vunpack.i.h.bf16 %v9295_v4  ;;  %v9296_v30 = vunpack.i.l.bf16 %v9295_v4 }
  0xc1   : > { %v11575_v43 = vsel %vm15946_vm2, %v15945_v61, %v1293_v29  ;;  %v2170_v4 = vsel %vm11268_vm14, %v11439_v37, %v11490_v62  ;;  %v9528_v61 = vpack.i.bf16 %v1914_v35, %v11512_v16 }
  0xc2   : > { %9509 = vrot.lane.b32.xlu2 %v11380_v50, %s15877_s24  ;;  %v3380_v2 = vsel %vm15943_vm15, %v3347_v12, %v9291_v8  ;;  %v3381_v48 = vsel %vm15944_vm6, %v3348_v63, %v9292_v17  ;;  %v9301_v50 = vunpack.i.l.bf16 %v11443_v18  ;;  %v1485_v63 = vrot.slane %v11539_v24, 1 }
  0xc3   : > { %v3413_v25 = vsel %vm15660_vm1, %v3380_v2, %v9296_v30  ;;  %v3414_v14 = vsel %vm15660_vm1, %v3381_v48, %v9297_v60  ;;  %v15661_v18 = vrot.slane %v11561_v13, 7  ;;  %v9533_v30 = vpack.i.bf16 %v11575_v43, %v2170_v4 }
  0xc4   : > { %v11566_v5 = vpop.permute.xlu2 %9344  ;;  %v3446_v60 = vsel %vm15662_vm10, %v3413_v25, %v9301_v50  ;;  %v3447_v2 = vsel %vm15662_vm10, %v3414_v14, %v9302_v15  ;;  %v15947_v48 = vrot.slane %v11561_v13, 1  ;;  %vm15949_vm15 = vcmask 261120  }
  0xc5   : > { %9514 = vrot.lane.b32.xlu0 %v9513_v46, %s15863_s23  ;;  %9519 = vrot.lane.b32.xlu1 %v9518_v27, %s15864_s25  ;;  %v821_v46 = vand.u32 15, %v601_v41  ;;  %vm15950_vm6 = vmmov %vm15949_vm15  ;;  %vm15954_vm1 = vcmask 1040384  }
  0xc6   : > { %v11598_v19 = vsel %vm15948_vm9, %v1485_v63, %v15947_v48  ;;  %v11611_v15 = vsel %vm15954_vm1, %v1293_v29, %v15661_v18  ;;  %v9317_v29 = vunpack.i.h.bf16 %v11492_v51  ;;  %vm15955_vm1 = vcmask 293888  }
  0xc7   : > { %v9305_v17 = vpop.permute.xlu0 %9304  ;;  %v9310_v8 = vpop.permute.xlu1 %9309  ;;  %vm11604_vm2 = vcmp.eq.s32.totalorder %v821_v46, 0  ;;  %v11623_v46 = vpack.i.bf16 %v11539_v24, %v11439_v37 }
  0xc8   : > { %v9307_v27 = vunpack.i.h.bf16 %v9305_v17  ;;  %v9306_v12 = vunpack.i.l.bf16 %v9305_v17  ;;  %v15951_v17 = vmov 0  ;;  %v9312_v50 = vunpack.i.h.bf16 %v9310_v8 }
  0xc9   : > { %v15952_v17 = vsel %vm11604_vm2, 4294967295, %v15951_v17  ;;  %v9311_v25 = vunpack.i.l.bf16 %v9310_v8  ;;  %v9316_v8 = vunpack.i.l.bf16 %v11492_v51  ;;  %v15958_v51 = vsel %vm10986_vm4, %v10888_v6, %v10992_v45 }
  0xca   : > { %9524 = vrot.lane.b32.xlu2 %v11523_v59, %s15869_s17  ;;  %v3479_v41 = vsel %vm15949_vm15, %v3446_v60, %v9306_v12  ;;  %v3480_v35 = vsel %vm15950_vm6, %v3447_v2, %v9307_v27  ;;  %15953 = vst [vmem:[#allocation52_spill] sm:$0xff] %v15952_v17  ;;  %v800_v27 = vand.u32 15, %v598_v3  ;;  %v15956_v60 = vrot.slane %v11439_v37, 1 }
  0xcb   : > { %v3510_v14 = vpack.c.bf16 %v3480_v35, %v3479_v41  ;;  %v2300_v3 = vsel %vm11527_vm11, %v11539_v24, %v11598_v19  ;;  %vm15957_vm15 = vcmask 31744   ;;  %vm15975_vm4 = vcmask 261120  }
  0xcc   : > { %v11617_v12 = vpop.permute.xlu2 %9359  ;;  %v11631_v2 = vsel %vm15948_vm9, %v15956_v60, %v1485_v63  ;;  %vm15959_vm6 = vmmov %vm15957_vm15  ;;  %vm15963_vm9 = vcmask 64512  }
  0xcd   : > { %9529 = vrot.lane.b32.xlu0 %v9528_v61, %s15870_s16  ;;  %9534 = vrot.lane.b32.xlu1 %v9533_v30, %s15871_s0  ;;  %v3251_v61 = vsel %vm15957_vm15, %v10967_v38, %v9312_v50  ;;  %v3250_v30 = vsel %vm15959_vm6, %v15958_v51, %v9311_v25  ;;  %v9543_v60 = vpack.i.bf16 %v2300_v3, %v11631_v2  ;;  %vm15964_vm15 = vmmov %vm15963_vm9  ;;  %vm15965_vm6 = vcmask 97280  }
  0xce   : > { %8737 = vmatmul.msk.bf16.gmra.mxu0 %vm15955_vm1, %v3510_v14  ;;  %vm11645_vm1 = vcmp.eq.s32.totalorder %v800_v27, 15  ;;  %v15960_v14 = vmov 0  ;;  %v3283_v4 = vsel %vm15963_vm9, %v3250_v30, %v9316_v8  ;;  %v3284_v38 = vsel %vm15964_vm15, %v3251_v61, %v9317_v29  ;;  %vm15966_vm10 = vmmov %vm15965_vm6  ;;  %v11675_v61 = vld [vmem:[%s10879_s26 + $0x98] sm:$0xff] }
  0xcf   : > { %v9320_v48 = vpop.permute.xlu0 %9319  ;;  %v9325_v41 = vpop.permute.xlu1 %9324  ;;  %v15961_v14 = vsel %vm11645_vm1, 4294967295, %v15960_v14  ;;  %v1626_v25 = vsel %vm11645_vm1, %v11426_v10, %v11478_v11  ;;  %v1786_v29 = vsel %vm11368_vm13, %v11439_v37, %v11490_v62  ;;  %v9332_v8 = vunpack.i.h.bf16 %v11533_v47 }
  0xd0   : > { %v9322_v35 = vunpack.i.h.bf16 %v9320_v48  ;;  %v9321_v63 = vunpack.i.l.bf16 %v9320_v48  ;;  %15962 = vst [vmem:[#allocation53_spill] sm:$0xff] %v15961_v14  ;;  %v9327_v50 = vunpack.i.h.bf16 %v9325_v41  ;;  %v9326_v18 = vunpack.i.l.bf16 %v9325_v41 }
  0xd1   : > { %v9331_v3 = vunpack.i.l.bf16 %v11533_v47  ;;  %v9553_v11 = vpack.i.bf16 %v1626_v25, %v11512_v16  ;;  %v9347_v51 = vunpack.i.h.bf16 %v11566_v5  ;;  %v9346_v30 = vunpack.i.l.bf16 %v11566_v5 }
  0xd2   : > { %9539 = vrot.lane.b32.xlu2 %v11623_v46, %s15875_s27  ;;  %v3316_v6 = vsel %vm15965_vm6, %v3283_v4, %v9321_v63  ;;  %v3317_v45 = vsel %vm15966_vm10, %v3284_v38, %v9322_v35  ;;  %vm15967_vm10 = vcmask 130048   ;;  %v9558_v47 = vpack.i.bf16 %v11575_v43, %v1786_v29  ;;  %v11681_v35 = vld [vmem:[%s10879_s26 + $0xa0] sm:$0xff] }
  0xd3   : > { %v3349_v4 = vsel %vm15967_vm10, %v3316_v6, %v9326_v18  ;;  %vm15968_vm9 = vmmov %vm15967_vm10  ;;  %vm15969_vm15 = vcmask 162816   ;;  %v1297_v5 = vrot.slane %v11675_v61, 7  ;;  %vm15971_vm10 = vcmask 195584  }
  0xd4   : > { %v11660_v27 = vpop.permute.xlu2 %9374  ;;  %v3350_v10 = vsel %vm15968_vm9, %v3317_v45, %v9327_v50  ;;  %v3382_v38 = vsel %vm15969_vm15, %v3349_v4, %v9331_v3  ;;  %vm15970_vm6 = vmmov %vm15969_vm15  ;;  %v1916_v50 = vsel %vm11645_vm1, %v11539_v24, %v11598_v19  ;;  %v1489_v25 = vrot.slane %v11675_v61, 1 }
  0xd5   : > { %9544 = vrot.lane.b32.xlu0 %v9543_v60, %s15876_s20  ;;  %9549 = vrot.lane.b32.xlu1 %v11523_v59, %s15877_s24  ;;  %v3383_v16 = vsel %vm15970_vm6, %v3350_v10, %v9332_v8  ;;  %vm15972_vm9 = vmmov %vm15971_vm10  ;;  %v15665_v29 = vrot.slane %v11681_v35, 1  ;;  %vm15973_vm15 = vcmask 228352   ;;  %v600_v4 = vadd.s32 152, %v10869_v1 }
  0xd6   : > { %vm15974_vm6 = vmmov %vm15973_vm15  ;;  %v603_v10 = vadd.s32 176, %v10869_v1  ;;  %v16001_v56 = vrot.slane %v11681_v35, 7 }
  0xd7   : > { %v9335_v48 = vpop.permute.xlu0 %9334  ;;  %v9340_v41 = vpop.permute.xlu1 %9339 }
  0xd8   : > { %v9337_v63 = vunpack.i.h.bf16 %v9335_v48  ;;  %v9336_v59 = vunpack.i.l.bf16 %v9335_v48  ;;  %v9342_v60 = vunpack.i.h.bf16 %v9340_v41  ;;  %v9341_v18 = vunpack.i.l.bf16 %v9340_v41 }
  0xda   : > { %v3415_v6 = vsel %vm15971_vm10, %v3382_v38, %v9336_v59  ;;  %v3416_v45 = vsel %vm15972_vm9, %v3383_v16, %v9337_v63  ;;  %9554 = vrot.lane.b32.xlu2 %v9553_v11, %s15863_s23  ;;  %vm15976_vm10 = vmmov %vm15975_vm4  ;;  %v15666_v11 = vrot.slane %v11681_v35, 7  ;;  %v15977_v38 = vrot.slane %v11561_v13, 7 }
  0xdb   : > { %v3448_v3 = vsel %vm15973_vm15, %v3415_v6, %v9341_v18  ;;  %v3449_v8 = vsel %vm15974_vm6, %v3416_v45, %v9342_v60  ;;  %v835_v18 = vand.u32 15, %v603_v10  ;;  %v9568_v60 = vpack.i.bf16 %v1916_v50, %v11631_v2 }
  0xdc   : > { %v11699_v48 = vpop.permute.xlu2 %9389  ;;  %v3481_v41 = vsel %vm15975_vm4, %v3448_v3, %v9346_v30  ;;  %v3482_v63 = vsel %vm15976_vm10, %v3449_v8, %v9347_v51  ;;  %vm15978_vm9 = vcmask 1040384   ;;  %v2172_v51 = vsel %vm11368_vm13, %v11561_v13, %v11611_v15 }
  0xdd   : > { %9559 = vrot.lane.b32.xlu0 %v9558_v47, %s15864_s25  ;;  %9564 = vrot.lane.b32.xlu1 %v11623_v46, %s15869_s17  ;;  %v3511_v59 = vpack.c.bf16 %v3482_v63, %v3481_v41  ;;  %v11711_v16 = vsel %vm15978_vm9, %v15977_v38, %v1297_v5  ;;  %vm15979_vm4 = vcmask 293888   ;;  %vm15980_vm15 = vcmask 1046528   ;;  %vm15984_vm10 = vmmov %vm15978_vm9 }
  0xde   : > { %v11721_v47 = vsel %vm15980_vm15, %v1489_v25, %v15665_v29  ;;  %v814_v50 = vand.u32 15, %v600_v4  ;;  %vm11723_vm6 = vcmp.eq.s32.totalorder %v835_v18, 0  ;;  %v15981_v8 = vmov 0  ;;  %vm15986_vm9 = vmmov %vm15980_vm15 }
  0xdf   : > { %v9350_v30 = vpop.permute.xlu0 %9349  ;;  %v9355_v6 = vpop.permute.xlu1 %9354  ;;  %8738 = vmatmul.msk.bf16.gmra.mxu0 %vm15979_vm4, %v3511_v59  ;;  %v15982_v8 = vsel %vm11723_vm6, 4294967295, %v15981_v8  ;;  %v11730_v10 = vsel %vm15984_vm10, %v1297_v5, %v15666_v11  ;;  %v9573_v41 = vpack.i.bf16 %v11711_v16, %v2172_v51  ;;  %v11735_v63 = vpack.i.bf16 %v11675_v61, %v11561_v13  ;;  %v11778_v11 = vld [vmem:[%s10879_s26 + $0xa8] sm:$0xff] }
  0xe0   : > { %v9352_v45 = vunpack.i.h.bf16 %v9350_v30  ;;  %v9351_v3 = vunpack.i.l.bf16 %v9350_v30  ;;  %15983 = vst [vmem:[#allocation54_spill] sm:$0xff] %v15982_v8  ;;  %v15985_v59 = vrot.slane %v11561_v13, 1  ;;  %v9357_v5 = vunpack.i.h.bf16 %v9355_v6 }
  0xe1   : > { %v9356_v38 = vunpack.i.l.bf16 %v9355_v6  ;;  %v2302_v51 = vsel %vm11645_vm1, %v11675_v61, %v11721_v47  ;;  %vm11751_vm4 = vcmp.eq.s32.totalorder %v814_v50, 15  ;;  %v15987_v30 = vmov 0  ;;  %vm16010_vm1 = vmmov %vm16009_vm7 }
  0xe2   : > { %9569 = vrot.lane.b32.xlu2 %v9568_v60, %s15870_s16  ;;  %v11745_v18 = vsel %vm15986_vm9, %v15985_v59, %v1489_v25  ;;  %v15988_v30 = vsel %vm11751_vm4, 4294967295, %v15987_v30  ;;  %vm15990_vm15 = vcmask 31744   ;;  %v15991_v25 = vsel %vm11011_vm5, %v10949_v28, %v11016_v57 }
  0xe3   : > { %15989 = vst [vmem:[#allocation55_spill] sm:$0xff] %v15988_v30  ;;  %v3253_v60 = vsel %vm15990_vm15, %v11059_v21, %v9352_v45  ;;  %vm15992_vm10 = vmmov %vm15990_vm15  ;;  %v9362_v50 = vunpack.i.h.bf16 %v11617_v12  ;;  %v9361_v4 = vunpack.i.l.bf16 %v11617_v12  ;;  %v9583_v21 = vpack.i.bf16 %v2302_v51, %v11745_v18 }
  0xe4   : > { %v3252_v6 = vsel %vm15992_vm10, %v15991_v25, %v9351_v3  ;;  %v11763_v59 = vpop.permute.xlu2 %9404  ;;  %v1628_v28 = vsel %vm11751_vm4, %v11539_v24, %v11598_v19  ;;  %vm15993_vm9 = vcmask 64512   ;;  %v1788_v51 = vsel %vm11483_vm3, %v11561_v13, %v11611_v15 }
  0xe5   : > { %9574 = vrot.lane.b32.xlu0 %v9573_v41, %s15871_s0  ;;  %9579 = vrot.lane.b32.xlu1 %v11735_v63, %s15875_s27  ;;  %v3286_v57 = vsel %vm15993_vm9, %v3253_v60, %v9357_v5  ;;  %vm15994_vm15 = vmmov %vm15993_vm9  ;;  %v9593_v12 = vpack.i.bf16 %v1628_v28, %v11631_v2  ;;  %vm15995_vm10 = vcmask 97280   ;;  %vm15997_vm9 = vcmask 130048  }
  0xe6   : > { %v3285_v45 = vsel %vm15994_vm15, %v3252_v6, %v9356_v38  ;;  %vm15996_vm5 = vmmov %vm15995_vm10  ;;  %v1918_v2 = vsel %vm11751_vm4, %v11675_v61, %v11721_v47  ;;  %v1301_v28 = vrot.slane %v11778_v11, 7 }
  0xe7   : > { %v9365_v3 = vpop.permute.xlu0 %9364  ;;  %v9370_v41 = vpop.permute.xlu1 %9369  ;;  %v3318_v19 = vsel %vm15995_vm10, %v3285_v45, %v9361_v4  ;;  %v3319_v24 = vsel %vm15996_vm5, %v3286_v57, %v9362_v50  ;;  %vm15998_vm15 = vmmov %vm15997_vm9  ;;  %v9598_v4 = vpack.i.bf16 %v11711_v16, %v1788_v51  ;;  %v11799_v50 = vld [vmem:[%s10879_s26 + $0xb0] sm:$0xff]  ;;  %v9377_v57 = vunpack.i.h.bf16 %v11660_v27 }
  0xe8   : > { %v9367_v25 = vunpack.i.h.bf16 %v9365_v3  ;;  %v9366_v29 = vunpack.i.l.bf16 %v9365_v3  ;;  %v9372_v5 = vunpack.i.h.bf16 %v9370_v41  ;;  %v9371_v38 = vunpack.i.l.bf16 %v9370_v41 }
  0xe9   : > { %vm15999_vm5 = vcmask 162816   ;;  %v9608_v51 = vpack.i.bf16 %v1918_v2, %v11745_v18 }
  0xea   : > { %9584 = vrot.lane.b32.xlu2 %v9583_v21, %s15876_s20  ;;  %v3351_v60 = vsel %vm15997_vm9, %v3318_v19, %v9366_v29  ;;  %v3352_v6 = vsel %vm15998_vm15, %v3319_v24, %v9367_v25  ;;  %v9376_v21 = vunpack.i.l.bf16 %v11660_v27  ;;  %v605_v29 = vadd.s32 192, %v10869_v1  ;;  %vm16000_vm10 = vmmov %vm15999_vm5 }
  0xeb   : > { %v3384_v41 = vsel %vm15999_vm5, %v3351_v60, %v9371_v38  ;;  %v3385_v25 = vsel %vm16000_vm10, %v3352_v6, %v9372_v5  ;;  %vm16002_vm9 = vcmask 1040384   ;;  %vm16003_vm15 = vcmask 195584  }
  0xec   : > { %v11795_v3 = vpop.permute.xlu2 %9419  ;;  %v11814_v27 = vsel %vm16002_vm9, %v16001_v56, %v1301_v28  ;;  %v849_v44 = vand.u32 15, %v605_v29  ;;  %v3417_v5 = vsel %vm16003_vm15, %v3384_v41, %v9376_v21  ;;  %vm16004_vm5 = vmmov %vm16003_vm15  ;;  %v16005_v6 = vmov 0 }
  0xed   : > { %9589 = vrot.lane.b32.xlu0 %v11623_v46, %s15877_s24  ;;  %9594 = vrot.lane.b32.xlu1 %v9593_v12, %s15863_s23  ;;  %v1493_v46 = vrot.slane %v11778_v11, 1  ;;  %v15681_v12 = vrot.slane %v11799_v50, 1  ;;  %v3418_v60 = vsel %vm16004_vm5, %v3385_v25, %v9377_v57  ;;  %v16008_v56 = vrot.slane %v11799_v50, 7 }
  0xee   : > { %vm11820_vm10 = vcmp.eq.s32.totalorder %v849_v44, 0  ;;  %v2174_v57 = vsel %vm11483_vm3, %v11681_v35, %v11730_v10  ;;  %vm16011_vm15 = vcmask 261120   ;;  %v9392_v25 = vunpack.i.h.bf16 %v11699_v48 }
  0xef   : > { %v9380_v19 = vpop.permute.xlu0 %9379  ;;  %v9385_v24 = vpop.permute.xlu1 %9384  ;;  %v16006_v6 = vsel %vm11820_vm10, 4294967295, %v16005_v6  ;;  %v11827_v2 = vsel %vm16002_vm9, %v1301_v28, %v16008_v56  ;;  %vm16012_vm5 = vmmov %vm16011_vm15  ;;  %vm16013_vm9 = vcmask 1046528  }
  0xf0   : > { %v9382_v14 = vunpack.i.h.bf16 %v9380_v19  ;;  %v9381_v45 = vunpack.i.l.bf16 %v9380_v19  ;;  %v9387_v20 = vunpack.i.h.bf16 %v9385_v24  ;;  %v9386_v38 = vunpack.i.l.bf16 %v9385_v24  ;;  %16007 = vst [vmem:[#allocation56_spill] sm:$0xff] %v16006_v6 }
  0xf1   : > { %v9391_v24 = vunpack.i.l.bf16 %v11699_v48 }
  0xf2   : > { %9599 = vrot.lane.b32.xlu2 %v9598_v4, %s15864_s25  ;;  %v3450_v29 = vsel %vm16009_vm7, %v3417_v5, %v9381_v45  ;;  %v3451_v19 = vsel %vm16010_vm1, %v3418_v60, %v9382_v14  ;;  %v11845_v4 = vsel %vm16013_vm9, %v1493_v46, %v15681_v12  ;;  %v602_v14 = vadd.s32 168, %v10869_v1  ;;  %vm16016_vm1 = vmmov %vm16013_vm9 }
  0xf3   : > { %v3483_v21 = vsel %vm16011_vm15, %v3450_v29, %v9386_v38  ;;  %v3484_v28 = vsel %vm16012_vm5, %v3451_v19, %v9387_v20  ;;  %vm16014_vm7 = vcmask 293888   ;;  %v9613_v20 = vpack.i.bf16 %v11814_v27, %v2174_v57 }
  0xf4   : > { %v11848_v45 = vpop.permute.xlu2 %9434  ;;  %v3512_v41 = vpack.c.bf16 %v3484_v28, %v3483_v21  ;;  %v16015_v38 = vrot.slane %v11681_v35, 1  ;;  %v2304_v60 = vsel %vm11751_vm4, %v11778_v11, %v11845_v4  ;;  %v828_v29 = vand.u32 15, %v602_v14 }
  0xf5   : > { %9604 = vrot.lane.b32.xlu0 %v11735_v63, %s15869_s17  ;;  %9609 = vrot.lane.b32.xlu1 %v9608_v51, %s15870_s16  ;;  %vm16017_vm15 = vcmask 31744   ;;  %v11876_v28 = vpack.i.bf16 %v11778_v11, %v11681_v35 }
  0xf6   : > { %8739 = vmatmul.msk.bf16.gmra.mxu0 %vm16014_vm7, %v3512_v41  ;;  %v11860_v5 = vsel %vm16016_vm1, %v16015_v38, %v1493_v46  ;;  %v3255_v21 = vsel %vm16017_vm15, %v11143_v9, %v9392_v25  ;;  %v16018_v46 = vsel %vm11065_vm8, %v11045_v7, %v11070_v23  ;;  %vm16019_vm5 = vmmov %vm16017_vm15  ;;  %vm11880_vm9 = vcmp.eq.s32.totalorder %v828_v29, 15  ;;  %v11892_v25 = vld [vmem:[%s10879_s26 + $0xb8] sm:$0xff] }
  0xf7   : > { %v9395_v48 = vpop.permute.xlu0 %9394  ;;  %v9400_v56 = vpop.permute.xlu1 %9399  ;;  %v3254_v57 = vsel %vm16019_vm5, %v16018_v46, %v9391_v24  ;;  %v9623_v41 = vpack.i.bf16 %v2304_v60, %v11860_v5  ;;  %vm16023_vm7 = vcmask 64512   ;;  %v9407_v24 = vunpack.i.h.bf16 %v11763_v59 }
  0xf8   : > { %v9397_v19 = vunpack.i.h.bf16 %v9395_v48  ;;  %v9396_v51 = vunpack.i.l.bf16 %v9395_v48  ;;  %v9402_v14 = vunpack.i.h.bf16 %v9400_v56  ;;  %v9401_v38 = vunpack.i.l.bf16 %v9400_v56  ;;  %vm16024_vm1 = vmmov %vm16023_vm7 }
  0xf9   : > { %v16020_v48 = vmov 0  ;;  %v1630_v60 = vsel %vm11880_vm9, %v11675_v61, %v11721_v47  ;;  %v1790_v56 = vsel %vm11604_vm2, %v11681_v35, %v11730_v10  ;;  %vm16025_vm15 = vcmask 97280  }
  0xfa   : > { %9614 = vrot.lane.b32.xlu2 %v9613_v20, %s15871_s0  ;;  %v16021_v48 = vsel %vm11880_vm9, 4294967295, %v16020_v48  ;;  %v3288_v9 = vsel %vm16023_vm7, %v3255_v21, %v9397_v19  ;;  %v3287_v7 = vsel %vm16024_vm1, %v3254_v57, %v9396_v51  ;;  %v9406_v20 = vunpack.i.l.bf16 %v11763_v59  ;;  %vm16026_vm5 = vmmov %vm16025_vm15 }
  0xfb   : > { %16022 = vst [vmem:[#allocation57_spill] sm:$0xff] %v16021_v48  ;;  %v3321_v29 = vsel %vm16025_vm15, %v3288_v9, %v9402_v14  ;;  %v3320_v19 = vsel %vm16026_vm5, %v3287_v7, %v9401_v38  ;;  %v1305_v59 = vrot.slane %v11892_v25, 7  ;;  %v9638_v61 = vpack.i.bf16 %v11814_v27, %v1790_v56  ;;  %v11914_v14 = vld [vmem:[%s10879_s26 + $0xc0] sm:$0xff] }
  0xfc   : > { %v11886_v23 = vpop.permute.xlu2 %9449  ;;  %vm16027_vm7 = vcmask 130048   ;;  %vm16029_vm15 = vcmask 162816   ;;  %v9422_v7 = vunpack.i.h.bf16 %v11795_v3  ;;  %v604_v56 = vadd.s32 184, %v10869_v1 }
  0xfd   : > { %9619 = vrot.lane.b32.xlu0 %v11876_v28, %s15875_s27  ;;  %9624 = vrot.lane.b32.xlu1 %v9623_v41, %s15876_s20  ;;  %v9633_v41 = vpack.i.bf16 %v1630_v60, %v11745_v18  ;;  %v3353_v47 = vsel %vm16027_vm7, %v3320_v19, %v9406_v20  ;;  %vm16028_vm1 = vmmov %vm16027_vm7  ;;  %v16031_v20 = vrot.slane %v11799_v50, 7  ;;  %vm16032_vm7 = vcmask 1040384  }
  0xfe   : > { %v3354_v44 = vsel %vm16028_vm1, %v3321_v29, %v9407_v24  ;;  %vm16030_vm5 = vmmov %vm16029_vm15  ;;  %v1920_v24 = vsel %vm11880_vm9, %v11778_v11, %v11845_v4  ;;  %v607_v29 = vadd.s32 208, %v10869_v1  ;;  %vm16033_vm1 = vcmask 195584  }
  0xff   : > { %v9410_v51 = vpop.permute.xlu0 %9409  ;;  %v9415_v21 = vpop.permute.xlu1 %9414  ;;  %v11928_v60 = vsel %vm16032_vm7, %v16031_v20, %v1305_v59  ;;  %v9648_v20 = vpack.i.bf16 %v1920_v24, %v11860_v5 }
 0x100   : > { %v9412_v46 = vunpack.i.h.bf16 %v9410_v51  ;;  %v9411_v57 = vunpack.i.l.bf16 %v9410_v51  ;;  %v9417_v12 = vunpack.i.h.bf16 %v9415_v21  ;;  %v9416_v22 = vunpack.i.l.bf16 %v9415_v21 }
 0x101   : > { %v2176_v21 = vsel %vm11604_vm2, %v11799_v50, %v11827_v2 }
 0x102   : > { %9629 = vrot.lane.b32.xlu2 %v11735_v63, %s15877_s24  ;;  %v3386_v38 = vsel %vm16029_vm15, %v3353_v47, %v9411_v57  ;;  %v3387_v9 = vsel %vm16030_vm5, %v3354_v44, %v9412_v46  ;;  %v9421_v63 = vunpack.i.l.bf16 %v11795_v3  ;;  %v1497_v44 = vrot.slane %v11892_v25, 1  ;;  %vm16034_vm15 = vmmov %vm16033_vm1 }
 0x103   : > { %v3419_v19 = vsel %vm16033_vm1, %v3386_v38, %v9416_v22  ;;  %v3420_v51 = vsel %vm16034_vm15, %v3387_v9, %v9417_v12  ;;  %v15690_v3 = vrot.slane %v11914_v14, 7  ;;  %v9653_v22 = vpack.i.bf16 %v11928_v60, %v2176_v21 }
 0x104   : > { %v11919_v18 = vpop.permute.xlu2 %9464  ;;  %vm16035_vm5 = vcmask 228352   ;;  %v16037_v9 = vrot.slane %v11914_v14, 1  ;;  %vm16038_vm1 = vcmask 1046528   ;;  %vm16039_vm15 = vcmask 261120  }
 0x105   : > { %9634 = vrot.lane.b32.xlu0 %v9633_v41, %s15863_s23  ;;  %9639 = vrot.lane.b32.xlu1 %v9638_v61, %s15864_s25  ;;  %v863_v41 = vand.u32 15, %v607_v29  ;;  %v3452_v12 = vsel %vm16035_vm5, %v3419_v19, %v9421_v63  ;;  %vm16036_vm7 = vmmov %vm16035_vm5  ;;  %vm16044_vm5 = vcmask 1040384  }
 0x106   : > { %v3453_v38 = vsel %vm16036_vm7, %v3420_v51, %v9422_v7  ;;  %v11951_v30 = vsel %vm16038_vm1, %v1497_v44, %v16037_v9  ;;  %vm16040_vm8 = vmmov %vm16039_vm15  ;;  %v11964_v7 = vsel %vm16044_vm5, %v1305_v59, %v15690_v3  ;;  %v9437_v59 = vunpack.i.h.bf16 %v11848_v45 }
 0x107   : > { %v9425_v46 = vpop.permute.xlu0 %9424  ;;  %v9430_v57 = vpop.permute.xlu1 %9429  ;;  %vm11957_vm4 = vcmp.eq.s32.totalorder %v863_v41, 0  ;;  %16045 = vst [vmem:[#allocation59_spill] sm:$0xff] %v11964_v7  ;;  %v11976_v41 = vpack.i.bf16 %v11892_v25, %v11799_v50  ;;  %vm16048_vm7 = vmmov %vm16038_vm1  ;;  %vm16049_vm1 = vcmask 31744  }
 0x108   : > { %v9427_v61 = vunpack.i.h.bf16 %v9425_v46  ;;  %v9426_v47 = vunpack.i.l.bf16 %v9425_v46  ;;  %v16041_v46 = vmov 0  ;;  %v9432_v63 = vunpack.i.h.bf16 %v9430_v57  ;;  %vm16052_vm5 = vmmov %vm16049_vm1 }
 0x109   : > { %v16042_v46 = vsel %vm11957_vm4, 4294967295, %v16041_v46  ;;  %v9431_v19 = vunpack.i.l.bf16 %v9430_v57  ;;  %v9436_v57 = vunpack.i.l.bf16 %v11848_v45 }
 0x10a   : > { %9644 = vrot.lane.b32.xlu2 %v11876_v28, %s15869_s17  ;;  %v3485_v29 = vsel %vm16039_vm15, %v3452_v12, %v9426_v47  ;;  %v3486_v24 = vsel %vm16040_vm8, %v3453_v38, %v9427_v61  ;;  %16043 = vst [vmem:[#allocation58_spill] sm:$0xff] %v16042_v46  ;;  %v842_v61 = vand.u32 15, %v604_v56  ;;  %vm16046_vm8 = vcmask 293888  }
 0x10b   : > { %v3513_v51 = vpack.c.bf16 %v3486_v24, %v3485_v29  ;;  %v16047_v12 = vrot.slane %v11799_v50, 1  ;;  %v2306_v56 = vsel %vm11880_vm9, %v11892_v25, %v11951_v30  ;;  %vm16050_vm15 = vnez %v15879_v0 }
 0x10c   : > { %v11970_v47 = vpop.permute.xlu2 %9479  ;;  %v16051_v45 = vsel %vm16050_vm15, %v11108_v52, %v11125_v54  ;;  %vm16069_vm9 = vcmask 261120  }
 0x10d   : > { %9649 = vrot.lane.b32.xlu0 %v9648_v20, %s15870_s16  ;;  %9654 = vrot.lane.b32.xlu1 %v9653_v22, %s15871_s0  ;;  %v11984_v38 = vsel %vm16048_vm7, %v16047_v12, %v1497_v44  ;;  %v3257_v20 = vsel %vm16049_vm1, %v11203_v36, %v9432_v63  ;;  %v3256_v22 = vsel %vm16052_vm5, %v16051_v45, %v9431_v19  ;;  %vm16056_vm7 = vcmask 64512  }
 0x10e   : > { %8740 = vmatmul.msk.bf16.gmra.mxu0 %vm16046_vm8, %v3513_v51  ;;  %vm11998_vm8 = vcmp.eq.s32.totalorder %v842_v61, 15  ;;  %v16053_v51 = vmov 0  ;;  %v9663_v12 = vpack.i.bf16 %v2306_v56, %v11984_v38  ;;  %v3289_v21 = vsel %vm16056_vm7, %v3256_v22, %v9436_v57  ;;  %vm16057_vm1 = vmmov %vm16056_vm7 }
 0x10f   : > { %v9440_v9 = vpop.permute.xlu0 %9439  ;;  %v9445_v29 = vpop.permute.xlu1 %9444  ;;  %v16054_v51 = vsel %vm11998_vm8, 4294967295, %v16053_v51  ;;  %v3290_v36 = vsel %vm16057_vm1, %v3257_v20, %v9437_v59  ;;  %vm16058_vm5 = vcmask 97280   ;;  %v1632_v19 = vsel %vm11998_vm8, %v11778_v11, %v11845_v4  ;;  %v12028_v20 = vld [vmem:[%s10879_s26 + $0xc8] sm:$0xff] }
 0x110   : > { %v9442_v24 = vunpack.i.h.bf16 %v9440_v9  ;;  %v9441_v44 = vunpack.i.l.bf16 %v9440_v9  ;;  %16055 = vst [vmem:[#allocation60_spill] sm:$0xff] %v16054_v51  ;;  %v9447_v63 = vunpack.i.h.bf16 %v9445_v29  ;;  %v9446_v3 = vunpack.i.l.bf16 %v9445_v29  ;;  %vm16059_vm15 = vmmov %vm16058_vm5 }
 0x111   : > { %v1792_v59 = vsel %vm11723_vm6, %v11799_v50, %v11827_v2  ;;  %v9452_v57 = vunpack.i.h.bf16 %v11886_v23  ;;  %v9451_v56 = vunpack.i.l.bf16 %v11886_v23  ;;  %v9673_v4 = vpack.i.bf16 %v1632_v19, %v11860_v5 }
 0x112   : > { %9659 = vrot.lane.b32.xlu2 %v11976_v41, %s15875_s27  ;;  %v3322_v52 = vsel %vm16058_vm5, %v3289_v21, %v9441_v44  ;;  %v3323_v54 = vsel %vm16059_vm15, %v3290_v36, %v9442_v24  ;;  %vm16060_vm15 = vcmask 130048   ;;  %v9467_v45 = vunpack.i.h.bf16 %v11919_v18  ;;  %v12034_v24 = vld [vmem:[%s10879_s26 + $0xd0] sm:$0xff] }
 0x113   : > { %v3355_v21 = vsel %vm16060_vm15, %v3322_v52, %v9446_v3  ;;  %vm16061_vm7 = vmmov %vm16060_vm15  ;;  %v9466_v22 = vunpack.i.l.bf16 %v11919_v18  ;;  %v9678_v23 = vpack.i.bf16 %v11928_v60, %v1792_v59  ;;  %16062 = vst [vmem:[#allocation61_spill] sm:$0xff] %v12034_v24  ;;  %vm16063_vm1 = vcmask 162816  }
 0x114   : > { %v12013_v61 = vpop.permute.xlu2 %9494  ;;  %v3356_v11 = vsel %vm16061_vm7, %v3323_v54, %v9447_v63  ;;  %v3388_v36 = vsel %vm16063_vm1, %v3355_v21, %v9451_v56  ;;  %vm16064_vm5 = vmmov %vm16063_vm1  ;;  %v1922_v63 = vsel %vm11998_vm8, %v11892_v25, %v11951_v30  ;;  %v1309_v18 = vrot.slane %v12028_v20, 7 }
 0x115   : > { %9664 = vrot.lane.b32.xlu0 %v9663_v12, %s15876_s20  ;;  %9669 = vrot.lane.b32.xlu1 %v11876_v28, %s15877_s24  ;;  %v3389_v5 = vsel %vm16064_vm5, %v3356_v11, %v9452_v57  ;;  %vm16065_vm15 = vcmask 195584   ;;  %v1501_v19 = vrot.slane %v12028_v20, 1  ;;  %v15693_v59 = vrot.slane %v12034_v24, 1 }
 0x116   : > { %vm16066_vm7 = vmmov %vm16065_vm15  ;;  %vm16067_vm1 = vcmask 228352   ;;  %v606_v21 = vadd.s32 200, %v10869_v1  ;;  %v609_v11 = vadd.s32 224, %v10869_v1 }
 0x117   : > { %v9455_v9 = vpop.permute.xlu0 %9454  ;;  %v9460_v29 = vpop.permute.xlu1 %9459  ;;  %vm16068_vm5 = vmmov %vm16067_vm1 }
 0x118   : > { %v9457_v44 = vunpack.i.h.bf16 %v9455_v9  ;;  %v9456_v28 = vunpack.i.l.bf16 %v9455_v9  ;;  %v9462_v12 = vunpack.i.h.bf16 %v9460_v29  ;;  %v9461_v3 = vunpack.i.l.bf16 %v9460_v29 }
 0x11a   : > { %v3421_v52 = vsel %vm16065_vm15, %v3388_v36, %v9456_v28  ;;  %v3422_v54 = vsel %vm16066_vm7, %v3389_v5, %v9457_v44  ;;  %9674 = vrot.lane.b32.xlu2 %v9673_v4, %s15863_s23  ;;  %vm16070_vm15 = vmmov %vm16069_vm9  ;;  %v15694_v4 = vrot.slane %v12034_v24, 7  ;;  %v16071_v36 = vrot.slane %v11914_v14, 7 }
 0x11b   : > { %v3454_v56 = vsel %vm16067_vm1, %v3421_v52, %v9461_v3  ;;  %v3455_v57 = vsel %vm16068_vm5, %v3422_v54, %v9462_v12  ;;  %v877_v3 = vand.u32 15, %v609_v11  ;;  %v9688_v12 = vpack.i.bf16 %v1922_v63, %v11984_v38 }
 0x11c   : > { %v12052_v9 = vpop.permute.xlu2 %9509  ;;  %v3487_v29 = vsel %vm16069_vm9, %v3454_v56, %v9466_v22  ;;  %v3488_v44 = vsel %vm16070_vm15, %v3455_v57, %v9467_v45  ;;  %vm16072_vm7 = vcmask 1040384   ;;  %v2178_v45 = vsel %vm11723_vm6, %v11914_v14, %v11964_v7 }
 0x11d   : > { %9679 = vrot.lane.b32.xlu0 %v9678_v23, %s15864_s25  ;;  %9684 = vrot.lane.b32.xlu1 %v11976_v41, %s15869_s17  ;;  %v3514_v28 = vpack.c.bf16 %v3488_v44, %v3487_v29  ;;  %v12064_v5 = vsel %vm16072_vm7, %v16071_v36, %v1309_v18  ;;  %vm16074_vm9 = vcmask 293888   ;;  %vm16075_vm1 = vcmask 1046528   ;;  %vm16079_vm15 = vmmov %vm16072_vm7 }
 0x11e   : > { %16073 = vst [vmem:[#allocation62_spill] sm:$0xff] %v12064_v5  ;;  %v12074_v23 = vsel %vm16075_vm1, %v1501_v19, %v15693_v59  ;;  %v856_v63 = vand.u32 15, %v606_v21  ;;  %vm12076_vm5 = vcmp.eq.s32.totalorder %v877_v3, 0  ;;  %v16076_v57 = vmov 0  ;;  %vm16082_vm7 = vmmov %vm16075_vm1 }
 0x11f   : > { %v9470_v22 = vpop.permute.xlu0 %9469  ;;  %v9475_v52 = vpop.permute.xlu1 %9474  ;;  %8741 = vmatmul.msk.bf16.gmra.mxu0 %vm16074_vm9, %v3514_v28  ;;  %v16077_v57 = vsel %vm12076_vm5, 4294967295, %v16076_v57  ;;  %v12083_v11 = vsel %vm16079_vm15, %v1309_v18, %v15694_v4  ;;  %v9693_v29 = vpack.i.bf16 %v12064_v5, %v2178_v45  ;;  %v12088_v44 = vpack.i.bf16 %v12028_v20, %v11914_v14 }
 0x120   : > { %v9472_v54 = vunpack.i.h.bf16 %v9470_v22  ;;  %v9471_v56 = vunpack.i.l.bf16 %v9470_v22  ;;  %16078 = vst [vmem:[#allocation63_spill] sm:$0xff] %v16077_v57  ;;  %v16081_v28 = vrot.slane %v11914_v14, 1  ;;  %v9477_v18 = vunpack.i.h.bf16 %v9475_v52 }
 0x121   : > { %16080 = vst [vmem:[#allocation64_spill] sm:$0xff] %v12083_v11  ;;  %v9476_v36 = vunpack.i.l.bf16 %v9475_v52  ;;  %v2308_v45 = vsel %vm11998_vm8, %v12028_v20, %v12074_v23  ;;  %vm12104_vm9 = vcmp.eq.s32.totalorder %v856_v63, 15  ;;  %v16083_v22 = vmov 0 }
 0x122   : > { %9689 = vrot.lane.b32.xlu2 %v9688_v12, %s15870_s16  ;;  %v12098_v3 = vsel %vm16082_vm7, %v16081_v28, %v1501_v19  ;;  %v16084_v22 = vsel %vm12104_vm9, 4294967295, %v16083_v22  ;;  %vm16086_vm1 = vcmask 31744   ;;  %v16087_v19 = vsel %vm11190_vm12, %v11177_v42, %v11195_v34 }
 0x123   : > { %16085 = vst [vmem:[#allocation65_spill] sm:$0xff] %v16084_v22  ;;  %v3259_v21 = vsel %vm16086_vm1, %v11255_v39, %v9472_v54  ;;  %vm16088_vm15 = vmmov %vm16086_vm1  ;;  %v9482_v63 = vunpack.i.h.bf16 %v11970_v47  ;;  %v9481_v28 = vunpack.i.l.bf16 %v11970_v47  ;;  %v9703_v39 = vpack.i.bf16 %v2308_v45, %v12098_v3 }
 0x124   : > { %v3258_v12 = vsel %vm16088_vm15, %v16087_v19, %v9471_v56  ;;  %v12116_v52 = vpop.permute.xlu2 %9524  ;;  %v1634_v42 = vsel %vm12104_vm9, %v11892_v25, %v11951_v30  ;;  %vm16089_vm7 = vcmask 64512   ;;  %v1794_v47 = vsel %vm11820_vm10, %v11914_v14, %v11964_v7 }
 0x125   : > { %9694 = vrot.lane.b32.xlu0 %v9693_v29, %s15871_s0  ;;  %9699 = vrot.lane.b32.xlu1 %v12088_v44, %s15875_s27  ;;  %v3292_v34 = vsel %vm16089_vm7, %v3259_v21, %v9477_v18  ;;  %vm16090_vm1 = vmmov %vm16089_vm7  ;;  %v9713_v4 = vpack.i.bf16 %v1634_v42, %v11984_v38  ;;  %vm16091_vm15 = vcmask 97280   ;;  %vm16093_vm7 = vcmask 130048   ;;  %v12146_v42 = vld [vmem:[%s10879_s26 + $0xe0] sm:$0xff] }
 0x126   : > { %v3291_v54 = vsel %vm16090_vm1, %v3258_v12, %v9476_v36  ;;  %vm16092_vm12 = vmmov %vm16091_vm15  ;;  %v12141_v12 = vld [vmem:[%s10879_s26 + $0xd8] sm:$0xff]  ;;  %vm16103_vm8 = vcmask 1040384  }
 0x127   : > { %v9485_v56 = vpop.permute.xlu0 %9484  ;;  %v9490_v29 = vpop.permute.xlu1 %9489  ;;  %v3324_v45 = vsel %vm16091_vm15, %v3291_v54, %v9481_v28  ;;  %v3325_v30 = vsel %vm16092_vm12, %v3292_v34, %v9482_v63  ;;  %vm16094_vm1 = vmmov %vm16093_vm7  ;;  %v9496_v28 = vunpack.i.l.bf16 %v12013_v61  ;;  %vm16095_vm12 = vcmask 162816  }
 0x128   : > { %v9487_v19 = vunpack.i.h.bf16 %v9485_v56  ;;  %v9486_v59 = vunpack.i.l.bf16 %v9485_v56  ;;  %v9492_v25 = vunpack.i.h.bf16 %v9490_v29  ;;  %v9491_v21 = vunpack.i.l.bf16 %v9490_v29  ;;  %vm16096_vm15 = vmmov %vm16095_vm12 }
 0x129   : > { %v9497_v56 = vunpack.i.h.bf16 %v12013_v61  ;;  %v1924_v34 = vsel %vm12104_vm9, %v12028_v20, %v12074_v23  ;;  %v15702_v54 = vrot.slane %v12141_v12, 7 }
 0x12a   : > { %9704 = vrot.lane.b32.xlu2 %v9703_v39, %s15876_s20  ;;  %v3357_v18 = vsel %vm16093_vm7, %v3324_v45, %v9486_v59  ;;  %v3358_v36 = vsel %vm16094_vm1, %v3325_v30, %v9487_v19  ;;  %v9718_v59 = vpack.i.bf16 %v12064_v5, %v1794_v47  ;;  %vm16098_vm7 = vcmask 195584   ;;  %v16410_v46 = vld [vmem:[#allocation65_spill] sm:$0xff] }
 0x12b   : > { %v3390_v63 = vsel %vm16095_vm12, %v3357_v18, %v9491_v21  ;;  %v3391_v39 = vsel %vm16096_vm15, %v3358_v36, %v9492_v25  ;;  %v12169_v25 = vld [vmem:[%s16097_s2] ss:$0 sm:$0xff]  ;;  %v9728_v21 = vpack.i.bf16 %v1924_v34, %v12098_v3  ;;  %vm16099_vm1 = vmmov %vm16098_vm7  ;;  %vm16100_vm12 = vcmask 228352  }
 0x12c   : > { %v12143_v38 = vpop.permute.xlu2 %9539  ;;  %v3423_v18 = vsel %vm16098_vm7, %v3390_v63, %v9496_v28  ;;  %v3424_v36 = vsel %vm16099_vm1, %v3391_v39, %v9497_v56  ;;  %vm16101_vm15 = vmmov %vm16100_vm12  ;;  %v2180_v28 = vsel %vm11820_vm10, %v12034_v24, %v12083_v11  ;;  %vm16105_vm7 = vcmask 261120  }
 0x12d   : > { %9709 = vrot.lane.b32.xlu0 %v11976_v41, %s15877_s24  ;;  %9714 = vrot.lane.b32.xlu1 %v9713_v4, %s15863_s23  ;;  %v1505_v41 = vrot.slane %v12141_v12, 1  ;;  %vm16106_vm1 = vmmov %vm16105_vm7  ;;  %v16107_v39 = vrot.slane %v12146_v42, 1 }
 0x12f   : > { %v9500_v29 = vpop.permute.xlu0 %9499  ;;  %v9505_v61 = vpop.permute.xlu1 %9504 }
 0x130   : > { %v9502_v19 = vunpack.i.h.bf16 %v9500_v29  ;;  %v9501_v47 = vunpack.i.l.bf16 %v9500_v29  ;;  %v9507_v45 = vunpack.i.h.bf16 %v9505_v61  ;;  %v9506_v30 = vunpack.i.l.bf16 %v9505_v61 }
 0x131   : > { %v16102_v61 = vrot.slane %v12034_v24, 7 }
 0x132   : > { %9719 = vrot.lane.b32.xlu2 %v9718_v59, %s15864_s25  ;;  %v3456_v4 = vsel %vm16100_vm12, %v3423_v18, %v9501_v47  ;;  %v3457_v29 = vsel %vm16101_vm15, %v3424_v36, %v9502_v19  ;;  %vm16108_vm12 = vcmask 1046528   ;;  %v608_v19 = vadd.s32 216, %v10869_v1 }
 0x133   : > { %v12183_v31 = vsel %vm16103_vm8, %v16102_v61, %v15702_v54  ;;  %v3605_v56 = vpop.f32.mrf.mxu0  ;;  %v3489_v59 = vsel %vm16105_vm7, %v3456_v4, %v9506_v30  ;;  %v3490_v63 = vsel %vm16106_vm1, %v3457_v29, %v9507_v45  ;;  %v12194_v34 = vsel %vm16108_vm12, %v1505_v41, %v16107_v39  ;;  %vm16111_vm15 = vmmov %vm16108_vm12 }
 0x134   : > { %16104 = vst [vmem:[#allocation66_spill] sm:$0xff] %v12183_v31  ;;  %v9511_v47 = vunpack.i.l.bf16 %v12052_v9  ;;  %v12198_v18 = vpop.permute.xlu2 %9554  ;;  %v3606_v36 = vadd.f32 %v12169_v25, %v3605_v56  ;;  %v3515_v61 = vpack.c.bf16 %v3490_v63, %v3489_v59  ;;  %v9512_v54 = vunpack.i.h.bf16 %v12052_v9 }
 0x135   : > { %9724 = vrot.lane.b32.xlu0 %v12088_v44, %s15869_s17  ;;  %9729 = vrot.lane.b32.xlu1 %v9728_v21, %s15870_s16  ;;  %vm16109_vm8 = vcmask 293888   ;;  %v9733_v45 = vpack.i.bf16 %v12183_v31, %v2180_v28  ;;  %v16110_v30 = vrot.slane %v12034_v24, 1  ;;  %v2310_v9 = vsel %vm12104_vm9, %v12141_v12, %v12194_v34 }
 0x136   : > { %v12205_v4 = vmax.f32 %v3606_v36, 0.0  ;;  %8742 = vmatmul.msk.bf16.gmra.mxu0 %vm16109_vm8, %v3515_v61  ;;  %v870_v63 = vand.u32 15, %v608_v19  ;;  %v16112_v21 = vsel %vm11268_vm14, %v11244_v33, %v11273_v49  ;;  %vm16113_vm7 = vcmask 31744  }
 0x137   : > { %v12212_v29 = vsel %vm16111_vm15, %v16110_v30, %v1505_v41  ;;  %v9515_v56 = vpop.permute.xlu0 %9514  ;;  %v9520_v59 = vpop.permute.xlu1 %9519  ;;  %v3260_v28 = vsel %vm16113_vm7, %v16112_v21, %v9511_v47  ;;  %vm16114_vm12 = vmmov %vm16113_vm7  ;;  %v12233_v19 = vpack.i.bf16 %v12141_v12, %v12034_v24  ;;  %vm16115_vm8 = vcmask 64512  }
 0x138   : > { %3717 = vst.msk [vmem:[%s12224_s1] sm:$0xff] %vm16106_vm1, %v12205_v4  ;;  %v9517_v41 = vunpack.i.h.bf16 %v9515_v56  ;;  %v9516_v39 = vunpack.i.l.bf16 %v9515_v56  ;;  %v3261_v36 = vsel %vm16114_vm12, %v11354_v40, %v9512_v54  ;;  %v9743_v61 = vpack.i.bf16 %v2310_v9, %v12212_v29  ;;  %vm16119_vm7 = vmmov %vm16115_vm8 }
 0x139   : > { %v9521_v49 = vunpack.i.l.bf16 %v9520_v59  ;;  %v9522_v47 = vunpack.i.h.bf16 %v9520_v59  ;;  %vm12238_vm15 = vcmp.eq.s32.totalorder %v870_v63, 15  ;;  %v16116_v21 = vmov 0 }
 0x13a   : > { %9734 = vrot.lane.b32.xlu2 %v9733_v45, %s15871_s0  ;;  %v3293_v33 = vsel %vm16115_vm8, %v3260_v28, %v9516_v39  ;;  %v16117_v21 = vsel %vm12238_vm15, 4294967295, %v16116_v21  ;;  %v3294_v56 = vsel %vm16119_vm7, %v3261_v36, %v9517_v41  ;;  %v9526_v9 = vunpack.i.l.bf16 %v12116_v52 }
 0x13b   : > { %v3607_v30 = vpop.f32.mrf.mxu0  ;;  %16118 = vst [vmem:[#allocation67_spill] sm:$0xff] %v16117_v21  ;;  %v1796_v45 = vsel %vm11957_vm4, %v12034_v24, %v12083_v11  ;;  %v1315_v59 = vrot.slane %v12146_v42, 7  ;;  %v9527_v63 = vunpack.i.h.bf16 %v12116_v52  ;;  %vm16120_vm1 = vcmask 97280   ;;  %v16138_v24 = vld [vmem:[#allocation25_spill] sm:$0xff] }
 0x13c   : > { %v12243_v40 = vpop.permute.xlu2 %9569  ;;  %v3608_v54 = vadd.f32 %v12169_v25, %v3607_v30  ;;  %v3326_v28 = vsel %vm16120_vm1, %v3293_v33, %v9521_v49  ;;  %v1636_v39 = vsel %vm12238_vm15, %v12028_v20, %v12074_v23  ;;  %vm16121_vm12 = vmmov %vm16120_vm1  ;;  %vm16123_vm8 = vcmask 261120  }
 0x13d   : > { %9739 = vrot.lane.b32.xlu0 %v12233_v19, %s15875_s27  ;;  %9744 = vrot.lane.b32.xlu1 %v9743_v61, %s15876_s20  ;;  %v3327_v36 = vsel %vm16121_vm12, %v3294_v56, %v9522_v47  ;;  %vm16124_vm7 = vcmask 130048   ;;  %v9758_v20 = vpack.i.bf16 %v12183_v31, %v1796_v45  ;;  %v16125_v23 = vrot.slane %v12141_v12, 7 }
 0x13e   : > { %v12257_v41 = vmax.f32 %v3608_v54, 0.0  ;;  %v3359_v33 = vsel %vm16124_vm7, %v3326_v28, %v9526_v9  ;;  %v9753_v54 = vpack.i.bf16 %v1636_v39, %v12098_v3  ;;  %vm16126_vm1 = vcmask 1040384   ;;  %vm16128_vm12 = vmmov %vm16124_vm7 }
 0x13f   : > { %v9530_v61 = vpop.permute.xlu0 %9529  ;;  %v9535_v30 = vpop.permute.xlu1 %9534  ;;  %v12276_v47 = vsel %vm16126_vm1, %v16125_v23, %v1315_v59  ;;  %v3360_v56 = vsel %vm16128_vm12, %v3327_v36, %v9527_v63  ;;  %v1926_v58 = vsel %vm12238_vm15, %v12141_v12, %v12194_v34  ;;  %v9114_v63 = vld [vmem:[%s16122_s3 + $0x80] sm:$0xff]  ;;  %v9541_v28 = vunpack.i.l.bf16 %v12143_v38  ;;  %v16131_v36 = vld [vmem:[#allocation46_spill] sm:$0xff] }
 0x140   : > { %3718 = vst.msk [vmem:[%s12224_s1 + $0x8] sm:$0xff] %vm16123_vm8, %v12257_v41  ;;  %v9532_v52 = vunpack.i.h.bf16 %v9530_v61  ;;  %v9531_v49 = vunpack.i.l.bf16 %v9530_v61  ;;  %v9537_v0 = vunpack.i.h.bf16 %v9535_v30  ;;  %v9536_v22 = vunpack.i.l.bf16 %v9535_v30  ;;  %v12282_v61 = vld [vmem:[%s10879_s26 + $0xf0] sm:$0xff]  ;;  %6010 = vmatpush.bf16.msra.mxu3 %v9114_v63 }
 0x141   : > { %16127 = vst [vmem:[#allocation68_spill] sm:$0xff] %v12276_v47  ;;  %v12285_v3 = vrot.slane %v12257_v41, 1  ;;  %vm16129_vm8 = vcmask 162816   ;;  %v12302_v30 = vsel %vm16126_vm1, %v1315_v59, %v16131_v36  ;;  %v12320_v59 = vrot.slane %v12282_v61, 1 }
 0x142   : > { %9749 = vrot.lane.b32.xlu2 %v12088_v44, %s15877_s24  ;;  %v3392_v9 = vsel %vm16129_vm8, %v3359_v33, %v9531_v49  ;;  %vm16130_vm7 = vmmov %vm16129_vm8  ;;  %v9542_v44 = vunpack.i.h.bf16 %v12143_v38  ;;  %16132 = vst [vmem:[#allocation46_spill] sm:$0xff] %v12302_v30  ;;  %v2182_v49 = vsel %vm11957_vm4, %v12146_v42, %v12276_v47  ;;  %v12314_v33 = vld [vmem:[%s10879_s26 + $0xe8] sm:$0xff]  ;;  %v610_v23 = vadd.s32 232, %v10869_v1  ;;  %v16419_v8 = vld [vmem:[#allocation67_spill] sm:$0xff] }
 0x143   : > { %v3393_v45 = vsel %vm16130_vm7, %v3360_v56, %v9532_v52  ;;  %v12305_v52 = vrot.slane %v12205_v4, 1  ;;  %v12317_v38 = vrot.slane %v12314_v33, 1  ;;  %vm16134_vm12 = vcmask 195584  }
 0x144   : > { %v12298_v39 = vpop.permute.xlu2 %9584  ;;  %v3425_v56 = vsel %vm16134_vm12, %v3392_v9, %v9536_v22  ;;  %vm16135_vm8 = vmmov %vm16134_vm12  ;;  %vm16136_vm7 = vcmask 1046528   ;;  %vm16139_vm14 = vnez %v16138_v24  ;;  %v9773_v9 = vpack.i.bf16 %v12302_v30, %v2182_v49 }
 0x145   : > { %16133 = vst [vmem:[#allocation69_spill] sm:$0xff] %v12305_v52  ;;  %9754 = vrot.lane.b32.xlu0 %v9753_v54, %s15863_s23  ;;  %9759 = vrot.lane.b32.xlu1 %v9758_v20, %s15864_s25  ;;  %v3426_v54 = vsel %vm16135_vm8, %v3393_v45, %v9537_v0  ;;  %v12328_v20 = vsel %vm16136_vm7, %v12305_v52, %v12285_v3  ;;  %vm16137_vm1 = vmmov %vm16136_vm7  ;;  %vm16140_vm12 = vcmask 228352   ;;  %vm16143_vm7 = vcmask 261120  }
 0x146   : > { %v3983_v51 = vsel %vm16137_vm1, %v12285_v3, %v12305_v52  ;;  %v9768_v0 = vpack.i.bf16 %v1926_v58, %v12212_v29  ;;  %v3458_v45 = vsel %vm16140_vm12, %v3425_v56, %v9541_v28  ;;  %vm16141_vm8 = vmmov %vm16140_vm12  ;;  %vm16145_vm9 = vcmask 1046528  }
 0x147   : > { %v9545_v48 = vpop.permute.xlu0 %9544  ;;  %v9550_v11 = vpop.permute.xlu1 %9549  ;;  %v4077_v31 = vsel %vm16139_vm14, %v12257_v41, %v3983_v51  ;;  %v3459_v63 = vsel %vm16141_vm8, %v3426_v54, %v9542_v44  ;;  %vm16144_vm1 = vmmov %vm16143_vm7  ;;  %v884_v58 = vand.u32 15, %v610_v23  ;;  %v16146_v23 = vrot.slane %v12146_v42, 1 }
 0x148   : > { %v9547_v5 = vunpack.i.h.bf16 %v9545_v48  ;;  %v9546_v22 = vunpack.i.l.bf16 %v9545_v48  ;;  %v12341_v7 = vpack.i.bf16 %v4077_v31, %v12328_v20  ;;  %v12350_v48 = vsel %vm16145_vm9, %v12317_v38, %v12320_v59 }
 0x149   : > { %v9552_v49 = vunpack.i.h.bf16 %v9550_v11  ;;  %v9551_v28 = vunpack.i.l.bf16 %v9550_v11  ;;  %v12365_v11 = vsel %vm16145_vm9, %v16146_v23, %v12317_v38  ;;  %vm16147_vm12 = vcmask 293888  }
 0x14a   : > { %16142 = vst [vmem:[#allocation25_spill] sm:$0xff] %v12341_v7  ;;  %9764 = vrot.lane.b32.xlu2 %v12233_v19, %s15869_s17  ;;  %v3491_v52 = vsel %vm16143_vm7, %v3458_v45, %v9546_v22  ;;  %v3492_v51 = vsel %vm16144_vm1, %v3459_v63, %v9547_v5  ;;  %v12359_v5 = vpack.i.bf16 %v12314_v33, %v12146_v42  ;;  %v9557_v22 = vunpack.i.h.bf16 %v12198_v18 }
 0x14b   : > { %v3610_v56 = vpop.f32.mrf.mxu0  ;;  %v3516_v44 = vpack.c.bf16 %v3492_v51, %v3491_v52  ;;  %v2312_v52 = vsel %vm12238_vm15, %v12314_v33, %v12350_v48  ;;  %vm12376_vm8 = vcmp.eq.s32.totalorder %v884_v58, 15  ;;  %v16148_v45 = vmov 0  ;;  %v16152_v51 = vld [vmem:[#allocation48_spill] sm:$0xff] }
 0x14c   : > { %v3611_v31 = vadd.f32 %v12169_v25, %v3610_v56  ;;  %v12353_v54 = vpop.permute.xlu2 %9599  ;;  %v16149_v45 = vsel %vm12376_vm8, 4294967295, %v16148_v45  ;;  %vm16151_vm7 = vcmask 31744   ;;  %v16153_v56 = vsel %vm11368_vm13, %v11330_v32, %v16152_v51 }
 0x14d   : > { %9769 = vrot.lane.b32.xlu0 %v9768_v0, %s15870_s16  ;;  %9774 = vrot.lane.b32.xlu1 %v9773_v9, %s15871_s0  ;;  %v9556_v0 = vunpack.i.l.bf16 %v12198_v18  ;;  %16150 = vst [vmem:[#allocation70_spill] sm:$0xff] %v16149_v45  ;;  %v3263_v63 = vsel %vm16151_vm7, %v11463_v26, %v9552_v49  ;;  %vm16154_vm1 = vmmov %vm16151_vm7  ;;  %vm16155_vm9 = vcmask 261120   ;;  %v1638_v26 = vsel %vm12376_vm8, %v12141_v12, %v12194_v34 }
 0x14e   : > { %v12373_v9 = vmax.f32 %v3611_v31, 0.0  ;;  %8743 = vmatmul.msk.bf16.gmra.mxu0 %vm16147_vm12, %v3516_v44  ;;  %v3262_v23 = vsel %vm16154_vm1, %v16153_v56, %v9551_v28  ;;  %v9783_v31 = vpack.i.bf16 %v2312_v52, %v12365_v11  ;;  %vm16156_vm12 = vcmask 64512  }
 0x14f   : > { %v9560_v7 = vpop.permute.xlu0 %9559  ;;  %v9565_v18 = vpop.permute.xlu1 %9564  ;;  %v3295_v49 = vsel %vm16156_vm12, %v3262_v23, %v9556_v0  ;;  %vm16157_vm7 = vmmov %vm16156_vm12  ;;  %vm16158_vm1 = vcmask 97280   ;;  %v1798_v12 = vsel %vm12076_vm5, %v12146_v42, %v12276_v47  ;;  %v9572_v34 = vunpack.i.h.bf16 %v12243_v40  ;;  %v16189_v47 = vld [vmem:[#allocation24_spill] sm:$0xff] }
 0x150   : > { %3719 = vst.msk [vmem:[%s12224_s1 + $0x10] sm:$0xff] %vm16155_vm9, %v12373_v9  ;;  %v9562_v44 = vunpack.i.h.bf16 %v9560_v7  ;;  %v9561_v58 = vunpack.i.l.bf16 %v9560_v7  ;;  %v3296_v32 = vsel %vm16157_vm7, %v3263_v63, %v9557_v22  ;;  %v9567_v51 = vunpack.i.h.bf16 %v9565_v18  ;;  %vm16159_vm9 = vmmov %vm16158_vm1 }
 0x151   : > { %v9566_v28 = vunpack.i.l.bf16 %v9565_v18  ;;  %v9571_v22 = vunpack.i.l.bf16 %v12243_v40  ;;  %v9793_v0 = vpack.i.bf16 %v1638_v26, %v12212_v29  ;;  %vm16160_vm12 = vcmask 130048  }
 0x152   : > { %9779 = vrot.lane.b32.xlu2 %v12359_v5, %s15875_s27  ;;  %v3328_v56 = vsel %vm16158_vm1, %v3295_v49, %v9561_v58  ;;  %v3329_v7 = vsel %vm16159_vm9, %v3296_v32, %v9562_v44  ;;  %vm16161_vm7 = vmmov %vm16160_vm12  ;;  %v12420_v42 = vrot.slane %v12282_v61, 7  ;;  %v9587_v18 = vunpack.i.h.bf16 %v12298_v39 }
 0x153   : > { %v3612_v53 = vpop.f32.mrf.mxu0  ;;  %v3362_v63 = vsel %vm16161_vm7, %v3329_v7, %v9567_v51  ;;  %v9586_v40 = vunpack.i.l.bf16 %v12298_v39  ;;  %vm16164_vm1 = vcmask 261120   ;;  %vm16165_vm9 = vcmask 162816  }
 0x154   : > { %v3613_v52 = vadd.f32 %v12169_v25, %v3612_v53  ;;  %v12403_v21 = vpop.permute.xlu2 %9614  ;;  %v3361_v53 = vsel %vm16160_vm12, %v3328_v56, %v9566_v28  ;;  %vm16166_vm12 = vmmov %vm16165_vm9  ;;  %v1928_v39 = vsel %vm12376_vm8, %v12314_v33, %v12350_v48  ;;  %vm16167_vm7 = vcmask 195584  }
 0x155   : > { %9784 = vrot.lane.b32.xlu0 %v9783_v31, %s15876_s20  ;;  %9789 = vrot.lane.b32.xlu1 %v12233_v19, %s15877_s24  ;;  %v9798_v31 = vpack.i.bf16 %v12302_v30, %v1798_v12  ;;  %v12426_v19 = vrot.slane %v12373_v9, 1  ;;  %v3394_v51 = vsel %vm16165_vm9, %v3361_v53, %v9571_v22  ;;  %v3395_v28 = vsel %vm16166_vm12, %v3362_v63, %v9572_v34  ;;  %vm16168_vm13 = vmmov %vm16167_vm7  ;;  %v12449_v53 = vld [vmem:[%s10879_s26 + $0xf8] sm:$0xff] }
 0x156   : > { %v12417_v23 = vmax.f32 %v3613_v52, 0.0  ;;  %v612_v12 = vadd.s32 248, %v10869_v1  ;;  %vm16170_vm9 = vcmask 228352   ;;  %v12452_v48 = vrot.slane %v12449_v53, 1 }
 0x157   : > { %v9575_v44 = vpop.permute.xlu0 %9574  ;;  %v9580_v58 = vpop.permute.xlu1 %9579  ;;  %16163 = vst [vmem:[#allocation71_spill] sm:$0xff] %v12426_v19  ;;  %vm16171_vm12 = vmmov %vm16170_vm9 }
 0x158   : > { %16162 = vst [vmem:[#allocation48_spill] sm:$0xff] %v12417_v23  ;;  %v9577_v29 = vunpack.i.h.bf16 %v9575_v44  ;;  %v9576_v26 = vunpack.i.l.bf16 %v9575_v44  ;;  %v9582_v49 = vunpack.i.h.bf16 %v9580_v58  ;;  %v9581_v32 = vunpack.i.l.bf16 %v9580_v58 }
 0x159   : > { %3720 = vst.msk [vmem:[%s12224_s1 + $0x18] sm:$0xff] %vm16164_vm1, %v12417_v23  ;;  %vm16169_vm1 = vcmask 1040384  }
 0x15a   : > { %v3427_v56 = vsel %vm16167_vm7, %v3394_v51, %v9576_v26  ;;  %v3428_v7 = vsel %vm16168_vm13, %v3395_v28, %v9577_v29  ;;  %9794 = vrot.lane.b32.xlu2 %v9793_v0, %s15863_s23  ;;  %v12443_v52 = vsel %vm16169_vm1, %v16131_v36, %v12420_v42  ;;  %vm16172_vm13 = vcmask 1046528  }
 0x15b   : > { %v3460_v34 = vsel %vm16170_vm9, %v3427_v56, %v9581_v32  ;;  %v3461_v22 = vsel %vm16171_vm12, %v3428_v7, %v9582_v49  ;;  %v12457_v0 = vsel %vm16172_vm13, %v12285_v3, %v12426_v19  ;;  %vm16173_vm7 = vcmask 261120   ;;  %v16175_v3 = vld [vmem:[#allocation27_spill] sm:$0xff] }
 0x15c   : > { %v12459_v63 = vpop.permute.xlu2 %9629  ;;  %v3615_v36 = vpop.f32.mrf.mxu0  ;;  %v3493_v44 = vsel %vm16173_vm7, %v3460_v34, %v9586_v40  ;;  %vm16174_vm1 = vmmov %vm16173_vm7  ;;  %v9808_v49 = vpack.i.bf16 %v1928_v39, %v12365_v11  ;;  %vm16176_vm9 = vcmask 1040384   ;;  %v898_v40 = vand.u32 15, %v612_v12 }
 0x15d   : > { %v3494_v58 = vsel %vm16174_vm1, %v3461_v22, %v9587_v18  ;;  %v3616_v29 = vadd.f32 %v12169_v25, %v3615_v36  ;;  %9799 = vrot.lane.b32.xlu0 %v9798_v31, %s15864_s25  ;;  %9804 = vrot.lane.b32.xlu1 %v12359_v5, %s15869_s17  ;;  %v12471_v32 = vsel %vm16176_vm9, %v12420_v42, %v16175_v3  ;;  %v16177_v31 = vld [vmem:[#allocation34_spill] sm:$0xff]  ;;  %vm16179_vm13 = vcmask 293888  }
 0x15e   : > { %v3517_v26 = vpack.c.bf16 %v3494_v58, %v3493_v44  ;;  %v2184_v18 = vsel %vm12076_vm5, %v12282_v61, %v12443_v52  ;;  %vm16178_vm12 = vnez %v16177_v31  ;;  %vm16180_vm7 = vcmask 1046528  }
 0x15f   : > { %v4079_v51 = vsel %vm16178_vm12, %v12257_v41, %v12457_v0  ;;  %v12481_v28 = vmax.f32 %v3616_v29, 0.0  ;;  %v9590_v56 = vpop.permute.xlu0 %9589  ;;  %v9595_v39 = vpop.permute.xlu1 %9594  ;;  %v2248_v7 = vsel %vm16180_vm7, %v12452_v48, %v12320_v59  ;;  %v3988_v36 = vrot.slane %v12417_v23, 1  ;;  %vm16182_vm9 = vmmov %vm16180_vm7 }
 0x160   : > { %8744 = vmatmul.msk.bf16.gmra.mxu0 %vm16179_vm13, %v3517_v26  ;;  %v9592_v34 = vunpack.i.h.bf16 %v9590_v56  ;;  %v9591_v22 = vunpack.i.l.bf16 %v9590_v56  ;;  %v611_v12 = vadd.s32 240, %v10869_v1  ;;  %v9813_v44 = vpack.i.bf16 %v12471_v32, %v2184_v18 }
 0x161   : > { %3721 = vst.msk [vmem:[%s12224_s1 + $0x20] sm:$0xff] %vm16174_vm1, %v12481_v28  ;;  %v12495_v58 = vpack.i.bf16 %v12449_v53, %v12282_v61  ;;  %v12499_v26 = vpack.i.bf16 %v4079_v51, %v12328_v20  ;;  %v9596_v30 = vunpack.i.l.bf16 %v9595_v39  ;;  %v12505_v56 = vsel %vm16182_vm9, %v12320_v59, %v12452_v48  ;;  %vm16188_vm1 = vmmov %vm16182_vm9 }
 0x162   : > { %9809 = vrot.lane.b32.xlu2 %v9808_v49, %s15870_s16  ;;  %v2314_v18 = vsel %vm12376_vm8, %v12449_v53, %v2248_v7  ;;  %vm12510_vm13 = vcmp.eq.s32.totalorder %v898_v40, 15  ;;  %v16185_v51 = vsel %vm11483_vm3, %v11439_v37, %v11490_v62  ;;  %vm16186_vm7 = vcmask 31744   ;;  %vm16190_vm9 = vmmov %vm16188_vm1 }
 0x163   : > { %16181 = vst [vmem:[#allocation27_spill] sm:$0xff] %v12499_v26  ;;  %v3264_v49 = vsel %vm16186_vm7, %v16185_v51, %v9591_v22  ;;  %v9597_v29 = vunpack.i.h.bf16 %v9595_v39  ;;  %v16187_v26 = vrot.slane %v12481_v28, 1  ;;  %v1544_v40 = vsel %vm16190_vm9, %v12317_v38, %v16189_v47  ;;  %vm16191_vm8 = vmmov %vm16186_vm7 }
 0x164   : > { %v3265_v7 = vsel %vm16191_vm8, %v11575_v43, %v9592_v34  ;;  %v12530_v45 = vpop.permute.xlu2 %9644  ;;  %v3617_v55 = vpop.f32.mrf.mxu0  ;;  %vm16192_vm3 = vmmov %vm16188_vm1  ;;  %v891_v39 = vand.u32 15, %v611_v12  ;;  %v9601_v22 = vunpack.i.l.bf16 %v12353_v54  ;;  %v9602_v34 = vunpack.i.h.bf16 %v12353_v54 }
 0x165   : > { %v12523_v59 = vsel %vm16188_vm1, %v3988_v36, %v16187_v26  ;;  %v12534_v37 = vsel %vm16192_vm3, %v12426_v19, %v3988_v36  ;;  %v3618_v38 = vadd.f32 %v12169_v25, %v3617_v55  ;;  %9814 = vrot.lane.b32.xlu0 %v9813_v44, %s15871_s0  ;;  %9819 = vrot.lane.b32.xlu1 %v12495_v58, %s15875_s27  ;;  %vm16193_vm3 = vcmask 64512  }
 0x166   : > { %v4689_v62 = vsel %vm16139_vm14, %v12417_v23, %v12523_v59  ;;  %v3297_v36 = vsel %vm16193_vm3, %v3264_v49, %v9596_v30  ;;  %v9823_v26 = vpack.i.bf16 %v2314_v18, %v12505_v56  ;;  %v1640_v12 = vsel %vm12510_vm13, %v12314_v33, %v1544_v40  ;;  %vm16194_vm8 = vmmov %vm16193_vm3 }
 0x167   : > { %v5620_v43 = vpack.c.bf16 %v4689_v62, %v12534_v37  ;;  %v3298_v55 = vsel %vm16194_vm8, %v3265_v7, %v9597_v29  ;;  %v12553_v51 = vmax.f32 %v3618_v38, 0.0  ;;  %v9605_v44 = vpop.permute.xlu0 %9604  ;;  %v9610_v19 = vpop.permute.xlu1 %9609  ;;  %vm16195_vm7 = vcmask 261120   ;;  %v16196_v62 = vld [vmem:[#allocation38_spill] sm:$0xff] }
 0x168   : > { %vm16197_vm1 = vnez %v16196_v62  ;;  %v9607_v30 = vunpack.i.h.bf16 %v9605_v44  ;;  %v9606_v49 = vunpack.i.l.bf16 %v9605_v44  ;;  %vm12560_vm9 = vcmp.eq.s32.totalorder %v891_v39, 0  ;;  %vm16201_vm3 = vmmov %vm16195_vm7 }
 0x169   : > { %8824 = vmatmul.msk.bf16.vlgmr.msra.gmra.mxu3 %vm16195_vm7, %v5620_v43  ;;  %v4081_v54 = vsel %vm16197_vm1, %v12417_v23, %v12523_v59  ;;  %v16198_v18 = vmov 0  ;;  %3722 = vst.msk [vmem:[%s12224_s1 + $0x28] sm:$0xff] %vm16201_vm3, %v12553_v51  ;;  %vm16202_vm8 = vcmask 97280   ;;  %v9833_v29 = vpack.i.bf16 %v1640_v12, %v12365_v11 }
 0x16a   : > { %v16199_v18 = vsel %vm12560_vm9, 4294967295, %v16198_v18  ;;  %v3330_v33 = vsel %vm16202_vm8, %v3297_v36, %v9601_v22  ;;  %vm16203_vm15 = vmmov %vm16202_vm8  ;;  %v9612_v7 = vunpack.i.h.bf16 %v9610_v19  ;;  %v9611_v38 = vunpack.i.l.bf16 %v9610_v19  ;;  %9824 = vrot.lane.b32.xlu2 %v9823_v26, %s15876_s20 }
 0x16b   : > { %16200 = vst [vmem:[#allocation34_spill] sm:$0xff] %v16199_v18  ;;  %v3331_v40 = vsel %vm16203_vm15, %v3298_v55, %v9602_v34  ;;  %v12572_v43 = vpack.i.bf16 %v4081_v54, %v12534_v37  ;;  %vm16204_vm7 = vcmask 130048   ;;  %v1800_v22 = vsel %vm12560_vm9, %v12282_v61, %v12443_v52 }
 0x16c   : > { %v3363_v39 = vsel %vm16204_vm7, %v3330_v33, %v9606_v49  ;;  %vm16205_vm11 = vmmov %vm16204_vm7  ;;  %vm16206_vm3 = vcmask 1046528   ;;  %v12583_v34 = vpop.permute.xlu2 %9659  ;;  %v9617_v19 = vunpack.i.h.bf16 %v12403_v21  ;;  %v9616_v36 = vunpack.i.l.bf16 %v12403_v21 }
 0x16d   : > { %v3364_v44 = vsel %vm16205_vm11, %v3331_v40, %v9607_v30  ;;  %v1898_v11 = vsel %vm16206_vm3, %v12452_v48, %v16189_v47  ;;  %9829 = vrot.lane.b32.xlu0 %v12359_v5, %s15877_s24  ;;  %9834 = vrot.lane.b32.xlu1 %v9833_v29, %s15863_s23  ;;  %vm16207_vm11 = vcmask 162816   ;;  %v9838_v52 = vpack.i.bf16 %v12471_v32, %v1800_v22  ;;  %s8501_s24 = scalar_lea.hbm %s15578_s14, %s10836_s22 }
 0x16e   : > { %v3396_v26 = vsel %vm16207_vm11, %v3363_v39, %v9611_v38  ;;  %vm16208_vm15 = vmmov %vm16207_vm11  ;;  %v1930_v47 = vsel %vm12510_vm13, %v12449_v53, %v1898_v11  ;;  %vm16209_vm8 = vcmask 1040384   ;;  %vm16210_vm7 = vcmask 195584   ;;  %v16216_v11 = vld [vmem:[#allocation26_spill] sm:$0xff] }
 0x16f   : > { %v3397_v12 = vsel %vm16208_vm15, %v3364_v44, %v9612_v7  ;;  %v9620_v55 = vpop.permute.xlu0 %9619  ;;  %v9625_v54 = vpop.permute.xlu1 %9624  ;;  %v2121_v21 = vsel %vm16209_vm8, %v16175_v3, %v12420_v42  ;;  %v9848_v29 = vpack.i.bf16 %v1930_v47, %v12505_v56  ;;  %v3429_v40 = vsel %vm16210_vm7, %v3396_v26, %v9616_v36  ;;  %vm16211_vm3 = vmmov %vm16210_vm7 }
 0x170   : > { %v9622_v30 = vunpack.i.h.bf16 %v9620_v55  ;;  %v9621_v5 = vunpack.i.l.bf16 %v9620_v55  ;;  %v9627_v49 = vunpack.i.h.bf16 %v9625_v54  ;;  %v9626_v33 = vunpack.i.l.bf16 %v9625_v54 }
 0x171   : > { %v3430_v7 = vsel %vm16211_vm3, %v3397_v12, %v9617_v19  ;;  %vm16212_vm11 = vcmask 228352   ;;  %vm16214_vm5 = vcmask 261120   ;;  %v2186_v3 = vsel %vm12560_vm9, %v12282_v61, %v2121_v21 }
 0x172   : > { %9839 = vrot.lane.b32.xlu2 %v9838_v52, %s15864_s25  ;;  %v3462_v38 = vsel %vm16212_vm11, %v3429_v40, %v9621_v5  ;;  %vm16213_vm15 = vmmov %vm16212_vm11  ;;  %vm16217_vm7 = vcmask 1046528   ;;  %v9631_v36 = vunpack.i.l.bf16 %v12459_v63  ;;  %v9632_v47 = vunpack.i.h.bf16 %v12459_v63 }
 0x173   : > { %v3463_v39 = vsel %vm16213_vm15, %v3430_v7, %v9622_v30  ;;  %v3620_v44 = vpop.f32.mrf.mxu0  ;;  %v3495_v22 = vsel %vm16214_vm5, %v3462_v38, %v9626_v33  ;;  %vm16215_vm8 = vmmov %vm16214_vm5  ;;  %v2284_v19 = vsel %vm16217_vm7, %v12452_v48, %v16216_v11  ;;  %vm16218_vm5 = vcmask 293888  }
 0x174   : > { %v3496_v42 = vsel %vm16215_vm8, %v3463_v39, %v9627_v49  ;;  %v12614_v26 = vpop.permute.xlu2 %9674  ;;  %v3621_v12 = vadd.f32 %v12169_v25, %v3620_v44  ;;  %v9853_v48 = vpack.i.bf16 %v12471_v32, %v2186_v3  ;;  %v2316_v55 = vsel %vm12510_vm13, %v12449_v53, %v2284_v19  ;;  %vm16221_vm11 = vmmov %vm16215_vm8 }
 0x175   : > { %v3518_v52 = vpack.c.bf16 %v3496_v42, %v3495_v22  ;;  %9844 = vrot.lane.b32.xlu0 %v12495_v58, %s15869_s17  ;;  %9849 = vrot.lane.b32.xlu1 %v9848_v29, %s15870_s16  ;;  %v16219_v63 = vsel %vm11604_vm2, %v11561_v13, %v11611_v15  ;;  %vm16220_vm3 = vcmask 31744   ;;  %v3992_v32 = vrot.slane %v12553_v51, 1  ;;  %s16852_s16 = smov 64   ;;  %s8724_s17 = sshll.u32 %s12162_s18, 4 }
 0x176   : > { %v12621_v61 = vmax.f32 %v3621_v12, 0.0  ;;  %v3266_v30 = vsel %vm16220_vm3, %v16219_v63, %v9631_v36  ;;  %vm16222_vm15 = vmmov %vm16220_vm3  ;;  %v9863_v53 = vpack.i.bf16 %v2316_v55, %v12505_v56  ;;  %vm16223_vm8 = vcmask 64512   ;;  %v16230_v55 = vld [vmem:[#allocation41_spill] sm:$0xff]  ;;  %s15188_s19 = scalar_lea.vmem [#allocation7], %s8724_s17  ;;  %s8420_s17 = sand.u32 1, %s10836_s22  }
 0x177   : > { %8745 = vmatmul.msk.bf16.gmra.mxu0 %vm16218_vm5, %v3518_v52  ;;  %v9635_v54 = vpop.permute.xlu0 %9634  ;;  %v9640_v21 = vpop.permute.xlu1 %9639  ;;  %v3267_v33 = vsel %vm16222_vm15, %v11711_v16, %v9632_v47  ;;  %vm16224_vm5 = vmmov %vm16223_vm8  ;;  %v16225_v56 = vrot.slane %v12481_v28, 1  ;;  %v9646_v3 = vunpack.i.l.bf16 %v12530_v45  ;;  %v4367_v19 = vsel %vm16139_vm14, %v12257_v41, %v12457_v0 }
 0x178   : > { %3723 = vst.msk [vmem:[%s12224_s1 + $0x30] sm:$0xff] %vm16221_vm11, %v12621_v61  ;;  %v9637_v5 = vunpack.i.h.bf16 %v9635_v54  ;;  %v9636_v49 = vunpack.i.l.bf16 %v9635_v54  ;;  %v3994_v29 = vrot.slane %v12621_v61, 1  ;;  %v9641_v40 = vunpack.i.l.bf16 %v9640_v21  ;;  %vm16226_vm3 = vmmov %vm16217_vm7 }
 0x179   : > { %v9642_v15 = vunpack.i.h.bf16 %v9640_v21  ;;  %v12656_v22 = vsel %vm16226_vm3, %v16225_v56, %v3992_v32  ;;  %v9647_v36 = vunpack.i.h.bf16 %v12530_v45  ;;  %vm16227_vm11 = vcmask 97280  }
 0x17a   : > { %9854 = vrot.lane.b32.xlu2 %v9853_v48, %s15871_s0  ;;  %v3299_v13 = vsel %vm16223_vm8, %v3266_v30, %v9636_v49  ;;  %v12647_v38 = vsel %vm16217_vm7, %v3992_v32, %v3994_v29  ;;  %v3300_v39 = vsel %vm16224_vm5, %v3267_v33, %v9637_v5  ;;  %vm16228_vm15 = vmmov %vm16227_vm11  ;;  %vm16229_vm8 = vcmask 261120   ;;  %s15782_s0 = smov 96  }
 0x17b   : > { %v3622_v7 = vpop.f32.mrf.mxu0  ;;  %v4691_v42 = vsel %vm16178_vm12, %v12553_v51, %v12647_v38  ;;  %v3332_v12 = vsel %vm16227_vm11, %v3299_v13, %v9641_v40  ;;  %v3333_v47 = vsel %vm16228_vm15, %v3300_v39, %v9642_v15  ;;  %vm16231_vm7 = vnez %v16230_v55  ;;  %vm16232_vm5 = vmmov %vm16229_vm8 }
 0x17c   : > { %v12650_v44 = vpop.permute.xlu2 %9689  ;;  %v3623_v16 = vadd.f32 %v12169_v25, %v3622_v7  ;;  %v5623_v11 = vpack.c.bf16 %v4691_v42, %v12656_v22  ;;  %v4083_v54 = vsel %vm16231_vm7, %v12553_v51, %v12647_v38  ;;  %v9868_v0 = vpack.i.bf16 %v4367_v19, %v12328_v20 }
 0x17d   : > { %9859 = vrot.lane.b32.xlu0 %v12495_v58, %s15875_s27  ;;  %9864 = vrot.lane.b32.xlu1 %v9863_v53, %s15876_s20  ;;  %vm16233_vm14 = vcmask 130048   ;;  %v12689_v49 = vpack.i.bf16 %v4083_v54, %v12656_v22  ;;  %vm16235_vm11 = vcmask 162816   ;;  %v12695_v53 = vpack.i.bf16 %v12417_v23, %v12373_v9 }
 0x17e   : > { %v12673_v52 = vmax.f32 %v3623_v16, 0.0  ;;  %8825 = vmatmul.msk.bf16.gmra.mxu3 %vm16229_vm8, %v5623_v11  ;;  %v3365_v21 = vsel %vm16233_vm14, %v3332_v12, %v9646_v3  ;;  %vm16234_vm3 = vmmov %vm16233_vm14  ;;  %v9662_v20 = vunpack.i.h.bf16 %v12583_v34  ;;  %v9661_v40 = vunpack.i.l.bf16 %v12583_v34 }
 0x17f   : > { %v9650_v58 = vpop.permute.xlu0 %9649  ;;  %v9655_v48 = vpop.permute.xlu1 %9654  ;;  %v3366_v63 = vsel %vm16234_vm3, %v3333_v47, %v9647_v36  ;;  %vm16236_vm15 = vmmov %vm16235_vm11  ;;  %vm16237_vm8 = vcmask 195584   ;;  %v9878_v3 = vpack.i.bf16 %v12257_v41, %v12205_v4  ;;  %vm16239_vm14 = vcmask 228352  }
 0x180   : > { %3724 = vst.msk [vmem:[%s12224_s1 + $0x38] sm:$0xff] %vm16232_vm5, %v12673_v52  ;;  %v9652_v24 = vunpack.i.h.bf16 %v9650_v58  ;;  %v9651_v45 = vunpack.i.l.bf16 %v9650_v58  ;;  %v9657_v30 = vunpack.i.h.bf16 %v9655_v48  ;;  %v9656_v5 = vunpack.i.l.bf16 %v9655_v48  ;;  %vm16238_vm5 = vmmov %vm16237_vm8 }
 0x181   : > { %vm16240_vm3 = vmmov %vm16239_vm14  ;;  %v16270_v62 = vsel %vm11820_vm10, %v11799_v50, %v11827_v2 }
 0x182   : > { %9869 = vrot.lane.b32.xlu2 %v9868_v0, %s15876_s20  ;;  %v3398_v32 = vsel %vm16235_vm11, %v3365_v21, %v9651_v45  ;;  %v3399_v33 = vsel %vm16236_vm15, %v3366_v63, %v9652_v24  ;;  %vm16241_vm11 = vcmask 261120   ;;  %v4369_v24 = vsel %vm16178_vm12, %v12417_v23, %v12523_v59 }
 0x183   : > { %v3431_v13 = vsel %vm16237_vm8, %v3398_v32, %v9656_v5  ;;  %v3432_v15 = vsel %vm16238_vm5, %v3399_v33, %v9657_v30  ;;  %vm16242_vm15 = vmmov %vm16241_vm11  ;;  %vm16243_vm8 = vcmask 293888   ;;  %v9677_v45 = vunpack.i.h.bf16 %v12614_v26 }
 0x184   : > { %v12703_v7 = vpop.permute.xlu2 %9704  ;;  %v3464_v11 = vsel %vm16239_vm14, %v3431_v13, %v9661_v40  ;;  %v3465_v34 = vsel %vm16240_vm3, %v3432_v15, %v9662_v20  ;;  %v9676_v0 = vunpack.i.l.bf16 %v12614_v26  ;;  %vm16244_vm5 = vcmask 31744   ;;  %vm16247_vm12 = vmmov %vm16241_vm11 }
 0x185   : > { %9874 = vrot.lane.b32.xlu1 %v12695_v53, %s15782_s0  ;;  %v16245_v30 = vsel %vm11723_vm6, %v11681_v35, %v11730_v10  ;;  %vm16246_vm14 = vmmov %vm16244_vm5  ;;  %v9893_v20 = vpack.i.bf16 %v4369_v24, %v12534_v37  ;;  %vm16248_vm3 = vcmask 64512  }
 0x187   : > { %v9665_v39 = vpop.permute.xlu0 %9664  ;;  %v9670_v16 = vpop.permute.xlu1 %9669 }
 0x188   : > { %v9667_v56 = vunpack.i.h.bf16 %v9665_v39  ;;  %v9666_v42 = vunpack.i.l.bf16 %v9665_v39  ;;  %v9672_v12 = vunpack.i.h.bf16 %v9670_v16  ;;  %v9671_v47 = vunpack.i.l.bf16 %v9670_v16 }
 0x18a   : > { %9879 = vrot.lane.b32.xlu2 %v9878_v3, %s15876_s20  ;;  %v3497_v19 = vsel %vm16241_vm11, %v3464_v11, %v9666_v42  ;;  %v3498_v36 = vsel %vm16242_vm15, %v3465_v34, %v9667_v56  ;;  %v3269_v63 = vsel %vm16244_vm5, %v11814_v27, %v9672_v12  ;;  %v3268_v5 = vsel %vm16246_vm14, %v16245_v30, %v9671_v47  ;;  %vm16249_vm11 = vmmov %vm16248_vm3 }
 0x18b   : > { %v3625_v58 = vpop.f32.mrf.mxu0  ;;  %v3519_v48 = vpack.c.bf16 %v3498_v36, %v3497_v19  ;;  %v3996_v27 = vrot.slane %v12673_v52, 1  ;;  %v3301_v13 = vsel %vm16248_vm3, %v3268_v5, %v9676_v0  ;;  %v3302_v35 = vsel %vm16249_vm11, %v3269_v63, %v9677_v45  ;;  %v16257_v0 = vld [vmem:[#allocation43_spill] sm:$0xff] }
 0x18c   : > { %v3626_v54 = vadd.f32 %v12169_v25, %v3625_v58  ;;  %v12733_v31 = vpop.permute.xlu2 %9719  ;;  %vm16250_vm15 = vcmask 97280   ;;  %vm16252_vm5 = vcmask 1046528   ;;  %v9692_v19 = vunpack.i.h.bf16 %v12650_v44 }
 0x18d   : > { %8746 = vmatmul.msk.bf16.gmra.mxu0 %vm16243_vm8, %v3519_v48  ;;  %vm16251_vm8 = vmmov %vm16250_vm15  ;;  %v9691_v36 = vunpack.i.l.bf16 %v12650_v44  ;;  %vm16256_vm11 = vcmask 261120   ;;  %v9721_v2 = vunpack.i.l.bf16 %v12733_v31 }
 0x18e   : > { %v12720_v21 = vmax.f32 %v3626_v54, 0.0  ;;  %vm16253_vm14 = vmmov %vm16252_vm5  ;;  %v9706_v54 = vunpack.i.l.bf16 %v12703_v7 }
 0x18f   : > { %v9680_v32 = vpop.permute.xlu0 %9679  ;;  %v9685_v33 = vpop.permute.xlu1 %9684  ;;  %v12752_v11 = vsel %vm16253_vm14, %v3994_v29, %v3996_v27  ;;  %v9707_v29 = vunpack.i.h.bf16 %v12703_v7 }
 0x190   : > { %3725 = vst.msk [vmem:[%s12224_s1 + $0x40] sm:$0xff] %vm16247_vm12, %v12720_v21  ;;  %v9682_v59 = vunpack.i.h.bf16 %v9680_v32  ;;  %v9681_v26 = vunpack.i.l.bf16 %v9680_v32  ;;  %v3998_v40 = vrot.slane %v12720_v21, 1  ;;  %v9687_v10 = vunpack.i.h.bf16 %v9685_v33 }
 0x191   : > { %v9686_v15 = vunpack.i.l.bf16 %v9685_v33  ;;  %vm16254_vm12 = vcmask 130048  }
 0x192   : > { %9894 = vrot.lane.b32.xlu2 %v9893_v20, %s15876_s20  ;;  %v3334_v39 = vsel %vm16250_vm15, %v3301_v13, %v9681_v26  ;;  %v3335_v16 = vsel %vm16251_vm8, %v3302_v35, %v9682_v59  ;;  %v12746_v37 = vsel %vm16252_vm5, %v3996_v27, %v3998_v40  ;;  %vm16255_vm3 = vmmov %vm16254_vm12  ;;  %vm16258_vm15 = vnez %v16257_v0 }
 0x193   : > { %v3627_v56 = vpop.f32.mrf.mxu0  ;;  %v4693_v34 = vsel %vm16197_vm1, %v12673_v52, %v12746_v37  ;;  %v3367_v47 = vsel %vm16254_vm12, %v3334_v39, %v9686_v15  ;;  %v3368_v58 = vsel %vm16255_vm3, %v3335_v16, %v9687_v10  ;;  %v4085_v44 = vsel %vm16258_vm15, %v12673_v52, %v12746_v37  ;;  %vm16259_vm8 = vmmov %vm16256_vm11 }
 0x194   : > { %v3628_v42 = vadd.f32 %v12169_v25, %v3627_v56  ;;  %v5626_v12 = vpack.c.bf16 %v4693_v34, %v12752_v11  ;;  %vm16260_vm5 = vcmask 162816   ;;  %v12777_v59 = vpop.permute.xlu2 %9734  ;;  %vm16262_vm12 = vcmask 195584  }
 0x195   : > { %v3400_v33 = vsel %vm16260_vm5, %v3367_v47, %v9691_v36  ;;  %vm16261_vm14 = vmmov %vm16260_vm5  ;;  %v12783_v27 = vpack.i.bf16 %v4085_v44, %v12752_v11  ;;  %vm16266_vm5 = vcmask 261120  }
 0x196   : > { %v12763_v48 = vmax.f32 %v3628_v42, 0.0  ;;  %8826 = vmatmul.msk.bf16.gmra.mxu3 %vm16256_vm11, %v5626_v12  ;;  %v3401_v7 = vsel %vm16261_vm14, %v3368_v58, %v9692_v19  ;;  %vm16263_vm3 = vmmov %vm16262_vm12  ;;  %vm16264_vm11 = vcmask 228352  }
 0x197   : > { %v9695_v24 = vpop.permute.xlu0 %9694  ;;  %v9700_v45 = vpop.permute.xlu1 %9699  ;;  %vm16267_vm14 = vmmov %vm16266_vm5 }
 0x198   : > { %3726 = vst.msk [vmem:[%s12224_s1 + $0x48] sm:$0xff] %vm16259_vm8, %v12763_v48  ;;  %v9697_v63 = vunpack.i.h.bf16 %v9695_v24  ;;  %v9696_v30 = vunpack.i.l.bf16 %v9695_v24  ;;  %v9702_v5 = vunpack.i.h.bf16 %v9700_v45  ;;  %v9701_v32 = vunpack.i.l.bf16 %v9700_v45  ;;  %vm16265_vm8 = vmmov %vm16264_vm11 }
 0x199   : > { %v4000_v58 = vrot.slane %v12763_v48, 1 }
 0x19a   : > { %v3433_v26 = vsel %vm16262_vm12, %v3400_v33, %v9696_v30  ;;  %v3434_v20 = vsel %vm16263_vm3, %v3401_v7, %v9697_v63  ;;  %9914 = vrot.lane.b32.xlu2 %v9878_v3, %s15876_s20  ;;  %v4371_v3 = vsel %vm16197_vm1, %v12553_v51, %v12647_v38  ;;  %vm16268_vm12 = vcmask 293888   ;;  %vm16269_vm3 = vmmov %vm16266_vm5 }
 0x19b   : > { %v3466_v13 = vsel %vm16264_vm11, %v3433_v26, %v9701_v32  ;;  %v3467_v35 = vsel %vm16265_vm8, %v3434_v20, %v9702_v5  ;;  %v9928_v47 = vpack.i.bf16 %v4371_v3, %v12656_v22  ;;  %vm16271_vm1 = vcmask 31744  }
 0x19c   : > { %v3630_v10 = vpop.f32.mrf.mxu0  ;;  %v3499_v15 = vsel %vm16266_vm5, %v3466_v13, %v9706_v54  ;;  %v3500_v39 = vsel %vm16267_vm14, %v3467_v35, %v9707_v29  ;;  %vm16272_vm11 = vcmask 1046528   ;;  %v12815_v45 = vpop.permute.xlu2 %9749  ;;  %vm16273_vm8 = vmmov %vm16271_vm1  ;;  %vm16275_vm14 = vcmask 64512   ;;  %v16277_v13 = vld [vmem:[#allocation45_spill] sm:$0xff] }
 0x19d   : > { %v3631_v16 = vadd.f32 %v12169_v25, %v3630_v10  ;;  %v3520_v56 = vpack.c.bf16 %v3500_v39, %v3499_v15  ;;  %vm16274_vm5 = vmmov %vm16272_vm11 }
 0x19e   : > { %v12822_v30 = vsel %vm16274_vm5, %v3998_v40, %v4000_v58 }
 0x19f   : > { %v12794_v42 = vmax.f32 %v3631_v16, 0.0  ;;  %v9710_v34 = vpop.permute.xlu0 %9709  ;;  %v9715_v19 = vpop.permute.xlu1 %9714  ;;  %8747 = vmatmul.msk.bf16.gmra.mxu0 %vm16268_vm12, %v3520_v56  ;;  %vm16276_vm12 = vmmov %vm16275_vm14 }
 0x1a0   : > { %v9712_v36 = vunpack.i.h.bf16 %v9710_v34  ;;  %v9711_v12 = vunpack.i.l.bf16 %v9710_v34  ;;  %v9716_v54 = vunpack.i.l.bf16 %v9715_v19  ;;  %v9717_v24 = vunpack.i.h.bf16 %v9715_v19 }
 0x1a1   : > { %3727 = vst.msk [vmem:[%s12224_s1 + $0x50] sm:$0xff] %vm16269_vm3, %v12794_v42  ;;  %v4002_v29 = vrot.slane %v12794_v42, 1 }
 0x1a2   : > { %9929 = vrot.lane.b32.xlu2 %v9928_v47, %s15876_s20  ;;  %v3270_v38 = vsel %vm16271_vm1, %v16270_v62, %v9711_v12  ;;  %v3271_v44 = vsel %vm16273_vm8, %v11928_v60, %v9712_v36  ;;  %v9722_v60 = vunpack.i.h.bf16 %v12733_v31  ;;  %vm16278_vm1 = vnez %v16277_v13 }
 0x1a3   : > { %v12813_v22 = vsel %vm16272_vm11, %v4000_v58, %v4002_v29  ;;  %v3303_v33 = vsel %vm16275_vm14, %v3270_v38, %v9716_v54  ;;  %v3304_v7 = vsel %vm16276_vm12, %v3271_v44, %v9717_v24  ;;  %vm16279_vm11 = vmmov %vm16269_vm3  ;;  %vm16280_vm8 = vcmask 97280  }
 0x1a4   : > { %v3632_v63 = vpop.f32.mrf.mxu0  ;;  %v4695_v50 = vsel %vm16231_vm7, %v12763_v48, %v12813_v22  ;;  %v4087_v35 = vsel %vm16278_vm1, %v12763_v48, %v12813_v22  ;;  %v3336_v31 = vsel %vm16280_vm8, %v3303_v33, %v9721_v2  ;;  %vm16281_vm5 = vmmov %vm16280_vm8  ;;  %vm16282_vm14 = vcmask 130048   ;;  %v12859_v58 = vpop.permute.xlu2 %9764 }
 0x1a5   : > { %v3633_v5 = vadd.f32 %v12169_v25, %v3632_v63  ;;  %v5629_v32 = vpack.c.bf16 %v4695_v50, %v12822_v30  ;;  %v3337_v39 = vsel %vm16281_vm5, %v3304_v7, %v9722_v60  ;;  %v12849_v3 = vpack.i.bf16 %v4087_v35, %v12822_v30  ;;  %vm16283_vm12 = vmmov %vm16282_vm14 }
 0x1a6   : > { %v4373_v36 = vsel %vm16231_vm7, %v12673_v52, %v12746_v37  ;;  %v9737_v12 = vunpack.i.h.bf16 %v12777_v59  ;;  %v9736_v47 = vunpack.i.l.bf16 %v12777_v59  ;;  %vm16286_vm8 = vcmask 195584  }
 0x1a7   : > { %v12834_v26 = vmax.f32 %v3633_v5, 0.0  ;;  %v9725_v40 = vpop.permute.xlu0 %9724  ;;  %v9730_v20 = vpop.permute.xlu1 %9729  ;;  %8827 = vmatmul.msk.bf16.gmra.mxu3 %vm16269_vm3, %v5629_v32  ;;  %vm16284_vm3 = vcmask 162816   ;;  %v9958_v24 = vpack.i.bf16 %v4373_v36, %v12752_v11  ;;  %vm16287_vm7 = vmmov %vm16286_vm8  ;;  %vm16288_vm5 = vcmask 228352   ;;  %v16297_v36 = vld [vmem:[#allocation62_spill] sm:$0xff] }
 0x1a8   : > { %v9727_v10 = vunpack.i.h.bf16 %v9725_v40  ;;  %v9726_v15 = vunpack.i.l.bf16 %v9725_v40  ;;  %v9732_v16 = vunpack.i.h.bf16 %v9730_v20  ;;  %v9731_v56 = vunpack.i.l.bf16 %v9730_v20 }
 0x1a9   : > { %3728 = vst.msk [vmem:[%s12224_s1 + $0x58] sm:$0xff] %vm16279_vm11, %v12834_v26  ;;  %vm16285_vm11 = vmmov %vm16284_vm3  ;;  %v9751_v33 = vunpack.i.l.bf16 %v12815_v45  ;;  %v9752_v20 = vunpack.i.h.bf16 %v12815_v45  ;;  %v12997_v13 = vpack.i.bf16 %v12763_v48, %v12720_v21 }
 0x1aa   : > { %9944 = vrot.lane.b32.xlu2 %v12695_v53, %s15876_s20  ;;  %v3369_v34 = vsel %vm16282_vm14, %v3336_v31, %v9726_v15  ;;  %v3370_v19 = vsel %vm16283_vm12, %v3337_v39, %v9727_v10  ;;  %vm16289_vm14 = vmmov %vm16288_vm5  ;;  %vm16290_vm12 = vcmask 261120   ;;  %v12879_v31 = vpack.i.bf16 %v12553_v51, %v12481_v28  ;;  %v16293_v39 = vld [vmem:[#allocation59_spill] sm:$0xff] }
 0x1ab   : > { %v3402_v53 = vsel %vm16284_vm3, %v3369_v34, %v9731_v56  ;;  %v3403_v54 = vsel %vm16285_vm11, %v3370_v19, %v9732_v16  ;;  %vm16291_vm3 = vmmov %vm16290_vm12  ;;  %vm16292_vm11 = vcmask 293888   ;;  %v16294_v16 = vsel %vm11957_vm4, %v11914_v14, %v16293_v39 }
 0x1ac   : > { %v3435_v55 = vsel %vm16286_vm8, %v3402_v53, %v9736_v47  ;;  %v3436_v37 = vsel %vm16287_vm7, %v3403_v54, %v9737_v12  ;;  %vm16295_vm8 = vcmask 31744   ;;  %v9780_v56 = vpop.permute.xlu2 %9779  ;;  %vm16296_vm7 = vmmov %vm16291_vm3  ;;  %v4004_v19 = vrot.slane %v12834_v26, 1 }
 0x1af   : > { %v9740_v62 = vpop.permute.xlu0 %9739  ;;  %v9745_v38 = vpop.permute.xlu1 %9744 }
 0x1b0   : > { %v9742_v44 = vunpack.i.h.bf16 %v9740_v62  ;;  %v9741_v63 = vunpack.i.l.bf16 %v9740_v62  ;;  %v9747_v50 = vunpack.i.h.bf16 %v9745_v38  ;;  %v9746_v2 = vunpack.i.l.bf16 %v9745_v38 }
 0x1b2   : > { %v3468_v59 = vsel %vm16288_vm5, %v3435_v55, %v9741_v63  ;;  %v3469_v5 = vsel %vm16289_vm14, %v3436_v37, %v9742_v44  ;;  %9959 = vrot.lane.b32.xlu2 %v9958_v24, %s15876_s20  ;;  %vm16298_vm5 = vmmov %vm16295_vm8  ;;  %vm16299_vm14 = vcmask 64512   ;;  %v12906_v44 = vld [vmem:[%s16097_s2] ss:$0 sm:$0xff]  ;;  %v9766_v55 = vunpack.i.l.bf16 %v12859_v58  ;;  %s8723_s2 = sshll.u32 %s12162_s18, 6 }
 0x1b3   : > { %v3501_v32 = vsel %vm16290_vm12, %v3468_v59, %v9746_v2  ;;  %v3502_v60 = vsel %vm16291_vm3, %v3469_v5, %v9747_v50  ;;  %v3635_v11 = vpop.f32.mrf.mxu0  ;;  %v3273_v12 = vsel %vm16298_vm5, %v16297_v36, %v9752_v20  ;;  %vm16300_vm12 = vcmask 1046528   ;;  %vm16301_vm3 = vmmov %vm16299_vm14  ;;  %s14563_s27 = scalar_lea.vmem [#allocation5], %s8723_s2 }
 0x1b4   : > { %v3636_v7 = vadd.f32 %v12169_v25, %v3635_v11  ;;  %v3521_v40 = vpack.c.bf16 %v3502_v60, %v3501_v32  ;;  %v3272_v25 = vsel %vm16295_vm8, %v16294_v16, %v9751_v33  ;;  %v4375_v59 = vsel %vm16258_vm15, %v12763_v48, %v12813_v22 }
 0x1b5   : > { %v9767_v5 = vunpack.i.h.bf16 %v12859_v58  ;;  %vm16303_vm8 = vcmask 97280   ;;  %vm16305_vm5 = vcmask 261120   ;;  %v9988_v58 = vpack.i.bf16 %v4375_v59, %v12822_v30 }
 0x1b6   : > { %v12874_v35 = vmax.f32 %v3636_v7, 0.0  ;;  %8748 = vmatmul.msk.bf16.gmra.mxu0 %vm16292_vm11, %v3521_v40  ;;  %vm16302_vm11 = vmmov %vm16300_vm12  ;;  %v9781_v36 = vunpack.i.l.bf16 %v9780_v56 }
 0x1b7   : > { %v9755_v10 = vpop.permute.xlu0 %9754  ;;  %v9760_v15 = vpop.permute.xlu1 %9759  ;;  %v4005_v50 = vsel %vm16302_vm11, %v4002_v29, %v4004_v19 }
 0x1b8   : > { %3729 = vst.msk [vmem:[%s12224_s1 + $0x60] sm:$0xff] %vm16296_vm7, %v12874_v35  ;;  %v9757_v45 = vunpack.i.h.bf16 %v9755_v10  ;;  %v9756_v34 = vunpack.i.l.bf16 %v9755_v10  ;;  %v4006_v47 = vrot.slane %v12874_v35, 1  ;;  %v9761_v53 = vunpack.i.l.bf16 %v9760_v15  ;;  %vm16304_vm7 = vmmov %vm16303_vm8  ;;  %v9795_v10 = vpop.permute.xlu2 %9794 }
 0x1b9   : > { %v9762_v54 = vunpack.i.h.bf16 %v9760_v15 }
 0x1ba   : > { %9974 = vrot.lane.b32.xlu2 %v12879_v31, %s15876_s20  ;;  %v3305_v14 = vsel %vm16299_vm14, %v3272_v25, %v9756_v34  ;;  %v12900_v38 = vsel %vm16300_vm12, %v4004_v19, %v4006_v47  ;;  %v3306_v24 = vsel %vm16301_vm3, %v3273_v12, %v9757_v45  ;;  %vm16307_vm14 = vmmov %vm16305_vm5  ;;  %vm16310_vm3 = vcmask 162816  }
 0x1bb   : > { %v3637_v62 = vpop.f32.mrf.mxu0  ;;  %v4697_v2 = vsel %vm16258_vm15, %v12834_v26, %v12900_v38  ;;  %v3338_v32 = vsel %vm16303_vm8, %v3305_v14, %v9761_v53  ;;  %v3339_v29 = vsel %vm16304_vm7, %v3306_v24, %v9762_v54  ;;  %v4089_v40 = vsel %vm11382_vm0, %v12834_v26, %v12900_v38  ;;  %vm16311_vm11 = vmmov %vm16310_vm3 }
 0x1bc   : > { %v3638_v63 = vadd.f32 %v12906_v44, %v3637_v62  ;;  %v5632_v37 = vpack.c.bf16 %v4697_v2, %v4005_v50  ;;  %vm16308_vm15 = vcmask 130048   ;;  %v12938_v25 = vpack.i.bf16 %v4089_v40, %v4005_v50 }
 0x1bd   : > { %v3371_v20 = vsel %vm16308_vm15, %v3338_v32, %v9766_v55  ;;  %vm16309_vm12 = vmmov %vm16308_vm15  ;;  %v9782_v19 = vunpack.i.h.bf16 %v9780_v56  ;;  %vm16312_vm8 = vcmask 195584   ;;  %v12946_v24 = vpack.i.bf16 %v12673_v52, %v12621_v61 }
 0x1be   : > { %v12923_v60 = vmax.f32 %v3638_v63, 0.0  ;;  %8828 = vmatmul.msk.bf16.gmra.mxu3 %vm16305_vm5, %v5632_v37  ;;  %v3372_v15 = vsel %vm16309_vm12, %v3339_v29, %v9767_v5  ;;  %vm16313_vm7 = vmmov %vm16312_vm8  ;;  %vm16314_vm5 = vcmask 228352   ;;  %vm16316_vm15 = vcmask 261120  }
 0x1bf   : > { %v9770_v11 = vpop.permute.xlu0 %9769  ;;  %v9775_v33 = vpop.permute.xlu1 %9774  ;;  %vm16317_vm12 = vmmov %vm16316_vm15  ;;  %v9797_v40 = vunpack.i.h.bf16 %v9795_v10 }
 0x1c0   : > { %3730 = vst.msk [vmem:[%s12224_s1 + $0x68] sm:$0xff] %vm16307_vm14, %v12923_v60  ;;  %v9772_v0 = vunpack.i.h.bf16 %v9770_v11  ;;  %v9771_v22 = vunpack.i.l.bf16 %v9770_v11  ;;  %v9777_v39 = vunpack.i.h.bf16 %v9775_v33  ;;  %v9776_v16 = vunpack.i.l.bf16 %v9775_v33  ;;  %vm16315_vm14 = vmmov %vm16314_vm5  ;;  %v9810_v29 = vpop.permute.xlu2 %9809 }
 0x1c1   : > { %v4377_v33 = vsel %vm16278_vm1, %v12834_v26, %v12900_v38 }
 0x1c2   : > { %9989 = vrot.lane.b32.xlu2 %v9988_v58, %s15876_s20  ;;  %v3404_v45 = vsel %vm16310_vm3, %v3371_v20, %v9771_v22  ;;  %v3405_v34 = vsel %vm16311_vm11, %v3372_v15, %v9772_v0  ;;  %vm16318_vm3 = vcmask 293888   ;;  %v9796_v0 = vunpack.i.l.bf16 %v9795_v10  ;;  %v16320_v58 = vld [vmem:[#allocation66_spill] sm:$0xff]  ;;  %v16323_v15 = vld [vmem:[#allocation61_spill] sm:$0xff] }
 0x1c3   : > { %v3437_v12 = vsel %vm16312_vm8, %v3404_v45, %v9776_v16  ;;  %v3438_v30 = vsel %vm16313_vm7, %v3405_v34, %v9777_v39  ;;  %vm16321_vm11 = vcmask 31744   ;;  %vm16322_vm8 = vnez %v16077_v57  ;;  %v16324_v39 = vld [vmem:[#allocation64_spill] sm:$0xff] }
 0x1c4   : > { %v3470_v63 = vsel %vm16314_vm5, %v3437_v12, %v9781_v36  ;;  %v3471_v2 = vsel %vm16315_vm14, %v3438_v30, %v9782_v19  ;;  %v16325_v16 = vsel %vm16322_vm8, %v16323_v15, %v16324_v39  ;;  %vm16326_vm7 = vmmov %vm16321_vm11  ;;  %v10018_v10 = vpack.i.bf16 %v4377_v33, %v4005_v50 }
 0x1c5   : > { %vm16327_vm5 = vmmov %vm16317_vm12  ;;  %v4008_v12 = vrot.slane %v12923_v60, 1  ;;  %vm16328_vm14 = vcmask 64512  }
 0x1c7   : > { %v9785_v53 = vpop.permute.xlu0 %9784  ;;  %v9790_v14 = vpop.permute.xlu1 %9789 }
 0x1c8   : > { %v9787_v54 = vunpack.i.h.bf16 %v9785_v53  ;;  %v9786_v62 = vunpack.i.l.bf16 %v9785_v53  ;;  %v9792_v37 = vunpack.i.h.bf16 %v9790_v14  ;;  %v9791_v59 = vunpack.i.l.bf16 %v9790_v14  ;;  %v9825_v33 = vpop.permute.xlu2 %9824 }
 0x1c9   : > { %v9826_v15 = vunpack.i.l.bf16 %v9825_v33 }
 0x1ca   : > { %v3503_v55 = vsel %vm16316_vm15, %v3470_v63, %v9786_v62  ;;  %v3504_v56 = vsel %vm16317_vm12, %v3471_v2, %v9787_v54  ;;  %10004 = vrot.lane.b32.xlu2 %v12946_v24, %s15876_s20  ;;  %v3275_v20 = vsel %vm16321_vm11, %v16320_v58, %v9792_v37  ;;  %v3274_v45 = vsel %vm16326_vm7, %v16325_v16, %v9791_v59  ;;  %vm16329_vm15 = vmmov %vm16328_vm14 }
 0x1cb   : > { %v3640_v5 = vpop.f32.mrf.mxu0  ;;  %v3522_v32 = vpack.c.bf16 %v3504_v56, %v3503_v55  ;;  %v3307_v53 = vsel %vm16328_vm14, %v3274_v45, %v9796_v0  ;;  %v3308_v14 = vsel %vm16329_vm15, %v3275_v20, %v9797_v40  ;;  %vm16330_vm12 = vcmask 97280  }
 0x1cc   : > { %v3641_v11 = vadd.f32 %v12906_v44, %v3640_v5  ;;  %vm16332_vm11 = vcmask 1046528   ;;  %v9812_v5 = vunpack.i.h.bf16 %v9810_v29  ;;  %v9827_v20 = vunpack.i.h.bf16 %v9825_v33  ;;  %v16348_v33 = vld [vmem:[#allocation68_spill] sm:$0xff] }
 0x1cd   : > { %8749 = vmatmul.msk.bf16.gmra.mxu0 %vm16318_vm3, %v3522_v32  ;;  %vm16331_vm3 = vmmov %vm16330_vm12  ;;  %v9811_v32 = vunpack.i.l.bf16 %v9810_v29  ;;  %vm16337_vm15 = vcmask 261120   ;;  %v16338_v29 = vld [vmem:[#allocation51_spill] sm:$0xff] }
 0x1ce   : > { %v12960_v22 = vmax.f32 %v3641_v11, 0.0  ;;  %vm16333_vm7 = vmmov %vm16332_vm11 }
 0x1cf   : > { %v9800_v34 = vpop.permute.xlu0 %9799  ;;  %v9805_v19 = vpop.permute.xlu1 %9804  ;;  %v4009_v37 = vsel %vm16333_vm7, %v4006_v47, %v4008_v12  ;;  %vm16343_vm7 = vcmask 195584  }
 0x1d0   : > { %16319 = vst [vmem:[#allocation24_spill] sm:$0xff] %v12960_v22  ;;  %v9802_v38 = vunpack.i.h.bf16 %v9800_v34  ;;  %v9801_v36 = vunpack.i.l.bf16 %v9800_v34  ;;  %v4010_v30 = vrot.slane %v12960_v22, 1  ;;  %v9807_v54 = vunpack.i.h.bf16 %v9805_v19 }
 0x1d1   : > { %3731 = vst.msk [vmem:[%s12224_s1 + $0x70] sm:$0xff] %vm16327_vm5, %v12960_v22  ;;  %v9806_v62 = vunpack.i.l.bf16 %v9805_v19  ;;  %vm16334_vm5 = vcmask 130048  }
 0x1d2   : > { %10019 = vrot.lane.b32.xlu2 %v10018_v10, %s15876_s20  ;;  %v3340_v63 = vsel %vm16330_vm12, %v3307_v53, %v9801_v36  ;;  %v3341_v2 = vsel %vm16331_vm3, %v3308_v14, %v9802_v38  ;;  %v4011_v50 = vsel %vm16332_vm11, %v4008_v12, %v4010_v30  ;;  %vm16335_vm14 = vmmov %vm16334_vm5  ;;  %vm16341_vm3 = vcmask 162816  }
 0x1d3   : > { %v3642_v55 = vpop.f32.mrf.mxu0  ;;  %v4699_v59 = vsel %vm16278_vm1, %v12923_v60, %v4011_v50  ;;  %v3373_v40 = vsel %vm16334_vm5, %v3340_v63, %v9806_v62  ;;  %v3374_v0 = vsel %vm16335_vm14, %v3341_v2, %v9807_v54  ;;  %vm16339_vm1 = vnez %v16338_v29  ;;  %vm16340_vm12 = vmmov %vm16337_vm15 }
 0x1d4   : > { %v3643_v56 = vadd.f32 %v12906_v44, %v3642_v55  ;;  %v5635_v11 = vpack.c.bf16 %v4699_v59, %v4009_v37  ;;  %v4091_v16 = vsel %vm16339_vm1, %v12923_v60, %v4011_v50  ;;  %v3406_v36 = vsel %vm16341_vm3, %v3373_v40, %v9811_v32  ;;  %vm16342_vm11 = vmmov %vm16341_vm3 }
 0x1d5   : > { %v3407_v10 = vsel %vm16342_vm11, %v3374_v0, %v9812_v5  ;;  %vm16344_vm5 = vmmov %vm16343_vm7  ;;  %v13011_v14 = vpack.i.bf16 %v4091_v16, %v4009_v37  ;;  %vm16345_vm14 = vcmask 228352   ;;  %v4379_v5 = vsel %vm11382_vm0, %v12923_v60, %v4011_v50 }
 0x1d6   : > { %v12992_v58 = vmax.f32 %v3643_v56, 0.0  ;;  %8829 = vmatmul.msk.bf16.gmra.mxu3 %vm16337_vm15, %v5635_v11  ;;  %vm16346_vm15 = vmmov %vm16345_vm14  ;;  %v10529_v11 = vld [vmem:[%s10879_s26 + $0xe0] sm:$0xff]  ;;  %vm16349_vm11 = vcmask 293888   ;;  %s15810_s26 = smov 64  }
 0x1d7   : > { %v9815_v47 = vpop.permute.xlu0 %9814  ;;  %v9820_v39 = vpop.permute.xlu1 %9819  ;;  %vm16347_vm3 = vmmov %vm16340_vm12  ;;  %v1445_v40 = vsel %vm12560_vm9, %v10529_v11, %v16348_v33 }
 0x1d8   : > { %16336 = vst [vmem:[#allocation38_spill] sm:$0xff] %v12992_v58  ;;  %v9817_v45 = vunpack.i.h.bf16 %v9815_v47  ;;  %v9816_v34 = vunpack.i.l.bf16 %v9815_v47  ;;  %v9822_v19 = vunpack.i.h.bf16 %v9820_v39  ;;  %v9821_v38 = vunpack.i.l.bf16 %v9820_v39 }
 0x1d9   : > { %3732 = vst.msk [vmem:[%s12224_s1 + $0x78] sm:$0xff] %vm16340_vm12, %v12992_v58  ;;  %v10048_v39 = vpack.i.bf16 %v4379_v5, %v4009_v37  ;;  %v4012_v16 = vrot.slane %v12992_v58, 1 }
 0x1da   : > { %v3439_v12 = vsel %vm16343_vm7, %v3406_v36, %v9816_v34  ;;  %v3440_v53 = vsel %vm16344_vm5, %v3407_v10, %v9817_v45  ;;  %10034 = vrot.lane.b32.xlu2 %v12997_v13, %s15876_s20  ;;  %vm16350_vm7 = vmmov %vm16347_vm3  ;;  %v9840_v45 = vpop.permute.xlu2 %9839  ;;  %vm16351_vm5 = vcmask 31744   ;;  %v16353_v10 = vld [vmem:[#allocation46_spill] sm:$0xff] }
 0x1db   : > { %v3472_v54 = vsel %vm16345_vm14, %v3439_v12, %v9821_v38  ;;  %v3473_v62 = vsel %vm16346_vm15, %v3440_v53, %v9822_v19  ;;  %vm16352_vm14 = vcmask 1046528   ;;  %vm16354_vm15 = vmmov %vm16351_vm5 }
 0x1dc   : > { %v3505_v2 = vsel %vm16340_vm12, %v3472_v54, %v9826_v15  ;;  %v3506_v55 = vsel %vm16347_vm3, %v3473_v62, %v9827_v20  ;;  %vm16355_vm12 = vmmov %vm16352_vm14  ;;  %v9841_v62 = vunpack.i.l.bf16 %v9840_v45  ;;  %vm16356_vm3 = vcmask 64512  }
 0x1dd   : > { %v3645_v63 = vpop.f32.mrf.mxu0  ;;  %v3523_v59 = vpack.c.bf16 %v3506_v55, %v3505_v2  ;;  %v4013_v53 = vsel %vm16355_vm12, %v4010_v30, %v4012_v16  ;;  %v9842_v55 = vunpack.i.h.bf16 %v9840_v45  ;;  %v16359_v30 = vld [vmem:[#allocation53_spill] sm:$0xff]  ;;  %vm16365_vm12 = vcmask 130048  }
 0x1de   : > { %v3646_v56 = vadd.f32 %v12906_v44, %v3645_v63 }
 0x1df   : > { %v9830_v0 = vpop.permute.xlu0 %9829  ;;  %v9835_v47 = vpop.permute.xlu1 %9834  ;;  %8750 = vmatmul.msk.bf16.gmra.mxu0 %vm16349_vm11, %v3523_v59  ;;  %vm16357_vm11 = vmmov %vm16356_vm3 }
 0x1e0   : > { %v13021_v32 = vmax.f32 %v3646_v56, 0.0  ;;  %v9832_v15 = vunpack.i.h.bf16 %v9830_v0  ;;  %v9831_v20 = vunpack.i.l.bf16 %v9830_v0  ;;  %v9836_v34 = vunpack.i.l.bf16 %v9835_v47 }
 0x1e1   : > { %v9837_v38 = vunpack.i.h.bf16 %v9835_v47  ;;  %v13057_v47 = vpack.i.bf16 %v12834_v26, %v12794_v42 }
 0x1e2   : > { %3733 = vst.msk [vmem:[%s12224_s1 + $0x80] sm:$0xff] %vm16350_vm7, %v13021_v32  ;;  %v4014_v50 = vrot.slane %v13021_v32, 1  ;;  %10049 = vrot.lane.b32.xlu2 %v10048_v39, %s15876_s20  ;;  %v3276_v19 = vsel %vm16351_vm5, %v1445_v40, %v9831_v20  ;;  %v3277_v37 = vsel %vm16354_vm15, %v16353_v10, %v9832_v15  ;;  %vm16360_vm5 = vnez %v16359_v30 }
 0x1e3   : > { %v3309_v56 = vsel %vm16356_vm3, %v3276_v19, %v9836_v34  ;;  %v3310_v59 = vsel %vm16357_vm11, %v3277_v37, %v9837_v38  ;;  %vm16366_vm3 = vmmov %vm16365_vm12  ;;  %v9855_v38 = vpop.permute.xlu2 %9854  ;;  %vm16367_vm11 = vcmask 162816  }
 0x1e4   : > { %v4015_v36 = vsel %vm16352_vm14, %v4012_v16, %v4014_v50  ;;  %vm16362_vm14 = vcmask 97280   ;;  %v9857_v37 = vunpack.i.h.bf16 %v9855_v38 }
 0x1e5   : > { %v3647_v12 = vpop.f32.mrf.mxu0  ;;  %v4701_v54 = vsel %vm11382_vm0, %v12992_v58, %v4015_v36  ;;  %v4093_v7 = vsel %vm16360_vm5, %v12992_v58, %v4015_v36  ;;  %vm16361_vm0 = vmmov %vm16350_vm7  ;;  %v3342_v15 = vsel %vm16362_vm14, %v3309_v56, %v9841_v62  ;;  %v4381_v10 = vsel %vm16339_vm1, %v12992_v58, %v4015_v36 }
 0x1e6   : > { %v3648_v63 = vadd.f32 %v12906_v44, %v3647_v12  ;;  %v5638_v2 = vpack.c.bf16 %v4701_v54, %v4013_v53  ;;  %vm16363_vm15 = vmmov %vm16362_vm14  ;;  %v13066_v45 = vpack.i.bf16 %v4093_v7, %v4013_v53  ;;  %v9856_v12 = vunpack.i.l.bf16 %v9855_v38 }
 0x1e7   : > { %v9845_v11 = vpop.permute.xlu0 %9844  ;;  %v9850_v33 = vpop.permute.xlu1 %9849  ;;  %v3343_v20 = vsel %vm16363_vm15, %v3310_v59, %v9842_v55  ;;  %v10078_v55 = vpack.i.bf16 %v4381_v10, %v4013_v53  ;;  %vm16371_vm15 = vcmask 228352   ;;  %v13092_v38 = vpack.i.bf16 %v12923_v60, %v12874_v35 }
 0x1e8   : > { %v13049_v5 = vmax.f32 %v3648_v63, 0.0  ;;  %8830 = vmatmul.msk.bf16.gmra.mxu3 %vm16350_vm7, %v5638_v2  ;;  %v9847_v40 = vunpack.i.h.bf16 %v9845_v11  ;;  %v9846_v0 = vunpack.i.l.bf16 %v9845_v11  ;;  %v9852_v39 = vunpack.i.h.bf16 %v9850_v33  ;;  %16364 = vst [vmem:[#allocation41_spill] sm:$0xff] %v13066_v45  ;;  %vm16368_vm7 = vmmov %vm16367_vm11 }
 0x1e9   : > { %v9851_v16 = vunpack.i.l.bf16 %v9850_v33 }
 0x1ea   : > { %16358 = vst [vmem:[#allocation26_spill] sm:$0xff] %v13049_v5  ;;  %10064 = vrot.lane.b32.xlu2 %v13057_v47, %s15876_s20  ;;  %v3375_v34 = vsel %vm16365_vm12, %v3342_v15, %v9846_v0  ;;  %v3376_v19 = vsel %vm16366_vm3, %v3343_v20, %v9847_v40  ;;  %vm16372_vm12 = vmmov %vm16371_vm15  ;;  %vm16373_vm3 = vcmask 261120  }
 0x1eb   : > { %3734 = vst.msk [vmem:[%s12224_s1 + $0x88] sm:$0xff] %vm16361_vm0, %v13049_v5  ;;  %v3408_v54 = vsel %vm16367_vm11, %v3375_v34, %v9851_v16  ;;  %v3409_v62 = vsel %vm16368_vm7, %v3376_v19, %v9852_v39  ;;  %vm16369_vm0 = vcmask 195584   ;;  %vm16374_vm11 = vmmov %vm16373_vm3  ;;  %vm16375_vm7 = vcmask 293888  }
 0x1ec   : > { %v3441_v7 = vsel %vm16369_vm0, %v3408_v54, %v9856_v12  ;;  %vm16370_vm14 = vmmov %vm16369_vm0  ;;  %v4016_v19 = vrot.slane %v13049_v5, 1 }
 0x1ed   : > { %v3442_v40 = vsel %vm16370_vm14, %v3409_v62, %v9857_v37  ;;  %vm16376_vm0 = vmmov %vm16373_vm3  ;;  %vm16377_vm14 = vcmask 1046528  }
 0x1ef   : > { %v9860_v63 = vpop.permute.xlu0 %9859  ;;  %v9865_v2 = vpop.permute.xlu1 %9864 }
 0x1f0   : > { %v9862_v56 = vunpack.i.h.bf16 %v9860_v63  ;;  %v9861_v59 = vunpack.i.l.bf16 %v9860_v63  ;;  %v9867_v11 = vunpack.i.h.bf16 %v9865_v2  ;;  %v9866_v33 = vunpack.i.l.bf16 %v9865_v2 }
 0x1f2   : > { %v3474_v36 = vsel %vm16371_vm15, %v3441_v7, %v9861_v59  ;;  %v3475_v0 = vsel %vm16372_vm12, %v3442_v40, %v9862_v56  ;;  %10079 = vrot.lane.b32.xlu2 %v10078_v55, %s15876_s20  ;;  %vm16378_vm15 = vmmov %vm16377_vm14  ;;  %v16379_v56 = vld [vmem:[#allocation55_spill] sm:$0xff] }
 0x1f3   : > { %v3507_v15 = vsel %vm16373_vm3, %v3474_v36, %v9866_v33  ;;  %v3508_v20 = vsel %vm16374_vm11, %v3475_v0, %v9867_v11  ;;  %v4017_v54 = vsel %vm16378_vm15, %v4014_v50, %v4016_v19  ;;  %vm16380_vm12 = vnez %v16379_v56  ;;  %vm16382_vm3 = vmmov %vm16376_vm0 }
 0x1f4   : > { %v3650_v53 = vpop.f32.mrf.mxu0  ;;  %v3524_v39 = vpack.c.bf16 %v3508_v20, %v3507_v15  ;;  %v13122_v33 = vpack.i.bf16 %v12992_v58, %v12960_v22  ;;  %vm16386_vm11 = vmmov %vm16376_vm0 }
 0x1f5   : > { %v3651_v16 = vadd.f32 %v12906_v44, %v3650_v53 }
 0x1f6   : > { %8751 = vmatmul.msk.bf16.gmra.mxu0 %vm16375_vm7, %v3524_v39  ;;  %vm16387_vm7 = vmmov %vm16377_vm14 }
 0x1f7   : > { %v13083_v34 = vmax.f32 %v3651_v16, 0.0 }
 0x1f9   : > { %3735 = vst.msk [vmem:[%s12224_s1 + $0x90] sm:$0xff] %vm16376_vm0, %v13083_v34  ;;  %v4018_v10 = vrot.slane %v13083_v34, 1 }
 0x1fa   : > { %10094 = vrot.lane.b32.xlu2 %v13092_v38, %s15876_s20 }
 0x1fb   : > { %v4019_v37 = vsel %vm16377_vm14, %v4016_v19, %v4018_v10 }
 0x1fc   : > { %v3652_v12 = vpop.f32.mrf.mxu0  ;;  %v4703_v62 = vsel %vm16339_vm1, %v13049_v5, %v4019_v37  ;;  %v4383_v55 = vsel %vm16360_vm5, %v13049_v5, %v4019_v37  ;;  %v4095_v59 = vsel %vm16380_vm12, %v13049_v5, %v4019_v37  ;;  %vm16384_vm1 = vmmov %vm16376_vm0 }
 0x1fd   : > { %v3653_v63 = vadd.f32 %v12906_v44, %v3652_v12  ;;  %v5641_v2 = vpack.c.bf16 %v4703_v62, %v4017_v54  ;;  %v13114_v50 = vpack.i.bf16 %v4095_v59, %v4017_v54  ;;  %v10108_v29 = vpack.i.bf16 %v4383_v55, %v4017_v54  ;;  %vm16388_vm0 = vmmov %vm16387_vm7  ;;  %v16389_v62 = vld [vmem:[#allocation57_spill] sm:$0xff] }
 0x1fe   : > { %vm16390_vm14 = vnez %v16389_v62  ;;  %vm16392_vm15 = vmmov %vm16384_vm1 }
 0x1ff   : > { %v13111_v11 = vmax.f32 %v3653_v63, 0.0  ;;  %8831 = vmatmul.msk.bf16.gmra.mxu3 %vm16382_vm3, %v5641_v2  ;;  %16383 = vst [vmem:[#allocation45_spill] sm:$0xff] %v13114_v50  ;;  %vm16396_vm3 = vmmov %vm16384_vm1 }
 0x201   : > { %16381 = vst [vmem:[#allocation43_spill] sm:$0xff] %v13111_v11  ;;  %v4020_v0 = vrot.slane %v13111_v11, 1  ;;  %v13192_v56 = vpack.i.bf16 %v13111_v11, %v13083_v34 }
 0x202   : > { %3736 = vst.msk [vmem:[%s12224_s1 + $0x98] sm:$0xff] %vm16384_vm1, %v13111_v11  ;;  %10109 = vrot.lane.b32.xlu2 %v10108_v29, %s15876_s20 }
 0x203   : > { %v4021_v39 = vsel %vm16388_vm0, %v4018_v10, %v4020_v0  ;;  %v13157_v10 = vpack.i.bf16 %v13049_v5, %v13021_v32  ;;  %16405 = vst [vmem:[#allocation51_spill] sm:$0xff] %v13192_v56 }
 0x20a   : > { %10124 = vrot.lane.b32.xlu2 %v13122_v33, %s15876_s20  ;;  %v3655_v7 = vpop.f32.mrf.mxu0 }
 0x20b   : > { %v3656_v40 = vadd.f32 %v12906_v44, %v3655_v7 }
 0x20d   : > { %v13127_v36 = vmax.f32 %v3656_v40, 0.0 }
 0x20f   : > { %16385 = vst [vmem:[#allocation59_spill] sm:$0xff] %v13127_v36  ;;  %v4022_v15 = vrot.slane %v13127_v36, 1 }
 0x210   : > { %3737 = vst.msk [vmem:[%s12224_s1 + $0xa0] sm:$0xff] %vm16386_vm11, %v13127_v36  ;;  %vm16398_vm11 = vmmov %vm16388_vm0 }
 0x211   : > { %v4023_v20 = vsel %vm16387_vm7, %v4020_v0, %v4022_v15 }
 0x212   : > { %v3657_v53 = vpop.f32.mrf.mxu0  ;;  %v4705_v16 = vsel %vm16360_vm5, %v13111_v11, %v4023_v20  ;;  %v4385_v19 = vsel %vm16380_vm12, %v13111_v11, %v4023_v20  ;;  %v4097_v63 = vsel %vm16390_vm14, %v13111_v11, %v4023_v20  ;;  %vm16394_vm5 = vmmov %vm16384_vm1 }
 0x213   : > { %v3658_v37 = vadd.f32 %v12906_v44, %v3657_v53  ;;  %v5644_v12 = vpack.c.bf16 %v4705_v16, %v4021_v39  ;;  %v10138_v54 = vpack.i.bf16 %v4385_v19, %v4021_v39  ;;  %v13150_v30 = vpack.i.bf16 %v4097_v63, %v4021_v39  ;;  %vm16397_vm1 = vmmov %vm16388_vm0 }
 0x214   : > { %vm16402_vm0 = vmmov %vm16396_vm3 }
 0x215   : > { %v13146_v2 = vmax.f32 %v3658_v37, 0.0  ;;  %8832 = vmatmul.msk.bf16.gmra.mxu3 %vm16392_vm15, %v5644_v12  ;;  %10139 = vrot.lane.b32.xlu2 %v10138_v54, %s15876_s20  ;;  %16393 = vst [vmem:[#allocation49_spill] sm:$0xff] %v13150_v30  ;;  %v16399_v54 = vld [vmem:[#allocation60_spill] sm:$0xff]  ;;  %vm16407_vm15 = vmmov %vm16402_vm0 }
 0x216   : > { %vm16400_vm7 = vnez %v16399_v54 }
 0x217   : > { %16391 = vst [vmem:[#allocation62_spill] sm:$0xff] %v13146_v2  ;;  %v4024_v7 = vrot.slane %v13146_v2, 1 }
 0x218   : > { %3738 = vst.msk [vmem:[%s12224_s1 + $0xa8] sm:$0xff] %vm16394_vm5, %v13146_v2  ;;  %vm16408_vm5 = vmmov %vm16397_vm1 }
 0x219   : > { %v4025_v53 = vsel %vm16398_vm11, %v4022_v15, %v4024_v7  ;;  %vm16413_vm11 = vmmov %vm16402_vm0 }
 0x21c   : > { %v3660_v55 = vpop.f32.mrf.mxu0 }
 0x21d   : > { %v3661_v59 = vadd.f32 %v12906_v44, %v3660_v55  ;;  %10154 = vrot.lane.b32.xlu2 %v13157_v10, %s15876_s20 }
 0x21f   : > { %v13162_v29 = vmax.f32 %v3661_v59, 0.0 }
 0x221   : > { %16395 = vst [vmem:[#allocation66_spill] sm:$0xff] %v13162_v29  ;;  %v4026_v40 = vrot.slane %v13162_v29, 1 }
 0x222   : > { %3739 = vst.msk [vmem:[%s12224_s1 + $0xb0] sm:$0xff] %vm16396_vm3, %v13162_v29  ;;  %vm16409_vm3 = vmmov %vm16397_vm1 }
 0x223   : > { %v4027_v0 = vsel %vm16397_vm1, %v4024_v7, %v4026_v40  ;;  %vm16411_vm1 = vnez %v16410_v46 }
 0x224   : > { %v3662_v20 = vpop.f32.mrf.mxu0  ;;  %v4707_v39 = vsel %vm16380_vm12, %v13146_v2, %v4027_v0  ;;  %v4387_v16 = vsel %vm16390_vm14, %v13146_v2, %v4027_v0  ;;  %v4099_v63 = vsel %vm16400_vm7, %v13146_v2, %v4027_v0  ;;  %vm16404_vm12 = vmmov %vm16402_vm0 }
 0x225   : > { %v3663_v19 = vadd.f32 %v12906_v44, %v3662_v20  ;;  %v5647_v37 = vpack.c.bf16 %v4707_v39, %v4025_v53  ;;  %v10168_v12 = vpack.i.bf16 %v4387_v16, %v4025_v53  ;;  %v13184_v15 = vpack.i.bf16 %v4099_v63, %v4025_v53 }
 0x227   : > { %v13181_v55 = vmax.f32 %v3663_v19, 0.0  ;;  %8833 = vmatmul.msk.bf16.gmra.mxu3 %vm16402_vm0, %v5647_v37  ;;  %16403 = vst [vmem:[#allocation64_spill] sm:$0xff] %v13184_v15  ;;  %10169 = vrot.lane.b32.xlu2 %v10168_v12, %s15876_s20 }
 0x229   : > { %16401 = vst [vmem:[#allocation61_spill] sm:$0xff] %v13181_v55  ;;  %v4028_v20 = vrot.slane %v13181_v55, 1 }
 0x22a   : > { %3740 = vst.msk [vmem:[%s12224_s1 + $0xb8] sm:$0xff] %vm16404_vm12, %v13181_v55  ;;  %vm16417_vm12 = vmmov %vm16409_vm3 }
 0x22b   : > { %v4029_v19 = vsel %vm16409_vm3, %v4026_v40, %v4028_v20  ;;  %v13227_v40 = vpack.i.bf16 %v13146_v2, %v13127_v36 }
 0x22d   : > { %16416 = vst [vmem:[#allocation55_spill] sm:$0xff] %v13227_v40 }
 0x22f   : > { %10184 = vrot.lane.b32.xlu2 %v13192_v56, %s15876_s20 }
 0x233   : > { %v3665_v59 = vpop.f32.mrf.mxu0 }
 0x234   : > { %v3666_v7 = vadd.f32 %v12906_v44, %v3665_v59 }
 0x236   : > { %v13197_v0 = vmax.f32 %v3666_v7, 0.0 }
 0x238   : > { %16406 = vst [vmem:[#allocation68_spill] sm:$0xff] %v13197_v0  ;;  %v4030_v53 = vrot.slane %v13197_v0, 1 }
 0x239   : > { %3741 = vst.msk [vmem:[%s12224_s1 + $0xc0] sm:$0xff] %vm16407_vm15, %v13197_v0  ;;  %vm16418_vm15 = vmmov %vm16409_vm3 }
 0x23a   : > { %v4031_v39 = vsel %vm16408_vm5, %v4028_v20, %v4030_v53  ;;  %vm16420_vm5 = vnez %v16419_v8  ;;  %vm16421_vm3 = vmmov %vm16402_vm0  ;;  %v13341_v8 = vrot.slane %v12257_v41, 7 }
 0x23b   : > { %v3667_v16 = vpop.f32.mrf.mxu0  ;;  %v4709_v37 = vsel %vm16390_vm14, %v13181_v55, %v4031_v39  ;;  %v4389_v12 = vsel %vm16400_vm7, %v13181_v55, %v4031_v39  ;;  %v4101_v6 = vsel %vm16411_vm1, %v13181_v55, %v4031_v39  ;;  %vm16415_vm14 = vmmov %vm16402_vm0 }
 0x23c   : > { %v3668_v63 = vadd.f32 %v12906_v44, %v3667_v16  ;;  %v5650_v59 = vpack.c.bf16 %v4709_v37, %v4029_v19  ;;  %v10198_v7 = vpack.i.bf16 %v4389_v12, %v4029_v19  ;;  %v13220_v62 = vpack.i.bf16 %v4101_v6, %v4029_v19 }
 0x23e   : > { %v13216_v15 = vmax.f32 %v3668_v63, 0.0  ;;  %8834 = vmatmul.msk.bf16.gmra.mxu3 %vm16413_vm11, %v5650_v59  ;;  %10199 = vrot.lane.b32.xlu2 %v10198_v7, %s15876_s20  ;;  %16414 = vst [vmem:[#allocation53_spill] sm:$0xff] %v13220_v62  ;;  %vm16426_vm11 = vmmov %vm16402_vm0 }
 0x240   : > { %16412 = vst [vmem:[#allocation46_spill] sm:$0xff] %v13216_v15  ;;  %v4032_v37 = vrot.slane %v13216_v15, 1 }
 0x241   : > { %3742 = vst.msk [vmem:[%s12224_s1 + $0xc8] sm:$0xff] %vm16415_vm14, %v13216_v15  ;;  %vm16427_vm14 = vmmov %vm16417_vm12 }
 0x242   : > { %v4033_v63 = vsel %vm16418_vm15, %v4030_v53, %v4032_v37  ;;  %v13262_v53 = vpack.i.bf16 %v13181_v55, %v13162_v29  ;;  %vm16433_vm15 = vmmov %vm16421_vm3 }
 0x244   : > { %16424 = vst [vmem:[#allocation60_spill] sm:$0xff] %v13262_v53 }
 0x246   : > { %10214 = vrot.lane.b32.xlu2 %v13227_v40, %s15876_s20 }
 0x24a   : > { %v3670_v20 = vpop.f32.mrf.mxu0 }
 0x24b   : > { %v3671_v39 = vadd.f32 %v12906_v44, %v3670_v20 }
 0x24d   : > { %v13232_v16 = vmax.f32 %v3671_v39, 0.0 }
 0x24f   : > { %3743 = vst.msk [vmem:[%s12224_s1 + $0xd0] sm:$0xff] %vm16402_vm0, %v13232_v16  ;;  %v4034_v6 = vrot.slane %v13232_v16, 1 }
 0x251   : > { %v4035_v19 = vsel %vm16417_vm12, %v4032_v37, %v4034_v6 }
 0x252   : > { %v3672_v12 = vpop.f32.mrf.mxu0  ;;  %v4711_v59 = vsel %vm16400_vm7, %v13216_v15, %v4035_v19  ;;  %v4391_v7 = vsel %vm16411_vm1, %v13216_v15, %v4035_v19  ;;  %v4103_v30 = vsel %vm16420_vm5, %v13216_v15, %v4035_v19  ;;  %vm16423_vm7 = vmmov %vm16402_vm0 }
 0x253   : > { %v3673_v20 = vadd.f32 %v12906_v44, %v3672_v12  ;;  %v5653_v39 = vpack.c.bf16 %v4711_v59, %v4033_v63  ;;  %v10228_v62 = vpack.i.bf16 %v4391_v7, %v4033_v63  ;;  %v13255_v54 = vpack.i.bf16 %v4103_v30, %v4033_v63  ;;  %v13264_v12 = vpop.f32.mrf.mxu3  ;;  %vm16428_vm0 = vmmov %vm16417_vm12 }
 0x254   : > { %16425 = vst [vmem:[#allocation65_spill] sm:$0xff] %v13264_v12 }
 0x255   : > { %v13251_v17 = vmax.f32 %v3673_v20, 0.0  ;;  %8835 = vmatmul.msk.bf16.gmra.mxu3 %vm16421_vm3, %v5653_v39  ;;  %10229 = vrot.lane.b32.xlu2 %v10228_v62, %s15876_s20  ;;  %16422 = vst [vmem:[#allocation57_spill] sm:$0xff] %v13255_v54 }
 0x257   : > { %3744 = vst.msk [vmem:[%s12224_s1 + $0xd8] sm:$0xff] %vm16423_vm7, %v13251_v17  ;;  %v4036_v30 = vrot.slane %v13251_v17, 1  ;;  %vm16438_vm7 = vmmov %vm16428_vm0  ;;  %v13385_v36 = vpack.i.bf16 %v13251_v17, %v13232_v16 }
 0x259   : > { %v4037_v20 = vsel %vm16428_vm0, %v4034_v6, %v4036_v30 }
 0x25b   : > { %v13288_v55 = vpop.f32.mrf.mxu3 }
 0x25c   : > { %v3675_v37 = vpop.f32.mrf.mxu0  ;;  %16431 = vst [vmem:[#allocation67_spill] sm:$0xff] %v13288_v55 }
 0x25d   : > { %v3676_v19 = vadd.f32 %v12906_v44, %v3675_v37  ;;  %10244 = vrot.lane.b32.xlu2 %v13262_v53, %s15876_s20  ;;  %v16429_v53 = vld [vmem:[#allocation70_spill] sm:$0xff] }
 0x25e   : > { %vm16430_vm12 = vnez %v16429_v53 }
 0x25f   : > { %v13269_v59 = vmax.f32 %v3676_v19, 0.0 }
 0x261   : > { %3745 = vst.msk [vmem:[%s12224_s1 + $0xe0] sm:$0xff] %vm16426_vm11, %v13269_v59  ;;  %v4038_v62 = vrot.slane %v13269_v59, 1 }
 0x263   : > { %v4039_v63 = vsel %vm16427_vm14, %v4036_v30, %v4038_v62  ;;  %vm16444_vm14 = vmmov %vm16428_vm0 }
 0x264   : > { %v3677_v7 = vpop.f32.mrf.mxu0  ;;  %v4713_v39 = vsel %vm16411_vm1, %v13251_v17, %v4039_v63  ;;  %v4393_v37 = vsel %vm16420_vm5, %v13251_v17, %v4039_v63  ;;  %v4105_v50 = vsel %vm16430_vm12, %v13251_v17, %v4039_v63  ;;  %vm16435_vm1 = vmmov %vm16421_vm3 }
 0x265   : > { %v3678_v19 = vadd.f32 %v12906_v44, %v3677_v7  ;;  %v5656_v12 = vpack.c.bf16 %v4713_v39, %v4037_v20  ;;  %v10258_v54 = vpack.i.bf16 %v4393_v37, %v4037_v20  ;;  %v13293_v46 = vpack.i.bf16 %v4105_v50, %v4037_v20  ;;  %vm16436_vm3 = vmmov %vm16428_vm0  ;;  %v16437_v7 = vld [vmem:[#allocation69_spill] sm:$0xff] }
 0x266   : > { %v13310_v50 = vpack.i.bf16 %v13216_v15, %v13197_v0  ;;  %vm16442_vm11 = vmmov %vm16435_vm1  ;;  %v16456_v0 = vld [vmem:[#allocation23_spill] sm:$0xff] }
 0x267   : > { %v13290_v29 = vmax.f32 %v3678_v19, 0.0  ;;  %8836 = vmatmul.msk.bf16.gmra.mxu3 %vm16433_vm15, %v5656_v12  ;;  %16434 = vst [vmem:[#allocation72_spill] sm:$0xff] %v13293_v46  ;;  %10259 = vrot.lane.b32.xlu2 %v10258_v54, %s15876_s20  ;;  %v13312_v54 = vpop.f32.mrf.mxu3  ;;  %vm16446_vm0 = vmmov %vm16435_vm1  ;;  %vm16451_vm15 = vcmask 1040384  }
 0x268   : > { %16440 = vst [vmem:[#allocation73_spill] sm:$0xff] %v13310_v50 }
 0x269   : > { %16432 = vst [vmem:[#allocation70_spill] sm:$0xff] %v13290_v29  ;;  %v4040_v6 = vrot.slane %v13290_v29, 1 }
 0x26a   : > { %3746 = vst.msk [vmem:[%s12224_s1 + $0xe8] sm:$0xff] %vm16435_vm1, %v13290_v29  ;;  %vm16452_vm1 = vmmov %vm16451_vm15 }
 0x26b   : > { %v4041_v30 = vsel %vm16436_vm3, %v4038_v62, %v4040_v6  ;;  %v4075_v63 = vsel %vm16438_vm7, %v4040_v6, %v16437_v7  ;;  %16441 = vst [vmem:[#allocation74_spill] sm:$0xff] %v13312_v54  ;;  %vm16453_vm3 = vmmov %vm16452_vm1 }
 0x26c   : > { %v4107_v39 = vsel %vm12510_vm13, %v13290_v29, %v4075_v63  ;;  %vm16454_vm7 = vmmov %vm16452_vm1  ;;  %16458 = vst [vmem:[#allocation23_spill] sm:$0xff] %v13385_v36 }
 0x26d   : > { %v13306_v37 = vpack.i.bf16 %v4107_v39, %v4041_v30 }
 0x26f   : > { %16439 = vst [vmem:[#allocation69_spill] sm:$0xff] %v13306_v37  ;;  %10274 = vrot.lane.b32.xlu2 %v13310_v50, %s15876_s20  ;;  %v13323_v63 = vpop.f32.mrf.mxu3 }
 0x270   : > { %16443 = vst [vmem:[#allocation75_spill] sm:$0xff] %v13323_v63  ;;  %v3861_v63 = vrot.slane %v12417_v23, 7 }
 0x273   : > { %v3680_v12 = vpop.f32.mrf.mxu0 }
 0x274   : > { %v3681_v62 = vadd.f32 %v12906_v44, %v3680_v12 }
 0x276   : > { %v13317_v20 = vmax.f32 %v3681_v62, 0.0 }
 0x278   : > { %3747 = vst.msk [vmem:[%s12224_s1 + $0xf0] sm:$0xff] %vm16442_vm11, %v13317_v20  ;;  %v4328_v19 = vrot.slane %v13317_v20, 1  ;;  %vm16455_vm11 = vmmov %vm16452_vm1 }
 0x27a   : > { %v4329_v39 = vsel %vm16444_vm14, %v4040_v6, %v4328_v19  ;;  %v13338_v6 = vrot.slane %v13317_v20, 7  ;;  %vm16457_vm14 = vnez %v16456_v0 }
 0x27b   : > { %v3682_v55 = vpop.f32.mrf.mxu0  ;;  %v4715_v54 = vsel %vm16420_vm5, %v13290_v29, %v4329_v39  ;;  %v4395_v12 = vsel %vm16430_vm12, %v13290_v29, %v4329_v39  ;;  %v13345_v39 = vrot.slane %v12205_v4, 7  ;;  %vm16448_vm5 = vmmov %vm16446_vm0 }
 0x27c   : > { %v3683_v62 = vadd.f32 %v12906_v44, %v3682_v55  ;;  %v5659_v37 = vpack.c.bf16 %v4715_v54, %v4041_v30  ;;  %v10288_v46 = vpack.i.bf16 %v4395_v12, %v4041_v30  ;;  %16447 = vst [vmem:[#allocation77_spill] sm:$0xff] %v13338_v6  ;;  %v3859_v44 = vrot.slane %v12373_v9, 7  ;;  %v13357_v30 = vpop.f32.mrf.mxu3 }
 0x27d   : > { %16450 = vst [vmem:[#allocation79_spill] sm:$0xff] %v13357_v30  ;;  %v13371_v15 = vsel %vm16454_vm7, %v13345_v39, %v13341_v8 }
 0x27e   : > { %v13333_v50 = vmax.f32 %v3683_v62, 0.0  ;;  %8837 = vmatmul.msk.bf16.gmra.mxu3 %vm16446_vm0, %v5659_v37  ;;  %10289 = vrot.lane.b32.xlu2 %v10288_v46, %s15876_s20  ;;  %v13355_v46 = vrot.slane %v13290_v29, 7  ;;  %v13374_v30 = vsel %vm16455_vm11, %v3859_v44, %v3861_v63  ;;  %vm16459_vm0 = vcmask 1046528  }
 0x280   : > { %16445 = vst [vmem:[#allocation76_spill] sm:$0xff] %v13333_v50  ;;  %v13352_v55 = vrot.slane %v13333_v50, 7  ;;  %v4330_v12 = vrot.slane %v13333_v50, 1  ;;  %v4202_v62 = vsel %vm16453_vm3, %v13355_v46, %v13338_v6  ;;  %vm16467_vm3 = vcmask 261120  }
 0x281   : > { %3748 = vst.msk [vmem:[%s12224_s1 + $0xf8] sm:$0xff] %vm16448_vm5, %v13333_v50  ;;  %v4587_v56 = vsel %vm16322_vm8, %v13317_v20, %v4202_v62  ;;  %vm16460_vm5 = vmmov %vm16452_vm1 }
 0x282   : > { %16449 = vst [vmem:[#allocation78_spill] sm:$0xff] %v13352_v55  ;;  %v4558_v37 = vsel %vm16451_vm15, %v13352_v55, %v3859_v44  ;;  %v4236_v54 = vsel %vm16452_vm1, %v13352_v55, %v13345_v39  ;;  %vm16462_vm15 = vmmov %vm16459_vm0 }
 0x283   : > { %v4559_v40 = vsel %vm16457_vm14, %v12373_v9, %v4558_v37  ;;  %v4237_v45 = vsel %vm16457_vm14, %v12205_v4, %v4236_v54  ;;  %v4651_v37 = vsel %vm16459_vm0, %v4330_v12, %v4328_v19  ;;  %v4365_v54 = vsel %vm16462_vm15, %v4330_v12, %v16437_v7  ;;  %vm16465_vm1 = vmmov %vm16459_vm0 }
 0x284   : > { %v9883_v2 = vpack.i.bf16 %v13374_v30, %v4559_v40  ;;  %v9903_v23 = vpack.i.bf16 %v13371_v15, %v4237_v45  ;;  %v13398_v40 = vsel %vm16460_vm5, %v13338_v6, %v13352_v55  ;;  %v4267_v45 = vsel %vm12560_vm9, %v13317_v20, %v4202_v62  ;;  %v13420_v18 = vpop.f32.mrf.mxu3  ;;  %vm16470_vm7 = vmmov %vm16460_vm5 }
 0x285   : > { %16461 = vst [vmem:[#allocation80_spill] sm:$0xff] %v13398_v40  ;;  %v13410_v57 = vpack.i.bf16 %v13398_v40, %v4267_v45  ;;  %v4717_v55 = vsel %vm16430_vm12, %v13333_v50, %v4651_v37  ;;  %v4397_v62 = vsel %vm12510_vm13, %v13333_v50, %v4365_v54  ;;  %vm16469_vm12 = vmmov %vm16460_vm5  ;;  %v13434_v37 = vsel %vm16470_vm7, %v13341_v8, %v3859_v44  ;;  %v16472_v45 = vld [vmem:[#allocation35_spill] sm:$0xff] }
 0x286   : > { %9884 = vrot.lane.b32.xlu0 %v9883_v2, %s15810_s26  ;;  %10304 = vrot.lane.b32.xlu2 %v13385_v36, %s15876_s20  ;;  %v13407_v2 = vpack.i.bf16 %v13398_v40, %v4587_v56  ;;  %v4331_v36 = vsel %vm16465_vm1, %v4328_v19, %v4330_v12  ;;  %16466 = vst [vmem:[#allocation83_spill] sm:$0xff] %v13420_v18  ;;  %v3865_v56 = vrot.slane %v12553_v51, 7  ;;  %v16468_v19 = vld [vmem:[#allocation25_spill] sm:$0xff]  ;;  %vm16471_vm11 = vmmov %vm16460_vm5  ;;  %vm16473_vm0 = vnez %v16472_v45 }
 0x287   : > { %9904 = vrot.lane.b32.xlu1 %v9903_v23, %s15782_s0  ;;  %16464 = vst [vmem:[#allocation82_spill] sm:$0xff] %v13410_v57  ;;  %v3863_v23 = vrot.slane %v12481_v28, 7  ;;  %v5662_v7 = vpack.c.bf16 %v4717_v55, %v4331_v36  ;;  %v10318_v6 = vpack.i.bf16 %v4397_v62, %v4331_v36  ;;  %vm16476_vm5 = vmmov %vm16465_vm1  ;;  %v3879_v18 = vrot.slane %v12874_v35, 7 }
 0x288   : > { %16463 = vst [vmem:[#allocation81_spill] sm:$0xff] %v13407_v2  ;;  %vm16478_vm15 = vmmov %vm16467_vm3  ;;  %v9100_v2 = vld [vmem:[%s16122_s3 + $0x10] sm:$0xff]  ;;  %vm16511_vm9 = vcmask 261120  }
 0x289   : > { %v13430_v53 = vsel %vm16469_vm12, %v3861_v63, %v3863_v23  ;;  %v13437_v55 = vsel %vm16471_vm11, %v3863_v23, %v3865_v56  ;;  %v13452_v63 = vpack.i.bf16 %v13290_v29, %v13269_v59  ;;  %v16475_v23 = vld [vmem:[#allocation71_spill] sm:$0xff]  ;;  %vm16480_vm1 = vmmov %vm16470_vm7 }
 0x28a   : > { %v4561_v54 = vsel %vm16473_vm0, %v12481_v28, %v13430_v53  ;;  %vm16484_vm12 = vmmov %vm16480_vm1 }
 0x28b   : > { %vm16485_vm7 = vmmov %vm16480_vm1 }
 0x28c   : > { %v13443_v62 = vpop.f32.mrf.mxu3 }
 0x28d   : > { %16474 = vst [vmem:[#allocation25_spill] sm:$0xff] %v13443_v62  ;;  %v3869_v62 = vrot.slane %v12673_v52, 7 }
 0x28e   : > { %8838 = vmatmul.msk.bf16.gmra.mxu3 %vm16467_vm3, %v5662_v7  ;;  %9889 = vrot.lane.b32.xlu0 %v16468_v19, %s15810_s26  ;;  %v4687_v7 = vsel %vm16476_vm5, %v4330_v12, %v16475_v23  ;;  %v16479_v12 = vld [vmem:[#allocation27_spill] sm:$0xff]  ;;  %vm16481_vm3 = vmmov %vm16480_vm1 }
 0x28f   : > { %10319 = vrot.lane.b32.xlu2 %v10318_v6, %s15876_s20  ;;  %9909 = vrot.lane.b32.xlu1 %v12879_v31, %s15782_s0  ;;  %v9898_v6 = vpack.i.bf16 %v13437_v55, %v4561_v54  ;;  %v4239_v31 = vsel %vm16473_vm0, %v12373_v9, %v13434_v37  ;;  %v4719_v19 = vsel %vm12510_vm13, %v13333_v50, %v4687_v7  ;;  %v3867_v54 = vrot.slane %v12621_v61, 7  ;;  %vm16488_vm5 = vmmov %vm16480_vm1 }
 0x290   : > { %v9923_v44 = vpack.i.bf16 %v13374_v30, %v4239_v31  ;;  %v5665_v29 = vpack.c.bf16 %v4719_v19, %v4331_v36  ;;  %v16482_v36 = vld [vmem:[#allocation32_spill] sm:$0xff]  ;;  %v3873_v7 = vrot.slane %v12763_v48, 7 }
 0x291   : > { %v13477_v1 = vsel %vm16481_vm3, %v3867_v54, %v3869_v62  ;;  %vm16483_vm13 = vnez %v16482_v36 }
 0x294   : > { %v13466_v31 = vpop.f32.mrf.mxu3 }
 0x295   : > { %16477 = vst [vmem:[#allocation35_spill] sm:$0xff] %v13466_v31 }
 0x296   : > { %9899 = vrot.lane.b32.xlu0 %v9898_v6, %s15810_s26  ;;  %v13474_v6 = vsel %vm16480_vm1, %v3865_v56, %v3867_v54  ;;  %v3871_v56 = vrot.slane %v12720_v21, 7 }
 0x297   : > { %10334 = vrot.lane.b32.xlu2 %v13452_v63, %s15876_s20  ;;  %9924 = vrot.lane.b32.xlu1 %v9923_v44, %s15782_s0  ;;  %v4563_v44 = vsel %vm16483_vm13, %v12621_v61, %v13474_v6 }
 0x298   : > { %v9933_v23 = vpack.i.bf16 %v13477_v1, %v4563_v44  ;;  %v13498_v19 = vsel %vm16484_vm12, %v3869_v62, %v3871_v56  ;;  %v13501_v54 = vsel %vm16485_vm7, %v3871_v56, %v3873_v7  ;;  %v3875_v62 = vrot.slane %v12794_v42, 7  ;;  %v13524_v56 = vpop.permute.xlu2 %9869  ;;  %vm16496_vm12 = vmmov %vm16481_vm3 }
 0x29e   : > { %8839 = vmatmul.msk.bf16.gmra.mxu3 %vm16478_vm15, %v5665_v29  ;;  %9919 = vrot.lane.b32.xlu0 %v16479_v12, %s15810_s26  ;;  %v4241_v29 = vsel %vm16483_vm13, %v12481_v28, %v13430_v53  ;;  %v16486_v12 = vld [vmem:[#allocation33_spill] sm:$0xff]  ;;  %vm16490_vm15 = vmmov %vm16480_vm1 }
 0x29f   : > { %9939 = vrot.lane.b32.xlu1 %v12946_v24, %s15782_s0  ;;  %v9953_v24 = vpack.i.bf16 %v13437_v55, %v4241_v29  ;;  %vm16487_vm11 = vnez %v16486_v12  ;;  %v3877_v29 = vrot.slane %v12834_v26, 7 }
 0x2a0   : > { %v4565_v44 = vsel %vm16487_vm11, %v12720_v21, %v13498_v19  ;;  %v13553_v31 = vpop.permute.xlu2 %9879 }
 0x2a6   : > { %9934 = vrot.lane.b32.xlu0 %v9933_v23, %s15810_s26  ;;  %v9963_v23 = vpack.i.bf16 %v13501_v54, %v4565_v44  ;;  %v13527_v44 = vsel %vm16488_vm5, %v3873_v7, %v3875_v62  ;;  %vm16500_vm5 = vmmov %vm16481_vm3 }
 0x2a7   : > { %9954 = vrot.lane.b32.xlu1 %v9953_v24, %s15782_s0  ;;  %v9113_v24 = vld [vmem:[%s16122_s3 + $0x78] sm:$0xff]  ;;  %16489 = vst [vmem:[#allocation71_spill] sm:$0xff] %v13527_v44 }
 0x2a8   : > { %5914 = vmatpush.bf16.msra.mxu2 %v9113_v24  ;;  %v9105_v24 = vld [vmem:[%s16122_s3 + $0x38] sm:$0xff] }
 0x2a9   : > { %5825 = vmatpush.bf16.msra.mxu1 %v9105_v24  ;;  %v9109_v24 = vld [vmem:[%s16122_s3 + $0x58] sm:$0xff] }
 0x2ae   : > { %9949 = vrot.lane.b32.xlu0 %v12572_v43, %s15810_s26  ;;  %v4243_v43 = vsel %vm16487_vm11, %v12621_v61, %v13474_v6 }
 0x2af   : > { %9969 = vrot.lane.b32.xlu1 %v12997_v13, %s15782_s0  ;;  %v9983_v13 = vpack.i.bf16 %v13477_v1, %v4243_v43  ;;  %v16492_v43 = vld [vmem:[#allocation36_spill] sm:$0xff] }
 0x2b0   : > { %vm16493_vm1 = vnez %v16492_v43 }
 0x2b1   : > { %v4245_v7 = vsel %vm16493_vm1, %v12720_v21, %v13498_v19 }
 0x2b6   : > { %9964 = vrot.lane.b32.xlu0 %v9963_v23, %s15810_s26  ;;  %v13530_v23 = vsel %vm16490_vm15, %v3875_v62, %v3877_v29  ;;  %v10013_v62 = vpack.i.bf16 %v13501_v54, %v4245_v7  ;;  %v3881_v7 = vrot.slane %v12923_v60, 7  ;;  %vm16502_vm15 = vmmov %vm16481_vm3 }
 0x2b7   : > { %9984 = vrot.lane.b32.xlu1 %v9983_v13, %s15782_s0  ;;  %16491 = vst [vmem:[#allocation27_spill] sm:$0xff] %v13530_v23 }
 0x2b8   : > { %v13577_v57 = vsel %vm16496_vm12, %v3879_v18, %v3881_v7  ;;  %vm16506_vm12 = vmmov %vm16500_vm5 }
 0x2b9   : > { %16497 = vst [vmem:[#allocation33_spill] sm:$0xff] %v13577_v57 }
 0x2be   : > { %9979 = vrot.lane.b32.xlu0 %v12689_v49, %s15810_s26  ;;  %v4567_v49 = vsel %vm16493_vm1, %v12794_v42, %v13527_v44 }
 0x2bf   : > { %9999 = vrot.lane.b32.xlu1 %v13057_v47, %s15782_s0  ;;  %v9112_v47 = vld [vmem:[%s16122_s3 + $0x70] sm:$0xff]  ;;  %v9993_v13 = vpack.i.bf16 %v13530_v23, %v4567_v49  ;;  %v9111_v49 = vld [vmem:[%s16122_s3 + $0x68] sm:$0xff] }
 0x2c0   : > { %5915 = vmatpush.bf16.msra.mxu2 %v9112_v47  ;;  %v9104_v47 = vld [vmem:[%s16122_s3 + $0x30] sm:$0xff] }
 0x2c1   : > { %5826 = vmatpush.bf16.msra.mxu1 %v9104_v47  ;;  %v13583_v47 = vpop.permute.xlu2 %9894 }
 0x2c4   : > { %5916 = vmatpush.bf16.msra.mxu2 %v9111_v49  ;;  %v13574_v49 = vsel %vm16481_vm3, %v3877_v29, %v3879_v18  ;;  %v9102_v18 = vld [vmem:[%s16122_s3 + $0x20] sm:$0xff] }
 0x2c5   : > { %16495 = vst [vmem:[#allocation32_spill] sm:$0xff] %v13574_v49 }
 0x2c6   : > { %9994 = vrot.lane.b32.xlu0 %v9993_v13, %s15810_s26  ;;  %v9110_v13 = vld [vmem:[%s16122_s3 + $0x60] sm:$0xff] }
 0x2c7   : > { %10014 = vrot.lane.b32.xlu1 %v10013_v62, %s15782_s0  ;;  %v9103_v62 = vld [vmem:[%s16122_s3 + $0x28] sm:$0xff]  ;;  %s9153_s0 = sshll.u32 %s10836_s22, 6 }
 0x2c8   : > { %5917 = vmatpush.bf16.msra.mxu2 %v9110_v13  ;;  %5827 = vmatpush.bf16.msra.mxu1 %v9103_v62  ;;  %v9108_v62 = vld [vmem:[%s16122_s3 + $0x50] sm:$0xff] }
 0x2cc   : > { %5918 = vmatpush.bf16.msra.mxu2 %v9109_v24  ;;  %5828 = vmatpush.bf16.msra.mxu1 %v9102_v18  ;;  %v9101_v24 = vld [vmem:[%s16122_s3 + $0x18] sm:$0xff]  ;;  %v13613_v18 = vpop.permute.xlu2 %9914 }
 0x2ce   : > { %10009 = vrot.lane.b32.xlu0 %v12783_v27, %s15810_s26  ;;  %v16498_v27 = vld [vmem:[#allocation39_spill] sm:$0xff] }
 0x2cf   : > { %10029 = vrot.lane.b32.xlu1 %v13092_v38, %s16494_s29  ;;  %vm16499_vm7 = vnez %v16498_v27 }
 0x2d0   : > { %v4569_v38 = vsel %vm16499_vm7, %v12874_v35, %v13574_v49  ;;  %v4247_v29 = vsel %vm16499_vm7, %v12794_v42, %v13527_v44  ;;  %5919 = vmatpush.bf16.msra.mxu2 %v9108_v62  ;;  %5829 = vmatpush.bf16.msra.mxu1 %v9101_v24  ;;  %v9099_v62 = vld [vmem:[%s16122_s3 + $0x8] sm:$0xff] }
 0x2d1   : > { %v10023_v13 = vpack.i.bf16 %v13577_v57, %v4569_v38  ;;  %v10043_v40 = vpack.i.bf16 %v13530_v23, %v4247_v29  ;;  %v9107_v38 = vld [vmem:[%s16122_s3 + $0x48] sm:$0xff]  ;;  %v3885_v29 = vrot.slane %v12992_v58, 7  ;;  %v3887_v58 = vrot.slane %v13021_v32, 7 }
 0x2d2   : > { %v3889_v23 = vrot.slane %v13049_v5, 7 }
 0x2d4   : > { %5920 = vmatpush.bf16.msra.mxu2 %v9107_v38  ;;  %5830 = vmatpush.bf16.msra.mxu1 %v9100_v2  ;;  %v16504_v2 = vld [vmem:[#allocation42_spill] sm:$0xff] }
 0x2d5   : > { %vm16505_vm3 = vnez %v16504_v2 }
 0x2d6   : > { %10024 = vrot.lane.b32.xlu0 %v10023_v13, %s15810_s26  ;;  %v9106_v13 = vld [vmem:[%s16122_s3 + $0x40] sm:$0xff] }
 0x2d7   : > { %10044 = vrot.lane.b32.xlu1 %v10043_v40, %s16494_s29  ;;  %v3883_v40 = vrot.slane %v12960_v22, 7 }
 0x2d8   : > { %5921 = vmatpush.bf16.msra.mxu2 %v9106_v13  ;;  %5831 = vmatpush.bf16.msra.mxu1 %v9099_v62  ;;  %v13643_v62 = vpop.permute.xlu2 %9929 }
 0x2d9   : > { %v13623_v24 = vsel %vm16500_vm5, %v3881_v7, %v3883_v40  ;;  %v13626_v38 = vsel %vm16502_vm15, %v3883_v40, %v3885_v29  ;;  %v4249_v7 = vsel %vm16505_vm3, %v12874_v35, %v13574_v49 }
 0x2da   : > { %16501 = vst [vmem:[#allocation36_spill] sm:$0xff] %v13623_v24  ;;  %v10073_v40 = vpack.i.bf16 %v13577_v57, %v4249_v7  ;;  %v9875_v7 = vpop.permute.xlu1 %9874 }
 0x2db   : > { %16503 = vst [vmem:[#allocation39_spill] sm:$0xff] %v13626_v38 }
 0x2de   : > { %10039 = vrot.lane.b32.xlu0 %v12849_v3, %s15810_s26  ;;  %v9098_v3 = vld [vmem:[%s16122_s3] sm:$0xff] }
 0x2df   : > { %10059 = vrot.lane.b32.xlu1 %v13122_v33, %s16494_s29  ;;  %v4571_v33 = vsel %vm16505_vm3, %v12960_v22, %v13623_v24  ;;  %5832 = vmatpush.bf16.msra.mxu1 %v9098_v3  ;;  %v13655_v3 = vsel %vm16500_vm5, %v3887_v58, %v3889_v23  ;;  %vm15802_vm5 = vcmask 785408  }
 0x2e0   : > { %v10053_v13 = vpack.i.bf16 %v13626_v38, %v4571_v33  ;;  %v13652_v33 = vsel %vm16506_vm12, %v3885_v29, %v3887_v58  ;;  %16508 = vst [vmem:[#allocation85_spill] sm:$0xff] %v13655_v3  ;;  %v9872_v29 = vunpack.i.h.bf16 %v13524_v56  ;;  %v9871_v58 = vunpack.i.l.bf16 %v13524_v56 }
 0x2e1   : > { %16507 = vst [vmem:[#allocation84_spill] sm:$0xff] %v13652_v33  ;;  %vm15803_vm12 = vcmask 523264  }
 0x2e6   : > { %10054 = vrot.lane.b32.xlu0 %v10053_v13, %s15810_s26  ;;  %v13657_v13 = vpop.permute.xlu2 %9944 }
 0x2e7   : > { %10074 = vrot.lane.b32.xlu1 %v10073_v40, %s16494_s29  ;;  %v16509_v40 = vld [vmem:[#allocation44_spill] sm:$0xff] }
 0x2e8   : > { %vm16510_vm15 = vnez %v16509_v40  ;;  %v5523_v40 = vsel %vm16511_vm9, %v12257_v41, %v9872_v29  ;;  %v3893_v29 = vrot.slane %v13111_v11, 7  ;;  %v9897_v11 = vunpack.i.h.bf16 %v13583_v47 }
 0x2e9   : > { %v4573_v5 = vsel %vm16510_vm15, %v13021_v32, %v13652_v33 }
 0x2ea   : > { %v10083_v57 = vpack.i.bf16 %v13655_v3, %v4573_v5 }
 0x2ee   : > { %10069 = vrot.lane.b32.xlu0 %v12938_v25, %s15810_s26  ;;  %v4251_v25 = vsel %vm16510_vm15, %v12960_v22, %v13623_v24  ;;  %vm16512_vm15 = vmmov %vm16511_vm9  ;;  %v9876_v24 = vunpack.i.l.bf16 %v9875_v7  ;;  %v13679_v22 = vpop.permute.xlu2 %9959  ;;  %vm16513_vm9 = vcmask 1040384  }
 0x2ef   : > { %10089 = vrot.lane.b32.xlu1 %v13157_v10, %s16494_s29  ;;  %v10103_v10 = vpack.i.bf16 %v13626_v38, %v4251_v25  ;;  %v5522_v25 = vsel %vm16512_vm15, %v12205_v4, %v9871_v58  ;;  %v9877_v38 = vunpack.i.h.bf16 %v9875_v7  ;;  %v3946_v41 = vsel %vm16513_vm9, %v13355_v46, %v13345_v39  ;;  %vm16515_vm15 = vmmov %vm16513_vm9 }
 0x2f0   : > { %v9882_v7 = vunpack.i.h.bf16 %v13553_v31 }
 0x2f6   : > { %10084 = vrot.lane.b32.xlu0 %v10083_v57, %s15810_s26 }
 0x2f7   : > { %10104 = vrot.lane.b32.xlu1 %v10103_v10, %s16494_s29  ;;  %v3891_v10 = vrot.slane %v13083_v34, 7 }
 0x2f8   : > { %v9885_v49 = vpop.permute.xlu0 %9884 }
 0x2f9   : > { %v9887_v2 = vunpack.i.h.bf16 %v9885_v49  ;;  %v9886_v44 = vunpack.i.l.bf16 %v9885_v49  ;;  %v9905_v5 = vpop.permute.xlu1 %9904 }
 0x2fb   : > { %v5554_v56 = vsel %vm15803_vm12, %v5522_v25, %v9886_v44  ;;  %v5555_v57 = vsel %vm15803_vm12, %v5523_v40, %v9887_v2  ;;  %v16514_v44 = vld [vmem:[#allocation51_spill] sm:$0xff]  ;;  %v13698_v2 = vsel %vm16515_vm15, %v3889_v23, %v3891_v10  ;;  %vm16520_vm15 = vcmask 523264  }
 0x2fc   : > { %v5586_v49 = vsel %vm15802_vm5, %v5554_v56, %v9876_v24  ;;  %v5587_v50 = vsel %vm15802_vm5, %v5555_v57, %v9877_v38  ;;  %v3947_v24 = vsel %vm16457_vm14, %v12205_v4, %v3946_v41  ;;  %v9881_v38 = vunpack.i.l.bf16 %v13553_v31  ;;  %v16518_v31 = vld [vmem:[#allocation47_spill] sm:$0xff]  ;;  %vm16521_vm8 = vmmov %vm16520_vm15 }
 0x2fd   : > { %v5619_v58 = vpack.c.bf16 %v5587_v50, %v5586_v49  ;;  %v13701_v50 = vsel %vm16513_vm9, %v3891_v10, %v3893_v29  ;;  %vm16516_vm5 = vcmask 261120   ;;  %v9907_v49 = vunpack.i.h.bf16 %v9905_v5 }
 0x2fe   : > { %10099 = vrot.lane.b32.xlu0 %v13011_v14, %s15810_s26  ;;  %v5425_v57 = vsel %vm16516_vm5, %v13371_v15, %v9882_v7  ;;  %vm16517_vm12 = vmmov %vm16516_vm5  ;;  %vm16519_vm14 = vnez %v16518_v31  ;;  %vm16522_vm5 = vcmask 785408  }
 0x2ff   : > { %10119 = vrot.lane.b32.xlu1 %v16514_v44, %s16494_s29  ;;  %5922 = vmatmul.bf16.vlgmr.msra.gmra.mxu2 %v5619_v58  ;;  %v9906_v58 = vunpack.i.l.bf16 %v9905_v5  ;;  %v5424_v0 = vsel %vm16517_vm12, %v3947_v24, %v9881_v38  ;;  %v4575_v23 = vsel %vm16519_vm14, %v13083_v34, %v13698_v2  ;;  %v4253_v7 = vsel %vm16519_vm14, %v13021_v32, %v13652_v33  ;;  %vm16523_vm9 = vmmov %vm16522_vm5 }
 0x300   : > { %v9890_v40 = vpop.permute.xlu0 %9889  ;;  %v10113_v44 = vpack.i.bf16 %v13701_v50, %v4575_v23  ;;  %v10133_v38 = vpack.i.bf16 %v13655_v3, %v4253_v7  ;;  %vm16529_vm14 = vmmov %vm16523_vm9 }
 0x301   : > { %v9892_v25 = vunpack.i.h.bf16 %v9890_v40  ;;  %v9891_v56 = vunpack.i.l.bf16 %v9890_v40  ;;  %v9910_v14 = vpop.permute.xlu1 %9909 }
 0x302   : > { %v9912_v7 = vunpack.i.h.bf16 %v9910_v14 }
 0x303   : > { %v5457_v41 = vsel %vm16520_vm15, %v5424_v0, %v9891_v56  ;;  %v5458_v10 = vsel %vm16521_vm8, %v5425_v57, %v9892_v25  ;;  %v9896_v56 = vunpack.i.l.bf16 %v13583_v47  ;;  %v13722_v0 = vpop.permute.xlu2 %9974  ;;  %vm16525_vm8 = vmmov %vm16517_vm12 }
 0x304   : > { %v5490_v5 = vsel %vm16522_vm5, %v5457_v41, %v9906_v58  ;;  %v5491_v24 = vsel %vm16523_vm9, %v5458_v10, %v9907_v49  ;;  %v16524_v41 = vld [vmem:[#allocation48_spill] sm:$0xff]  ;;  %vm16526_vm12 = vmmov %vm16525_vm8 }
 0x305   : > { %v5618_v40 = vpack.c.bf16 %v5491_v24, %v5490_v5  ;;  %v5525_v49 = vsel %vm16525_vm8, %v16524_v41, %v9897_v11  ;;  %v5524_v10 = vsel %vm16526_vm12, %v12373_v9, %v9896_v56  ;;  %v9911_v5 = vunpack.i.l.bf16 %v9910_v14  ;;  %vm16527_vm5 = vmmov %vm16520_vm15  ;;  %v16532_v56 = vld [vmem:[#allocation41_spill] sm:$0xff] }
 0x306   : > { %10114 = vrot.lane.b32.xlu0 %v10113_v44, %s15810_s26  ;;  %v16528_v44 = vld [vmem:[#allocation59_spill] sm:$0xff]  ;;  %v9917_v11 = vunpack.i.h.bf16 %v13613_v18  ;;  %v9916_v41 = vunpack.i.l.bf16 %v13613_v18  ;;  %vm16531_vm8 = vcmask 1040384  }
 0x307   : > { %10134 = vrot.lane.b32.xlu1 %v10133_v38, %s16494_s29  ;;  %5833 = vmatmul.bf16.vlgmr.msra.gmra.mxu1 %v5618_v40  ;;  %v3895_v3 = vrot.slane %v16528_v44, 7  ;;  %v3856_v14 = vsel %vm16531_vm8, %v13341_v8, %v13345_v39  ;;  %vm16535_vm12 = vmmov %vm16531_vm8 }
 0x308   : > { %v9900_v25 = vpop.permute.xlu0 %9899  ;;  %v3949_v18 = vsel %vm16473_vm0, %v12205_v4, %v3856_v14 }
 0x309   : > { %v9902_v57 = vunpack.i.h.bf16 %v9900_v25  ;;  %v9901_v23 = vunpack.i.l.bf16 %v9900_v25  ;;  %v9925_v58 = vpop.permute.xlu1 %9924  ;;  %v16530_v25 = vld [vmem:[#allocation62_spill] sm:$0xff] }
 0x30a   : > { %v3897_v33 = vrot.slane %v16530_v25, 7 }
 0x30b   : > { %v5556_v47 = vsel %vm16520_vm15, %v5524_v10, %v9901_v23  ;;  %v5557_v24 = vsel %vm16527_vm5, %v5525_v49, %v9902_v57  ;;  %v16533_v57 = vld [vmem:[#allocation55_spill] sm:$0xff]  ;;  %v13745_v23 = vpop.permute.xlu2 %9989  ;;  %vm16536_vm15 = vcmask 261120  }
 0x30c   : > { %v5588_v38 = vsel %vm16523_vm9, %v5556_v47, %v9911_v5  ;;  %v5589_v40 = vsel %vm16529_vm14, %v5557_v24, %v9912_v7  ;;  %vm16534_vm14 = vmmov %vm16531_vm8  ;;  %v13754_v7 = vsel %vm16535_vm12, %v3895_v3, %v3897_v33  ;;  %v5426_v47 = vsel %vm16536_vm15, %v3949_v18, %v9916_v41 }
 0x30d   : > { %v5622_v31 = vpack.c.bf16 %v5589_v40, %v5588_v38  ;;  %v13748_v49 = vsel %vm16534_vm14, %v3893_v29, %v3895_v3  ;;  %vm16537_vm5 = vmmov %vm16536_vm15  ;;  %v9927_v24 = vunpack.i.h.bf16 %v9925_v58  ;;  %v9926_v38 = vunpack.i.l.bf16 %v9925_v58  ;;  %v16538_v29 = vld [vmem:[#allocation50_spill] sm:$0xff] }
 0x30e   : > { %10129 = vrot.lane.b32.xlu0 %v16532_v56, %s15810_s26  ;;  %vm16539_vm9 = vnez %v16538_v29  ;;  %vm16540_vm8 = vcmask 523264   ;;  %vm16542_vm14 = vcmask 785408   ;;  %v9932_v56 = vunpack.i.h.bf16 %v13643_v62  ;;  %vm16544_vm15 = vmmov %vm16537_vm5 }
 0x30f   : > { %10149 = vrot.lane.b32.xlu1 %v16533_v57, %s16494_s29  ;;  %5927 = vmatmul.bf16.gmra.mxu2 %v5622_v31  ;;  %v5427_v31 = vsel %vm16537_vm5, %v13371_v15, %v9917_v11  ;;  %v4577_v40 = vsel %vm16539_vm9, %v16528_v44, %v13748_v49  ;;  %vm16541_vm0 = vmmov %vm16540_vm8  ;;  %v4255_v41 = vsel %vm16539_vm9, %v13083_v34, %v13698_v2  ;;  %v9931_v57 = vunpack.i.l.bf16 %v13643_v62 }
 0x310   : > { %v9920_v10 = vpop.permute.xlu0 %9919  ;;  %v10143_v3 = vpack.i.bf16 %v13754_v7, %v4577_v40  ;;  %vm16543_vm12 = vmmov %vm16542_vm14  ;;  %v10163_v11 = vpack.i.bf16 %v13701_v50, %v4255_v41 }
 0x311   : > { %v9922_v8 = vunpack.i.h.bf16 %v9920_v10  ;;  %v9921_v39 = vunpack.i.l.bf16 %v9920_v10  ;;  %v9940_v5 = vpop.permute.xlu1 %9939 }
 0x312   : > { %v9941_v40 = vunpack.i.l.bf16 %v9940_v5 }
 0x313   : > { %v5459_v4 = vsel %vm16540_vm8, %v5426_v47, %v9921_v39  ;;  %v5460_v45 = vsel %vm16541_vm0, %v5427_v31, %v9922_v8  ;;  %v5527_v47 = vsel %vm16544_vm15, %v12553_v51, %v9932_v56  ;;  %v5526_v31 = vsel %vm16537_vm5, %v12481_v28, %v9931_v57  ;;  %vm16545_vm8 = vmmov %vm16541_vm0  ;;  %v16549_v57 = vld [vmem:[#allocation45_spill] sm:$0xff] }
 0x314   : > { %v5492_v15 = vsel %vm16542_vm14, %v5459_v4, %v9926_v38  ;;  %v5493_v58 = vsel %vm16543_vm12, %v5460_v45, %v9927_v24  ;;  %v13781_v24 = vpop.permute.xlu2 %10004  ;;  %v9942_v38 = vunpack.i.h.bf16 %v9940_v5  ;;  %v16546_v45 = vld [vmem:[#allocation66_spill] sm:$0xff]  ;;  %vm16547_vm14 = vmmov %vm16543_vm12  ;;  %v9946_v56 = vunpack.i.l.bf16 %v13657_v13  ;;  %v16550_v5 = vld [vmem:[#allocation60_spill] sm:$0xff] }
 0x315   : > { %v5621_v14 = vpack.c.bf16 %v5493_v58, %v5492_v15  ;;  %v16548_v58 = vld [vmem:[#allocation61_spill] sm:$0xff]  ;;  %vm16551_vm15 = vcmask 1040384  }
 0x316   : > { %10144 = vrot.lane.b32.xlu0 %v10143_v3, %s15810_s26  ;;  %v3899_v3 = vrot.slane %v16546_v45, 7  ;;  %vm16552_vm5 = vmmov %vm16551_vm15 }
 0x317   : > { %10164 = vrot.lane.b32.xlu1 %v10163_v11, %s16494_s29  ;;  %5838 = vmatmul.bf16.gmra.mxu1 %v5621_v14  ;;  %v3901_v11 = vrot.slane %v16548_v58, 7  ;;  %v9947_v14 = vunpack.i.h.bf16 %v13657_v13 }
 0x318   : > { %v9935_v10 = vpop.permute.xlu0 %9934 }
 0x319   : > { %v9937_v18 = vunpack.i.h.bf16 %v9935_v10  ;;  %v9936_v8 = vunpack.i.l.bf16 %v9935_v10  ;;  %v9955_v39 = vpop.permute.xlu1 %9954  ;;  %v13796_v10 = vsel %vm16551_vm15, %v3897_v33, %v3899_v3  ;;  %vm16558_vm15 = vmmov %vm16543_vm12 }
 0x31a   : > { %v9956_v33 = vunpack.i.l.bf16 %v9955_v39 }
 0x31b   : > { %v5558_v62 = vsel %vm16545_vm8, %v5526_v31, %v9936_v8  ;;  %v5559_v4 = vsel %vm16541_vm0, %v5527_v47, %v9937_v18  ;;  %v3951_v8 = vsel %vm16483_vm13, %v12373_v9, %v13434_v37  ;;  %v13803_v47 = vsel %vm16552_vm5, %v3899_v3, %v3901_v11 }
 0x31c   : > { %v5590_v41 = vsel %vm16547_vm14, %v5558_v62, %v9941_v40  ;;  %v5591_v15 = vsel %vm16543_vm12, %v5559_v4, %v9942_v38  ;;  %vm16553_vm8 = vcmask 261120   ;;  %v9957_v4 = vunpack.i.h.bf16 %v9955_v39  ;;  %v13814_v36 = vpop.permute.xlu2 %10019 }
 0x31d   : > { %v5625_v51 = vpack.c.bf16 %v5591_v15, %v5590_v41  ;;  %v5429_v40 = vsel %vm16553_vm8, %v13374_v30, %v9947_v14  ;;  %vm16554_vm0 = vmmov %vm16553_vm8  ;;  %v4579_v15 = vsel %vm11604_vm2, %v16546_v45, %v13796_v10  ;;  %vm16556_vm14 = vcmask 523264  }
 0x31e   : > { %10159 = vrot.lane.b32.xlu0 %v16549_v57, %s15810_s26  ;;  %v5428_v62 = vsel %vm16554_vm0, %v3951_v8, %v9946_v56  ;;  %vm16557_vm13 = vmmov %vm16556_vm14  ;;  %v10173_v3 = vpack.i.bf16 %v13803_v47, %v4579_v15  ;;  %v4257_v30 = vsel %vm11604_vm2, %v16528_v44, %v13748_v49  ;;  %v9962_v57 = vunpack.i.h.bf16 %v13679_v22 }
 0x31f   : > { %10179 = vrot.lane.b32.xlu1 %v16550_v5, %s16494_s29  ;;  %5932 = vmatmul.bf16.gmra.mxu2 %v5625_v51  ;;  %v10193_v14 = vpack.i.bf16 %v13754_v7, %v4257_v30  ;;  %v9961_v5 = vunpack.i.l.bf16 %v13679_v22  ;;  %vm16559_vm5 = vmmov %vm16554_vm0 }
 0x320   : > { %v9950_v18 = vpop.permute.xlu0 %9949  ;;  %vm16560_vm8 = vmmov %vm16554_vm0 }
 0x321   : > { %v9952_v13 = vunpack.i.h.bf16 %v9950_v18  ;;  %v9951_v31 = vunpack.i.l.bf16 %v9950_v18  ;;  %v9970_v38 = vpop.permute.xlu1 %9969  ;;  %vm16561_vm0 = vmmov %vm16557_vm13 }
 0x323   : > { %v5461_v9 = vsel %vm16556_vm14, %v5428_v62, %v9951_v31  ;;  %v5462_v37 = vsel %vm16557_vm13, %v5429_v40, %v9952_v13  ;;  %v5529_v40 = vsel %vm16559_vm5, %v12673_v52, %v9962_v57  ;;  %v5528_v62 = vsel %vm16560_vm8, %v12621_v61, %v9961_v5  ;;  %vm16562_vm14 = vmmov %vm16561_vm0  ;;  %v16567_v5 = vld [vmem:[#allocation73_spill] sm:$0xff] }
 0x324   : > { %v5494_v39 = vsel %vm16543_vm12, %v5461_v9, %v9956_v33  ;;  %v5495_v51 = vsel %vm16558_vm15, %v5462_v37, %v9957_v4  ;;  %v9972_v4 = vunpack.i.h.bf16 %v9970_v38  ;;  %v9971_v33 = vunpack.i.l.bf16 %v9970_v38  ;;  %v16563_v9 = vld [vmem:[#allocation68_spill] sm:$0xff]  ;;  %vm16564_vm13 = vmmov %vm16543_vm12  ;;  %v13840_v57 = vpop.permute.xlu2 %10034  ;;  %v16566_v38 = vld [vmem:[#allocation49_spill] sm:$0xff] }
 0x325   : > { %v5624_v56 = vpack.c.bf16 %v5495_v51, %v5494_v39  ;;  %v3903_v37 = vrot.slane %v16563_v9, 7  ;;  %v16565_v39 = vld [vmem:[#allocation46_spill] sm:$0xff]  ;;  %v9977_v52 = vunpack.i.h.bf16 %v13722_v0  ;;  %vm16568_vm15 = vcmask 1040384  }
 0x326   : > { %10174 = vrot.lane.b32.xlu0 %v10173_v3, %s15810_s26  ;;  %v3905_v51 = vrot.slane %v16565_v39, 7  ;;  %vm16569_vm5 = vmmov %vm16568_vm15 }
 0x327   : > { %10194 = vrot.lane.b32.xlu1 %v10193_v14, %s16494_s29  ;;  %5843 = vmatmul.bf16.gmra.mxu1 %v5624_v56  ;;  %v9976_v56 = vunpack.i.l.bf16 %v13722_v0 }
 0x328   : > { %v9965_v18 = vpop.permute.xlu0 %9964  ;;  %v13854_v0 = vsel %vm16569_vm5, %v3903_v37, %v3905_v51 }
 0x329   : > { %v9967_v8 = vunpack.i.h.bf16 %v9965_v18  ;;  %v9966_v13 = vunpack.i.l.bf16 %v9965_v18  ;;  %v9985_v31 = vpop.permute.xlu1 %9984  ;;  %v13847_v18 = vsel %vm16568_vm15, %v3901_v11, %v3903_v37 }
 0x32a   : > { %v9986_v11 = vunpack.i.l.bf16 %v9985_v31 }
 0x32b   : > { %v5560_v15 = vsel %vm16561_vm0, %v5528_v62, %v9966_v13  ;;  %v5561_v22 = vsel %vm16562_vm14, %v5529_v40, %v9967_v8  ;;  %v3953_v13 = vsel %vm16487_vm11, %v12481_v28, %v13430_v53  ;;  %vm16570_vm0 = vmmov %vm16560_vm8 }
 0x32c   : > { %v5592_v3 = vsel %vm16564_vm13, %v5560_v15, %v9971_v33  ;;  %v5593_v30 = vsel %vm16543_vm12, %v5561_v22, %v9972_v4  ;;  %v5431_v33 = vsel %vm16560_vm8, %v13437_v55, %v9977_v52  ;;  %v5430_v15 = vsel %vm16570_vm0, %v3953_v13, %v9976_v56  ;;  %vm16572_vm11 = vmmov %vm16562_vm14 }
 0x32d   : > { %v5628_v14 = vpack.c.bf16 %v5593_v30, %v5592_v3  ;;  %v9987_v22 = vunpack.i.h.bf16 %v9985_v31  ;;  %v4581_v30 = vsel %vm11723_vm6, %v16563_v9, %v13847_v18  ;;  %v4259_v55 = vsel %vm11723_vm6, %v16546_v45, %v13796_v10  ;;  %vm16573_vm13 = vmmov %vm16543_vm12 }
 0x32e   : > { %10189 = vrot.lane.b32.xlu0 %v16566_v38, %s15810_s26  ;;  %v10203_v12 = vpack.i.bf16 %v13854_v0, %v4581_v30  ;;  %v9992_v56 = vunpack.i.h.bf16 %v13745_v23  ;;  %v9991_v38 = vunpack.i.l.bf16 %v13745_v23  ;;  %vm16574_vm15 = vmmov %vm16570_vm0 }
 0x32f   : > { %10209 = vrot.lane.b32.xlu1 %v16567_v5, %s16494_s29  ;;  %5937 = vmatmul.bf16.gmra.mxu2 %v5628_v14  ;;  %v10223_v14 = vpack.i.bf16 %v13803_v47, %v4259_v55  ;;  %v13877_v5 = vpop.permute.xlu2 %10049  ;;  %vm16575_vm5 = vmmov %vm16570_vm0  ;;  %v3909_v55 = vrot.slane %v13251_v17, 7 }
 0x330   : > { %v9980_v8 = vpop.permute.xlu0 %9979  ;;  %vm16576_vm8 = vmmov %vm16572_vm11 }
 0x331   : > { %v9982_v40 = vunpack.i.h.bf16 %v9980_v8  ;;  %v9981_v62 = vunpack.i.l.bf16 %v9980_v8  ;;  %v10000_v4 = vpop.permute.xlu1 %9999  ;;  %vm16577_vm0 = vmmov %vm16576_vm8 }
 0x333   : > { %v5463_v28 = vsel %vm16562_vm14, %v5430_v15, %v9981_v62  ;;  %v5464_v53 = vsel %vm16572_vm11, %v5431_v33, %v9982_v40  ;;  %v5531_v33 = vsel %vm16574_vm15, %v12763_v48, %v9992_v56  ;;  %v5530_v15 = vsel %vm16575_vm5, %v12720_v21, %v9991_v38  ;;  %vm16578_vm14 = vmmov %vm16543_vm12 }
 0x334   : > { %v5496_v37 = vsel %vm16573_vm13, %v5463_v28, %v9986_v11  ;;  %v5497_v31 = vsel %vm16543_vm12, %v5464_v53, %v9987_v22  ;;  %v10002_v22 = vunpack.i.h.bf16 %v10000_v4  ;;  %v10001_v11 = vunpack.i.l.bf16 %v10000_v4  ;;  %vm16579_vm11 = vmmov %vm16543_vm12  ;;  %v16581_v4 = vld [vmem:[#allocation23_spill] sm:$0xff] }
 0x335   : > { %v5627_v52 = vpack.c.bf16 %v5497_v31, %v5496_v37  ;;  %v3907_v28 = vrot.slane %v13232_v16, 7  ;;  %v10007_v48 = vunpack.i.h.bf16 %v13781_v24  ;;  %v10006_v31 = vunpack.i.l.bf16 %v13781_v24  ;;  %vm16584_vm15 = vmmov %vm16575_vm5 }
 0x336   : > { %10204 = vrot.lane.b32.xlu0 %v10203_v12, %s15810_s26  ;;  %vm16582_vm13 = vcmask 1040384   ;;  %v3955_v38 = vsel %vm16493_vm1, %v12621_v61, %v13474_v6  ;;  %vm16586_vm1 = vmmov %vm16577_vm0 }
 0x337   : > { %10224 = vrot.lane.b32.xlu1 %v10223_v14, %s16494_s29  ;;  %5848 = vmatmul.bf16.gmra.mxu1 %v5627_v52  ;;  %v16580_v14 = vld [vmem:[#allocation64_spill] sm:$0xff]  ;;  %v13896_v52 = vsel %vm16582_vm13, %v3905_v51, %v3907_v28  ;;  %vm16583_vm12 = vmmov %vm16582_vm13 }
 0x338   : > { %v9995_v8 = vpop.permute.xlu0 %9994  ;;  %v4583_v61 = vsel %vm11820_vm10, %v13232_v16, %v13896_v52  ;;  %vm16591_vm13 = vmmov %vm16575_vm5 }
 0x339   : > { %v9997_v13 = vunpack.i.h.bf16 %v9995_v8  ;;  %v9996_v40 = vunpack.i.l.bf16 %v9995_v8  ;;  %v10015_v62 = vpop.permute.xlu1 %10014  ;;  %v13903_v8 = vsel %vm16583_vm12, %v3907_v28, %v3909_v55  ;;  %vm16592_vm12 = vmmov %vm16586_vm1 }
 0x33a   : > { %v10017_v51 = vunpack.i.h.bf16 %v10015_v62 }
 0x33b   : > { %v5562_v23 = vsel %vm16576_vm8, %v5530_v15, %v9996_v40  ;;  %v5563_v30 = vsel %vm16577_vm0, %v5531_v33, %v9997_v13  ;;  %v5433_v33 = vsel %vm16584_vm15, %v13477_v1, %v10007_v48  ;;  %v5432_v15 = vsel %vm16575_vm5, %v3955_v38, %v10006_v31  ;;  %vm16587_vm8 = vmmov %vm16577_vm0 }
 0x33c   : > { %v5594_v53 = vsel %vm16578_vm14, %v5562_v23, %v10001_v11  ;;  %v5595_v12 = vsel %vm16579_vm11, %v5563_v30, %v10002_v22  ;;  %v13908_v22 = vpop.permute.xlu2 %10064  ;;  %v10016_v11 = vunpack.i.l.bf16 %v10015_v62  ;;  %v10233_v30 = vpack.i.bf16 %v13903_v8, %v4583_v61  ;;  %vm16588_vm0 = vmmov %vm16579_vm11 }
 0x33d   : > { %v5631_v37 = vpack.c.bf16 %v5595_v12, %v5594_v53  ;;  %v4261_v1 = vsel %vm11820_vm10, %v16563_v9, %v13847_v18  ;;  %vm16589_vm14 = vmmov %vm16588_vm0  ;;  %v10021_v48 = vunpack.i.l.bf16 %v13814_v36 }
 0x33e   : > { %10219 = vrot.lane.b32.xlu0 %v16580_v14, %s15810_s26  ;;  %v10253_v53 = vpack.i.bf16 %v13854_v0, %v4261_v1  ;;  %vm16590_vm11 = vmmov %vm16575_vm5  ;;  %v16596_v1 = vld [vmem:[#allocation53_spill] sm:$0xff] }
 0x33f   : > { %10239 = vrot.lane.b32.xlu1 %v16581_v4, %s16494_s29  ;;  %5942 = vmatmul.bf16.gmra.mxu2 %v5631_v37  ;;  %v10022_v37 = vunpack.i.h.bf16 %v13814_v36  ;;  %vm16593_vm15 = vmmov %vm16586_vm1 }
 0x340   : > { %v10010_v56 = vpop.permute.xlu0 %10009  ;;  %vm16594_vm5 = vmmov %vm16588_vm0 }
 0x341   : > { %v10012_v24 = vunpack.i.h.bf16 %v10010_v56  ;;  %v10011_v13 = vunpack.i.l.bf16 %v10010_v56  ;;  %v10030_v40 = vpop.permute.xlu1 %10029  ;;  %v5533_v38 = vsel %vm16590_vm11, %v12834_v26, %v10022_v37  ;;  %v10037_v26 = vunpack.i.h.bf16 %v13840_v57 }
 0x343   : > { %v5465_v6 = vsel %vm16586_vm1, %v5432_v15, %v10011_v13  ;;  %v5466_v43 = vsel %vm16587_vm8, %v5433_v33, %v10012_v24  ;;  %v5532_v24 = vsel %vm16591_vm13, %v12794_v42, %v10021_v48  ;;  %v10032_v13 = vunpack.i.h.bf16 %v10030_v40  ;;  %vm16595_vm1 = vmmov %vm16588_vm0 }
 0x344   : > { %v5498_v28 = vsel %vm16588_vm0, %v5465_v6, %v10016_v11  ;;  %v5499_v62 = vsel %vm16589_vm14, %v5466_v43, %v10017_v51  ;;  %v10031_v33 = vunpack.i.l.bf16 %v10030_v40  ;;  %v13934_v51 = vpop.permute.xlu2 %10079  ;;  %v3911_v11 = vrot.slane %v13269_v59, 7  ;;  %vm16599_vm14 = vmmov %vm16590_vm11 }
 0x345   : > { %v5630_v12 = vpack.c.bf16 %v5499_v62, %v5498_v28  ;;  %vm16597_vm8 = vcmask 1040384   ;;  %v3957_v62 = vsel %vm16499_vm7, %v12720_v21, %v13498_v19  ;;  %vm16601_vm7 = vmmov %vm16592_vm12 }
 0x346   : > { %10234 = vrot.lane.b32.xlu0 %v10233_v30, %s15810_s26  ;;  %v10036_v30 = vunpack.i.l.bf16 %v13840_v57  ;;  %v13946_v40 = vsel %vm16597_vm8, %v3909_v55, %v3911_v11  ;;  %vm16598_vm0 = vmmov %vm16597_vm8 }
 0x347   : > { %10254 = vrot.lane.b32.xlu1 %v10253_v53, %s16494_s29  ;;  %5853 = vmatmul.bf16.gmra.mxu1 %v5630_v12  ;;  %v13954_v53 = vsel %vm16598_vm0, %v3911_v11, %v13355_v46  ;;  %v4585_v27 = vsel %vm11957_vm4, %v13269_v59, %v13946_v40  ;;  %vm16602_vm13 = vmmov %vm16601_vm7 }
 0x348   : > { %v10025_v31 = vpop.permute.xlu0 %10024  ;;  %v5434_v48 = vsel %vm16590_vm11, %v3957_v62, %v10036_v30  ;;  %v10263_v19 = vpack.i.bf16 %v13954_v53, %v4585_v27  ;;  %vm16607_vm8 = vmmov %vm16601_vm7 }
 0x349   : > { %v10027_v14 = vunpack.i.h.bf16 %v10025_v31  ;;  %v10026_v4 = vunpack.i.l.bf16 %v10025_v31  ;;  %v10045_v56 = vpop.permute.xlu1 %10044  ;;  %vm16608_vm0 = vmmov %vm16601_vm7 }
 0x34a   : > { %v10047_v55 = vunpack.i.h.bf16 %v10045_v56  ;;  %v10046_v31 = vunpack.i.l.bf16 %v10045_v56 }
 0x34b   : > { %v5564_v15 = vsel %vm16592_vm12, %v5532_v24, %v10026_v4  ;;  %v5565_v36 = vsel %vm16593_vm15, %v5533_v38, %v10027_v14  ;;  %vm16603_vm12 = vmmov %vm16595_vm1 }
 0x34c   : > { %v5596_v61 = vsel %vm16594_vm5, %v5564_v15, %v10031_v33  ;;  %v5597_v6 = vsel %vm16595_vm1, %v5565_v36, %v10032_v13  ;;  %vm16604_vm15 = vmmov %vm16595_vm1  ;;  %v10052_v13 = vunpack.i.h.bf16 %v13877_v5  ;;  %v10051_v33 = vunpack.i.l.bf16 %v13877_v5  ;;  %v13975_v15 = vpop.permute.xlu2 %10094 }
 0x34d   : > { %v5634_v43 = vpack.c.bf16 %v5597_v6, %v5596_v61  ;;  %vm16605_vm5 = vmmov %vm16590_vm11 }
 0x34e   : > { %10249 = vrot.lane.b32.xlu0 %v16596_v1, %s15810_s26  ;;  %vm16606_vm1 = vmmov %vm16605_vm5 }
 0x34f   : > { %10269 = vrot.lane.b32.xlu1 %v13452_v63, %s16494_s29  ;;  %5947 = vmatmul.bf16.gmra.mxu2 %v5634_v43  ;;  %v5435_v63 = vsel %vm16599_vm14, %v13501_v54, %v10037_v26  ;;  %v4263_v54 = vsel %vm11957_vm4, %v13232_v16, %v13896_v52  ;;  %v5535_v43 = vsel %vm16605_vm5, %v12923_v60, %v10052_v13  ;;  %vm16609_vm14 = vmmov %vm16603_vm12  ;;  %v10066_v60 = vunpack.i.l.bf16 %v13908_v22 }
 0x350   : > { %v10040_v28 = vpop.permute.xlu0 %10039  ;;  %v10283_v38 = vpack.i.bf16 %v13903_v8, %v4263_v54  ;;  %v5534_v26 = vsel %vm16606_vm1, %v12874_v35, %v10051_v33  ;;  %vm16610_vm11 = vmmov %vm16603_vm12 }
 0x351   : > { %v10042_v57 = vunpack.i.h.bf16 %v10040_v28  ;;  %v10041_v12 = vunpack.i.l.bf16 %v10040_v28  ;;  %v10060_v37 = vpop.permute.xlu1 %10059 }
 0x352   : > { %v10062_v30 = vunpack.i.h.bf16 %v10060_v37  ;;  %v10061_v1 = vunpack.i.l.bf16 %v10060_v37 }
 0x353   : > { %v5467_v21 = vsel %vm16601_vm7, %v5434_v48, %v10041_v12  ;;  %v5468_v46 = vsel %vm16602_vm13, %v5435_v63, %v10042_v57  ;;  %v16611_v12 = vld [vmem:[#allocation76_spill] sm:$0xff]  ;;  %vm16616_vm7 = vmmov %vm16606_vm1 }
 0x354   : > { %v5500_v4 = vsel %vm16603_vm12, %v5467_v21, %v10046_v31  ;;  %v5501_v56 = vsel %vm16604_vm15, %v5468_v46, %v10047_v55  ;;  %v10298_v63 = vpack.i.bf16 %v16611_v12, %v13317_v20  ;;  %v10067_v55 = vunpack.i.h.bf16 %v13908_v22  ;;  %v16612_v31 = vld [vmem:[#allocation57_spill] sm:$0xff]  ;;  %v13994_v37 = vpop.permute.xlu2 %10109  ;;  %v16613_v21 = vld [vmem:[#allocation71_spill] sm:$0xff]  ;;  %vm16617_vm13 = vmmov %vm16606_vm1 }
 0x355   : > { %v5633_v24 = vpack.c.bf16 %v5501_v56, %v5500_v4  ;;  %vm16618_vm12 = vmmov %vm16608_vm0 }
 0x356   : > { %10264 = vrot.lane.b32.xlu0 %v10263_v19, %s15810_s26  ;;  %v3959_v19 = vsel %vm16505_vm3, %v12794_v42, %v16613_v21  ;;  %vm16619_vm15 = vmmov %vm16608_vm0 }
 0x357   : > { %10284 = vrot.lane.b32.xlu1 %v10283_v38, %s16494_s29  ;;  %5858 = vmatmul.bf16.gmra.mxu1 %v5633_v24  ;;  %v16615_v38 = vld [vmem:[#allocation27_spill] sm:$0xff]  ;;  %v5436_v24 = vsel %vm16617_vm13, %v3959_v19, %v10066_v60  ;;  %vm16622_vm3 = vmmov %vm16610_vm11  ;;  %v16625_v60 = vld [vmem:[#allocation38_spill] sm:$0xff] }
 0x358   : > { %v10055_v36 = vpop.permute.xlu0 %10054  ;;  %v5437_v22 = vsel %vm16616_vm7, %v16615_v38, %v10067_v55  ;;  %vm16623_vm1 = vmmov %vm16622_vm3 }
 0x359   : > { %v10057_v11 = vunpack.i.h.bf16 %v10055_v36  ;;  %v10056_v61 = vunpack.i.l.bf16 %v10055_v36  ;;  %v10075_v6 = vpop.permute.xlu1 %10074  ;;  %vm16632_vm13 = vmmov %vm16623_vm1 }
 0x35a   : > { %v10077_v13 = vunpack.i.h.bf16 %v10075_v6  ;;  %v10076_v33 = vunpack.i.l.bf16 %v10075_v6  ;;  %v10081_v6 = vunpack.i.l.bf16 %v13934_v51 }
 0x35b   : > { %v5566_v5 = vsel %vm16607_vm8, %v5534_v26, %v10056_v61  ;;  %v5567_v28 = vsel %vm16608_vm0, %v5535_v43, %v10057_v11  ;;  %v16620_v61 = vld [vmem:[#allocation63_spill] sm:$0xff]  ;;  %vm16626_vm8 = vmmov %vm16616_vm7 }
 0x35c   : > { %v5598_v62 = vsel %vm16609_vm14, %v5566_v5, %v10061_v1  ;;  %v5599_v57 = vsel %vm16610_vm11, %v5567_v28, %v10062_v30  ;;  %vm16621_vm5 = vnez %v16620_v61  ;;  %v10082_v5 = vunpack.i.h.bf16 %v13934_v51  ;;  %v16624_v28 = vld [vmem:[#allocation81_spill] sm:$0xff]  ;;  %vm16628_vm0 = vmmov %vm16616_vm7  ;;  %v10125_v46 = vpop.permute.xlu2 %10124 }
 0x35d   : > { %v5637_v48 = vpack.c.bf16 %v5599_v57, %v5598_v62  ;;  %v4265_v43 = vsel %vm16621_vm5, %v13269_v59, %v13946_v40  ;;  %vm16629_vm14 = vmmov %vm16618_vm12 }
 0x35e   : > { %10279 = vrot.lane.b32.xlu0 %v16612_v31, %s15810_s26  ;;  %v10313_v30 = vpack.i.bf16 %v13954_v53, %v4265_v43  ;;  %v5537_v31 = vsel %vm16626_vm8, %v16625_v60, %v10082_v5  ;;  %vm16630_vm11 = vmmov %vm16618_vm12  ;;  %v16635_v43 = vld [vmem:[#allocation78_spill] sm:$0xff] }
 0x35f   : > { %10299 = vrot.lane.b32.xlu1 %v10298_v63, %s16494_s29  ;;  %5952 = vmatmul.bf16.gmra.mxu2 %v5637_v48  ;;  %vm16631_vm7 = vmmov %vm16623_vm1 }
 0x360   : > { %v10070_v27 = vpop.permute.xlu0 %10069  ;;  %vm16644_vm8 = vmmov %vm16628_vm0 }
 0x361   : > { %v10072_v54 = vunpack.i.h.bf16 %v10070_v27  ;;  %v10071_v4 = vunpack.i.l.bf16 %v10070_v27  ;;  %v10090_v56 = vpop.permute.xlu1 %10089  ;;  %v16627_v27 = vld [vmem:[#allocation24_spill] sm:$0xff] }
 0x362   : > { %v5536_v21 = vsel %vm16628_vm0, %v16627_v27, %v10081_v6  ;;  %v10092_v19 = vunpack.i.h.bf16 %v10090_v56 }
 0x363   : > { %v5469_v36 = vsel %vm16618_vm12, %v5436_v24, %v10071_v4  ;;  %v5470_v11 = vsel %vm16619_vm15, %v5437_v22, %v10072_v54  ;;  %v10091_v54 = vunpack.i.l.bf16 %v10090_v56  ;;  %vm16636_vm12 = vcmask 1040384  }
 0x364   : > { %v5502_v42 = vsel %vm16622_vm3, %v5469_v36, %v10076_v33  ;;  %v5503_v26 = vsel %vm16623_vm1, %v5470_v11, %v10077_v13  ;;  %v10097_v13 = vunpack.i.h.bf16 %v13975_v15  ;;  %v10096_v33 = vunpack.i.l.bf16 %v13975_v15  ;;  %v16633_v36 = vld [vmem:[#allocation72_spill] sm:$0xff]  ;;  %v16634_v11 = vld [vmem:[#allocation77_spill] sm:$0xff]  ;;  %v16640_v15 = vld [vmem:[#allocation34_spill] sm:$0xff] }
 0x365   : > { %v5636_v1 = vpack.c.bf16 %v5503_v26, %v5502_v42  ;;  %v4524_v56 = vsel %vm16636_vm12, %v16635_v43, %v16634_v11  ;;  %v16637_v26 = vld [vmem:[#allocation32_spill] sm:$0xff]  ;;  %vm16641_vm3 = vnez %v16640_v15  ;;  %vm16643_vm1 = vmmov %vm16628_vm0 }
 0x366   : > { %10294 = vrot.lane.b32.xlu0 %v16624_v28, %s15810_s26  ;;  %vm16645_vm0 = vmmov %vm16630_vm11 }
 0x367   : > { %10314 = vrot.lane.b32.xlu1 %v10313_v30, %s16494_s29  ;;  %5863 = vmatmul.bf16.gmra.mxu1 %v5636_v1  ;;  %v16638_v30 = vld [vmem:[#allocation44_spill] sm:$0xff]  ;;  %vm16652_vm12 = vmmov %vm16643_vm1 }
 0x368   : > { %v10085_v62 = vpop.permute.xlu0 %10084  ;;  %vm16639_vm15 = vnez %v16638_v30 }
 0x369   : > { %v10087_v57 = vunpack.i.h.bf16 %v10085_v62  ;;  %v10086_v48 = vunpack.i.l.bf16 %v10085_v62  ;;  %v10105_v55 = vpop.permute.xlu1 %10104  ;;  %v3961_v1 = vsel %vm16639_vm15, %v12874_v35, %v16637_v26  ;;  %v4589_v62 = vsel %vm16641_vm3, %v13317_v20, %v4524_v56  ;;  %v16647_v35 = vld [vmem:[#allocation80_spill] sm:$0xff]  ;;  %v16650_v56 = vld [vmem:[#allocation26_spill] sm:$0xff]  ;;  %vm16653_vm15 = vmmov %vm16645_vm0 }
 0x36a   : > { %v5438_v60 = vsel %vm16644_vm8, %v3961_v1, %v10096_v33  ;;  %v16649_v33 = vld [vmem:[#allocation82_spill] sm:$0xff]  ;;  %vm16655_vm8 = vmmov %vm16631_vm7 }
 0x36b   : > { %v5568_v51 = vsel %vm16629_vm14, %v5536_v21, %v10086_v48  ;;  %v5569_v4 = vsel %vm16630_vm11, %v5537_v31, %v10087_v57  ;;  %v16642_v57 = vld [vmem:[#allocation33_spill] sm:$0xff]  ;;  %v10107_v31 = vunpack.i.h.bf16 %v10105_v55  ;;  %v10106_v21 = vunpack.i.l.bf16 %v10105_v55  ;;  %vm16646_vm14 = vmmov %vm16645_vm0 }
 0x36c   : > { %v5600_v38 = vsel %vm16631_vm7, %v5568_v51, %v10091_v54  ;;  %v5601_v22 = vsel %vm16632_vm13, %v5569_v4, %v10092_v19  ;;  %v5439_v48 = vsel %vm16643_vm1, %v16642_v57, %v10097_v13  ;;  %v10323_v51 = vpack.i.bf16 %v16647_v35, %v4589_v62  ;;  %vm16648_vm11 = vmmov %vm16631_vm7 }
 0x36d   : > { %v5640_v24 = vpack.c.bf16 %v5601_v22, %v5600_v38  ;;  %v10111_v13 = vunpack.i.l.bf16 %v13994_v37  ;;  %vm16651_vm13 = vmmov %vm16643_vm1 }
 0x36e   : > { %10309 = vrot.lane.b32.xlu0 %v16633_v36, %s15810_s26  ;;  %vm16654_vm1 = vmmov %vm16645_vm0 }
 0x36f   : > { %10329 = vrot.lane.b32.xlu1 %v10298_v63, %s16494_s29  ;;  %5957 = vmatmul.bf16.gmra.mxu2 %v5640_v24  ;;  %v10140_v63 = vpop.permute.xlu2 %10139  ;;  %v10112_v24 = vunpack.i.h.bf16 %v13994_v37  ;;  %v5538_v26 = vsel %vm16652_vm12, %v13021_v32, %v10111_v13 }
 0x370   : > { %v10100_v42 = vpop.permute.xlu0 %10099 }
 0x371   : > { %v10102_v5 = vunpack.i.h.bf16 %v10100_v42  ;;  %v10101_v6 = vunpack.i.l.bf16 %v10100_v42  ;;  %v10120_v28 = vpop.permute.xlu1 %10119  ;;  %v5539_v42 = vsel %vm16651_vm13, %v16650_v56, %v10112_v24  ;;  %vm16664_vm13 = vmmov %vm16654_vm1 }
 0x372   : > { %v10122_v30 = vunpack.i.h.bf16 %v10120_v28  ;;  %v10121_v1 = vunpack.i.l.bf16 %v10120_v28  ;;  %v16659_v28 = vld [vmem:[#allocation47_spill] sm:$0xff] }
 0x373   : > { %v5471_v19 = vsel %vm16645_vm0, %v5438_v60, %v10101_v6  ;;  %v5472_v54 = vsel %vm16646_vm14, %v5439_v48, %v10102_v5  ;;  %vm16656_vm0 = vmmov %vm16631_vm7  ;;  %v10127_v60 = vunpack.i.h.bf16 %v10125_v46  ;;  %vm16660_vm14 = vnez %v16659_v28 }
 0x374   : > { %v5504_v4 = vsel %vm16648_vm11, %v5471_v19, %v10106_v21  ;;  %v5505_v38 = vsel %vm16631_vm7, %v5472_v54, %v10107_v31  ;;  %v10126_v31 = vunpack.i.l.bf16 %v10125_v46  ;;  %v16657_v21 = vld [vmem:[#allocation69_spill] sm:$0xff]  ;;  %v16658_v54 = vld [vmem:[#allocation36_spill] sm:$0xff]  ;;  %vm16662_vm11 = vmmov %vm16652_vm12 }
 0x375   : > { %v5639_v22 = vpack.c.bf16 %v5505_v38, %v5504_v4  ;;  %v3963_v35 = vsel %vm16660_vm14, %v16627_v27, %v16658_v54  ;;  %vm16663_vm7 = vmmov %vm16662_vm11 }
 0x376   : > { %10324 = vrot.lane.b32.xlu0 %v10323_v51, %s15810_s26  ;;  %v5440_v13 = vsel %vm16663_vm7, %v3963_v35, %v10126_v31  ;;  %vm16665_vm12 = vmmov %vm16654_vm1 }
 0x377   : > { %10344 = vrot.lane.b32.xlu1 %v16649_v33, %s16494_s29  ;;  %5868 = vmatmul.bf16.gmra.mxu1 %v5639_v22  ;;  %v10155_v6 = vpop.permute.xlu2 %10154  ;;  %v16661_v22 = vld [vmem:[#allocation39_spill] sm:$0xff]  ;;  %vm16671_vm14 = vmmov %vm16665_vm12 }
 0x378   : > { %v10115_v55 = vpop.permute.xlu0 %10114  ;;  %v5441_v24 = vsel %vm16662_vm11, %v16661_v22, %v10127_v60  ;;  %vm16672_vm11 = vmmov %vm16665_vm12  ;;  %v540_v22 = vld [vmem:[%s16675_s8 + $0x18] sm:$0xff] }
 0x379   : > { %v10117_v36 = vunpack.i.h.bf16 %v10115_v55  ;;  %v10116_v11 = vunpack.i.l.bf16 %v10115_v55  ;;  %v10135_v43 = vpop.permute.xlu1 %10134  ;;  %6400 = vmatpush.msrb.mxu3 %v540_v22 }
 0x37a   : > { %v10137_v33 = vunpack.i.h.bf16 %v10135_v43  ;;  %v10136_v46 = vunpack.i.l.bf16 %v10135_v43 }
 0x37b   : > { %v5570_v37 = vsel %vm16653_vm15, %v5538_v26, %v10116_v11  ;;  %v5571_v5 = vsel %vm16654_vm1, %v5539_v42, %v10117_v36  ;;  %vm16666_vm15 = vmmov %vm16656_vm0 }
 0x37c   : > { %v5602_v62 = vsel %vm16655_vm8, %v5570_v37, %v10121_v1  ;;  %v5603_v57 = vsel %vm16656_vm0, %v5571_v5, %v10122_v30  ;;  %vm16667_vm1 = vmmov %vm16656_vm0  ;;  %v10142_v1 = vunpack.i.h.bf16 %v10140_v63  ;;  %v10141_v37 = vunpack.i.l.bf16 %v10140_v63 }
 0x37d   : > { %v5643_v48 = vpack.c.bf16 %v5603_v57, %v5602_v62  ;;  %vm16669_vm8 = vmmov %vm16663_vm7 }
 0x37e   : > { %10339 = vrot.lane.b32.xlu0 %v16657_v21, %s15810_s26  ;;  %vm16670_vm0 = vmmov %vm16663_vm7  ;;  %s15815_s26 = scalar_lea.vmem [#allocation8], %s12162_s18 }
 0x37f   : > { %5962 = vmatmul.bf16.gmra.mxu2 %v5643_v48  ;;  %v14072_v56 = vpop.permute.xlu2 %10169  ;;  %v16668_v48 = vld [vmem:[#allocation43_spill] sm:$0xff]  ;;  %v5540_v31 = vsel %vm16670_vm0, %v13083_v34, %v10141_v37  ;;  %vm16673_vm7 = vmmov %vm16667_vm1 }
 0x380   : > { %v10130_v19 = vpop.permute.xlu0 %10129  ;;  %v5541_v60 = vsel %vm16669_vm8, %v16668_v48, %v10142_v1 }
 0x381   : > { %v10132_v51 = vunpack.i.h.bf16 %v10130_v19  ;;  %v10131_v4 = vunpack.i.l.bf16 %v10130_v19  ;;  %v10150_v38 = vpop.permute.xlu1 %10149 }
 0x382   : > { %v5923_v55 = vpop.f32.mrf.mxu2  ;;  %v10152_v21 = vunpack.i.h.bf16 %v10150_v38  ;;  %v10151_v19 = vunpack.i.l.bf16 %v10150_v38  ;;  %v14092_v38 = vld [vmem:[%s16676_s4] ss:$0 sm:$0xff] }
 0x383   : > { %v5473_v36 = vsel %vm16664_vm13, %v5440_v13, %v10131_v4  ;;  %v5474_v11 = vsel %vm16665_vm12, %v5441_v24, %v10132_v51  ;;  %vm16674_vm13 = vmmov %vm16667_vm1  ;;  %v10157_v24 = vunpack.i.h.bf16 %v10155_v6 }
 0x384   : > { %v5834_v42 = vpop.f32.mrf.mxu1  ;;  %v5506_v27 = vsel %vm16666_vm15, %v5473_v36, %v10136_v46  ;;  %v5507_v26 = vsel %vm16667_vm1, %v5474_v11, %v10137_v33  ;;  %v10156_v33 = vunpack.i.l.bf16 %v10155_v6  ;;  %vm16679_vm12 = vmmov %vm16670_vm0 }
 0x385   : > { %v5642_v30 = vpack.c.bf16 %v5507_v26, %v5506_v27  ;;  %v16677_v27 = vld [vmem:[#allocation84_spill] sm:$0xff]  ;;  %vm16680_vm15 = vmmov %vm16670_vm0 }
 0x386   : > { %v3965_v26 = vsel %vm16539_vm9, %v13021_v32, %v16677_v27  ;;  %vm16681_vm1 = vmmov %vm16672_vm11 }
 0x387   : > { %5873 = vmatmul.bf16.gmra.mxu1 %v5642_v30  ;;  %v14087_v46 = vpop.permute.xlu2 %10184  ;;  %v16678_v30 = vld [vmem:[#allocation85_spill] sm:$0xff]  ;;  %vm16682_vm8 = vmmov %vm16681_vm1 }
 0x388   : > { %v10145_v5 = vpop.permute.xlu0 %10144  ;;  %v5443_v1 = vsel %vm16679_vm12, %v16678_v30, %v10157_v24  ;;  %vm16683_vm9 = vmmov %vm16673_vm7  ;;  %v16685_v24 = vld [vmem:[#allocation67_spill] sm:$0xff] }
 0x389   : > { %v10147_v62 = vunpack.i.h.bf16 %v10145_v5  ;;  %v10146_v57 = vunpack.i.l.bf16 %v10145_v5  ;;  %v10165_v43 = vpop.permute.xlu1 %10164  ;;  %vm16684_vm0 = vmmov %vm16673_vm7 }
 0x38a   : > { %v5925_v54 = vpop.f32.mrf.mxu2  ;;  %v10167_v48 = vunpack.i.h.bf16 %v10165_v43 }
 0x38b   : > { %v5572_v28 = vsel %vm16671_vm14, %v5540_v31, %v10146_v57  ;;  %v5573_v35 = vsel %vm16672_vm11, %v5541_v60, %v10147_v62  ;;  %v5442_v62 = vsel %vm16680_vm15, %v3965_v26, %v10156_v33  ;;  %v5835_v57 = vadd.f32 %v14092_v38, %v5834_v42  ;;  %vm16686_vm14 = vmmov %vm16679_vm12 }
 0x38c   : > { %v5836_v51 = vpop.f32.mrf.mxu1  ;;  %v5604_v63 = vsel %vm16673_vm7, %v5572_v28, %v10151_v19  ;;  %v5605_v4 = vsel %vm16674_vm13, %v5573_v35, %v10152_v21  ;;  %v10166_v60 = vunpack.i.l.bf16 %v10165_v43  ;;  %v10171_v42 = vunpack.i.l.bf16 %v14072_v56  ;;  %vm16687_vm11 = vmmov %vm16679_vm12 }
 0x38d   : > { %v5646_v13 = vpack.c.bf16 %v5605_v4, %v5604_v63  ;;  %v5837_v36 = vadd.f32 %v14092_v38, %v5836_v51  ;;  %v10172_v51 = vunpack.i.h.bf16 %v14072_v56  ;;  %v5924_v43 = vadd.f32 %v5923_v55, %v5835_v57  ;;  %vm16689_vm7 = vmmov %vm16681_vm1 }
 0x38e   : > { %v5542_v30 = vsel %vm16687_vm11, %v16528_v44, %v10171_v42  ;;  %vm16690_vm13 = vmmov %vm16681_vm1 }
 0x38f   : > { %5967 = vmatmul.bf16.gmra.mxu2 %v5646_v13  ;;  %v5926_v28 = vadd.f32 %v5925_v54, %v5837_v36  ;;  %v14110_v22 = vpop.permute.xlu2 %10199  ;;  %v5543_v33 = vsel %vm16686_vm14, %v16530_v25, %v10172_v51  ;;  %vm16691_vm12 = vmmov %vm16684_vm0 }
 0x390   : > { %v10160_v11 = vpop.permute.xlu0 %10159  ;;  %vm16692_vm15 = vmmov %vm16684_vm0 }
 0x391   : > { %v10162_v6 = vunpack.i.h.bf16 %v10160_v11  ;;  %v10161_v37 = vunpack.i.l.bf16 %v10160_v11  ;;  %v10180_v5 = vpop.permute.xlu1 %10179  ;;  %v14113_v13 = vadd.f32 %v16685_v24, %v5926_v28  ;;  %vm16700_vm14 = vmmov %vm16691_vm12 }
 0x392   : > { %v5928_v31 = vpop.f32.mrf.mxu2 }
 0x393   : > { %v5475_v21 = vsel %vm16681_vm1, %v5442_v62, %v10161_v37  ;;  %v5476_v19 = vsel %vm16682_vm8, %v5443_v1, %v10162_v6  ;;  %v16688_v1 = vld [vmem:[#allocation65_spill] sm:$0xff]  ;;  %v10182_v6 = vunpack.i.h.bf16 %v10180_v5  ;;  %v10181_v37 = vunpack.i.l.bf16 %v10180_v5  ;;  %vm16694_vm1 = vmmov %vm16687_vm11 }
 0x394   : > { %v5839_v29 = vpop.f32.mrf.mxu1  ;;  %v5508_v32 = vsel %vm16683_vm9, %v5475_v21, %v10166_v60  ;;  %v5509_v35 = vsel %vm16684_vm0, %v5476_v19, %v10167_v48  ;;  %v6013_v56 = vadd.f32 %v16688_v1, %v5924_v43  ;;  %v10187_v48 = vunpack.i.h.bf16 %v14087_v46  ;;  %v16693_v19 = vld [vmem:[#allocation74_spill] sm:$0xff]  ;;  %vm16696_vm8 = vmmov %vm16694_vm1 }
 0x395   : > { %v5840_v63 = vadd.f32 %v14092_v38, %v5839_v29  ;;  %v5645_v4 = vpack.c.bf16 %v5509_v35, %v5508_v32  ;;  %v6093_v25 = vmax.f32 %v14113_v13, 0.0  ;;  %v10186_v5 = vunpack.i.l.bf16 %v14087_v46  ;;  %vm16701_vm11 = vmmov %vm16691_vm12 }
 0x396   : > { %v6092_v35 = vmax.f32 %v6013_v56, 0.0  ;;  %vm16699_vm0 = vcmask 1046528  }
 0x397   : > { %5878 = vmatmul.bf16.gmra.mxu1 %v5645_v4  ;;  %v5929_v36 = vadd.f32 %v5928_v31, %v5840_v63  ;;  %v3967_v63 = vsel %vm11604_vm2, %v13083_v34, %v13698_v2  ;;  %v5445_v4 = vsel %vm16694_vm1, %v13701_v50, %v10187_v48  ;;  %v14135_v42 = vpop.permute.xlu2 %10214  ;;  %v6157_v43 = vrot.slane %v6093_v25, 1  ;;  %vm16697_vm2 = vmmov %vm16689_vm7 }
 0x398   : > { %v10175_v54 = vpop.permute.xlu0 %10174  ;;  %v14141_v1 = vrot.slane %v6092_v35, 1  ;;  %vm16698_vm9 = vmmov %vm16697_vm2 }
 0x399   : > { %v10177_v11 = vunpack.i.h.bf16 %v10175_v54  ;;  %v10176_v27 = vunpack.i.l.bf16 %v10175_v54  ;;  %v10195_v26 = vpop.permute.xlu1 %10194  ;;  %v6018_v28 = vadd.f32 %v16693_v19, %v5929_v36  ;;  %v10201_v19 = vunpack.i.l.bf16 %v14110_v22 }
 0x39a   : > { %v5930_v55 = vpop.f32.mrf.mxu2  ;;  %v10197_v34 = vunpack.i.h.bf16 %v10195_v26  ;;  %v10196_v2 = vunpack.i.l.bf16 %v10195_v26 }
 0x39b   : > { %v5574_v62 = vsel %vm16689_vm7, %v5542_v30, %v10176_v27  ;;  %v5575_v57 = vsel %vm16690_vm13, %v5543_v33, %v10177_v11  ;;  %v6094_v54 = vmax.f32 %v6018_v28, 0.0  ;;  %v16695_v33 = vld [vmem:[#allocation75_spill] sm:$0xff]  ;;  %v5444_v30 = vsel %vm16696_vm8, %v3967_v63, %v10186_v5  ;;  %vm16702_vm7 = vmmov %vm16699_vm0 }
 0x39c   : > { %v5841_v60 = vpop.f32.mrf.mxu1  ;;  %v5606_v31 = vsel %vm16691_vm12, %v5574_v62, %v10181_v37  ;;  %v5607_v21 = vsel %vm16692_vm15, %v5575_v57, %v10182_v6  ;;  %v10202_v37 = vunpack.i.h.bf16 %v14110_v22  ;;  %vm16703_vm13 = vmmov %vm16694_vm1 }
 0x39d   : > { %v5842_v29 = vadd.f32 %v14092_v38, %v5841_v60  ;;  %v5649_v32 = vpack.c.bf16 %v5607_v21, %v5606_v31  ;;  %v6159_v60 = vrot.slane %v6094_v54, 1  ;;  %vm16705_vm12 = vmmov %vm16694_vm1 }
 0x39e   : > { %v5544_v22 = vsel %vm16705_vm12, %v16546_v45, %v10201_v19  ;;  %vm16706_vm15 = vmmov %vm16697_vm2 }
 0x39f   : > { %v5931_v51 = vadd.f32 %v5930_v55, %v5842_v29  ;;  %5972 = vmatmul.bf16.gmra.mxu2 %v5649_v32  ;;  %v6158_v55 = vsel %vm16699_vm0, %v14141_v1, %v6157_v43  ;;  %v14153_v32 = vpop.permute.xlu2 %10229  ;;  %vm16707_vm1 = vmmov %vm16697_vm2 }
 0x3a0   : > { %v10190_v24 = vpop.permute.xlu0 %10189  ;;  %v6253_v5 = vmax.f32 %v6092_v35, %v6158_v55 }
 0x3a1   : > { %v6020_v46 = vadd.f32 %v16695_v33, %v5931_v51  ;;  %v10192_v36 = vunpack.i.h.bf16 %v10190_v24  ;;  %v10191_v11 = vunpack.i.l.bf16 %v10190_v24  ;;  %v10210_v27 = vpop.permute.xlu1 %10209  ;;  %v16704_v24 = vld [vmem:[#allocation79_spill] sm:$0xff] }
 0x3a2   : > { %v5933_v41 = vpop.f32.mrf.mxu2 }
 0x3a3   : > { %v6095_v50 = vmax.f32 %v6020_v46, 0.0  ;;  %v5477_v56 = vsel %vm16697_vm2, %v5444_v30, %v10191_v11  ;;  %v5478_v6 = vsel %vm16698_vm9, %v5445_v4, %v10192_v36  ;;  %v5545_v4 = vsel %vm16703_vm13, %v16548_v58, %v10202_v37  ;;  %vm16708_vm2 = vmmov %vm16701_vm11 }
 0x3a4   : > { %v5844_v62 = vpop.f32.mrf.mxu1  ;;  %v5510_v57 = vsel %vm16700_vm14, %v5477_v56, %v10196_v2  ;;  %v5511_v48 = vsel %vm16701_vm11, %v5478_v6, %v10197_v34  ;;  %v10212_v34 = vunpack.i.h.bf16 %v10210_v27  ;;  %v10211_v2 = vunpack.i.l.bf16 %v10210_v27  ;;  %v14165_v6 = vpop.f32.mrf.mxu3  ;;  %vm16709_vm9 = vmmov %vm16708_vm2 }
 0x3a5   : > { %v6161_v31 = vrot.slane %v6095_v50, 1  ;;  %v5845_v26 = vadd.f32 %v14092_v38, %v5844_v62  ;;  %v5648_v21 = vpack.c.bf16 %v5511_v48, %v5510_v57  ;;  %v10217_v58 = vunpack.i.h.bf16 %v14135_v42  ;;  %vm16710_vm14 = vmmov %vm16699_vm0 }
 0x3a6   : > { %v6160_v57 = vsel %vm16699_vm0, %v6157_v43, %v6159_v60  ;;  %vm16711_vm11 = vmmov %vm16696_vm8 }
 0x3a7   : > { %v6162_v28 = vsel %vm16702_vm7, %v6159_v60, %v6161_v31  ;;  %v5934_v29 = vadd.f32 %v5933_v41, %v5845_v26  ;;  %5883 = vmatmul.bf16.gmra.mxu1 %v5648_v21  ;;  %v10216_v21 = vunpack.i.l.bf16 %v14135_v42  ;;  %v6254_v43 = vmax.f32 %v6093_v25, %v6160_v57  ;;  %vm16713_vm7 = vmmov %vm16696_vm8 }
 0x3a8   : > { %v14155_v51 = vmax.f32 %v6094_v54, %v6162_v28  ;;  %v10205_v63 = vpop.permute.xlu0 %10204  ;;  %v5447_v60 = vsel %vm16711_vm11, %v13754_v7, %v10217_v58  ;;  %vm16715_vm13 = vmmov %vm16707_vm1  ;;  %v10231_v58 = vunpack.i.l.bf16 %v14153_v32 }
 0x3a9   : > { %v6023_v33 = vadd.f32 %v16704_v24, %v5934_v29  ;;  %v10207_v46 = vunpack.i.h.bf16 %v10205_v63  ;;  %v10206_v36 = vunpack.i.l.bf16 %v10205_v63  ;;  %v10225_v11 = vpop.permute.xlu1 %10224  ;;  %v3969_v29 = vsel %vm11723_vm6, %v16528_v44, %v13748_v49  ;;  %vm16714_vm6 = vmmov %vm16707_vm1 }
 0x3aa   : > { %v6285_v30 = vmax.f32 %v6253_v5, %v14155_v51  ;;  %v5935_v41 = vpop.f32.mrf.mxu2  ;;  %vm16716_vm12 = vmmov %vm16708_vm2 }
 0x3ab   : > { %v6096_v35 = vmax.f32 %v6023_v33, 0.0  ;;  %v5576_v54 = vsel %vm16706_vm15, %v5544_v22, %v10206_v36  ;;  %v5577_v56 = vsel %vm16707_vm1, %v5545_v4, %v10207_v46  ;;  %v16712_v4 = vld [vmem:[#allocation83_spill] sm:$0xff]  ;;  %v5446_v46 = vsel %vm16713_vm7, %v3969_v29, %v10216_v21  ;;  %v10245_v36 = vpop.permute.xlu2 %10244  ;;  %vm16717_vm15 = vmmov %vm16708_vm2 }
 0x3ac   : > { %6317 = vst.msk [vmem:[#allocation2] sm:$0xff] %vm16696_vm8, %v6285_v30  ;;  %v5846_v37 = vpop.f32.mrf.mxu1  ;;  %v5608_v55 = vsel %vm16708_vm2, %v5576_v54, %v10211_v2  ;;  %v5609_v62 = vsel %vm16709_vm9, %v5577_v56, %v10212_v34  ;;  %v10227_v22 = vunpack.i.h.bf16 %v10225_v11  ;;  %v10226_v30 = vunpack.i.l.bf16 %v10225_v11  ;;  %vm16718_vm1 = vmmov %vm16713_vm7  ;;  %v14192_v56 = vpop.f32.mrf.mxu3 }
 0x3ad   : > { %v6163_v27 = vrot.slane %v6096_v35, 1  ;;  %v5847_v48 = vadd.f32 %v14092_v38, %v5846_v37  ;;  %v5652_v26 = vpack.c.bf16 %v5609_v62, %v5608_v55  ;;  %v10232_v2 = vunpack.i.h.bf16 %v14153_v32  ;;  %vm16719_vm8 = vmmov %vm16699_vm0 }
 0x3ae   : > { %vm16720_vm2 = vmmov %vm16718_vm1 }
 0x3af   : > { %v6164_v19 = vsel %vm16710_vm14, %v6161_v31, %v6163_v27  ;;  %v5936_v28 = vadd.f32 %v5935_v41, %v5847_v48  ;;  %5977 = vmatmul.bf16.gmra.mxu2 %v5652_v26  ;;  %v5547_v48 = vsel %vm16720_vm2, %v16565_v39, %v10232_v2  ;;  %v16721_v26 = vld [vmem:[#allocation25_spill] sm:$0xff]  ;;  %vm16722_vm9 = vmmov %vm16718_vm1  ;;  %v16730_v2 = vld [vmem:[#allocation35_spill] sm:$0xff] }
 0x3b0   : > { %v6256_v5 = vmax.f32 %v6095_v50, %v6164_v19  ;;  %v10220_v63 = vpop.permute.xlu0 %10219  ;;  %vm16723_vm0 = vmmov %vm16714_vm6 }
 0x3b1   : > { %v6025_v24 = vadd.f32 %v16712_v4, %v5936_v28  ;;  %v10222_v42 = vunpack.i.h.bf16 %v10220_v63  ;;  %v10221_v33 = vunpack.i.l.bf16 %v10220_v63  ;;  %v10240_v31 = vpop.permute.xlu1 %10239  ;;  %vm16724_vm14 = vmmov %vm16723_vm0 }
 0x3b2   : > { %v5938_v3 = vpop.f32.mrf.mxu2  ;;  %v6286_v44 = vmax.f32 %v6254_v43, %v6256_v5  ;;  %v5546_v5 = vsel %vm16722_vm9, %v16563_v9, %v10231_v58  ;;  %v10241_v43 = vunpack.i.l.bf16 %v10240_v31  ;;  %vm16725_vm11 = vmmov %vm16718_vm1 }
 0x3b3   : > { %v6097_v49 = vmax.f32 %v6025_v24, 0.0  ;;  %v5479_v50 = vsel %vm16714_vm6, %v5446_v46, %v10221_v33  ;;  %v5480_v13 = vsel %vm16715_vm13, %v5447_v60, %v10222_v42  ;;  %v10260_v63 = vpop.permute.xlu2 %10259  ;;  %vm16726_vm7 = vmmov %vm16716_vm12  ;;  %v10247_v46 = vunpack.i.h.bf16 %v10245_v36 }
 0x3b4   : > { %v5849_v25 = vpop.f32.mrf.mxu1  ;;  %v5512_v7 = vsel %vm16716_vm12, %v5479_v50, %v10226_v30  ;;  %v5513_v34 = vsel %vm16717_vm15, %v5480_v13, %v10227_v22  ;;  %6318 = vst.msk [vmem:[#allocation2 + $0x8] sm:$0xff] %vm16718_vm1, %v6286_v44  ;;  %vm16727_vm6 = vmmov %vm16726_vm7  ;;  %v3971_v13 = vsel %vm11820_vm10, %v16546_v45, %v13796_v10 }
 0x3b5   : > { %v6165_v41 = vrot.slane %v6097_v49, 1  ;;  %v5850_v54 = vadd.f32 %v14092_v38, %v5849_v25  ;;  %v5651_v11 = vpack.c.bf16 %v5513_v34, %v5512_v7  ;;  %vm16728_vm13 = vmmov %vm16719_vm8 }
 0x3b6   : > { %vm16729_vm12 = vmmov %vm16718_vm1 }
 0x3b7   : > { %v6166_v37 = vsel %vm16719_vm8, %v6163_v27, %v6165_v41  ;;  %v5939_v55 = vadd.f32 %v5938_v3, %v5850_v54  ;;  %5888 = vmatmul.bf16.gmra.mxu1 %v5651_v11  ;;  %v10242_v27 = vunpack.i.h.bf16 %v10240_v31  ;;  %v14211_v3 = vpop.f32.mrf.mxu3  ;;  %v10246_v31 = vunpack.i.l.bf16 %v10245_v36  ;;  %vm16731_vm15 = vmmov %vm16718_vm1 }
 0x3b8   : > { %v14196_v62 = vmax.f32 %v6096_v35, %v6166_v37  ;;  %v10235_v57 = vpop.permute.xlu0 %10234  ;;  %v5449_v34 = vsel %vm16729_vm12, %v13803_v47, %v10247_v46  ;;  %vm16732_vm1 = vmmov %vm16723_vm0 }
 0x3b9   : > { %v6028_v21 = vadd.f32 %v16721_v26, %v5939_v55  ;;  %v10237_v19 = vunpack.i.h.bf16 %v10235_v57  ;;  %v10236_v28 = vunpack.i.l.bf16 %v10235_v57  ;;  %v10255_v29 = vpop.permute.xlu1 %10254  ;;  %vm16733_vm10 = vmmov %vm16723_vm0 }
 0x3ba   : > { %v6287_v32 = vmax.f32 %v14155_v51, %v14196_v62  ;;  %v5940_v35 = vpop.f32.mrf.mxu2  ;;  %v10257_v37 = vunpack.i.h.bf16 %v10255_v29  ;;  %v10256_v55 = vunpack.i.l.bf16 %v10255_v29  ;;  %vm16734_vm8 = vmmov %vm16727_vm6 }
 0x3bb   : > { %v6098_v60 = vmax.f32 %v6028_v21, 0.0  ;;  %v5578_v4 = vsel %vm16723_vm0, %v5546_v5, %v10236_v28  ;;  %v5579_v39 = vsel %vm16724_vm14, %v5547_v48, %v10237_v19  ;;  %v10275_v10 = vpop.permute.xlu2 %10274  ;;  %vm16735_vm2 = vmmov %vm16727_vm6  ;;  %v10262_v21 = vunpack.i.h.bf16 %v10260_v63 }
 0x3bc   : > { %6319 = vst.msk [vmem:[#allocation2 + $0x10] sm:$0xff] %vm16725_vm11, %v6287_v32  ;;  %v5851_v24 = vpop.f32.mrf.mxu1  ;;  %v5610_v42 = vsel %vm16726_vm7, %v5578_v4, %v10241_v43  ;;  %v5611_v33 = vsel %vm16727_vm6, %v5579_v39, %v10242_v27  ;;  %v10261_v32 = vunpack.i.l.bf16 %v10260_v63  ;;  %vm16736_vm9 = vmmov %vm16728_vm13 }
 0x3bd   : > { %v6167_v22 = vrot.slane %v6098_v60, 1  ;;  %v5852_v30 = vadd.f32 %v14092_v38, %v5851_v24  ;;  %v5655_v51 = vpack.c.bf16 %v5611_v33, %v5610_v42  ;;  %vm16737_vm0 = vmmov %vm16725_vm11 }
 0x3be   : > { %v5549_v39 = vsel %vm16737_vm0, %v13251_v17, %v10262_v21  ;;  %vm16738_vm14 = vmmov %vm16737_vm0 }
 0x3bf   : > { %v6168_v44 = vsel %vm16728_vm13, %v6165_v41, %v6167_v22  ;;  %v5941_v50 = vadd.f32 %v5940_v35, %v5852_v30  ;;  %5982 = vmatmul.bf16.gmra.mxu2 %v5655_v51  ;;  %v5448_v41 = vsel %vm16731_vm15, %v3971_v13, %v10246_v31  ;;  %v14230_v43 = vpop.f32.mrf.mxu3  ;;  %v5548_v63 = vsel %vm16738_vm14, %v13232_v16, %v10261_v32  ;;  %vm16739_vm11 = vmmov %vm16732_vm1 }
 0x3c0   : > { %v14218_v25 = vmax.f32 %v6097_v49, %v6168_v44  ;;  %v10250_v7 = vpop.permute.xlu0 %10249  ;;  %vm16740_vm7 = vmmov %vm16732_vm1 }
 0x3c1   : > { %v6030_v54 = vadd.f32 %v16730_v2, %v5941_v50  ;;  %v10252_v11 = vunpack.i.h.bf16 %v10250_v7  ;;  %v10251_v58 = vunpack.i.l.bf16 %v10250_v7  ;;  %v10270_v36 = vpop.permute.xlu1 %10269  ;;  %vm16741_vm6 = vmmov %vm16737_vm0 }
 0x3c2   : > { %v5943_v57 = vpop.f32.mrf.mxu2  ;;  %v10272_v30 = vunpack.i.h.bf16 %v10270_v36  ;;  %v10271_v51 = vunpack.i.l.bf16 %v10270_v36  ;;  %vm16742_vm13 = vmmov %vm16735_vm2 }
 0x3c3   : > { %v6099_v48 = vmax.f32 %v6030_v54, 0.0  ;;  %v5481_v23 = vsel %vm16732_vm1, %v5448_v41, %v10251_v58  ;;  %v5482_v45 = vsel %vm16733_vm10, %v5449_v34, %v10252_v11  ;;  %v10290_v17 = vpop.permute.xlu2 %10289  ;;  %vm16743_vm12 = vmmov %vm16735_vm2  ;;  %v10277_v34 = vunpack.i.h.bf16 %v10275_v10 }
 0x3c4   : > { %v5854_v49 = vpop.f32.mrf.mxu1  ;;  %v5514_v26 = vsel %vm16734_vm8, %v5481_v23, %v10256_v55  ;;  %v5515_v47 = vsel %vm16735_vm2, %v5482_v45, %v10257_v37  ;;  %v10276_v58 = vunpack.i.l.bf16 %v10275_v10  ;;  %vm16744_vm15 = vmmov %vm16736_vm9  ;;  %v3973_v55 = vsel %vm11957_vm4, %v16563_v9, %v13847_v18 }
 0x3c5   : > { %v6169_v19 = vrot.slane %v6099_v48, 1  ;;  %v5855_v28 = vadd.f32 %v14092_v38, %v5854_v49  ;;  %v5654_v5 = vpack.c.bf16 %v5515_v47, %v5514_v26  ;;  %vm16745_vm1 = vmmov %vm16737_vm0 }
 0x3c6   : > { %v5451_v45 = vsel %vm16745_vm1, %v13854_v0, %v10277_v34  ;;  %vm16746_vm10 = vmmov %vm16737_vm0 }
 0x3c7   : > { %v6170_v29 = vsel %vm16736_vm9, %v6167_v22, %v6169_v19  ;;  %v5944_v27 = vadd.f32 %v5943_v57, %v5855_v28  ;;  %5893 = vmatmul.bf16.gmra.mxu1 %v5654_v5  ;;  %v14254_v37 = vpop.f32.mrf.mxu3  ;;  %v5450_v21 = vsel %vm16746_vm10, %v3973_v55, %v10276_v58  ;;  %vm16747_vm8 = vmmov %vm16740_vm7 }
 0x3c8   : > { %v14232_v35 = vmax.f32 %v6098_v60, %v6170_v29  ;;  %v10265_v4 = vpop.permute.xlu0 %10264  ;;  %vm16748_vm4 = vmmov %vm16740_vm7 }
 0x3c9   : > { %v6033_v24 = vadd.f32 %v14165_v6, %v5944_v27  ;;  %v10267_v42 = vunpack.i.h.bf16 %v10265_v4  ;;  %v10266_v33 = vunpack.i.l.bf16 %v10265_v4  ;;  %v10285_v46 = vpop.permute.xlu1 %10284  ;;  %vm16749_vm2 = vmmov %vm16737_vm0 }
 0x3ca   : > { %v6289_v22 = vmax.f32 %v14196_v62, %v14232_v35  ;;  %v5945_v31 = vpop.f32.mrf.mxu2  ;;  %v14249_v62 = vld [vmem:[%s16675_s8 + $0x10] sm:$0xff]  ;;  %v10287_v28 = vunpack.i.h.bf16 %v10285_v46  ;;  %v10286_v5 = vunpack.i.l.bf16 %v10285_v46  ;;  %vm16750_vm9 = vmmov %vm16743_vm12 }
 0x3cb   : > { %v6100_v60 = vmax.f32 %v6033_v24, 0.0  ;;  %v5580_v44 = vsel %vm16739_vm11, %v5548_v63, %v10266_v33  ;;  %v5581_v50 = vsel %vm16740_vm7, %v5549_v39, %v10267_v42  ;;  %6401 = vmatpush.msrb.mxu3 %v14249_v62  ;;  %vm16751_vm0 = vmmov %vm16750_vm9  ;;  %v10291_v39 = vunpack.i.l.bf16 %v10290_v17  ;;  %v10305_v24 = vpop.permute.xlu2 %10304 }
 0x3cc   : > { %6321 = vst.msk [vmem:[#allocation2 + $0x20] sm:$0xff] %vm16741_vm6, %v6289_v22  ;;  %v5856_v6 = vpop.f32.mrf.mxu1  ;;  %v5612_v13 = vsel %vm16742_vm13, %v5580_v44, %v10271_v51  ;;  %v5613_v7 = vsel %vm16743_vm12, %v5581_v50, %v10272_v30  ;;  %vm16752_vm14 = vmmov %vm16744_vm15  ;;  %v16753_v22 = vld [vmem:[#allocation70_spill] sm:$0xff] }
 0x3cd   : > { %v6171_v2 = vrot.slane %v6100_v60, 1  ;;  %v5857_v54 = vadd.f32 %v14092_v38, %v5856_v6  ;;  %v5658_v11 = vpack.c.bf16 %v5613_v7, %v5612_v13  ;;  %vm16754_vm11 = vmmov %vm16745_vm1 }
 0x3ce   : > { %vm16755_vm7 = vmmov %vm16745_vm1 }
 0x3cf   : > { %v6172_v36 = vsel %vm16744_vm15, %v6169_v19, %v6171_v2  ;;  %v5946_v41 = vadd.f32 %v5945_v31, %v5857_v54  ;;  %5987 = vmatmul.bf16.gmra.mxu2 %v5658_v11  ;;  %v14277_v50 = vpop.f32.mrf.mxu3  ;;  %vm16756_vm6 = vmmov %vm16748_vm4 }
 0x3d0   : > { %v6260_v57 = vmax.f32 %v6099_v48, %v6172_v36  ;;  %v10280_v23 = vpop.permute.xlu0 %10279  ;;  %v10292_v48 = vunpack.i.h.bf16 %v10290_v17  ;;  %v5550_v17 = vsel %vm16755_vm7, %v13269_v59, %v10291_v39  ;;  %vm16757_vm13 = vmmov %vm16748_vm4 }
 0x3d1   : > { %v6035_v49 = vadd.f32 %v14192_v56, %v5946_v41  ;;  %v10282_v26 = vunpack.i.h.bf16 %v10280_v23  ;;  %v10281_v10 = vunpack.i.l.bf16 %v10280_v23  ;;  %v10300_v47 = vpop.permute.xlu1 %10299  ;;  %vm16758_vm12 = vmmov %vm16745_vm1  ;;  %v10307_v41 = vunpack.i.h.bf16 %v10305_v24 }
 0x3d2   : > { %v6290_v19 = vmax.f32 %v14218_v25, %v6260_v57  ;;  %v5948_v32 = vpop.f32.mrf.mxu2  ;;  %v5551_v30 = vsel %vm16754_vm11, %v16753_v22, %v10292_v48  ;;  %v10302_v13 = vunpack.i.h.bf16 %v10300_v47  ;;  %v10301_v7 = vunpack.i.l.bf16 %v10300_v47  ;;  %vm16759_vm15 = vmmov %vm16751_vm0 }
 0x3d3   : > { %v6101_v29 = vmax.f32 %v6035_v49, 0.0  ;;  %v5483_v9 = vsel %vm16747_vm8, %v5450_v21, %v10281_v10  ;;  %v5484_v18 = vsel %vm16748_vm4, %v5451_v45, %v10282_v26  ;;  %vm16760_vm1 = vmmov %vm16751_vm0  ;;  %v10306_v23 = vunpack.i.l.bf16 %v10305_v24  ;;  %v10320_v10 = vpop.permute.xlu2 %10319 }
 0x3d4   : > { %6322 = vst.msk [vmem:[#allocation2 + $0x28] sm:$0xff] %vm16749_vm2, %v6290_v19  ;;  %v5859_v0 = vpop.f32.mrf.mxu1  ;;  %v5516_v14 = vsel %vm16750_vm9, %v5483_v9, %v10286_v5  ;;  %v5517_v56 = vsel %vm16751_vm0, %v5484_v18, %v10287_v28  ;;  %vm16761_vm10 = vmmov %vm16752_vm14  ;;  %v3975_v26 = vsel %vm16621_vm5, %v13232_v16, %v13896_v52  ;;  %v10321_v24 = vunpack.i.l.bf16 %v10320_v10 }
 0x3d5   : > { %v6173_v27 = vrot.slane %v6101_v29, 1  ;;  %v5860_v4 = vadd.f32 %v14092_v38, %v5859_v0  ;;  %v5657_v25 = vpack.c.bf16 %v5517_v56, %v5516_v14  ;;  %vm16762_vm8 = vmmov %vm16749_vm2 }
 0x3d6   : > { %v5453_v19 = vsel %vm16762_vm8, %v13903_v8, %v10307_v41  ;;  %vm16763_vm4 = vmmov %vm16749_vm2 }
 0x3d7   : > { %v6174_v42 = vsel %vm16752_vm14, %v6171_v2, %v6173_v27  ;;  %v5949_v33 = vadd.f32 %v5948_v32, %v5860_v4  ;;  %5898 = vmatmul.bf16.gmra.mxu1 %v5657_v25  ;;  %v14299_v9 = vpop.f32.mrf.mxu3  ;;  %v5452_v18 = vsel %vm16763_vm4, %v3975_v26, %v10306_v23  ;;  %vm16764_vm5 = vmmov %vm16756_vm6 }
 0x3d8   : > { %v14272_v46 = vmax.f32 %v6100_v60, %v6174_v42  ;;  %v10295_v63 = vpop.permute.xlu0 %10294  ;;  %vm16765_vm2 = vmmov %vm16764_vm5 }
 0x3d9   : > { %v6038_v51 = vadd.f32 %v14211_v3, %v5949_v33  ;;  %v10297_v31 = vunpack.i.h.bf16 %v10295_v63  ;;  %v10296_v44 = vunpack.i.l.bf16 %v10295_v63  ;;  %v10315_v11 = vpop.permute.xlu1 %10314  ;;  %vm16766_vm9 = vmmov %vm16751_vm0 }
 0x3da   : > { %v6291_v6 = vmax.f32 %v14232_v35, %v14272_v46  ;;  %v5950_v60 = vpop.f32.mrf.mxu2  ;;  %v10317_v0 = vunpack.i.h.bf16 %v10315_v11  ;;  %v10316_v14 = vunpack.i.l.bf16 %v10315_v11  ;;  %vm16767_vm14 = vmmov %vm16761_vm10 }
 0x3db   : > { %v6102_v34 = vmax.f32 %v6038_v51, 0.0  ;;  %v5582_v2 = vsel %vm16756_vm6, %v5550_v17, %v10296_v44  ;;  %v5583_v54 = vsel %vm16757_vm13, %v5551_v30, %v10297_v31  ;;  %vm16768_vm11 = vmmov %vm16763_vm4 }
 0x3dc   : > { %6323 = vst.msk [vmem:[#allocation2 + $0x30] sm:$0xff] %vm16758_vm12, %v6291_v6  ;;  %v5861_v3 = vpop.f32.mrf.mxu1  ;;  %v5614_v58 = vsel %vm16759_vm15, %v5582_v2, %v10301_v7  ;;  %v5615_v36 = vsel %vm16760_vm1, %v5583_v54, %v10302_v13  ;;  %vm16769_vm7 = vmmov %vm16763_vm4  ;;  %v10335_v6 = vpop.permute.xlu2 %10334 }
 0x3dd   : > { %v6175_v55 = vrot.slane %v6102_v34, 1  ;;  %v5862_v35 = vadd.f32 %v14092_v38, %v5861_v3  ;;  %v5661_v57 = vpack.c.bf16 %v5615_v36, %v5614_v58  ;;  %v5552_v17 = vsel %vm16769_vm7, %v13317_v20, %v10321_v24  ;;  %vm16770_vm6 = vmmov %vm16765_vm2 }
 0x3de   : > { %vm16771_vm13 = vmmov %vm16765_vm2  ;;  %v10337_v20 = vunpack.i.h.bf16 %v10335_v6 }
 0x3df   : > { %v6176_v45 = vsel %vm16761_vm10, %v6173_v27, %v6175_v55  ;;  %v5951_v49 = vadd.f32 %v5950_v60, %v5862_v35  ;;  %5992 = vmatmul.bf16.gmra.mxu2 %v5661_v57  ;;  %v6049_v3 = vpop.f32.mrf.mxu3  ;;  %vm16772_vm12 = vmmov %vm16763_vm4 }
 0x3e0   : > { %v14294_v47 = vmax.f32 %v6101_v29, %v6176_v45  ;;  %v10310_v21 = vpop.permute.xlu0 %10309  ;;  %vm16773_vm15 = vmmov %vm16751_vm0  ;;  %v3977_v45 = vsel %vm16641_vm3, %v13269_v59, %v13946_v40 }
 0x3e1   : > { %v6040_v28 = vadd.f32 %v14230_v43, %v5951_v49  ;;  %v10312_v5 = vunpack.i.h.bf16 %v10310_v21  ;;  %v10311_v32 = vunpack.i.l.bf16 %v10310_v21  ;;  %v10322_v43 = vunpack.i.h.bf16 %v10320_v10  ;;  %v10330_v4 = vpop.permute.xlu1 %10329  ;;  %vm16774_vm1 = vmmov %vm16751_vm0 }
 0x3e2   : > { %v5953_v56 = vpop.f32.mrf.mxu2  ;;  %v10332_v7 = vunpack.i.h.bf16 %v10330_v4  ;;  %v10331_v60 = vunpack.i.l.bf16 %v10330_v4  ;;  %vm16775_vm8 = vmmov %vm16763_vm4 }
 0x3e3   : > { %v6103_v61 = vmax.f32 %v6040_v28, 0.0  ;;  %v5485_v16 = vsel %vm16764_vm5, %v5452_v18, %v10311_v32  ;;  %v5486_v52 = vsel %vm16765_vm2, %v5453_v19, %v10312_v5  ;;  %v5553_v30 = vsel %vm16768_vm11, %v16611_v12, %v10322_v43  ;;  %vm16776_vm5 = vmmov %vm16765_vm2 }
 0x3e4   : > { %v5864_v29 = vpop.f32.mrf.mxu1  ;;  %v5518_v48 = vsel %vm16766_vm9, %v5485_v16, %v10316_v14  ;;  %v5519_v8 = vsel %vm16751_vm0, %v5486_v52, %v10317_v0  ;;  %v5455_v10 = vsel %vm16775_vm8, %v13954_v53, %v10337_v20  ;;  %vm16777_vm3 = vmmov %vm16765_vm2 }
 0x3e5   : > { %v6177_v27 = vrot.slane %v6103_v61, 1  ;;  %v5865_v25 = vadd.f32 %v14092_v38, %v5864_v29  ;;  %v5660_v39 = vpack.c.bf16 %v5519_v8, %v5518_v48  ;;  %vm16778_vm2 = vmmov %vm16763_vm4 }
 0x3e6   : > { %vm16779_vm9 = vmmov %vm16751_vm0 }
 0x3e7   : > { %v6178_v42 = vsel %vm16767_vm14, %v6175_v55, %v6177_v27  ;;  %v5954_v33 = vadd.f32 %v5953_v56, %v5865_v25  ;;  %5903 = vmatmul.bf16.gmra.mxu1 %v5660_v39  ;;  %v10336_v55 = vunpack.i.l.bf16 %v10335_v6  ;;  %v6052_v40 = vpop.f32.mrf.mxu3  ;;  %vm16780_vm14 = vmmov %vm16761_vm10 }
 0x3e8   : > { %v6263_v63 = vmax.f32 %v6102_v34, %v6178_v42  ;;  %v10325_v22 = vpop.permute.xlu0 %10324  ;;  %vm16781_vm11 = vmmov %vm16761_vm10 }
 0x3e9   : > { %v6043_v51 = vadd.f32 %v14254_v37, %v5954_v33  ;;  %v10327_v31 = vunpack.i.h.bf16 %v10325_v22  ;;  %v10326_v44 = vunpack.i.l.bf16 %v10325_v22  ;;  %v10345_v57 = vpop.permute.xlu1 %10344  ;;  %v5454_v5 = vsel %vm16763_vm4, %v3977_v45, %v10336_v55  ;;  %vm16782_vm7 = vmmov %vm16761_vm10 }
 0x3ea   : > { %v6293_v13 = vmax.f32 %v14272_v46, %v6263_v63  ;;  %v5955_v2 = vpop.f32.mrf.mxu2  ;;  %v10347_v18 = vunpack.i.h.bf16 %v10345_v57  ;;  %v10346_v0 = vunpack.i.l.bf16 %v10345_v57  ;;  %vm16790_vm4 = vmmov %vm16778_vm2 }
 0x3eb   : > { %v6104_v54 = vmax.f32 %v6043_v51, 0.0  ;;  %v5584_v34 = vsel %vm16770_vm6, %v5552_v17, %v10326_v44  ;;  %v5585_v11 = vsel %vm16771_vm13, %v5553_v30, %v10327_v31  ;;  %vm16783_vm6 = vmmov %vm16778_vm2 }
 0x3ec   : > { %6325 = vst.msk [vmem:[#allocation2 + $0x40] sm:$0xff] %vm16772_vm12, %v6293_v13  ;;  %v5866_v12 = vpop.f32.mrf.mxu1  ;;  %v5616_v37 = vsel %vm16773_vm15, %v5584_v34, %v10331_v60  ;;  %v5617_v58 = vsel %vm16774_vm1, %v5585_v11, %v10332_v7  ;;  %vm16784_vm13 = vmmov %vm16782_vm7  ;;  %vm6419_vm15 = vcmask 1043456  }
 0x3ed   : > { %v6179_v36 = vrot.slane %v6104_v54, 1  ;;  %v5867_v46 = vadd.f32 %v14092_v38, %v5866_v12  ;;  %v5664_v41 = vpack.c.bf16 %v5617_v58, %v5616_v37  ;;  %vm16785_vm12 = vmmov %vm16778_vm2 }
 0x3ee   : > { %vm16787_vm1 = vmmov %vm16782_vm7 }
 0x3ef   : > { %v6180_v35 = vsel %vm16761_vm10, %v6177_v27, %v6179_v36  ;;  %v5956_v23 = vadd.f32 %v5955_v2, %v5867_v46  ;;  %5997 = vmatmul.bf16.gmra.mxu2 %v5664_v41  ;;  %v6054_v42 = vpop.f32.mrf.mxu3  ;;  %vm16788_vm10 = vmmov %vm16787_vm1 }
 0x3f0   : > { %v6264_v49 = vmax.f32 %v6103_v61, %v6180_v35  ;;  %v10340_v26 = vpop.permute.xlu0 %10339  ;;  %vm16789_vm8 = vmmov %vm16787_vm1 }
 0x3f1   : > { %v6045_v21 = vadd.f32 %v14277_v50, %v5956_v23  ;;  %v10342_v19 = vunpack.i.h.bf16 %v10340_v26  ;;  %v10341_v28 = vunpack.i.l.bf16 %v10340_v26 }
 0x3f2   : > { %v6294_v32 = vmax.f32 %v14294_v47, %v6264_v49  ;;  %v5958_v14 = vpop.f32.mrf.mxu2  ;;  %v14355_v49 = vld [vmem:[%s16786_s9] sm:$0xf] }
 0x3f3   : > { %v6105_v56 = vmax.f32 %v6045_v21, 0.0  ;;  %v5487_v15 = vsel %vm16776_vm5, %v5454_v5, %v10341_v28  ;;  %v5488_v59 = vsel %vm16777_vm3, %v5455_v10, %v10342_v19  ;;  %8841 = vmatpush.msk.msrb.mxu0 %vm6419_vm15, %v14355_v49  ;;  %vm16791_vm5 = vmmov %vm16787_vm1 }
 0x3f4   : > { %6326 = vst.msk [vmem:[#allocation2 + $0x48] sm:$0xff] %vm16778_vm2, %v6294_v32  ;;  %v5869_v53 = vpop.f32.mrf.mxu1  ;;  %v5520_v50 = vsel %vm16779_vm9, %v5487_v15, %v10346_v0  ;;  %v5521_v61 = vsel %vm16751_vm0, %v5488_v59, %v10347_v18  ;;  %vm16792_vm3 = vmmov %vm16778_vm2 }
 0x3f5   : > { %v6181_v16 = vrot.slane %v6105_v56, 1  ;;  %v5870_v52 = vadd.f32 %v14092_v38, %v5869_v53  ;;  %v5663_v47 = vpack.c.bf16 %v5521_v61, %v5520_v50  ;;  %8844 = vmatpush.msk.msra.mxu0 %vm6419_vm15, %v14355_v49  ;;  %vm16793_vm2 = vmmov %vm16787_vm1 }
 0x3f6   : > { %vm16794_vm9 = vmmov %vm16787_vm1 }
 0x3f7   : > { %v6182_v29 = vsel %vm16780_vm14, %v6179_v36, %v6181_v16  ;;  %v5959_v48 = vadd.f32 %v5958_v14, %v5870_v52  ;;  %5908 = vmatmul.bf16.gmra.mxu1 %v5663_v47  ;;  %v6057_v13 = vpop.f32.mrf.mxu3  ;;  %vm16795_vm0 = vmmov %vm16787_vm1 }
 0x3f8   : > { %v6265_v8 = vmax.f32 %v6104_v54, %v6182_v29  ;;  %vm16796_vm14 = vmmov %vm16792_vm3 }
 0x3f9   : > { %v6048_v43 = vadd.f32 %v14299_v9, %v5959_v48 }
 0x3fa   : > { %v5960_v27 = vpop.f32.mrf.mxu2 }
 0x3fb   : > { %v6106_v4 = vmax.f32 %v6048_v43, 0.0 }
 0x3fc   : > { %v5871_v25 = vpop.f32.mrf.mxu1 }
 0x3fd   : > { %v6183_v39 = vrot.slane %v6106_v4, 1  ;;  %v5872_v24 = vadd.f32 %v14092_v38, %v5871_v25 }
 0x3ff   : > { %v6184_v33 = vsel %vm16781_vm11, %v6181_v16, %v6183_v39  ;;  %v5961_v63 = vadd.f32 %v5960_v27, %v5872_v24  ;;  %v6059_v46 = vpop.f32.mrf.mxu3  ;;  %vm16797_vm11 = vmmov %vm16795_vm0 }
 0x400   : > { %v6266_v22 = vmax.f32 %v6105_v56, %v6184_v33 }
 0x401   : > { %v6050_v30 = vadd.f32 %v6049_v3, %v5961_v63  ;;  %v14346_v3 = vld [vmem:[%s16675_s8 + $0x8] sm:$0xff] }
 0x402   : > { %v5963_v51 = vpop.f32.mrf.mxu2  ;;  %6402 = vmatpush.msrb.mxu3 %v14346_v3 }
 0x403   : > { %v6107_v31 = vmax.f32 %v6050_v30, 0.0 }
 0x404   : > { %v5874_v44 = vpop.f32.mrf.mxu1 }
 0x405   : > { %v6185_v17 = vrot.slane %v6107_v31, 1  ;;  %v5875_v6 = vadd.f32 %v14092_v38, %v5874_v44 }
 0x407   : > { %v6186_v9 = vsel %vm16782_vm7, %v6183_v39, %v6185_v17  ;;  %v5964_v7 = vadd.f32 %v5963_v51, %v5875_v6  ;;  %v6062_v28 = vpop.f32.mrf.mxu3  ;;  %vm16798_vm7 = vmmov %vm16792_vm3 }
 0x408   : > { %v6267_v60 = vmax.f32 %v6106_v4, %v6186_v9 }
 0x409   : > { %v6053_v2 = vadd.f32 %v6052_v40, %v5964_v7 }
 0x40a   : > { %v6297_v54 = vmax.f32 %v6265_v8, %v6267_v60  ;;  %v5965_v34 = vpop.f32.mrf.mxu2 }
 0x40b   : > { %v6108_v11 = vmax.f32 %v6053_v2, 0.0 }
 0x40c   : > { %6329 = vst.msk [vmem:[#allocation2 + $0x60] sm:$0xff] %vm16783_vm6, %v6297_v54  ;;  %v5876_v12 = vpop.f32.mrf.mxu1  ;;  %vm16799_vm6 = vmmov %vm16795_vm0 }
 0x40d   : > { %v6187_v37 = vrot.slane %v6108_v11, 1  ;;  %v5877_v58 = vadd.f32 %v14092_v38, %v5876_v12 }
 0x40f   : > { %v6188_v20 = vsel %vm16784_vm13, %v6185_v17, %v6187_v37  ;;  %v5966_v36 = vadd.f32 %v5965_v34, %v5877_v58  ;;  %v6064_v61 = vpop.f32.mrf.mxu3  ;;  %vm16800_vm13 = vmmov %vm16795_vm0 }
 0x410   : > { %v6268_v41 = vmax.f32 %v6107_v31, %v6188_v20 }
 0x411   : > { %v6055_v55 = vadd.f32 %v6054_v42, %v5966_v36 }
 0x412   : > { %v6298_v35 = vmax.f32 %v6266_v22, %v6268_v41  ;;  %v5968_v57 = vpop.f32.mrf.mxu2 }
 0x413   : > { %v6109_v23 = vmax.f32 %v6055_v55, 0.0 }
 0x414   : > { %6330 = vst.msk [vmem:[#allocation2 + $0x68] sm:$0xff] %vm16785_vm12, %v6298_v35  ;;  %v5879_v45 = vpop.f32.mrf.mxu1  ;;  %vm16801_vm12 = vmmov %vm16795_vm0 }
 0x415   : > { %v6189_v26 = vrot.slane %v6109_v23, 1  ;;  %v5880_v10 = vadd.f32 %v14092_v38, %v5879_v45 }
 0x417   : > { %v6190_v21 = vsel %vm16787_vm1, %v6187_v37, %v6189_v26  ;;  %v5969_v19 = vadd.f32 %v5968_v57, %v5880_v10  ;;  %v6067_v25 = vpop.f32.mrf.mxu3  ;;  %vm16802_vm1 = vmmov %vm16792_vm3 }
 0x418   : > { %v6269_v5 = vmax.f32 %v6108_v11, %v6190_v21 }
 0x419   : > { %v6058_v32 = vadd.f32 %v6057_v13, %v5969_v19 }
 0x41a   : > { %v5970_v18 = vpop.f32.mrf.mxu2 }
 0x41b   : > { %v6110_v0 = vmax.f32 %v6058_v32, 0.0 }
 0x41c   : > { %v5881_v14 = vpop.f32.mrf.mxu1 }
 0x41d   : > { %v6191_v56 = vrot.slane %v6110_v0, 1  ;;  %v5882_v15 = vadd.f32 %v14092_v38, %v5881_v14 }
 0x41f   : > { %v6192_v59 = vsel %vm16788_vm10, %v6189_v26, %v6191_v56  ;;  %v5971_v40 = vadd.f32 %v5970_v18, %v5882_v15  ;;  %v6069_v9 = vpop.f32.mrf.mxu3  ;;  %vm16803_vm10 = vmmov %vm16795_vm0 }
 0x420   : > { %v6270_v53 = vmax.f32 %v6109_v23, %v6192_v59 }
 0x421   : > { %v6060_v50 = vadd.f32 %v6059_v46, %v5971_v40  ;;  %v14381_v40 = vld [vmem:[%s16675_s8] sm:$0xff] }
 0x422   : > { %v5973_v16 = vpop.f32.mrf.mxu2  ;;  %6403 = vmatpush.msrb.mxu3 %v14381_v40 }
 0x423   : > { %v6111_v52 = vmax.f32 %v6060_v50, 0.0 }
 0x424   : > { %v5884_v47 = vpop.f32.mrf.mxu1 }
 0x425   : > { %v6193_v29 = vrot.slane %v6111_v52, 1  ;;  %v5885_v48 = vadd.f32 %v14092_v38, %v5884_v47 }
 0x427   : > { %v6194_v8 = vsel %vm16789_vm8, %v6191_v56, %v6193_v29  ;;  %v5974_v43 = vadd.f32 %v5973_v16, %v5885_v48  ;;  %v6072_v20 = vpop.f32.mrf.mxu3  ;;  %v14393_v16 = vld [vmem:[%s16675_s8 + $0x18] sm:$0xff]  ;;  %vm16804_vm8 = vmmov %vm16802_vm1 }
 0x428   : > { %v6271_v27 = vmax.f32 %v6110_v0, %v6194_v8  ;;  %6496 = vmatpush.msra.mxu3 %v14393_v16 }
 0x429   : > { %v6063_v4 = vadd.f32 %v6062_v28, %v5974_v43 }
 0x42a   : > { %v6301_v39 = vmax.f32 %v6269_v5, %v6271_v27  ;;  %v5975_v24 = vpop.f32.mrf.mxu2  ;;  %6497 = vmatpush.msra.mxu3 %v14249_v62 }
 0x42b   : > { %v6112_v42 = vmax.f32 %v6063_v4, 0.0 }
 0x42c   : > { %6333 = vst.msk [vmem:[#allocation2 + $0x80] sm:$0xff] %vm16790_vm4, %v6301_v39  ;;  %v5886_v33 = vpop.f32.mrf.mxu1  ;;  %6498 = vmatpush.msra.mxu3 %v14346_v3  ;;  %vm16805_vm4 = vmmov %vm16795_vm0 }
 0x42d   : > { %v6195_v63 = vrot.slane %v6112_v42, 1  ;;  %v5887_v22 = vadd.f32 %v14092_v38, %v5886_v33 }
 0x42e   : > { %6499 = vmatpush.msra.mxu3 %v14381_v40 }
 0x42f   : > { %v6196_v30 = vsel %vm16791_vm5, %v6193_v29, %v6195_v63  ;;  %v5976_v51 = vadd.f32 %v5975_v24, %v5887_v22  ;;  %v6074_v28 = vpop.f32.mrf.mxu3  ;;  %vm16806_vm5 = vmmov %vm16795_vm0 }
 0x430   : > { %v6272_v31 = vmax.f32 %v6111_v52, %v6196_v30 }
 0x431   : > { %v6065_v44 = vadd.f32 %v6064_v61, %v5976_v51 }
 0x432   : > { %v6302_v17 = vmax.f32 %v6270_v53, %v6272_v31  ;;  %v5978_v6 = vpop.f32.mrf.mxu2 }
 0x433   : > { %v6113_v13 = vmax.f32 %v6065_v44, 0.0 }
 0x434   : > { %6334 = vst.msk [vmem:[#allocation2 + $0x88] sm:$0xff] %vm16792_vm3, %v6302_v17  ;;  %v5889_v7 = vpop.f32.mrf.mxu1  ;;  %vm16807_vm3 = vmmov %vm16795_vm0 }
 0x435   : > { %v6197_v60 = vrot.slane %v6113_v13, 1  ;;  %v5890_v2 = vadd.f32 %v14092_v38, %v5889_v7 }
 0x437   : > { %v6198_v54 = vsel %vm16793_vm2, %v6195_v63, %v6197_v60  ;;  %v5979_v34 = vadd.f32 %v5978_v6, %v5890_v2  ;;  %v6077_v61 = vpop.f32.mrf.mxu3  ;;  %vm16808_vm2 = vmmov %vm16795_vm0 }
 0x438   : > { %v6273_v11 = vmax.f32 %v6112_v42, %v6198_v54 }
 0x439   : > { %v6068_v12 = vadd.f32 %v6067_v25, %v5979_v34 }
 0x43a   : > { %v5980_v37 = vpop.f32.mrf.mxu2 }
 0x43b   : > { %v6114_v58 = vmax.f32 %v6068_v12, 0.0 }
 0x43c   : > { %v5891_v36 = vpop.f32.mrf.mxu1 }
 0x43d   : > { %v6199_v46 = vrot.slane %v6114_v58, 1  ;;  %v5892_v41 = vadd.f32 %v14092_v38, %v5891_v36 }
 0x43f   : > { %v6200_v55 = vsel %vm16794_vm9, %v6197_v60, %v6199_v46  ;;  %v5981_v35 = vadd.f32 %v5980_v37, %v5892_v41  ;;  %v6079_v33 = vpop.f32.mrf.mxu3  ;;  %vm16809_vm9 = vmmov %vm16802_vm1 }
 0x440   : > { %v6274_v57 = vmax.f32 %v6113_v13, %v6200_v55 }
 0x441   : > { %v6070_v23 = vadd.f32 %v6069_v9, %v5981_v35 }
 0x442   : > { %v5983_v45 = vpop.f32.mrf.mxu2 }
 0x443   : > { %v6115_v26 = vmax.f32 %v6070_v23, 0.0 }
 0x444   : > { %v5894_v10 = vpop.f32.mrf.mxu1 }
 0x445   : > { %v6201_v21 = vrot.slane %v6115_v26, 1  ;;  %v5895_v19 = vadd.f32 %v14092_v38, %v5894_v10  ;;  %v14386_v38 = vld [vmem:[%s16676_s4] ss:$0 sm:$0xff] }
 0x447   : > { %v6202_v5 = vsel %vm16795_vm0, %v6199_v46, %v6201_v21  ;;  %v5984_v32 = vadd.f32 %v5983_v45, %v5895_v19  ;;  %v6082_v60 = vpop.f32.mrf.mxu3  ;;  %vm16810_vm0 = vmmov %vm16802_vm1 }
 0x448   : > { %v6275_v18 = vmax.f32 %v6114_v58, %v6202_v5 }
 0x449   : > { %v6073_v0 = vadd.f32 %v6072_v20, %v5984_v32 }
 0x44a   : > { %v6305_v14 = vmax.f32 %v6273_v11, %v6275_v18  ;;  %v5985_v56 = vpop.f32.mrf.mxu2 }
 0x44b   : > { %v6116_v15 = vmax.f32 %v6073_v0, 0.0 }
 0x44c   : > { %6337 = vst.msk [vmem:[#allocation2 + $0xa0] sm:$0xff] %vm16796_vm14, %v6305_v14  ;;  %v5896_v59 = vpop.f32.mrf.mxu1  ;;  %vm16811_vm14 = vmmov %vm16810_vm0 }
 0x44d   : > { %v6203_v53 = vrot.slane %v6116_v15, 1  ;;  %v5897_v50 = vadd.f32 %v14386_v38, %v5896_v59 }
 0x44f   : > { %v6204_v52 = vsel %vm16797_vm11, %v6201_v21, %v6203_v53  ;;  %v5986_v47 = vadd.f32 %v5985_v56, %v5897_v50  ;;  %v6084_v35 = vpop.f32.mrf.mxu3  ;;  %vm16812_vm11 = vmmov %vm16810_vm0 }
 0x450   : > { %v6276_v29 = vmax.f32 %v6115_v26, %v6204_v52 }
 0x451   : > { %v6075_v48 = vadd.f32 %v6074_v28, %v5986_v47 }
 0x452   : > { %v6306_v8 = vmax.f32 %v6274_v57, %v6276_v29  ;;  %v5988_v43 = vpop.f32.mrf.mxu2 }
 0x453   : > { %v6117_v27 = vmax.f32 %v6075_v48, 0.0 }
 0x454   : > { %6338 = vst.msk [vmem:[#allocation2 + $0xa8] sm:$0xff] %vm16798_vm7, %v6306_v8  ;;  %v5899_v4 = vpop.f32.mrf.mxu1  ;;  %vm16813_vm7 = vmmov %vm16810_vm0 }
 0x455   : > { %v6205_v25 = vrot.slane %v6117_v27, 1  ;;  %v5900_v39 = vadd.f32 %v14386_v38, %v5899_v4 }
 0x457   : > { %v6206_v24 = vsel %vm16799_vm6, %v6203_v53, %v6205_v25  ;;  %v5989_v42 = vadd.f32 %v5988_v43, %v5900_v39  ;;  %v6087_v56 = vpop.f32.mrf.mxu3  ;;  %vm16814_vm6 = vmmov %vm16810_vm0 }
 0x458   : > { %v6277_v63 = vmax.f32 %v6116_v15, %v6206_v24  ;;  %v6351_v24 = vld [vmem:[#allocation2 + $0x20] ss:$2 sm:$0xff] }
 0x459   : > { %v6078_v22 = vadd.f32 %v6077_v61, %v5989_v42 }
 0x45a   : > { %v5990_v30 = vpop.f32.mrf.mxu2 }
 0x45b   : > { %v6118_v51 = vmax.f32 %v6078_v22, 0.0 }
 0x45c   : > { %v5901_v31 = vpop.f32.mrf.mxu1 }
 0x45d   : > { %v6207_v44 = vrot.slane %v6118_v51, 1  ;;  %v5902_v17 = vadd.f32 %v14386_v38, %v5901_v31 }
 0x45f   : > { %v6208_v6 = vsel %vm16800_vm13, %v6205_v25, %v6207_v44  ;;  %v5991_v13 = vadd.f32 %v5990_v30, %v5902_v17  ;;  %vm16815_vm13 = vmmov %vm16810_vm0 }
 0x460   : > { %v6278_v9 = vmax.f32 %v6117_v27, %v6208_v6  ;;  %v6089_v27 = vpop.f32.mrf.mxu3 }
 0x461   : > { %v6080_v7 = vadd.f32 %v6079_v33, %v5991_v13  ;;  %v6349_v33 = vld [vmem:[#allocation2] ss:$2 sm:$0xff] }
 0x462   : > { %v5993_v2 = vpop.f32.mrf.mxu2  ;;  %v6364_v17 = vsel %vm16810_vm0, %v6349_v33, 0.0 }
 0x463   : > { %v6119_v54 = vmax.f32 %v6080_v7, 0.0  ;;  %v6357_v7 = vld [vmem:[#allocation2 + $0x80] ss:$2 sm:$0xff] }
 0x464   : > { %v5904_v34 = vpop.f32.mrf.mxu1 }
 0x465   : > { %v6209_v11 = vrot.slane %v6119_v54, 1  ;;  %v5905_v12 = vadd.f32 %v14386_v38, %v5904_v34 }
 0x467   : > { %v6210_v37 = vsel %vm16801_vm12, %v6207_v44, %v6209_v11  ;;  %v5994_v58 = vadd.f32 %v5993_v2, %v5905_v12  ;;  %v6355_v44 = vld [vmem:[#allocation2 + $0x60] ss:$2 sm:$0xff]  ;;  %vm16816_vm12 = vmmov %vm16810_vm0 }
 0x468   : > { %v6279_v20 = vmax.f32 %v6118_v51, %v6210_v37  ;;  %v6365_v51 = vsel %vm16809_vm9, %v6351_v24, 0.0  ;;  %v6369_v2 = vsel %vm16812_vm11, %v6355_v44, 0.0  ;;  %vm16823_vm9 = vmmov %vm16810_vm0 }
 0x469   : > { %v6083_v36 = vadd.f32 %v6082_v60, %v5994_v58  ;;  %v6366_v60 = vadd.f32 %v6365_v51, %v6364_v17  ;;  %vm16825_vm11 = vmmov %vm16810_vm0 }
 0x46a   : > { %v6309_v46 = vmax.f32 %v6277_v63, %v6279_v20  ;;  %v5995_v41 = vpop.f32.mrf.mxu2  ;;  %v6353_v63 = vld [vmem:[#allocation2 + $0x40] ss:$2 sm:$0xff] }
 0x46b   : > { %v6120_v55 = vmax.f32 %v6083_v36, 0.0  ;;  %v6367_v6 = vsel %vm16811_vm14, %v6353_v63, 0.0  ;;  %vm16824_vm14 = vmmov %vm16810_vm0 }
 0x46c   : > { %6341 = vst.msk [vmem:[#allocation2 + $0xc0] sm:$0xff] %vm16802_vm1, %v6309_v46  ;;  %v5906_v57 = vpop.f32.mrf.mxu1  ;;  %v6368_v34 = vadd.f32 %v6367_v6, %v6366_v60  ;;  %vm16817_vm1 = vmmov %vm16810_vm0 }
 0x46d   : > { %v6211_v23 = vrot.slane %v6120_v55, 1  ;;  %v5907_v45 = vadd.f32 %v14386_v38, %v5906_v57 }
 0x46e   : > { %v6370_v12 = vadd.f32 %v6369_v2, %v6368_v34 }
 0x46f   : > { %v6212_v26 = vsel %vm16803_vm10, %v6209_v11, %v6211_v23  ;;  %v5996_v10 = vadd.f32 %v5995_v41, %v5907_v45  ;;  %vm16818_vm10 = vmmov %vm16810_vm0 }
 0x470   : > { %v6280_v21 = vmax.f32 %v6119_v54, %v6212_v26  ;;  %v6359_v54 = vld [vmem:[#allocation2 + $0xa0] ss:$2 sm:$0xff] }
 0x471   : > { %v6085_v19 = vadd.f32 %v6084_v35, %v5996_v10  ;;  %v6373_v37 = vsel %vm16816_vm12, %v6359_v54, 0.0 }
 0x472   : > { %v6310_v28 = vmax.f32 %v6278_v9, %v6280_v21  ;;  %v5998_v32 = vpop.f32.mrf.mxu2 }
 0x473   : > { %v6121_v5 = vmax.f32 %v6085_v19, 0.0  ;;  %v10731_v19 = vmov 512.0  }
 0x474   : > { %6342 = vst.msk [vmem:[#allocation2 + $0xc8] sm:$0xff] %vm16804_vm8, %v6310_v28  ;;  %v5909_v18 = vpop.f32.mrf.mxu1  ;;  %vm16819_vm8 = vmmov %vm16810_vm0  ;;  %10502 = vrcp.f32 %v10731_v19 }
 0x475   : > { %v6213_v0 = vrot.slane %v6121_v5, 1  ;;  %v5910_v14 = vadd.f32 %v14386_v38, %v5909_v18 }
 0x477   : > { %v6214_v15 = vsel %vm16805_vm4, %v6211_v23, %v6213_v0  ;;  %v5999_v59 = vadd.f32 %v5998_v32, %v5910_v14 }
 0x478   : > { %v6281_v53 = vmax.f32 %v6120_v55, %v6214_v15 }
 0x479   : > { %v6088_v50 = vadd.f32 %v6087_v56, %v5999_v59 }
 0x47a   : > { %v6000_v48 = vpop.f32.mrf.mxu2  ;;  %v10503_v28 = vpop.eup %10502 }
 0x47b   : > { %v6122_v61 = vmax.f32 %v6088_v50, 0.0  ;;  %v6361_v11 = vld [vmem:[#allocation2 + $0xc0] ss:$2 sm:$0xff]  ;;  %vm6413_vm4 = vweird.f32 %v10503_v28 }
 0x47c   : > { %v5911_v52 = vpop.f32.mrf.mxu1  ;;  %v6375_v20 = vsel %vm16817_vm1, %v6361_v11, 0.0 }
 0x47d   : > { %v6215_v47 = vrot.slane %v6122_v61, 1  ;;  %v5912_v29 = vadd.f32 %v14386_v38, %v5911_v52 }
 0x47f   : > { %v6216_v8 = vsel %vm16806_vm5, %v6213_v0, %v6215_v47  ;;  %v6001_v43 = vadd.f32 %v6000_v48, %v5912_v29  ;;  %vm16820_vm5 = vcmask 31744  }
 0x480   : > { %v6282_v4 = vmax.f32 %v6121_v5, %v6216_v8  ;;  %v6409_v5 = vmul.f32 512.0, %v10503_v28 }
 0x481   : > { %v6090_v25 = vadd.f32 %v6089_v27, %v6001_v43 }
 0x482   : > { %v6410_v32 = vsub.f32 1.0, %v6409_v5 }
 0x483   : > { %v6123_v39 = vmax.f32 %v6090_v25, 0.0 }
 0x484   : > { %v6411_v18 = vmul.f32 %v10503_v28, %v6410_v32  ;;  %v9133_v32 = vld [vmem:[%s16122_s3 + $0x118] sm:$0xff] }
 0x485   : > { %v6217_v42 = vrot.slane %v6123_v39, 1 }
 0x486   : > { %v6412_v0 = vadd.f32 %v10503_v28, %v6411_v18  ;;  %v9127_v18 = vld [vmem:[%s16122_s3 + $0xe8] sm:$0xff] }
 0x487   : > { %v6218_v22 = vsel %vm16807_vm3, %v6215_v47, %v6217_v42  ;;  %v6252_v30 = vsel %vm16808_vm2, %v6217_v42, %v14141_v1  ;;  %v6371_v1 = vsel %vm16815_vm13, %v6357_v7, 0.0  ;;  %vm16821_vm3 = vmmov %vm16810_vm0 }
 0x488   : > { %v6283_v38 = vmax.f32 %v6122_v61, %v6218_v22  ;;  %v6284_v31 = vmax.f32 %v6123_v39, %v6252_v30  ;;  %v6372_v58 = vadd.f32 %v6371_v1, %v6370_v12  ;;  %v6414_v14 = vsel %vm6413_vm4, %v10503_v28, %v6412_v0  ;;  %vm16822_vm2 = vmmov %vm16810_vm0  ;;  %v9131_v12 = vld [vmem:[%s16122_s3 + $0x108] sm:$0xff]  ;;  %v9132_v0 = vld [vmem:[%s16122_s3 + $0x110] sm:$0xff] }
 0x489   : > { %vm16828_vm13 = vmmov %vm16810_vm0  ;;  %7413 = vmatpush.bf16.msrb.mxu2 %v9131_v12 }
 0x48a   : > { %v6313_v13 = vmax.f32 %v6281_v53, %v6283_v38  ;;  %v6314_v9 = vmax.f32 %v6282_v4, %v6284_v31  ;;  %v6374_v36 = vadd.f32 %v6373_v37, %v6372_v58  ;;  %v9123_v37 = vld [vmem:[%s16122_s3 + $0xc8] sm:$0xff]  ;;  %v9130_v58 = vld [vmem:[%s16122_s3 + $0x100] sm:$0xff] }
 0x48b   : > { %7384 = vmatpush.bf16.msrb.mxu1 %v9123_v37 }
 0x48c   : > { %6345 = vst.msk [vmem:[#allocation2 + $0xe0] sm:$0xff] %vm16813_vm7, %v6313_v13  ;;  %v6376_v41 = vadd.f32 %v6375_v20, %v6374_v36  ;;  %vm16826_vm7 = vmmov %vm16810_vm0  ;;  %v9122_v20 = vld [vmem:[%s16122_s3 + $0xc0] sm:$0xff]  ;;  %v9129_v36 = vld [vmem:[%s16122_s3 + $0xf8] sm:$0xff] }
 0x48d   : > { %6346 = vst.msk [vmem:[#allocation2 + $0xe8] sm:$0xff] %vm16814_vm6, %v6314_v9  ;;  %vm16827_vm6 = vmmov %vm16810_vm0  ;;  %7414 = vmatpush.bf16.msrb.mxu2 %v9130_v58 }
 0x48f   : > { %7385 = vmatpush.bf16.msrb.mxu1 %v9122_v20 }
 0x491   : > { %7415 = vmatpush.bf16.msrb.mxu2 %v9129_v36 }
 0x494   : > { %v6363_v46 = vld [vmem:[#allocation2 + $0xe0] ss:$2 sm:$0xff] }
 0x495   : > { %v6377_v55 = vsel %vm16818_vm10, %v6363_v46, 0.0 }
 0x496   : > { %v6378_v35 = vadd.f32 %v6377_v55, %v6376_v41 }
 0x498   : > { %v6379_v57 = vrot.slane %v6378_v35, 4 }
 0x49a   : > { %v6380_v23 = vadd.f32 %v6379_v57, %v6378_v35  ;;  %v9128_v35 = vld [vmem:[%s16122_s3 + $0xf0] sm:$0xff] }
 0x49b   : > { %v9120_v57 = vld [vmem:[%s16122_s3 + $0xb0] sm:$0xff]  ;;  %7416 = vmatpush.bf16.msrb.mxu2 %v9128_v35  ;;  %v16856_v35 = vld [vmem:[#allocation29_spill] sm:$0xff] }
 0x49c   : > { %v6381_v45 = vrot.slane %v6380_v23, 2 }
 0x49e   : > { %v6382_v26 = vadd.f32 %v6381_v45, %v6380_v23 }
 0x49f   : > { %7417 = vmatpush.bf16.msrb.mxu2 %v9127_v18 }
 0x4a0   : > { %v6383_v10 = vrot.slane %v6382_v26, 1 }
 0x4a2   : > { %v6384_v21 = vadd.f32 %v6383_v10, %v6382_v26 }
 0x4a4   : > { %8840 = vmatmul.msk.f32.vlgmr.msrb.gmra.mxu3 %vm16819_vm8, %v6384_v21  ;;  %vm16829_vm8 = vmmov %vm16820_vm5 }
 0x4a5   : > { %7448 = vmatpush.bf16.msrb.mxu3 %v9133_v32 }
 0x4a9   : > { %7449 = vmatpush.bf16.msrb.mxu3 %v9132_v0 }
 0x527   : > { %v6405_v56 = vpop.f32.mrf.mxu3 }
 0x528   : > { %v6415_v15 = vmul.f32 %v6414_v14, %v6405_v56 }
 0x52a   : > { %8842 = vmatmul.msk.f32.vlgmr.msrb.gmra.mxu0 %vm16820_vm5, %v6415_v15  ;;  %v16831_v15 = vld [vmem:[#allocation22_spill] sm:$0xff] }
 0x52b   : > { %7574 = vmatpush.msrb.mxu0 %v14393_v16 }
 0x52d   : > { %7575 = vmatpush.msrb.mxu0 %v14249_v62 }
 0x52f   : > { %7576 = vmatpush.msrb.mxu0 %v14346_v3 }
 0x531   : > { %7577 = vmatpush.msrb.mxu0 %v14381_v40 }
 0x5a7   : > { %v6440_v59 = vpop.f32.mrf.mxu0 }
 0x5a8   : > { %v6443_v53 = vperm.slane %v6440_v59, 0  ;;  %v6622_v59 = vand.u32 7, %v16831_v15 }
 0x5aa   : > { %v14434_v50 = vsub.f32 %v6349_v33, %v6443_v53  ;;  %v14436_v61 = vsub.f32 %v6351_v24, %v6443_v53  ;;  %v14438_v52 = vsub.f32 %v6353_v63, %v6443_v53  ;;  %v14440_v47 = vsub.f32 %v6355_v44, %v6443_v53 }
 0x5ab   : > { %v14442_v29 = vsub.f32 %v6357_v7, %v6443_v53  ;;  %v14450_v40 = vsub.f32 %v6359_v54, %v6443_v53  ;;  %v14456_v4 = vsub.f32 %v6361_v11, %v6443_v53  ;;  %v14461_v42 = vsub.f32 %v6363_v46, %v6443_v53  ;;  %v9121_v46 = vld [vmem:[%s16122_s3 + $0xb8] sm:$0xff] }
 0x5ac   : > { %v6452_v16 = vmul.f32 %v14434_v50, %v14434_v50  ;;  %v6453_v62 = vmul.f32 %v14436_v61, %v14436_v61  ;;  %v6454_v3 = vmul.f32 %v14438_v52, %v14438_v52  ;;  %v6455_v48 = vmul.f32 %v14440_v47, %v14440_v47  ;;  %7386 = vmatpush.bf16.msrb.mxu1 %v9121_v46  ;;  %v9118_v46 = vld [vmem:[%s16122_s3 + $0xa0] sm:$0xff] }
 0x5ad   : > { %v6456_v25 = vmul.f32 %v14442_v29, %v14442_v29  ;;  %v6457_v33 = vmul.f32 %v14450_v40, %v14450_v40  ;;  %v6458_v30 = vmul.f32 %v14456_v4, %v14456_v4  ;;  %v6459_v31 = vmul.f32 %v14461_v42, %v14461_v42 }
 0x5ae   : > { %v6460_v8 = vsel %vm16821_vm3, %v6452_v16, 0.0  ;;  %v6461_v43 = vsel %vm16822_vm2, %v6453_v62, 0.0  ;;  %v6463_v39 = vsel %vm16823_vm9, %v6454_v3, 0.0  ;;  %v6465_v63 = vsel %vm16810_vm0, %v6455_v48, 0.0  ;;  %vm16840_vm9 = vmmov %vm16810_vm0 }
 0x5af   : > { %v6462_v27 = vadd.f32 %v6461_v43, %v6460_v8  ;;  %v6467_v51 = vsel %vm16824_vm14, %v6456_v25, 0.0  ;;  %v6469_v44 = vsel %vm16825_vm11, %v6457_v33, 0.0  ;;  %v6471_v6 = vsel %vm16826_vm7, %v6458_v30, 0.0  ;;  %vm16843_vm7 = vmmov %vm16810_vm0 }
 0x5b0   : > { %v6473_v9 = vsel %vm16827_vm6, %v6459_v31, 0.0  ;;  %7387 = vmatpush.bf16.msrb.mxu1 %v9120_v57  ;;  %vm14521_vm5 = vcmp.eq.s32.totalorder %v6622_v59, 7  ;;  %vm14550_vm2 = vcmp.eq.s32.totalorder %v6622_v59, 0  ;;  %vm16841_vm14 = vcmask 1046528  }
 0x5b1   : > { %v6464_v24 = vadd.f32 %v6463_v39, %v6462_v27  ;;  %vm16842_vm11 = vmmov %vm16841_vm14  ;;  %vm16844_vm6 = vcmask 1040384   ;;  %v6636_v57 = vand.u32 7, %v16856_v35 }
 0x5b3   : > { %v6466_v22 = vadd.f32 %v6465_v63, %v6464_v24 }
 0x5b5   : > { %v6468_v38 = vadd.f32 %v6467_v51, %v6466_v22 }
 0x5b7   : > { %v6470_v17 = vadd.f32 %v6469_v44, %v6468_v38  ;;  %v9126_v44 = vld [vmem:[%s16122_s3 + $0xe0] sm:$0xff] }
 0x5b8   : > { %7418 = vmatpush.bf16.msrb.mxu2 %v9126_v44 }
 0x5b9   : > { %v6472_v13 = vadd.f32 %v6471_v6, %v6470_v17 }
 0x5bb   : > { %v6474_v7 = vadd.f32 %v6473_v9, %v6472_v13 }
 0x5bd   : > { %v6475_v60 = vrot.slane %v6474_v7, 4 }
 0x5bf   : > { %v6476_v2 = vadd.f32 %v6475_v60, %v6474_v7 }
 0x5c1   : > { %v6477_v54 = vrot.slane %v6476_v2, 2 }
 0x5c3   : > { %v6478_v34 = vadd.f32 %v6477_v54, %v6476_v2 }
 0x5c5   : > { %v6479_v1 = vrot.slane %v6478_v34, 1 }
 0x5c7   : > { %v6480_v11 = vadd.f32 %v6479_v1, %v6478_v34 }
 0x5c9   : > { %8843 = vmatmul.msk.f32.vlgmr.msra.gmra.mxu3 %vm16828_vm13, %v6480_v11  ;;  %vm16845_vm13 = vmmov %vm16844_vm6 }
 0x64c   : > { %v6501_v41 = vpop.f32.mrf.mxu3 }
 0x64d   : > { %v6504_v55 = vmul.f32 %v6501_v41, %v6414_v14  ;;  %v9119_v14 = vld [vmem:[%s16122_s3 + $0xa8] sm:$0xff] }
 0x64e   : > { %7388 = vmatpush.bf16.msrb.mxu1 %v9119_v14  ;;  %v16855_v41 = vld [vmem:[#allocation30_spill] sm:$0xff] }
 0x64f   : > { %v6505_v23 = vadd.f32 1e-10, %v6504_v55  ;;  %v6629_v55 = vand.u32 7, %v16855_v41 }
 0x651   : > { %10504 = vrsqrt.f32 %v6505_v23  ;;  %vm6512_vm1 = vweird.f32 %v6505_v23 }
 0x652   : > { %7389 = vmatpush.bf16.msrb.mxu1 %v9118_v46 }
 0x657   : > { %v10505_v45 = vpop.eup %10504 }
 0x658   : > { %v6507_v26 = vmul.f32 %v10505_v45, %v6505_v23  ;;  %vm6513_vm12 = vweird.f32 %v10505_v45 }
 0x659   : > { %vm6514_vm10 = vmor %vm6512_vm1, %vm6513_vm12 }
 0x65a   : > { %v6508_v10 = vmul.f32 %v10505_v45, %v6507_v26  ;;  %vm16846_vm12 = vmmov %vm16810_vm0 }
 0x65b   : > { %vm16847_vm1 = vmmov %vm16842_vm11 }
 0x65c   : > { %v6509_v21 = vmul.f32 0.5, %v6508_v10 }
 0x65e   : > { %v6510_v19 = vsub.f32 1.5, %v6509_v21 }
 0x660   : > { %v6511_v28 = vmul.f32 %v10505_v45, %v6510_v19 }
 0x662   : > { %v6515_v5 = vsel %vm6514_vm10, %v10505_v45, %v6511_v28  ;;  %vm16848_vm10 = vmmov %vm16844_vm6 }
 0x663   : > { %8845 = vmatmul.msk.f32.vlgmr.msra.gmra.mxu0 %vm16829_vm8, %v6515_v5  ;;  %vm16849_vm8 = vmmov %vm16810_vm0 }
 0x664   : > { %8960 = vmatpush.msk.msra.mxu0 %vm6419_vm15, %v14355_v49  ;;  %v16830_v49 = vld [vmem:[#allocation21_spill] sm:$0xff] }
 0x665   : > { %v6615_v56 = vand.u32 7, %v16830_v49 }
 0x667   : > { %vm14517_vm4 = vcmp.eq.s32.totalorder %v6615_v56, 7  ;;  %vm14525_vm3 = vcmp.eq.s32.totalorder %v6615_v56, 0 }
 0x6e0   : > { %v6536_v53 = vpop.f32.mrf.mxu0 }
 0x6e1   : > { %v6539_v16 = vperm.slane %v6536_v53, 0 }
 0x6e3   : > { %v14530_v8 = vmul.f32 %v6539_v16, %v14434_v50  ;;  %v14533_v43 = vmul.f32 %v6539_v16, %v14436_v61  ;;  %v14536_v27 = vmul.f32 %v6539_v16, %v14438_v52  ;;  %v14539_v25 = vmul.f32 %v6539_v16, %v14440_v47 }
 0x6e4   : > { %v14542_v39 = vmul.f32 %v6539_v16, %v14442_v29  ;;  %v14545_v24 = vmul.f32 %v6539_v16, %v14450_v40  ;;  %v14548_v33 = vmul.f32 %v6539_v16, %v14461_v42  ;;  %v14580_v30 = vmul.f32 %v6539_v16, %v14456_v4 }
 0x6e5   : > { %v14556_v61 = vpack.i.bf16 %v14536_v27, %v14533_v43  ;;  %v14559_v52 = vrot.slane %v14533_v43, 1  ;;  %v6809_v47 = vrot.slane %v14536_v27, 1  ;;  %v6811_v29 = vrot.slane %v14539_v25, 1  ;;  %6548 = vst.msk [vmem:[%s14563_s27] sm:$0xff] %vm16840_vm9, %v14530_v8  ;;  %vm16850_vm9 = vmmov %vm16810_vm0 }
 0x6e6   : > { %v6760_v40 = vrot.slane %v14533_v43, 7  ;;  %v6762_v42 = vrot.slane %v14536_v27, 7  ;;  %v14571_v63 = vrot.slane %v14548_v33, 7  ;;  %v14574_v22 = vrot.slane %v14530_v8, 1  ;;  %6549 = vst.msk [vmem:[%s14563_s27 + $0x8] sm:$0xff] %vm16810_vm0, %v14533_v43  ;;  %vm16851_vm0 = vmmov %vm16844_vm6 }
 0x6e7   : > { %10349 = vrot.lane.b32.xlu1 %v14556_v61, %s16494_s29  ;;  %v14586_v51 = vsel %vm16841_vm14, %v14559_v52, %v6809_v47  ;;  %v14589_v38 = vsel %vm16842_vm11, %v6809_v47, %v6811_v29  ;;  %v14592_v31 = vrot.slane %v14530_v8, 7  ;;  %6550 = vst.msk [vmem:[%s14563_s27 + $0x10] sm:$0xff] %vm16843_vm7, %v14536_v27  ;;  %vm16853_vm14 = vmmov %vm16843_vm7  ;;  %v6813_v26 = vrot.slane %v14542_v39, 1 }
 0x6e8   : > { %v7017_v4 = vsel %vm14517_vm4, %v14533_v43, %v14586_v51  ;;  %v7018_v17 = vsel %vm14521_vm5, %v14536_v27, %v14589_v38  ;;  %v14609_v6 = vsel %vm16844_vm6, %v6760_v40, %v6762_v42  ;;  %v6983_v13 = vsel %vm16845_vm13, %v14571_v63, %v6760_v40  ;;  %6551 = vst.msk [vmem:[%s14563_s27 + $0x18] sm:$0xff] %vm16846_vm12, %v14539_v25  ;;  %vm16854_vm11 = vmmov %vm16843_vm7 }
 0x6e9   : > { %v7251_v9 = vpack.c.bf16 %v7018_v17, %v7017_v4  ;;  %v6984_v7 = vsel %vm14525_vm3, %v14533_v43, %v6983_v13  ;;  %v6985_v60 = vsel %vm14550_vm2, %v14536_v27, %v14609_v6  ;;  %v6808_v2 = vsel %vm16847_vm1, %v14574_v22, %v14559_v52  ;;  %6552 = vst.msk [vmem:[%s14563_s27 + $0x20] sm:$0xff] %vm16849_vm8, %v14542_v39  ;;  %vm16862_vm13 = vmmov %vm16847_vm1  ;;  %v16870_v4 = vld [vmem:[#allocation37_spill] sm:$0xff] }
 0x6ea   : > { %v10363_v54 = vpack.i.bf16 %v6985_v60, %v6984_v7  ;;  %v6919_v34 = vsel %vm14517_vm4, %v14530_v8, %v6808_v2  ;;  %v6920_v1 = vsel %vm14521_vm5, %v14533_v43, %v14586_v51  ;;  %v14635_v11 = vsel %vm16848_vm10, %v14592_v31, %v6760_v40  ;;  %6553 = vst.msk [vmem:[%s14563_s27 + $0x28] sm:$0xff] %vm16853_vm14, %v14545_v24  ;;  %vm16867_vm10 = vmmov %vm16851_vm0  ;;  %v16871_v7 = vld [vmem:[#allocation31_spill] sm:$0xff] }
 0x6eb   : > { %8955 = vmatmul.msk.bf16.vlgmr.msrb.gmra.mxu3 %vm16850_vm9, %v7251_v9  ;;  %v10353_v12 = vpack.i.bf16 %v6920_v1, %v6919_v34  ;;  %v6885_v37 = vsel %vm16851_vm0, %v14571_v63, %v14592_v31  ;;  %v6887_v58 = vsel %vm14550_vm2, %v14533_v43, %v14635_v11  ;;  %6554 = vst.msk [vmem:[%s14563_s27 + $0x30] sm:$0xff] %vm16854_vm11, %v14580_v30  ;;  %v6815_v10 = vrot.slane %v14545_v24, 1  ;;  %vm16868_vm8 = vmmov %vm16851_vm0 }
 0x6ec   : > { %10364 = vrot.lane.b32.xlu0 %v10363_v54, %s16852_s16  ;;  %v6886_v20 = vsel %vm14525_vm3, %v14530_v8, %v6885_v37  ;;  %6555 = vst.msk [vmem:[%s14563_s27 + $0x38] sm:$0xff] %vm16843_vm7, %v14548_v33  ;;  %v6845_v23 = vsel %vm14517_vm4, %v14530_v8, %v14574_v22  ;;  %v6846_v45 = vsel %vm14521_vm5, %v14530_v8, %v6808_v2  ;;  %v6764_v21 = vrot.slane %v14539_v25, 7  ;;  %vm16861_vm5 = vmmov %vm16847_vm1  ;;  %v16872_v2 = vld [vmem:[#allocation40_spill] sm:$0xff] }
 0x6ed   : > { %10354 = vrot.lane.b32.xlu2 %v10353_v12, %s15876_s20  ;;  %v10373_v36 = vpack.i.bf16 %v6887_v58, %v6886_v20  ;;  %v6766_v19 = vrot.slane %v14542_v39, 7  ;;  %v10368_v28 = vpack.i.bf16 %v6846_v45, %v6845_v23  ;;  %vm14679_vm6 = vcmp.eq.s32.totalorder %v6629_v55, 7  ;;  %vm16873_vm9 = vmmov %vm16843_vm7 }
 0x6ee   : > { %v10358_v32 = vpack.i.bf16 %v14530_v8, %v14530_v8  ;;  %vm14685_vm4 = vcmp.eq.s32.totalorder %v6636_v57, 7  ;;  %v14690_v0 = vsel %vm16861_vm5, %v6811_v29, %v6813_v26  ;;  %v14695_v14 = vsel %vm16862_vm13, %v6813_v26, %v6815_v10  ;;  %vm16882_vm5 = vmmov %vm16868_vm8 }
 0x6ef   : > { %10374 = vrot.lane.b32.xlu1 %v10373_v36, %s16494_s29  ;;  %vm14698_vm12 = vcmp.eq.s32.totalorder %v6629_v55, 0  ;;  %vm14702_vm1 = vcmp.eq.s32.totalorder %v6636_v57, 0  ;;  %v14707_v53 = vsel %vm16867_vm10, %v6762_v42, %v6764_v21  ;;  %v14710_v16 = vsel %vm16868_vm8, %v6764_v21, %v6766_v19  ;;  %v16869_v42 = vld [vmem:[#allocation28_spill] sm:$0xff]  ;;  %vm16883_vm13 = vmmov %vm16882_vm5 }
 0x6f0   : > { %v14715_v62 = vpack.i.bf16 %v14542_v39, %v14539_v25  ;;  %v7019_v3 = vsel %vm14679_vm6, %v14539_v25, %v14690_v0  ;;  %v7020_v47 = vsel %vm14685_vm4, %v14542_v39, %v14695_v14  ;;  %v6986_v29 = vsel %vm14698_vm12, %v14539_v25, %v14707_v53  ;;  %vm16884_vm10 = vmmov %vm16882_vm5 }
 0x6f1   : > { %v6987_v40 = vsel %vm14702_vm1, %v14542_v39, %v14710_v16  ;;  %v6643_v44 = vand.u32 7, %v16869_v42  ;;  %v6650_v17 = vand.u32 7, %v16870_v4  ;;  %v6921_v13 = vsel %vm14679_vm6, %v14536_v27, %v14589_v38 }
 0x6f2   : > { %v6922_v9 = vsel %vm14685_vm4, %v14539_v25, %v14690_v0  ;;  %v6657_v60 = vand.u32 7, %v16871_v7  ;;  %v6664_v54 = vand.u32 7, %v16872_v2  ;;  %v7254_v34 = vpack.c.bf16 %v7020_v47, %v7019_v3 }
 0x6f3   : > { %v14748_v1 = vrot.slane %v14580_v30, 7  ;;  %v6768_v12 = vrot.slane %v14545_v24, 7  ;;  %v10393_v37 = vpack.i.bf16 %v6987_v40, %v6986_v29  ;;  %v6888_v58 = vsel %vm14698_vm12, %v14536_v27, %v14609_v6 }
 0x6f4   : > { %10369 = vrot.lane.b32.xlu0 %v10368_v28, %s16852_s16  ;;  %v6889_v20 = vsel %vm14702_vm1, %v14539_v25, %v14707_v53  ;;  %v10383_v36 = vpack.i.bf16 %v6922_v9, %v6921_v13  ;;  %vm14761_vm0 = vcmp.eq.s32.totalorder %v6643_v44, 0  ;;  %vm14765_vm14 = vcmp.eq.s32.totalorder %v6650_v17, 0 }
 0x6f5   : > { %10359 = vrot.lane.b32.xlu2 %v10358_v32, %s15876_s20  ;;  %vm14771_vm11 = vcmp.eq.s32.totalorder %v6657_v60, 0  ;;  %vm14777_vm7 = vcmp.eq.s32.totalorder %v6664_v54, 0  ;;  %v10403_v57 = vpack.i.bf16 %v6889_v20, %v6888_v58  ;;  %v6847_v23 = vsel %vm14679_vm6, %v14533_v43, %v14586_v51 }
 0x6f6   : > { %v14787_v45 = vsel %vm16882_vm5, %v6766_v19, %v6768_v12  ;;  %v14791_v26 = vsel %vm16883_vm13, %v6768_v12, %v14748_v1  ;;  %v6848_v21 = vsel %vm14685_vm4, %v14536_v27, %v14589_v38  ;;  %v14798_v28 = vrot.slane %v14580_v30, 1  ;;  %v9117_v12 = vld [vmem:[%s16122_s3 + $0x98] sm:$0xff] }
 0x6f7   : > { %10379 = vrot.lane.b32.xlu1 %v14715_v62, %s16494_s29  ;;  %v14803_v5 = vsel %vm16884_vm10, %v14748_v1, %v14592_v31  ;;  %v6797_v51 = vsel %vm14550_vm2, %v14530_v8, %v14592_v31  ;;  %v6907_v19 = vrot.slane %v14548_v33, 1  ;;  %v6799_v32 = vsel %vm14702_vm1, %v14536_v27, %v14609_v6  ;;  %7390 = vmatpush.bf16.msrb.mxu1 %v9117_v12 }
 0x6f8   : > { %v6796_v38 = vsel %vm14525_vm3, %v14530_v8, %v14803_v5  ;;  %v6798_v18 = vsel %vm14698_vm12, %v14533_v43, %v14635_v11  ;;  %v6800_v3 = vsel %vm14761_vm0, %v14539_v25, %v14707_v53  ;;  %v6801_v47 = vsel %vm14765_vm14, %v14542_v39, %v14710_v16 }
 0x6f9   : > { %v6802_v29 = vsel %vm14771_vm11, %v14545_v24, %v14787_v45  ;;  %v6803_v40 = vsel %vm14777_vm7, %v14580_v30, %v14791_v26  ;;  %v10398_v42 = vpack.i.bf16 %v6848_v21, %v6847_v23  ;;  %vm14839_vm6 = vcmp.eq.s32.totalorder %v6643_v44, 7 }
 0x6fa   : > { %vm14843_vm4 = vcmp.eq.s32.totalorder %v6650_v17, 7  ;;  %vm16889_vm8 = vcmask 1046528   ;;  %v10408_v44 = vpack.i.bf16 %v14580_v30, %v14545_v24  ;;  %v9125_v17 = vld [vmem:[%s16122_s3 + $0xd8] sm:$0xff]  ;;  %v6989_v58 = vsel %vm14765_vm14, %v14580_v30, %v14791_v26 }
 0x6fb   : > { %8956 = vmatmul.msk.bf16.gmra.mxu3 %vm16873_vm9, %v7254_v34  ;;  %v6818_v9 = vsel %vm16889_vm8, %v6815_v10, %v14798_v28  ;;  %vm16890_vm9 = vmmov %vm16889_vm8  ;;  %7419 = vmatpush.bf16.msrb.mxu2 %v9125_v17  ;;  %v6923_v20 = vsel %vm14839_vm6, %v14542_v39, %v14695_v14  ;;  %v6890_v21 = vsel %vm14761_vm0, %v14542_v39, %v14710_v16  ;;  %vm16891_vm5 = vcmask 261120  }
 0x6fc   : > { %10394 = vrot.lane.b32.xlu0 %v10393_v37, %s16852_s16  ;;  %v6908_v34 = vsel %vm16890_vm9, %v14798_v28, %v6907_v19  ;;  %v7021_v10 = vsel %vm14839_vm6, %v14545_v24, %v6818_v9  ;;  %vm14908_vm13 = vcmp.eq.s32.totalorder %v6657_v60, 7  ;;  %vm14914_vm10 = vcmp.eq.s32.totalorder %v6664_v54, 7  ;;  %vm16899_vm9 = vmmov %vm16891_vm5 }
 0x6fd   : > { %10384 = vrot.lane.b32.xlu2 %v10383_v36, %s15876_s20  ;;  %v7022_v37 = vsel %vm14843_vm4, %v14580_v30, %v6908_v34  ;;  %v6924_v36 = vsel %vm14843_vm4, %v14545_v24, %v6818_v9  ;;  %v10438_v7 = vpack.i.bf16 %v14548_v33, %v14548_v33  ;;  %v7023_v2 = vsel %vm14908_vm13, %v14548_v33, %v6907_v19 }
 0x6fe   : > { %v10413_v17 = vpack.i.bf16 %v6924_v36, %v6923_v20  ;;  %v6991_v54 = vsel %vm14777_vm7, %v14548_v33, %v14571_v63  ;;  %v6892_v36 = vsel %vm14771_vm11, %v14580_v30, %v14791_v26 }
 0x6ff   : > { %10404 = vrot.lane.b32.xlu1 %v10403_v57, %s16494_s29  ;;  %v7257_v57 = vpack.c.bf16 %v7022_v37, %v7021_v10  ;;  %v6849_v10 = vsel %vm14839_vm6, %v14539_v25, %v14690_v0  ;;  %v6850_v37 = vsel %vm14843_vm4, %v14542_v39, %v14695_v14  ;;  %vm16896_vm6 = vmmov %vm16889_vm8  ;;  %vm16897_vm4 = vcmask 1040384  }
 0x700   : > { %v7016_v0 = vsel %vm16896_vm6, %v6907_v19, %v14559_v52  ;;  %v6876_v14 = vsel %vm16897_vm4, %v14748_v1, %v14571_v63  ;;  %vm16898_vm8 = vmmov %vm16896_vm6  ;;  %v6925_v1 = vsel %vm14908_vm13, %v14580_v30, %v6908_v34 }
 0x701   : > { %v6918_v60 = vsel %vm16898_vm8, %v6907_v19, %v14574_v22  ;;  %v7024_v52 = vsel %vm14914_vm10, %v14548_v33, %v7016_v0  ;;  %vm16905_vm8 = vcmask 785408  }
 0x702   : > { %v6926_v19 = vsel %vm14914_vm10, %v14548_v33, %v6918_v60  ;;  %v7260_v4 = vpack.c.bf16 %v7024_v52, %v7023_v2 }
 0x703   : > { %v10443_v63 = vpack.i.bf16 %v6926_v19, %v6925_v1 }
 0x704   : > { %10399 = vrot.lane.b32.xlu0 %v10398_v42, %s16852_s16  ;;  %v6891_v42 = vsel %vm14765_vm14, %v14545_v24, %v14787_v45 }
 0x705   : > { %10389 = vrot.lane.b32.xlu2 %v14556_v61, %s15876_s20  ;;  %v6988_v61 = vsel %vm14761_vm0, %v14545_v24, %v14787_v45  ;;  %v10433_v12 = vpack.i.bf16 %v6891_v42, %v6890_v21  ;;  %v6851_v21 = vsel %vm14908_vm13, %v14545_v24, %v6818_v9  ;;  %vm16901_vm13 = vmmov %vm16899_vm9 }
 0x706   : > { %v10423_v23 = vpack.i.bf16 %v6989_v58, %v6988_v61  ;;  %v10428_v61 = vpack.i.bf16 %v6850_v37, %v6849_v10 }
 0x707   : > { %10409 = vrot.lane.b32.xlu1 %v10408_v44, %s16494_s29 }
 0x70b   : > { %8957 = vmatmul.msk.bf16.gmra.mxu3 %vm16891_vm5, %v7257_v57  ;;  %v6893_v57 = vsel %vm14777_vm7, %v14548_v33, %v6876_v14  ;;  %vm16900_vm5 = vmmov %vm16896_vm6  ;;  %vm16903_vm6 = vcmask 523264  }
 0x70c   : > { %10424 = vrot.lane.b32.xlu0 %v10423_v23, %s16852_s16  ;;  %v6828_v34 = vsel %vm16900_vm5, %v14798_v28, %v14574_v22  ;;  %v10463_v23 = vpack.i.bf16 %v6893_v57, %v6892_v36  ;;  %v9124_v22 = vld [vmem:[%s16122_s3 + $0xd0] sm:$0xff]  ;;  %vm16904_vm4 = vmmov %vm16903_vm6 }
 0x70d   : > { %10414 = vrot.lane.b32.xlu2 %v10413_v17, %s15876_s20  ;;  %v6852_v42 = vsel %vm14914_vm10, %v14580_v30, %v6828_v34  ;;  %v9116_v28 = vld [vmem:[%s16122_s3 + $0x90] sm:$0xff]  ;;  %7420 = vmatpush.bf16.msrb.mxu2 %v9124_v22  ;;  %vm16902_vm10 = vmmov %vm16899_vm9 }
 0x70e   : > { %v10458_v17 = vpack.i.bf16 %v6852_v42, %v6851_v21  ;;  %7391 = vmatpush.bf16.msrb.mxu1 %v9116_v28  ;;  %vm16907_vm5 = vmmov %vm16902_vm10 }
 0x70f   : > { %10434 = vrot.lane.b32.xlu1 %v10433_v12, %s16494_s29  ;;  %vm16913_vm2 = vmmov %vm16907_vm5 }
 0x714   : > { %10429 = vrot.lane.b32.xlu0 %v10428_v61, %s16852_s16 }
 0x715   : > { %10419 = vrot.lane.b32.xlu2 %v14715_v62, %s15876_s20  ;;  %v6990_v62 = vsel %vm14771_vm11, %v14548_v33, %v6876_v14  ;;  %vm16948_vm11 = vcmask 1046528  }
 0x716   : > { %v10453_v13 = vpack.i.bf16 %v6991_v54, %v6990_v62  ;;  %vm16949_vm7 = vmmov %vm16948_vm11 }
 0x717   : > { %10439 = vrot.lane.b32.xlu1 %v10438_v7, %s16494_s29 }
 0x71b   : > { %8958 = vmatmul.msk.bf16.gmra.mxu3 %vm16899_vm9, %v7260_v4  ;;  %vm16906_vm9 = vmmov %vm16905_vm8 }
 0x71c   : > { %10454 = vrot.lane.b32.xlu0 %v10453_v13, %s16852_s16 }
 0x71d   : > { %10444 = vrot.lane.b32.xlu2 %v10443_v63, %s15876_s20 }
 0x71f   : > { %10464 = vrot.lane.b32.xlu1 %v10463_v23, %s16494_s29 }
 0x724   : > { %10459 = vrot.lane.b32.xlu0 %v10458_v17, %s16852_s16 }
 0x725   : > { %10449 = vrot.lane.b32.xlu2 %v10408_v44, %s15876_s20 }
 0x747   : > { %v10355_v9 = vpop.permute.xlu2 %10354 }
 0x748   : > { %v10357_v37 = vunpack.i.h.bf16 %v10355_v9  ;;  %v10356_v61 = vunpack.i.l.bf16 %v10355_v9 }
 0x74a   : > { %v7226_v44 = vsel %vm16901_vm13, %v14533_v43, %v10357_v37  ;;  %v7225_v7 = vsel %vm16902_vm10, %v14530_v8, %v10356_v61  ;;  %vm16908_vm13 = vmmov %vm16907_vm5 }
 0x74b   : > { %vm16909_vm10 = vmmov %vm16904_vm4 }
 0x74f   : > { %v10360_v12 = vpop.permute.xlu2 %10359 }
 0x750   : > { %v10362_v4 = vunpack.i.h.bf16 %v10360_v12  ;;  %v10361_v13 = vunpack.i.l.bf16 %v10360_v12 }
 0x752   : > { %v7201_v23 = vsel %vm16907_vm5, %v6796_v38, %v10361_v13  ;;  %v7202_v21 = vsel %vm16908_vm13, %v6797_v51, %v10362_v4 }
 0x757   : > { %v10385_v20 = vpop.permute.xlu2 %10384 }
 0x758   : > { %v10387_v38 = vunpack.i.h.bf16 %v10385_v20 }
 0x759   : > { %v10350_v10 = vpop.permute.xlu1 %10349 }
 0x75a   : > { %v10352_v60 = vunpack.i.h.bf16 %v10350_v10  ;;  %v10351_v2 = vunpack.i.l.bf16 %v10350_v10  ;;  %v10386_v10 = vunpack.i.l.bf16 %v10385_v20  ;;  %v7228_v51 = vsel %vm16913_vm2, %v14539_v25, %v10387_v38 }
 0x75e   : > { %v10365_v58 = vpop.permute.xlu0 %10364 }
 0x75f   : > { %v10367_v0 = vunpack.i.h.bf16 %v10365_v58  ;;  %v10366_v14 = vunpack.i.l.bf16 %v10365_v58  ;;  %v10390_v42 = vpop.permute.xlu2 %10389 }
 0x761   : > { %v7233_v52 = vsel %vm16903_vm6, %v7225_v7, %v10366_v14  ;;  %v7234_v62 = vsel %vm16904_vm4, %v7226_v44, %v10367_v0  ;;  %v10375_v54 = vpop.permute.xlu1 %10374  ;;  %vm16910_vm6 = vmmov %vm16904_vm4 }
 0x762   : > { %v7241_v1 = vsel %vm16905_vm8, %v7233_v52, %v10351_v2  ;;  %v7242_v19 = vsel %vm16906_vm9, %v7234_v62, %v10352_v60  ;;  %v10377_v17 = vunpack.i.h.bf16 %v10375_v54  ;;  %v10376_v22 = vunpack.i.l.bf16 %v10375_v54  ;;  %vm16911_vm4 = vmmov %vm16905_vm8 }
 0x763   : > { %v7250_v36 = vpack.c.bf16 %v7242_v19, %v7241_v1  ;;  %vm16912_vm3 = vmmov %vm16911_vm4  ;;  %v10392_v52 = vunpack.i.h.bf16 %v10390_v42  ;;  %v10391_v62 = vunpack.i.l.bf16 %v10390_v42 }
 0x764   : > { %vm16914_vm8 = vmmov %vm16913_vm2 }
 0x765   : > { %7421 = vmatmul.bf16.vlgmr.msrb.gmra.mxu2 %v7250_v36  ;;  %v7227_v61 = vsel %vm16914_vm8, %v14536_v27, %v10386_v10  ;;  %vm16915_vm9 = vmmov %vm16910_vm6 }
 0x766   : > { %v10370_v57 = vpop.permute.xlu0 %10369  ;;  %vm16916_vm5 = vmmov %vm16910_vm6 }
 0x767   : > { %v10372_v63 = vunpack.i.h.bf16 %v10370_v57  ;;  %v10371_v34 = vunpack.i.l.bf16 %v10370_v57  ;;  %v10415_v60 = vpop.permute.xlu2 %10414  ;;  %vm16917_vm13 = vmmov %vm16912_vm3 }
 0x768   : > { %v10417_v6 = vunpack.i.h.bf16 %v10415_v60 }
 0x769   : > { %v7209_v28 = vsel %vm16909_vm10, %v7201_v23, %v10371_v34  ;;  %v7210_v9 = vsel %vm16910_vm6, %v7202_v21, %v10372_v63  ;;  %v10380_v48 = vpop.permute.xlu1 %10379  ;;  %vm16918_vm10 = vmmov %vm16912_vm3 }
 0x76a   : > { %v7217_v12 = vsel %vm16911_vm4, %v7209_v28, %v10376_v22  ;;  %v7218_v5 = vsel %vm16912_vm3, %v7210_v9, %v10377_v17  ;;  %v10382_v58 = vunpack.i.h.bf16 %v10380_v48  ;;  %v10381_v0 = vunpack.i.l.bf16 %v10380_v48  ;;  %vm16919_vm6 = vmmov %vm16913_vm2 }
 0x76b   : > { %v7249_v50 = vpack.c.bf16 %v7218_v5, %v7217_v12  ;;  %v7204_v13 = vsel %vm16919_vm6, %v6799_v32, %v10392_v52  ;;  %vm16920_vm4 = vmmov %vm16913_vm2  ;;  %v10416_v32 = vunpack.i.l.bf16 %v10415_v60 }
 0x76c   : > { %v7203_v36 = vsel %vm16920_vm4, %v6798_v18, %v10391_v62  ;;  %vm16921_vm3 = vmmov %vm16916_vm5 }
 0x76d   : > { %7392 = vmatmul.bf16.vlgmr.msrb.gmra.mxu1 %v7249_v50  ;;  %vm16922_vm2 = vmmov %vm16921_vm3 }
 0x76e   : > { %v10395_v37 = vpop.permute.xlu0 %10394  ;;  %vm16923_vm8 = vmmov %vm16918_vm10  ;;  %v7451_v26 = vpop.f32.mrf.mxu3 }
 0x76f   : > { %v10397_v8 = vunpack.i.h.bf16 %v10395_v37  ;;  %v10396_v31 = vunpack.i.l.bf16 %v10395_v37  ;;  %v10420_v56 = vpop.permute.xlu2 %10419  ;;  %vm16925_vm12 = vmmov %vm16920_vm4 }
 0x770   : > { %v7230_v18 = vsel %vm16925_vm12, %v14545_v24, %v10417_v6  ;;  %vm16926_vm1 = vmmov %vm16920_vm4  ;;  %v10422_v50 = vunpack.i.h.bf16 %v10420_v56  ;;  %v10421_v37 = vunpack.i.l.bf16 %v10420_v56  ;;  %v15077_v24 = vld [vmem:[%s16676_s4 + $0x1] ss:$0 sm:$0xff] }
 0x771   : > { %v7236_v14 = vsel %vm16915_vm9, %v7228_v51, %v10397_v8  ;;  %v7235_v44 = vsel %vm16916_vm5, %v7227_v61, %v10396_v31  ;;  %v10405_v7 = vpop.permute.xlu1 %10404  ;;  %vm16924_vm9 = vmmov %vm16923_vm8  ;;  %v7229_v22 = vsel %vm16926_vm1, %v14542_v39, %v10416_v32 }
 0x772   : > { %v7243_v20 = vsel %vm16917_vm13, %v7235_v44, %v10381_v0  ;;  %v7244_v2 = vsel %vm16918_vm10, %v7236_v14, %v10382_v58  ;;  %v10407_v57 = vunpack.i.h.bf16 %v10405_v7  ;;  %v10406_v63 = vunpack.i.l.bf16 %v10405_v7  ;;  %vm16927_vm5 = vmmov %vm16922_vm2 }
 0x773   : > { %v7253_v54 = vpack.c.bf16 %v7244_v2, %v7243_v20  ;;  %vm16928_vm13 = vmmov %vm16922_vm2 }
 0x774   : > { %vm16929_vm10 = vmmov %vm16923_vm8 }
 0x775   : > { %7426 = vmatmul.bf16.gmra.mxu2 %v7253_v54  ;;  %vm16930_vm6 = vmmov %vm16923_vm8 }
 0x776   : > { %v10400_v1 = vpop.permute.xlu0 %10399  ;;  %vm16931_vm4 = vmmov %vm16926_vm1  ;;  %v7453_v55 = vpop.f32.mrf.mxu3 }
 0x777   : > { %v10402_v19 = vunpack.i.h.bf16 %v10400_v1  ;;  %v10401_v4 = vunpack.i.l.bf16 %v10400_v1  ;;  %v10445_v51 = vpop.permute.xlu2 %10444  ;;  %v7206_v0 = vsel %vm16931_vm4, %v6801_v47, %v10422_v50  ;;  %vm16935_vm12 = vmmov %vm16930_vm6 }
 0x778   : > { %v10447_v47 = vunpack.i.h.bf16 %v10445_v51  ;;  %v10446_v52 = vunpack.i.l.bf16 %v10445_v51  ;;  %vm16936_vm0 = vmmov %vm16926_vm1 }
 0x779   : > { %v7212_v34 = vsel %vm16921_vm3, %v7204_v13, %v10402_v19  ;;  %v7211_v23 = vsel %vm16922_vm2, %v7203_v36, %v10401_v4  ;;  %v10410_v21 = vpop.permute.xlu1 %10409  ;;  %vm16932_vm3 = vmmov %vm16926_vm1 }
 0x77a   : > { %v7219_v59 = vsel %vm16923_vm8, %v7211_v23, %v10406_v63  ;;  %v7220_v27 = vsel %vm16924_vm9, %v7212_v34, %v10407_v57  ;;  %v10412_v28 = vunpack.i.h.bf16 %v10410_v21  ;;  %v10411_v9 = vunpack.i.l.bf16 %v10410_v21  ;;  %vm16933_vm8 = vmmov %vm16922_vm2 }
 0x77b   : > { %v7252_v42 = vpack.c.bf16 %v7220_v27, %v7219_v59  ;;  %v7205_v14 = vsel %vm16932_vm3, %v6800_v3, %v10421_v37  ;;  %vm16934_vm9 = vmmov %vm16930_vm6  ;;  %v7232_v53 = vsel %vm16936_vm0, %v14548_v33, %v10447_v47 }
 0x77c   : > { %vm16937_vm14 = vmmov %vm16936_vm0 }
 0x77d   : > { %7397 = vmatmul.bf16.gmra.mxu1 %v7252_v42  ;;  %v7231_v3 = vsel %vm16937_vm14, %v14580_v30, %v10446_v52  ;;  %vm16938_vm1 = vmmov %vm16922_vm2 }
 0x77e   : > { %v10425_v17 = vpop.permute.xlu0 %10424  ;;  %vm16943_vm4 = vmmov %vm16936_vm0 }
 0x77f   : > { %v10427_v43 = vunpack.i.h.bf16 %v10425_v17  ;;  %v10426_v11 = vunpack.i.l.bf16 %v10425_v17  ;;  %v10450_v19 = vpop.permute.xlu2 %10449  ;;  %vm16944_vm3 = vmmov %vm16938_vm1 }
 0x780   : > { %v10452_v34 = vunpack.i.h.bf16 %v10450_v19  ;;  %v10451_v23 = vunpack.i.l.bf16 %v10450_v19  ;;  %vm16952_vm14 = vmmov %vm16943_vm4 }
 0x781   : > { %v7238_v48 = vsel %vm16927_vm5, %v7230_v18, %v10427_v43  ;;  %v7237_v12 = vsel %vm16928_vm13, %v7229_v22, %v10426_v11  ;;  %v10435_v5 = vpop.permute.xlu1 %10434  ;;  %vm16939_vm5 = vmmov %vm16938_vm1 }
 0x782   : > { %v7245_v38 = vsel %vm16929_vm10, %v7237_v12, %v10411_v9  ;;  %v7246_v10 = vsel %vm16930_vm6, %v7238_v48, %v10412_v28  ;;  %v10437_v44 = vunpack.i.h.bf16 %v10435_v5  ;;  %v10436_v7 = vunpack.i.l.bf16 %v10435_v5  ;;  %vm16940_vm13 = vmmov %vm16930_vm6  ;;  %v7456_v9 = vpop.f32.mrf.mxu3 }
 0x783   : > { %v7256_v8 = vpack.c.bf16 %v7246_v10, %v7245_v38  ;;  %vm16941_vm10 = vmmov %vm16930_vm6  ;;  %v7207_v32 = vsel %vm16943_vm4, %v6802_v29, %v10451_v23 }
 0x784   : > { %vm16942_vm6 = vmmov %vm16936_vm0 }
 0x785   : > { %7431 = vmatmul.bf16.gmra.mxu2 %v7256_v8  ;;  %v7208_v6 = vsel %vm16942_vm6, %v6803_v40, %v10452_v34  ;;  %vm16957_vm6 = vmmov %vm16943_vm4 }
 0x786   : > { %v10430_v31 = vpop.permute.xlu0 %10429 }
 0x787   : > { %v10432_v61 = vunpack.i.h.bf16 %v10430_v31  ;;  %v10431_v58 = vunpack.i.l.bf16 %v10430_v31 }
 0x789   : > { %v7214_v60 = vsel %vm16922_vm2, %v7206_v0, %v10432_v61  ;;  %v7213_v20 = vsel %vm16933_vm8, %v7205_v14, %v10431_v58  ;;  %v10440_v39 = vpop.permute.xlu1 %10439  ;;  %vm16945_vm2 = vmmov %vm16938_vm1 }
 0x78a   : > { %v7221_v41 = vsel %vm16934_vm9, %v7213_v20, %v10436_v7  ;;  %v7222_v2 = vsel %vm16935_vm12, %v7214_v60, %v10437_v44  ;;  %v10442_v54 = vunpack.i.h.bf16 %v10440_v39  ;;  %v10441_v1 = vunpack.i.l.bf16 %v10440_v39  ;;  %vm16946_vm8 = vmmov %vm16934_vm9  ;;  %v7458_v61 = vpop.f32.mrf.mxu3 }
 0x78b   : > { %v7255_v16 = vpack.c.bf16 %v7222_v2, %v7221_v41  ;;  %vm16947_vm9 = vmmov %vm16946_vm8 }
 0x78c   : > { %vm16950_vm12 = vmmov %vm16936_vm0 }
 0x78d   : > { %7402 = vmatmul.bf16.gmra.mxu1 %v7255_v16  ;;  %vm16951_vm0 = vmmov %vm16949_vm7 }
 0x78e   : > { %v10455_v46 = vpop.permute.xlu0 %10454 }
 0x78f   : > { %v10457_v62 = vunpack.i.h.bf16 %v10455_v46  ;;  %v10456_v25 = vunpack.i.l.bf16 %v10455_v46 }
 0x791   : > { %v7240_v4 = vsel %vm16938_vm1, %v7232_v53, %v10457_v62  ;;  %v7239_v13 = vsel %vm16939_vm5, %v7231_v3, %v10456_v25  ;;  %v10465_v21 = vpop.permute.xlu1 %10464  ;;  %vm16953_vm1 = vmmov %vm16951_vm0 }
 0x792   : > { %v7247_v36 = vsel %vm16940_vm13, %v7239_v13, %v10441_v1  ;;  %v7248_v57 = vsel %vm16941_vm10, %v7240_v4, %v10442_v54  ;;  %v10467_v42 = vunpack.i.h.bf16 %v10465_v21  ;;  %v10466_v56 = vunpack.i.l.bf16 %v10465_v21  ;;  %v7461_v62 = vpop.f32.mrf.mxu3  ;;  %vm16954_vm5 = vmmov %vm16943_vm4 }
 0x793   : > { %v7259_v63 = vpack.c.bf16 %v7248_v57, %v7247_v36  ;;  %vm16955_vm13 = vmmov %vm16951_vm0 }
 0x794   : > { %vm16956_vm10 = vmmov %vm16951_vm0 }
 0x795   : > { %7436 = vmatmul.bf16.gmra.mxu2 %v7259_v63  ;;  %vm16958_vm4 = vmmov %vm16951_vm0 }
 0x796   : > { %v10460_v33 = vpop.permute.xlu0 %10459 }
 0x797   : > { %v10462_v59 = vunpack.i.h.bf16 %v10460_v33  ;;  %v10461_v27 = vunpack.i.l.bf16 %v10460_v33 }
 0x799   : > { %v7216_v17 = vsel %vm16944_vm3, %v7208_v6, %v10462_v59  ;;  %v7215_v43 = vsel %vm16945_vm2, %v7207_v32, %v10461_v27  ;;  %vm16959_vm3 = vmmov %vm16951_vm0 }
 0x79a   : > { %v7223_v35 = vsel %vm16946_vm8, %v7215_v43, %v10466_v56  ;;  %v7224_v11 = vsel %vm16947_vm9, %v7216_v17, %v10467_v42  ;;  %v7463_v21 = vpop.f32.mrf.mxu3  ;;  %vm16960_vm2 = vmmov %vm16954_vm5 }
 0x79b   : > { %v7258_v30 = vpack.c.bf16 %v7224_v11, %v7223_v35  ;;  %vm16961_vm8 = vmmov %vm16960_vm2 }
 0x79c   : > { %vm16962_vm9 = vmmov %vm16960_vm2 }
 0x79d   : > { %7407 = vmatmul.bf16.gmra.mxu1 %v7258_v30 }
 0x7e8   : > { %v7422_v40 = vpop.f32.mrf.mxu2 }
 0x7ea   : > { %v7393_v18 = vpop.f32.mrf.mxu1 }
 0x7eb   : > { %v7394_v29 = vadd.f32 %v15077_v24, %v7393_v18 }
 0x7ed   : > { %v7423_v48 = vadd.f32 %v7422_v40, %v7394_v29  ;;  %v7466_v40 = vpop.f32.mrf.mxu3 }
 0x7ef   : > { %v7452_v10 = vadd.f32 %v7451_v26, %v7423_v48 }
 0x7f0   : > { %v7424_v45 = vpop.f32.mrf.mxu2 }
 0x7f1   : > { %v7471_v31 = vmax.f32 %v7452_v10, 0.0 }
 0x7f2   : > { %v7395_v22 = vpop.f32.mrf.mxu1 }
 0x7f3   : > { %v7396_v28 = vadd.f32 %v15077_v24, %v7395_v22  ;;  %v15082_v44 = vrot.slane %v7471_v31, 1 }
 0x7f5   : > { %v7425_v12 = vadd.f32 %v7424_v45, %v7396_v28  ;;  %v7468_v10 = vpop.f32.mrf.mxu3 }
 0x7f7   : > { %v7454_v5 = vadd.f32 %v7453_v55, %v7425_v12 }
 0x7f8   : > { %v7427_v38 = vpop.f32.mrf.mxu2 }
 0x7f9   : > { %v7472_v37 = vmax.f32 %v7454_v5, 0.0 }
 0x7fa   : > { %v7398_v50 = vpop.f32.mrf.mxu1 }
 0x7fb   : > { %v7399_v8 = vadd.f32 %v15077_v24, %v7398_v50  ;;  %v7488_v58 = vrot.slane %v7472_v37, 1 }
 0x7fd   : > { %v7428_v51 = vadd.f32 %v7427_v38, %v7399_v8  ;;  %v7489_v20 = vsel %vm16948_vm11, %v15082_v44, %v7488_v58  ;;  %vm16963_vm11 = vmmov %vm16960_vm2 }
 0x7fe   : > { %v7512_v52 = vmax.f32 %v7471_v31, %v7489_v20 }
 0x7ff   : > { %v7457_v0 = vadd.f32 %v7456_v9, %v7428_v51 }
 0x800   : > { %v7429_v14 = vpop.f32.mrf.mxu2 }
 0x801   : > { %v7473_v7 = vmax.f32 %v7457_v0, 0.0 }
 0x802   : > { %v7400_v60 = vpop.f32.mrf.mxu1 }
 0x803   : > { %v7490_v41 = vrot.slane %v7473_v7, 1  ;;  %v7401_v2 = vadd.f32 %v15077_v24, %v7400_v60 }
 0x805   : > { %v7491_v39 = vsel %vm16949_vm7, %v7488_v58, %v7490_v41  ;;  %v7430_v16 = vadd.f32 %v7429_v14, %v7401_v2  ;;  %vm16964_vm7 = vmmov %vm16960_vm2 }
 0x806   : > { %v7513_v47 = vmax.f32 %v7472_v37, %v7491_v39 }
 0x807   : > { %v7459_v46 = vadd.f32 %v7458_v61, %v7430_v16 }
 0x808   : > { %v7432_v25 = vpop.f32.mrf.mxu2  ;;  %v7520_v53 = vmax.f32 %v7512_v52, %v7513_v47 }
 0x809   : > { %v7474_v3 = vmax.f32 %v7459_v46, 0.0 }
 0x80a   : > { %v7403_v54 = vpop.f32.mrf.mxu1  ;;  %7528 = vst.msk [vmem:[#allocation2] sm:$0xff] %vm16950_vm12, %v7520_v53 }
 0x80b   : > { %v7492_v1 = vrot.slane %v7474_v3, 1  ;;  %v7404_v19 = vadd.f32 %v15077_v24, %v7403_v54 }
 0x80d   : > { %v7493_v4 = vsel %vm16951_vm0, %v7490_v41, %v7492_v1  ;;  %v7433_v13 = vadd.f32 %v7432_v25, %v7404_v19  ;;  %vm16965_vm0 = vcmask 31744  }
 0x80e   : > { %v7514_v36 = vmax.f32 %v7473_v7, %v7493_v4  ;;  %v15113_v4 = vld [vmem:[%s16675_s8 + $0x18] sm:$0xff] }
 0x80f   : > { %v7462_v57 = vadd.f32 %v7461_v62, %v7433_v13  ;;  %v15119_v13 = vld [vmem:[%s16675_s8 + $0x10] sm:$0xff] }
 0x810   : > { %v7521_v63 = vmax.f32 %v7513_v47, %v7514_v36  ;;  %v7434_v34 = vpop.f32.mrf.mxu2 }
 0x811   : > { %v7475_v23 = vmax.f32 %v7462_v57, 0.0  ;;  %v7536_v41 = vld [vmem:[#allocation2] ss:$2 sm:$0xf] }
 0x812   : > { %7529 = vst.msk [vmem:[#allocation2 + $0x8] sm:$0xff] %vm16952_vm14, %v7521_v63  ;;  %v7405_v33 = vpop.f32.mrf.mxu1  ;;  %v15131_v57 = vld [vmem:[%s16675_s8] sm:$0xff]  ;;  %v10732_v63 = vmov 128.0   ;;  %vm16966_vm14 = vmmov %vm16960_vm2 }
 0x813   : > { %v7494_v59 = vrot.slane %v7475_v23, 1  ;;  %v7406_v27 = vadd.f32 %v15077_v24, %v7405_v33  ;;  %10506 = vrcp.f32 %v10732_v63 }
 0x815   : > { %v7495_v6 = vsel %vm16953_vm1, %v7492_v1, %v7494_v59  ;;  %v7435_v32 = vadd.f32 %v7434_v34, %v7406_v27  ;;  %vm16967_vm1 = vmmov %vm16960_vm2 }
 0x816   : > { %v7515_v42 = vmax.f32 %v7474_v3, %v7495_v6 }
 0x817   : > { %v7464_v56 = vadd.f32 %v7463_v21, %v7435_v32 }
 0x818   : > { %v7522_v17 = vmax.f32 %v7514_v36, %v7515_v42  ;;  %v7437_v35 = vpop.f32.mrf.mxu2  ;;  %v15125_v36 = vld [vmem:[%s16675_s8 + $0x8] sm:$0xff]  ;;  %v15138_v42 = vld [vmem:[%s16786_s9] sm:$0xf]  ;;  %s8727_s8 = sshll.u32 %s10867_s30, 2  ;;  %s15460_s30 = scalar_lea.sflag [#allocation6], %s8420_s17 }
 0x819   : > { %v7476_v43 = vmax.f32 %v7464_v56, 0.0  ;;  %v10507_v34 = vpop.eup %10506  ;;  %s535_s25 = scalar_lea.vmem %s15577_s13, %s8727_s8  ;;  %s8466_s8 = scalar_lea.hbm %s15575_s11, %s9153_s0 }
 0x81a   : > { %7530 = vst.msk [vmem:[#allocation2 + $0x10] sm:$0xff] %vm16954_vm5, %v7522_v17  ;;  %v7408_v11 = vpop.f32.mrf.mxu1  ;;  %vm7587_vm12 = vweird.f32 %v10507_v34  ;;  %vm16968_vm5 = vmmov %vm16967_vm1  ;;  %s8469_s9 = sshll.u32 %s8466_s8, 4  ;;  %s10557_s0 = scalar_lea.hbm %s15575_s11, 128  ;;  %s8470_s9 = int_to_ptr.hbm [resolvable:$true] %s8469_s9 }
 0x81b   : > { %v7496_v30 = vrot.slane %v7476_v43, 1  ;;  %v7409_v26 = vadd.f32 %v15077_v24, %v7408_v11  ;;  %s10551_s2 = sshra.s32 %s8470_s9, 4  ;;  %s10552_s2 = int_to_ptr.hbm [resolvable:$true] %s10551_s2 }
 0x81c   : > { %s10553_s21 = scalar_lea.hbm %s10552_s2, 64  ;;  %p10558_p0 = scmp.lt.s32.totalorder %s10552_s2, %s15575_s11 }
 0x81d   : > { %v7497_v55 = vsel %vm16955_vm13, %v7494_v59, %v7496_v30  ;;  %v7438_v18 = vadd.f32 %v7437_v35, %v7409_v26  ;;  %p10554_p11 = scmp.ne.s32.totalorder %s10552_s2, %s10553_s21  ;;  %p10559_p1 = scmp.lt.s32.totalorder %s10557_s0, %s10553_s21 }
 0x81e   : > { %v7516_v45 = vmax.f32 %v7475_v23, %v7497_v55  ;;  %v7583_v23 = vmul.f32 128.0, %v10507_v34 }
 0x81f   : > { %v7467_v29 = vadd.f32 %v7466_v40, %v7438_v18  ;;  %p10555_p12 = pnand %p10554_p11, %p10855_p5  ;;  %p10560_p2 = por %p10559_p1, %p10558_p0 }
 0x820   : > { %v7439_v12 = vpop.f32.mrf.mxu2  ;;  %v7584_v21 = vsub.f32 1.0, %v7583_v23 }
 0x821   : > { %v7477_v22 = vmax.f32 %v7467_v29, 0.0  ;;  %v7538_v60 = vld [vmem:[#allocation2 + $0x10] ss:$2 sm:$0xf]  ;;  %p10556_p13 = pneg %p10555_p12 }
 0x822   : > { %v7410_v28 = vpop.f32.mrf.mxu1  ;;  %v7543_v20 = vrot.slane %v7538_v60, 4  ;;  %v7585_v33 = vmul.f32 %v10507_v34, %v7584_v21  ;;  %v7737_v60 = vand.u32 3, %v16830_v49 }
 0x823   : > { %v7498_v9 = vrot.slane %v7477_v22, 1  ;;  %v7411_v48 = vadd.f32 %v15077_v24, %v7410_v28  ;;  %p10561_p3 = pnand %p10560_p2, %p10556_p13 }
 0x824   : > { %v7548_v16 = vsel %vm6419_vm15, %v7536_v41, %v7543_v20  ;;  %v7586_v59 = vadd.f32 %v10507_v34, %v7585_v33  ;;  %v7744_v20 = vand.u32 3, %v16831_v15 }
 0x825   : > { %v7499_v5 = vsel %vm16956_vm10, %v7496_v30, %v7498_v9  ;;  %v7440_v38 = vadd.f32 %v7439_v12, %v7411_v48 }
 0x826   : > { %v7517_v50 = vmax.f32 %v7476_v43, %v7499_v5  ;;  %v7588_v27 = vsel %vm7587_vm12, %v10507_v34, %v7586_v59  ;;  %vm16977_vm12 = vmmov %vm16967_vm1 }
 0x827   : > { %v7469_v37 = vadd.f32 %v7468_v10, %v7440_v38 }
 0x828   : > { %v7524_v8 = vmax.f32 %v7516_v45, %v7517_v50 }
 0x829   : > { %v7478_v31 = vmax.f32 %v7469_v37, 0.0 }
 0x82a   : > { %7532 = vst.msk [vmem:[#allocation2 + $0x20] sm:$0xff] %vm16957_vm6, %v7524_v8 }
 0x82b   : > { %v7500_v51 = vrot.slane %v7478_v31, 1 }
 0x82d   : > { %v7501_v61 = vsel %vm16958_vm4, %v7498_v9, %v7500_v51  ;;  %v7511_v58 = vsel %vm16959_vm3, %v7500_v51, %v15082_v44  ;;  %v7550_v44 = vsel %vm16962_vm9, %v7548_v16, 0.0  ;;  %vm16969_vm4 = vmmov %vm16965_vm0  ;;  %vm7732_vm3 = vcmp.ge.s32.totalorder %v16831_v15, 12 }
 0x82e   : > { %v7518_v0 = vmax.f32 %v7477_v22, %v7501_v61  ;;  %v7519_v14 = vmax.f32 %v7478_v31, %v7511_v58  ;;  %v9151_v61 = vld [vmem:[%s16122_s3 + $0x1a8] sm:$0xff]  ;;  %v9150_v58 = vld [vmem:[%s16122_s3 + $0x1a0] sm:$0xff]  ;;  %vm16974_vm9 = vmmov %vm16967_vm1 }
 0x82f   : > { %8055 = vmatpush.bf16.msra.mxu2 %v9151_v61 }
 0x830   : > { %v7525_v24 = vmax.f32 %v7517_v50, %v7518_v0  ;;  %v7526_v7 = vmax.f32 %v7518_v0, %v7519_v14  ;;  %v9149_v0 = vld [vmem:[%s16122_s3 + $0x198] sm:$0xff]  ;;  %v9148_v14 = vld [vmem:[%s16122_s3 + $0x190] sm:$0xff] }
 0x831   : > { %v7539_v47 = vld [vmem:[#allocation2 + $0x20] ss:$2 sm:$0xf]  ;;  %8035 = vmatpush.bf16.msra.mxu3 %v9149_v0 }
 0x832   : > { %7533 = vst.msk [vmem:[#allocation2 + $0x28] sm:$0xff] %vm16960_vm2, %v7525_v24  ;;  %v9147_v24 = vld [vmem:[%s16122_s3 + $0x188] sm:$0xff]  ;;  %vm15176_vm2 = vcmp.eq.s32.totalorder %v7737_v60, 3 }
 0x833   : > { %7534 = vst.msk [vmem:[#allocation2 + $0x30] sm:$0xff] %vm16961_vm8, %v7526_v7  ;;  %8056 = vmatpush.bf16.msra.mxu2 %v9150_v58  ;;  %vm15180_vm8 = vcmp.eq.s32.totalorder %v7744_v20, 3 }
 0x835   : > { %8036 = vmatpush.bf16.msra.mxu3 %v9148_v14  ;;  %v9141_v14 = vld [vmem:[%s16122_s3 + $0x158] sm:$0xff] }
 0x837   : > { %8119 = vmatpush.msrb.mxu2 %v15113_v4 }
 0x839   : > { %8120 = vmatpush.msrb.mxu2 %v15119_v13  ;;  %8037 = vmatpush.bf16.msra.mxu3 %v9147_v24  ;;  %v9144_v24 = vld [vmem:[%s16122_s3 + $0x170] sm:$0xff] }
 0x83a   : > { %v7541_v2 = vld [vmem:[#allocation2 + $0x30] ss:$2 sm:$0xf] }
 0x83b   : > { %v7546_v39 = vrot.slane %v7541_v2, 4  ;;  %8121 = vmatpush.msrb.mxu2 %v15125_v36  ;;  %v9146_v2 = vld [vmem:[%s16122_s3 + $0x180] sm:$0xff] }
 0x83d   : > { %v7549_v52 = vsel %vm6419_vm15, %v7539_v47, %v7546_v39  ;;  %8122 = vmatpush.msrb.mxu2 %v15131_v57  ;;  %8038 = vmatpush.bf16.msra.mxu3 %v9146_v2  ;;  %v9136_v2 = vld [vmem:[%s16122_s3 + $0x130] sm:$0xff]  ;;  %v9135_v47 = vld [vmem:[%s16122_s3 + $0x128] sm:$0xff] }
 0x83e   : > { %v7551_v46 = vsel %vm16963_vm11, %v7549_v52, 0.0  ;;  %vm15193_vm11 = vcmp.eq.s32.totalorder %v7737_v60, 0  ;;  %v9138_v60 = vld [vmem:[%s16122_s3 + $0x140] sm:$0xff] }
 0x83f   : > { %v7552_v62 = vadd.f32 %v7551_v46, %v7550_v44 }
 0x841   : > { %v7553_v25 = vrot.slane %v7552_v62, 4 }
 0x843   : > { %v7554_v53 = vadd.f32 %v7553_v25, %v7552_v62 }
 0x845   : > { %v7555_v3 = vrot.slane %v7554_v53, 2 }
 0x847   : > { %v7556_v54 = vadd.f32 %v7555_v3, %v7554_v53 }
 0x849   : > { %v7557_v1 = vrot.slane %v7556_v54, 1 }
 0x84b   : > { %v7558_v19 = vadd.f32 %v7557_v1, %v7556_v54 }
 0x84d   : > { %8959 = vmatmul.msk.f32.vlgmr.msrb.gmra.mxu0 %vm16964_vm7, %v7558_v19  ;;  %vm7729_vm7 = vcmp.lt.s32.totalorder %v16830_v49, 4 }
 0x84e   : > { %7642 = vmatpush.msrb.mxu0 %v15113_v4 }
 0x850   : > { %7643 = vmatpush.msrb.mxu0 %v15119_v13 }
 0x852   : > { %7644 = vmatpush.msrb.mxu0 %v15125_v36 }
 0x854   : > { %7645 = vmatpush.msrb.mxu0 %v15131_v57 }
 0x8ca   : > { %v7579_v6 = vpop.f32.mrf.mxu0 }
 0x8cb   : > { %v7589_v32 = vmul.f32 %v7588_v27, %v7579_v6 }
 0x8cd   : > { %8961 = vmatmul.msk.f32.vlgmr.msra.gmra.mxu0 %vm16965_vm0, %v7589_v32  ;;  %vm16978_vm0 = vcmask 1046528  }
 0x8ce   : > { %8963 = vmatpush.msk.msra.mxu0 %vm6419_vm15, %v15138_v42 }
 0x94a   : > { %v7610_v56 = vpop.f32.mrf.mxu0 }
 0x94b   : > { %v7613_v17 = vperm.slane %v7610_v56, 0 }
 0x94d   : > { %v7614_v43 = vsub.f32 %v7548_v16, %v7613_v17  ;;  %v7615_v35 = vsub.f32 %v7549_v52, %v7613_v17  ;;  %v9134_v52 = vld [vmem:[%s16122_s3 + $0x120] sm:$0xff] }
 0x94f   : > { %v7616_v11 = vmul.f32 %v7614_v43, %v7614_v43  ;;  %v7617_v30 = vmul.f32 %v7615_v35, %v7615_v35 }
 0x951   : > { %v7618_v26 = vsel %vm16966_vm14, %v7616_v11, 0.0  ;;  %v7619_v40 = vsel %vm16967_vm1, %v7617_v30, 0.0  ;;  %vm16979_vm14 = vmmov %vm16978_vm0  ;;  %vm15221_vm1 = vcmp.eq.s32.totalorder %v7744_v20, 0  ;;  %v9137_v20 = vld [vmem:[%s16122_s3 + $0x138] sm:$0xff] }
 0x952   : > { %v7620_v55 = vadd.f32 %v7619_v40, %v7618_v26 }
 0x954   : > { %v7621_v18 = vrot.slane %v7620_v55, 4 }
 0x956   : > { %v7622_v45 = vadd.f32 %v7621_v18, %v7620_v55 }
 0x958   : > { %v7623_v29 = vrot.slane %v7622_v45, 2 }
 0x95a   : > { %v7624_v22 = vadd.f32 %v7623_v29, %v7622_v45 }
 0x95c   : > { %v7625_v28 = vrot.slane %v7624_v22, 1 }
 0x95e   : > { %v7626_v9 = vadd.f32 %v7625_v28, %v7624_v22 }
 0x960   : > { %8962 = vmatmul.msk.f32.vlgmr.msrb.gmra.mxu0 %vm16968_vm5, %v7626_v9  ;;  %vm16982_vm5 = vcmask 1040384  }
 0x961   : > { %8021 = vmatpush.bf16.msrb.mxu0 %v9141_v14 }
 0x9dd   : > { %v7647_v48 = vpop.f32.mrf.mxu0 }
 0x9de   : > { %v7650_v12 = vmul.f32 %v7647_v48, %v7588_v27 }
 0x9e0   : > { %v7651_v5 = vadd.f32 1e-10, %v7650_v12 }
 0x9e2   : > { %10508 = vrsqrt.f32 %v7651_v5  ;;  %vm7658_vm10 = vweird.f32 %v7651_v5 }
 0x9e8   : > { %v10509_v38 = vpop.eup %10508 }
 0x9e9   : > { %v7653_v10 = vmul.f32 %v10509_v38, %v7651_v5  ;;  %vm7659_vm13 = vweird.f32 %v10509_v38 }
 0x9ea   : > { %vm7660_vm6 = vmor %vm7658_vm10, %vm7659_vm13 }
 0x9eb   : > { %v7654_v50 = vmul.f32 %v10509_v38, %v7653_v10  ;;  %vm16983_vm13 = vmmov %vm16978_vm0 }
 0x9ec   : > { %vm16984_vm10 = vmmov %vm16978_vm0 }
 0x9ed   : > { %v7655_v37 = vmul.f32 0.5, %v7654_v50 }
 0x9ef   : > { %v7656_v8 = vsub.f32 1.5, %v7655_v37 }
 0x9f1   : > { %v7657_v31 = vmul.f32 %v10509_v38, %v7656_v8 }
 0x9f3   : > { %v7661_v51 = vsel %vm7660_vm6, %v10509_v38, %v7657_v31  ;;  %vm16985_vm6 = vmmov %vm16982_vm5 }
 0x9f4   : > { %8964 = vmatmul.msk.f32.vlgmr.msra.gmra.mxu0 %vm16969_vm4, %v7661_v51  ;;  %vm16986_vm4 = vmmov %vm16982_vm5 }
 0xa71   : > { %v7682_v7 = vpop.f32.mrf.mxu0 }
 0xa72   : > { %v7685_v41 = vperm.slane %v7682_v7, 0  ;;  %v9139_v7 = vld [vmem:[%s16122_s3 + $0x148] sm:$0xff] }
 0xa74   : > { %v15171_v39 = vmul.f32 %v7685_v41, %v7614_v43  ;;  %v15173_v16 = vmul.f32 %v7685_v41, %v7615_v35  ;;  %v9142_v41 = vld [vmem:[%s16122_s3 + $0x160] sm:$0xff] }
 0xa76   : > { %v7762_v44 = vrot.slane %v15173_v16, 4  ;;  %v7813_v46 = vrot.slane %v15171_v39, 1  ;;  %v7814_v62 = vrot.slane %v15173_v16, 1  ;;  %v7765_v25 = vrot.slane %v15171_v39, 4  ;;  %7688 = vst.msk [vmem:[%s15188_s19] sm:$0xff] %vm16974_vm9, %v15171_v39 }
 0xa77   : > { %v7804_v3 = vrot.slane %v15173_v16, 7  ;;  %v7806_v54 = vrot.slane %v15171_v39, 7  ;;  %7689 = vst.msk [vmem:[%s15188_s19 + $0x8] sm:$0xff] %vm16977_vm12, %v15173_v16  ;;  %vm16989_vm12 = vmmov %vm16978_vm0 }
 0xa78   : > { %v7815_v1 = vsel %vm16978_vm0, %v7813_v46, %v7814_v62  ;;  %v7819_v19 = vsel %vm16979_vm14, %v7814_v62, %v7813_v46  ;;  %v15206_v63 = vsel %vm6419_vm15, %v7765_v25, %v7762_v44  ;;  %v7769_v34 = vsel %vm6419_vm15, %v7762_v44, %v7765_v25 }
 0xa79   : > { %v7820_v23 = vsel %vm15176_vm2, %v15171_v39, %v7815_v1  ;;  %v7821_v21 = vsel %vm15180_vm8, %v15173_v16, %v7819_v19  ;;  %v7792_v33 = vrot.slane %v15206_v63, 1  ;;  %v7827_v59 = vsel %vm7732_vm3, %v15173_v16, %v7769_v34  ;;  %vm16987_vm3 = vmmov %vm16986_vm4 }
 0xa7a   : > { %v10468_v27 = vpack.i.bf16 %v7821_v21, %v7820_v23  ;;  %v7840_v6 = vrot.slane %v7827_v59, 1  ;;  %v10473_v32 = vpack.i.bf16 %v7827_v59, %v15206_v63  ;;  %v7777_v56 = vrot.slane %v15206_v63, 7 }
 0xa7b   : > { %v7829_v43 = vrot.slane %v7827_v59, 7  ;;  %v15228_v35 = vsel %vm7729_vm7, %v15171_v39, %v7769_v34  ;;  %v7807_v11 = vsel %vm16982_vm5, %v7806_v54, %v7804_v3  ;;  %v7810_v26 = vsel %vm16985_vm6, %v7804_v3, %v7806_v54  ;;  %vm16988_vm7 = vmmov %vm16978_vm0 }
 0xa7c   : > { %10469 = vrot.lane.b32.xlu2 %v10468_v27, %s15876_s20  ;;  %v7841_v15 = vsel %vm16983_vm13, %v7792_v33, %v7840_v6  ;;  %v7845_v30 = vsel %vm16984_vm10, %v7840_v6, %v7792_v33  ;;  %10474 = vrot.lane.b32.xlu1 %v10473_v32, %s16494_s29  ;;  %v7791_v40 = vrot.slane %v15228_v35, 1  ;;  %v7811_v48 = vsel %vm15193_vm11, %v15171_v39, %v7810_v26  ;;  %vm16990_vm0 = vmmov %vm16987_vm3 }
 0xa7d   : > { %v7846_v49 = vsel %vm15176_vm2, %v15206_v63, %v7841_v15  ;;  %v7847_v55 = vsel %vm15180_vm8, %v7827_v59, %v7845_v30  ;;  %v7833_v18 = vsel %vm16986_vm4, %v7777_v56, %v7829_v43  ;;  %v7836_v45 = vsel %vm16987_vm3, %v7829_v43, %v7777_v56  ;;  %vm16991_vm14 = vmmov %vm16990_vm0 }
 0xa7e   : > { %v7906_v29 = vpack.c.bf16 %v7847_v55, %v7846_v49  ;;  %v7837_v22 = vsel %vm15193_vm11, %v15206_v63, %v7836_v45  ;;  %v7838_v28 = vsel %vm15221_vm1, %v7827_v59, %v7833_v18  ;;  %v7812_v12 = vsel %vm15221_vm1, %v15173_v16, %v7807_v11  ;;  %v10501_v18 = vld [vmem:[%s16676_s4 + $0x2] ss:$0 sm:$0xff] }
 0xa7f   : > { %v10483_v9 = vpack.i.bf16 %v7838_v28, %v7837_v22  ;;  %v7780_v5 = vrot.slane %v15228_v35, 7  ;;  %v7793_v38 = vsel %vm16988_vm7, %v7791_v40, %v7792_v33  ;;  %v7797_v10 = vsel %vm16989_vm12, %v7792_v33, %v7791_v40 }
 0xa80   : > { %9074 = vmatmul.msk.bf16.vlgmr.msra.gmra.mxu2 %vm16974_vm9, %v7906_v29  ;;  %v10478_v50 = vpack.i.bf16 %v15206_v63, %v15228_v35  ;;  %v10493_v37 = vpack.i.bf16 %v7812_v12, %v7811_v48  ;;  %v7802_v61 = vsel %vm15176_vm2, %v15228_v35, %v7793_v38  ;;  %v7803_v58 = vsel %vm15180_vm8, %v15206_v63, %v7797_v10  ;;  %vm16992_vm2 = vmmov %vm16974_vm9 }
 0xa81   : > { %10484 = vrot.lane.b32.xlu0 %v10483_v9, %s16852_s16  ;;  %8183 = vmatpush.msra.mxu2 %v15113_v4  ;;  %v15264_v8 = vsel %vm16990_vm0, %v7780_v5, %v7777_v56  ;;  %v15267_v31 = vsel %vm16991_vm14, %v7777_v56, %v7780_v5  ;;  %v10488_v0 = vpack.i.bf16 %v7803_v58, %v7802_v61  ;;  %vm16993_vm8 = vmmov %vm16992_vm2  ;;  %vm16996_vm5 = vcmask 785408  }
 0xa82   : > { %v7789_v51 = vsel %vm15193_vm11, %v15228_v35, %v15267_v31  ;;  %v7790_v4 = vsel %vm15221_vm1, %v15206_v63, %v15264_v8  ;;  %vm16994_vm11 = vcmask 523264   ;;  %vm16997_vm13 = vmmov %vm16996_vm5 }
 0xa83   : > { %8184 = vmatpush.msra.mxu2 %v15119_v13  ;;  %v9145_v13 = vld [vmem:[%s16122_s3 + $0x178] sm:$0xff]  ;;  %vm16995_vm1 = vmmov %vm16994_vm11 }
 0xa84   : > { %10479 = vrot.lane.b32.xlu2 %v10478_v50, %s15876_s20  ;;  %10494 = vrot.lane.b32.xlu1 %v10493_v37, %s16494_s29  ;;  %vm16998_vm10 = vmmov %vm16992_vm2 }
 0xa85   : > { %8185 = vmatpush.msra.mxu2 %v15125_v36  ;;  %8039 = vmatpush.bf16.msra.mxu3 %v9145_v13  ;;  %v9140_v36 = vld [vmem:[%s16122_s3 + $0x150] sm:$0xff]  ;;  %vm16999_vm6 = vmmov %vm16992_vm2 }
 0xa86   : > { %8022 = vmatpush.bf16.msrb.mxu0 %v9140_v36  ;;  %vm17000_vm4 = vmmov %vm16995_vm1 }
 0xa87   : > { %8186 = vmatpush.msra.mxu2 %v15131_v57  ;;  %v9143_v57 = vld [vmem:[%s16122_s3 + $0x168] sm:$0xff]  ;;  %vm17001_vm3 = vmmov %vm16995_vm1 }
 0xa88   : > { %vm17002_vm9 = vmmov %vm16996_vm5 }
 0xa89   : > { %10489 = vrot.lane.b32.xlu0 %v10488_v0, %s16852_s16  ;;  %8040 = vmatpush.bf16.msra.mxu3 %v9144_v24  ;;  %vm17003_vm7 = vmmov %vm16996_vm5 }
 0xa8a   : > { %8023 = vmatpush.bf16.msrb.mxu0 %v9139_v7  ;;  %vm17004_vm0 = vmmov %vm16989_vm12 }
 0xa8b   : > { %vm17005_vm14 = vmmov %vm16992_vm2 }
 0xa8d   : > { %8041 = vmatpush.bf16.msra.mxu3 %v9143_v57 }
 0xa8e   : > { %8024 = vmatpush.bf16.msrb.mxu0 %v9138_v60 }
 0xa91   : > { %8042 = vmatpush.bf16.msra.mxu3 %v9142_v41 }
 0xa92   : > { %8025 = vmatpush.bf16.msrb.mxu0 %v9137_v20 }
 0xa95   : > { %9079 = vmatpush.msk.msrb.mxu3 %vm6419_vm15, %v15138_v42 }
 0xa96   : > { %8026 = vmatpush.bf16.msrb.mxu0 %v9136_v2 }
 0xa9a   : > { %8027 = vmatpush.bf16.msrb.mxu0 %v9135_v47 }
 0xa9e   : > { %8028 = vmatpush.bf16.msrb.mxu0 %v9134_v52 }
 0xaa2   : > { %9076 = vmatpush.msk.msra.mxu0 %vm6419_vm15, %v15138_v42 }
 0xad6   : > { %v10470_v44 = vpop.permute.xlu2 %10469 }
 0xad7   : > { %v10472_v62 = vunpack.i.h.bf16 %v10470_v44  ;;  %v10471_v25 = vunpack.i.l.bf16 %v10470_v44 }
 0xad9   : > { %v7899_v1 = vsel %vm16992_vm2, %v15173_v16, %v10472_v62  ;;  %v7898_v19 = vsel %vm16993_vm8, %v15171_v39, %v10471_v25  ;;  %vm8096_vm8 = vcmask 257024  }
 0xade   : > { %v10480_v23 = vpop.permute.xlu2 %10479 }
 0xadf   : > { %v10482_v6 = vunpack.i.h.bf16 %v10480_v23  ;;  %v10481_v32 = vunpack.i.l.bf16 %v10480_v23 }
 0xae1   : > { %v7892_v39 = vsel %vm16998_vm10, %v7789_v51, %v10481_v32  ;;  %v7893_v35 = vsel %vm16999_vm6, %v7790_v4, %v10482_v6 }
 0xaee   : > { %v10475_v46 = vpop.permute.xlu1 %10474 }
 0xaef   : > { %v10477_v63 = vunpack.i.h.bf16 %v10475_v46  ;;  %v10476_v34 = vunpack.i.l.bf16 %v10475_v46 }
 0xaf3   : > { %v10485_v53 = vpop.permute.xlu0 %10484 }
 0xaf4   : > { %v10487_v3 = vunpack.i.h.bf16 %v10485_v53  ;;  %v10486_v54 = vunpack.i.l.bf16 %v10485_v53 }
 0xaf6   : > { %v7901_v21 = vsel %vm16994_vm11, %v7899_v1, %v10487_v3  ;;  %v7900_v42 = vsel %vm16995_vm1, %v7898_v19, %v10486_v54  ;;  %v10495_v56 = vpop.permute.xlu1 %10494  ;;  %vm17006_vm11 = vcmask 1041408   ;;  %v10733_v54 = vmov 32.0  }
 0xaf7   : > { %v7903_v33 = vsel %vm16996_vm5, %v7901_v21, %v10477_v63  ;;  %v7902_v59 = vsel %vm16997_vm13, %v7900_v42, %v10476_v34  ;;  %v10497_v11 = vunpack.i.h.bf16 %v10495_v56  ;;  %v10496_v15 = vunpack.i.l.bf16 %v10495_v56  ;;  %vm17009_vm13 = vmmov %vm16992_vm2 }
 0xaf8   : > { %v7905_v27 = vpack.c.bf16 %v7903_v33, %v7902_v59  ;;  %10510 = vrcp.f32 %v10733_v54  ;;  %vm17008_vm5 = vcmask 31744   ;;  %v8261_v54 = vld [vmem:[%s15570_s6] sm:$0x1] }
 0xafa   : > { %8043 = vmatmul.bf16.vlgmr.msra.gmra.mxu3 %v7905_v27 }
 0xafb   : > { %v10490_v16 = vpop.permute.xlu0 %10489 }
 0xafc   : > { %v10492_v17 = vunpack.i.h.bf16 %v10490_v16  ;;  %v10491_v43 = vunpack.i.l.bf16 %v10490_v16 }
 0xafe   : > { %v7894_v30 = vsel %vm17000_vm4, %v7892_v39, %v10491_v43  ;;  %v7895_v26 = vsel %vm17001_vm3, %v7893_v35, %v10492_v17  ;;  %v10511_v1 = vpop.eup %10510  ;;  %vm17010_vm3 = vmmov %vm17008_vm5 }
 0xaff   : > { %v7896_v40 = vsel %vm17002_vm9, %v7894_v30, %v10496_v15  ;;  %v7897_v49 = vsel %vm17003_vm7, %v7895_v26, %v10497_v11  ;;  %v8128_v19 = vmul.f32 32.0, %v10511_v1  ;;  %vm8132_vm1 = vweird.f32 %v10511_v1 }
 0xb00   : > { %v7904_v55 = vpack.c.bf16 %v7897_v49, %v7896_v40  ;;  %vm8323_vm9 = vcmask 17408   ;;  %vm8319_vm7 = vcmask 23552  }
 0xb01   : > { %v8129_v63 = vsub.f32 1.0, %v8128_v19 }
 0xb02   : > { %8029 = vmatmul.bf16.vlgmr.msrb.gmra.mxu0 %v7904_v55 }
 0xb03   : > { %v8058_v28 = vpop.f32.mrf.mxu2  ;;  %v8130_v34 = vmul.f32 %v10511_v1, %v8129_v63 }
 0xb05   : > { %v8131_v23 = vadd.f32 %v10511_v1, %v8130_v34 }
 0xb07   : > { %v8133_v21 = vsel %vm8132_vm1, %v10511_v1, %v8131_v23 }
 0xb0b   : > { %v8060_v50 = vpop.f32.mrf.mxu2 }
 0xb7d   : > { %v8044_v45 = vpop.f32.mrf.mxu3 }
 0xb7f   : > { %v8030_v29 = vpop.f32.mrf.mxu0 }
 0xb80   : > { %v8031_v22 = vadd.f32 %v10501_v18, %v8030_v29 }
 0xb82   : > { %v8045_v9 = vadd.f32 %v8044_v45, %v8031_v22 }
 0xb84   : > { %v8059_v12 = vadd.f32 %v8058_v28, %v8045_v9  ;;  %v8260_v28 = vld [vmem:[%s15569_s5 + $0x78] sm:$0xff]  ;;  %v8259_v9 = vld [vmem:[%s15569_s5 + $0x70] sm:$0xff] }
 0xb85   : > { %v8046_v38 = vpop.f32.mrf.mxu3  ;;  %8262 = vmatpush.msra.mxu1 %v8260_v28 }
 0xb86   : > { %v8063_v37 = vmax.f32 %v8059_v12, 0.0  ;;  %v8257_v12 = vld [vmem:[%s15569_s5 + $0x60] sm:$0xff] }
 0xb87   : > { %v8032_v48 = vpop.f32.mrf.mxu0  ;;  %8263 = vmatpush.msra.mxu1 %v8259_v9 }
 0xb88   : > { %v8033_v5 = vadd.f32 %v10501_v18, %v8032_v48  ;;  %v8067_v51 = vrot.slane %v8063_v37, 1  ;;  %v8258_v48 = vld [vmem:[%s15569_s5 + $0x68] sm:$0xff] }
 0xb89   : > { %8264 = vmatpush.msra.mxu1 %v8258_v48 }
 0xb8a   : > { %v8047_v10 = vadd.f32 %v8046_v38, %v8033_v5  ;;  %v8256_v5 = vld [vmem:[%s15569_s5 + $0x58] sm:$0xff]  ;;  %v8255_v38 = vld [vmem:[%s15569_s5 + $0x50] sm:$0xff] }
 0xb8b   : > { %8265 = vmatpush.msra.mxu1 %v8257_v12 }
 0xb8c   : > { %v8061_v8 = vadd.f32 %v8060_v50, %v8047_v10  ;;  %v8254_v10 = vld [vmem:[%s15569_s5 + $0x48] sm:$0xff]  ;;  %v8253_v50 = vld [vmem:[%s15569_s5 + $0x40] sm:$0xff] }
 0xb8d   : > { %8266 = vmatpush.msra.mxu1 %v8256_v5 }
 0xb8e   : > { %v8064_v31 = vmax.f32 %v8061_v8, 0.0  ;;  %v8251_v8 = vld [vmem:[%s15569_s5 + $0x30] sm:$0xff] }
 0xb8f   : > { %8267 = vmatpush.msra.mxu1 %v8255_v38 }
 0xb90   : > { %v8068_v4 = vrot.slane %v8064_v31, 1 }
 0xb91   : > { %8268 = vmatpush.msra.mxu1 %v8254_v10 }
 0xb92   : > { %v8069_v61 = vsel %vm16989_vm12, %v8067_v51, %v8068_v4  ;;  %v8073_v58 = vsel %vm17004_vm0, %v8068_v4, %v8067_v51  ;;  %vm17011_vm12 = vmmov %vm16992_vm2  ;;  %vm17012_vm0 = vcmask 523264  }
 0xb93   : > { %v8074_v0 = vmax.f32 %v8063_v37, %v8069_v61  ;;  %v8075_v13 = vmax.f32 %v8064_v31, %v8073_v58  ;;  %v8252_v37 = vld [vmem:[%s15569_s5 + $0x38] sm:$0xff]  ;;  %8269 = vmatpush.msra.mxu1 %v8253_v50 }
 0xb95   : > { %v8078_v14 = vrot.slane %v8074_v0, 4  ;;  %v8079_v24 = vrot.slane %v8075_v13, 4  ;;  %8270 = vmatpush.msra.mxu1 %v8252_v37 }
 0xb97   : > { %v8080_v36 = vsel %vm6419_vm15, %v8078_v14, %v8079_v24  ;;  %v8084_v57 = vsel %vm6419_vm15, %v8079_v24, %v8078_v14  ;;  %vm17007_vm15 = vmmov %vm16992_vm2  ;;  %8271 = vmatpush.msra.mxu1 %v8251_v8  ;;  %v8249_v14 = vld [vmem:[%s15569_s5 + $0x20] sm:$0xff]  ;;  %v8248_v24 = vld [vmem:[%s15569_s5 + $0x18] sm:$0xff] }
 0xb98   : > { %v8085_v7 = vmax.f32 %v8074_v0, %v8080_v36  ;;  %v8086_v60 = vmax.f32 %v8075_v13, %v8084_v57  ;;  %v8250_v13 = vld [vmem:[%s15569_s5 + $0x28] sm:$0xff]  ;;  %v8247_v36 = vld [vmem:[%s15569_s5 + $0x10] sm:$0xff] }
 0xb99   : > { %8272 = vmatpush.msra.mxu1 %v8250_v13  ;;  %v8246_v57 = vld [vmem:[%s15569_s5 + $0x8] sm:$0xff] }
 0xb9a   : > { %8087 = vst.msk [vmem:[#allocation2] sm:$0xff] %vm17005_vm14, %v8085_v7  ;;  %v8245_v7 = vld [vmem:[%s15569_s5] sm:$0xff]  ;;  %vm17013_vm14 = vcmask 785408  }
 0xb9b   : > { %8088 = vst.msk [vmem:[#allocation2 + $0x8] sm:$0xff] %vm16992_vm2, %v8086_v60  ;;  %8273 = vmatpush.msra.mxu1 %v8249_v14  ;;  %v15418_v60 = vld [vmem:[%s15571_s7 + $0x8] sm:$0x3]  ;;  %vm8283_vm2 = vcmask 16384  }
 0xb9d   : > { %8274 = vmatpush.msra.mxu1 %v8248_v24 }
 0xb9f   : > { %8275 = vmatpush.msra.mxu1 %v8247_v36 }
 0xba1   : > { %v8089_v2 = vld [vmem:[#allocation2] ss:$2 sm:$0x3]  ;;  %8276 = vmatpush.msra.mxu1 %v8246_v57 }
 0xba2   : > { %v8091_v20 = vld [vmem:[#allocation2 + $0x8] ss:$2 sm:$0x3] }
 0xba3   : > { %v8093_v41 = vrot.slane %v8091_v20, 6  ;;  %8277 = vmatpush.msra.mxu1 %v8245_v7  ;;  %v15423_v20 = vld [vmem:[%s15571_s7] sm:$0xff] }
 0xba5   : > { %v8095_v47 = vsel %vm17006_vm11, %v8089_v2, %v8093_v41  ;;  %v8318_v41 = vmul.f32 %v15418_v60, %v15418_v60  ;;  %v8317_v2 = vmul.f32 %v15423_v20, %v15423_v20 }
 0xba6   : > { %v8097_v52 = vsel %vm8096_vm8, %v8095_v47, 0.0 }
 0xba7   : > { %v8098_v44 = vrot.slane %v8097_v52, 4 }
 0xba9   : > { %v8099_v46 = vadd.f32 %v8098_v44, %v8097_v52  ;;  %v8320_v52 = vsel %vm8319_vm7, %v8317_v2, 0.0 }
 0xbab   : > { %v8100_v62 = vrot.slane %v8099_v46, 2 }
 0xbad   : > { %v8101_v25 = vadd.f32 %v8100_v62, %v8099_v46 }
 0xbaf   : > { %v8102_v53 = vrot.slane %v8101_v25, 1 }
 0xbb1   : > { %v8103_v3 = vadd.f32 %v8102_v53, %v8101_v25 }
 0xbb3   : > { %9075 = vmatmul.msk.f32.vlgmr.msrb.gmra.mxu2 %vm17007_vm15, %v8103_v3 }
 0xc36   : > { %v8124_v42 = vpop.f32.mrf.mxu2 }
 0xc37   : > { %v8134_v33 = vmul.f32 %v8133_v21, %v8124_v42 }
 0xc39   : > { %9077 = vmatmul.msk.f32.vlgmr.msra.gmra.mxu0 %vm17008_vm5, %v8134_v33 }
 0xcb6   : > { %v8155_v59 = vpop.f32.mrf.mxu0 }
 0xcb7   : > { %v8158_v27 = vperm.slane %v8155_v59, 0 }
 0xcb9   : > { %v8159_v6 = vsub.f32 %v8095_v47, %v8158_v27  ;;  %v8324_v47 = vsel %vm8323_vm9, %v8318_v41, 0.0 }
 0xcbb   : > { %v8160_v32 = vmul.f32 %v8159_v6, %v8159_v6 }
 0xcbd   : > { %v8161_v56 = vsel %vm8096_vm8, %v8160_v32, 0.0 }
 0xcbe   : > { %v8162_v16 = vrot.slane %v8161_v56, 4 }
 0xcc0   : > { %v8163_v17 = vadd.f32 %v8162_v16, %v8161_v56 }
 0xcc2   : > { %v8164_v43 = vrot.slane %v8163_v17, 2 }
 0xcc4   : > { %v8165_v39 = vadd.f32 %v8164_v43, %v8163_v17 }
 0xcc6   : > { %v8166_v35 = vrot.slane %v8165_v39, 1 }
 0xcc8   : > { %v8167_v11 = vadd.f32 %v8166_v35, %v8165_v39 }
 0xcca   : > { %9078 = vmatmul.msk.f32.vlgmr.msra.gmra.mxu2 %vm17009_vm13, %v8167_v11 }
 0xd4d   : > { %v8188_v15 = vpop.f32.mrf.mxu2 }
 0xd4e   : > { %v8191_v30 = vmul.f32 %v8188_v15, %v8133_v21 }
 0xd50   : > { %v8192_v26 = vadd.f32 1e-10, %v8191_v30 }
 0xd52   : > { %10512 = vrsqrt.f32 %v8192_v26  ;;  %vm8199_vm6 = vweird.f32 %v8192_v26 }
 0xd58   : > { %v10513_v40 = vpop.eup %10512 }
 0xd59   : > { %v8194_v49 = vmul.f32 %v10513_v40, %v8192_v26  ;;  %vm8200_vm10 = vweird.f32 %v10513_v40 }
 0xd5a   : > { %vm8201_vm4 = vmor %vm8199_vm6, %vm8200_vm10 }
 0xd5b   : > { %v8195_v55 = vmul.f32 %v10513_v40, %v8194_v49 }
 0xd5d   : > { %v8196_v18 = vmul.f32 0.5, %v8195_v55 }
 0xd5f   : > { %v8197_v45 = vsub.f32 1.5, %v8196_v18 }
 0xd61   : > { %v8198_v29 = vmul.f32 %v10513_v40, %v8197_v45 }
 0xd63   : > { %v8202_v22 = vsel %vm8201_vm4, %v10513_v40, %v8198_v29 }
 0xd64   : > { %9080 = vmatmul.msk.f32.vlgmr.msrb.gmra.mxu3 %vm17010_vm3, %v8202_v22 }
 0xde7   : > { %v8223_v31 = vpop.f32.mrf.mxu3 }
 0xde8   : > { %v8226_v51 = vperm.slane %v8223_v31, 0 }
 0xdea   : > { %v8227_v4 = vmul.f32 %v8226_v51, %v8159_v6 }
 0xdec   : > { %8228 = vst.msk [vmem:[%s535_s25] sm:$0xf] %vm8096_vm8, %v8227_v4  ;;  %v8238_v61 = vrot.slane %v8227_v4, 3  ;;  %v8234_v58 = vrot.slane %v8227_v4, 2  ;;  %v8230_v0 = vrot.slane %v8227_v4, 1 }
 0xdee   : > { %8239 = vrot.lane.b32.xlu1 %v8238_v61, %s16494_s29  ;;  %8235 = vrot.lane.b32.xlu0 %v8234_v58, %s16852_s16  ;;  %s8467_s29 = sshll.u32 %s14563_s27, 4  ;;  %s8468_s29 = int_to_ptr.vmem [resolvable:$true] %s8467_s29 }
 0xdef   : > { %8231 = vrot.lane.b32.xlu2 %v8230_v0, %s15876_s20 }
 0xe18   : > { %8325 = vadd.xlane.f32.xlu2 %v8324_v47  ;;  %8321 = vadd.xlane.f32.xlu0 %v8320_v52 }
 0xe49   : > { %v8232_v44 = vpop.permute.xlu2 %8231 }
 0xe4a   : > { %v8242_v46 = vsel %vm17011_vm12, %v8227_v4, %v8232_v44 }
 0xe60   : > { %v8240_v62 = vpop.permute.xlu1 %8239  ;;  %v8236_v25 = vpop.permute.xlu0 %8235 }
 0xe61   : > { %v8243_v53 = vsel %vm17012_vm0, %v8242_v46, %v8236_v25 }
 0xe62   : > { %v8244_v3 = vsel %vm17013_vm14, %v8243_v53, %v8240_v62 }
 0xe63   : > { %8278 = vmatmul.f32.vlgmr.msra.gmra.mxu1 %v8244_v3 }
 0xe8b   : > { %v8326_v23 = vpop.xlane.xlu2 %8325  ;;  %v8322_v21 = vpop.xlane.xlu0 %8321 }
 0xe8c   : > { %10514 = vrsqrt.f32 %v8326_v23  ;;  %vm8346_vm8 = vcmp.eq.f32.partialorder %v8326_v23, inf  ;;  %v8349_v15 = vand.u32 2147483648, %v8326_v23  ;;  %vm8348_vm11 = vcmp.eq.f32.partialorder %v8326_v23, 0.0 }
 0xe8d   : > { %10516 = vrsqrt.f32 %v8322_v21  ;;  %vm8334_vm15 = vcmp.eq.f32.partialorder %v8322_v21, inf  ;;  %v8337_v49 = vand.u32 2147483648, %v8322_v21  ;;  %vm8336_vm1 = vcmp.eq.f32.partialorder %v8322_v21, 0.0 }
 0xe92   : > { %v10515_v42 = vpop.eup %10514 }
 0xe93   : > { %v8340_v33 = vmul.f32 %v10515_v42, %v8326_v23  ;;  %v10517_v59 = vpop.eup %10516 }
 0xe94   : > { %v8328_v6 = vmul.f32 %v10517_v59, %v8322_v21 }
 0xe95   : > { %v8341_v27 = vmul.f32 %v10515_v42, %v8340_v33 }
 0xe96   : > { %v8329_v56 = vmul.f32 %v10517_v59, %v8328_v6 }
 0xe97   : > { %v8342_v32 = vmul.f32 0.5, %v8341_v27 }
 0xe98   : > { %v8330_v17 = vmul.f32 0.5, %v8329_v56 }
 0xe99   : > { %v8343_v16 = vsub.f32 1.5, %v8342_v32 }
 0xe9a   : > { %v8331_v39 = vsub.f32 1.5, %v8330_v17 }
 0xe9b   : > { %v8344_v43 = vmul.f32 %v10515_v42, %v8343_v16 }
 0xe9c   : > { %v8332_v11 = vmul.f32 %v10517_v59, %v8331_v39 }
 0xe9d   : > { %v8345_v35 = vmul.f32 %v8344_v43, %v8326_v23 }
 0xe9e   : > { %v8333_v26 = vmul.f32 %v8332_v11, %v8322_v21 }
 0xe9f   : > { %v8347_v30 = vsel %vm8346_vm8, %v8326_v23, %v8345_v35 }
 0xea0   : > { %v8350_v40 = vsel %vm8348_vm11, %v8349_v15, %v8347_v30  ;;  %v8335_v55 = vsel %vm8334_vm15, %v8322_v21, %v8333_v26 }
 0xea1   : > { %v8352_v18 = vmax.f32 %v8350_v40, 1e-12  ;;  %v8338_v45 = vsel %vm8336_vm1, %v8337_v49, %v8335_v55 }
 0xea2   : > { %v8351_v29 = vmax.f32 %v8338_v45, 1e-12 }
 0xea3   : > { %10518 = vrcp.f32 %v8352_v18  ;;  %v8379_v38 = vand.u32 2147483648, %v8352_v18  ;;  %vm8373_vm5 = vweird.f32 %v8352_v18  ;;  %v8377_v50 = vand.u32 2147483647, %v8352_v18 }
 0xea4   : > { %10520 = vrcp.f32 %v8351_v29  ;;  %v8364_v61 = vand.u32 2147483648, %v8351_v29  ;;  %vm8358_vm4 = vweird.f32 %v8351_v29  ;;  %v8362_v0 = vand.u32 2147483647, %v8351_v29 }
 0xea5   : > { %v8380_v37 = vor.u32 1.1754944e-38, %v8379_v38  ;;  %vm8378_vm6 = vcmp.eq.f32.partialorder %v8377_v50, 8.507059e+37 }
 0xea6   : > { %v8365_v14 = vor.u32 1.1754944e-38, %v8364_v61  ;;  %vm8363_vm12 = vcmp.eq.f32.partialorder %v8362_v0, 8.507059e+37 }
 0xea9   : > { %v10519_v22 = vpop.eup %10518 }
 0xeaa   : > { %v8369_v28 = vmul.f32 %v10519_v22, %v8352_v18  ;;  %v10521_v9 = vpop.eup %10520  ;;  %vm8374_vm13 = vweird.f32 %v10519_v22 }
 0xeab   : > { %v8354_v5 = vmul.f32 %v10521_v9, %v8351_v29  ;;  %vm8375_vm10 = vmor %vm8373_vm5, %vm8374_vm13  ;;  %vm8359_vm3 = vweird.f32 %v10521_v9 }
 0xeac   : > { %v8370_v48 = vsub.f32 1.0, %v8369_v28  ;;  %vm8360_vm9 = vmor %vm8358_vm4, %vm8359_vm3 }
 0xead   : > { %v8355_v8 = vsub.f32 1.0, %v8354_v5 }
 0xeae   : > { %v8371_v12 = vmul.f32 %v10519_v22, %v8370_v48 }
 0xeaf   : > { %v8356_v4 = vmul.f32 %v10521_v9, %v8355_v8 }
 0xeb0   : > { %v8372_v10 = vadd.f32 %v10519_v22, %v8371_v12 }
 0xeb1   : > { %v8357_v13 = vadd.f32 %v10521_v9, %v8356_v4 }
 0xeb2   : > { %v8376_v31 = vsel %vm8375_vm10, %v10519_v22, %v8372_v10 }
 0xeb3   : > { %v8381_v51 = vsel %vm8378_vm6, %v8380_v37, %v8376_v31  ;;  %v8361_v24 = vsel %vm8360_vm9, %v10521_v9, %v8357_v13 }
 0xeb4   : > { %v8382_v58 = vmul.f32 %v8381_v51, %v15418_v60  ;;  %v8366_v36 = vsel %vm8363_vm12, %v8365_v14, %v8361_v24 }
 0xeb5   : > { %v8367_v57 = vmul.f32 %v8366_v36, %v15423_v20 }
 0xeb6   : > { %9081 = vmatpush.xpose.msk.msrb.mxu0 %vm8319_vm7, %v8382_v58 }
 0xeba   : > { %9082 = vmatpush.xpose.msk.msrb.mxu0 %vm8319_vm7, %v8367_v57 }
 0xee0   : > { %v8279_v1 = vpop.f32.mrf.mxu1 }
 0xee1   : > { %v15436_v19 = vadd.f32 %v8279_v1, %v8261_v54 }
 0xee3   : > { %v8282_v63 = vmul.f32 %v15436_v19, %v15436_v19  ;;  %8412 = vst.msk [vmem:[%s15815_s26] sm:$0x1] %vm8283_vm2, %v15436_v19 }
 0xee5   : > { %v8284_v34 = vsel %vm8283_vm2, %v8282_v63, 0.0 }
 0xee6   : > { %8285 = vadd.xlane.f32.xlu1 %v8284_v34 }
 0xf59   : > { %v8286_v7 = vpop.xlane.xlu1 %8285 }
 0xf5a   : > { %10522 = vrsqrt.f32 %v8286_v7  ;;  %vm8294_vm0 = vcmp.eq.f32.partialorder %v8286_v7, inf  ;;  %v8297_v62 = vand.u32 2147483648, %v8286_v7  ;;  %vm8296_vm14 = vcmp.eq.f32.partialorder %v8286_v7, 0.0 }
 0xf60   : > { %v10523_v41 = vpop.eup %10522 }
 0xf61   : > { %v8288_v2 = vmul.f32 %v10523_v41, %v8286_v7 }
 0xf63   : > { %v8289_v60 = vmul.f32 %v10523_v41, %v8288_v2 }
 0xf65   : > { %v8290_v47 = vmul.f32 0.5, %v8289_v60 }
 0xf67   : > { %v8291_v52 = vsub.f32 1.5, %v8290_v47 }
 0xf69   : > { %v8292_v44 = vmul.f32 %v10523_v41, %v8291_v52 }
 0xf6b   : > { %v8293_v46 = vmul.f32 %v8292_v44, %v8286_v7 }
 0xf6d   : > { %v8295_v25 = vsel %vm8294_vm0, %v8286_v7, %v8293_v46 }
 0xf6e   : > { %v8298_v53 = vsel %vm8296_vm14, %v8297_v62, %v8295_v25 }
 0xf6f   : > { %v8299_v3 = vmax.f32 %v8298_v53, 1e-12 }
 0xf71   : > { %10524 = vrcp.f32 %v8299_v3  ;;  %v8311_v63 = vand.u32 2147483648, %v8299_v3  ;;  %v8309_v23 = vand.u32 2147483647, %v8299_v3  ;;  %vm8305_vm8 = vweird.f32 %v8299_v3 }
 0xf73   : > { %v8312_v42 = vor.u32 1.1754944e-38, %v8311_v63  ;;  %vm8310_vm15 = vcmp.eq.f32.partialorder %v8309_v23, 8.507059e+37 }
 0xf77   : > { %v10525_v20 = vpop.eup %10524 }
 0xf78   : > { %v8301_v54 = vmul.f32 %v10525_v20, %v8299_v3  ;;  %vm8306_vm2 = vweird.f32 %v10525_v20 }
 0xf79   : > { %vm8307_vm11 = vmor %vm8305_vm8, %vm8306_vm2 }
 0xf7a   : > { %v8302_v1 = vsub.f32 1.0, %v8301_v54 }
 0xf7c   : > { %v8303_v34 = vmul.f32 %v10525_v20, %v8302_v1 }
 0xf7e   : > { %v8304_v21 = vadd.f32 %v10525_v20, %v8303_v34 }
 0xf80   : > { %v8308_v33 = vsel %vm8307_vm11, %v10525_v20, %v8304_v21 }
 0xf81   : > { %v8313_v59 = vsel %vm8310_vm15, %v8312_v42, %v8308_v33 }
 0xf82   : > { %v8314_v27 = vmul.f32 %v8313_v59, %v15436_v19 }
 0xf84   : > { %9083 = vmatmul.msk.f32.vlgmr.msrb.gmra.mxu0 %vm8319_vm7, %v8314_v27 }
 0xf85   : > { %10564 = shalt.err (!%p10561_p3)
}
 0xf86   : > { %s15816_s8 = smov 128   ;;  %s17014_s26 = scalar_lea.vmem [#allocation8], %s12162_s18 }
 0xf87   : > { %9156 = dma.vmem_to_hbm [thread:$0]  (%p10855_p5), %s8468_s29, 1024, %s8470_s9, %s15460_s30, %s15816_s8, %s15816_s8, %s15863_s23  }
 0xf88   : > { %s8503_s15 = sshll.u32 %s17014_s26, 4  ;;  %s8505_s25 = sshll.u32 %s8501_s24, 4  ;;  %s8504_s15 = int_to_ptr.vmem [resolvable:$true] %s8503_s15  ;;  %s8506_s25 = int_to_ptr.hbm [resolvable:$true] %s8505_s25 }
 0xf89   : > { %s15478_s2 = scalar_lea.sflag [#allocation9], %s8420_s17  ;;  %s10579_s21 = sshra.s32 %s8506_s25, 4  ;;  %s10580_s21 = int_to_ptr.hbm [resolvable:$true] %s10579_s21 }
 0xf8a   : > { %s10581_s27 = scalar_lea.hbm %s10580_s21, 1  ;;  %s10585_s16 = scalar_lea.hbm %s15578_s14, 2 }
 0xf8b   : > { %p10582_p4 = scmp.ne.s32.totalorder %s10580_s21, %s10581_s27  ;;  %p10586_p9 = scmp.lt.s32.totalorder %s10580_s21, %s15578_s14 }
 0xf8c   : > { %p10587_p10 = scmp.lt.s32.totalorder %s10585_s16, %s10581_s27 }
 0xf8d   : > { %p10583_p7 = pnand %p10582_p4, %p10855_p5 }
 0xf8e   : > { %p10588_p11 = por %p10587_p10, %p10586_p9 }
 0xf8f   : > { %p10584_p8 = pneg %p10583_p7 }
 0xf91   : > { %p10589_p12 = pnand %p10588_p11, %p10584_p8 }
 0xf93   : > { %10592 = shalt.err (!%p10589_p12)
}
 0xf94   : > { %9158 = dma.vmem_to_hbm [thread:$0]  (%p10855_p5), %s8504_s15, 16, %s8506_s25, %s15478_s2  }
 0xf95   : > { %s9152_s17 = sshll.u32 %s10836_s22, 8  ;;  %s8450_s9 = sshll.u32 %s12224_s1, 4  ;;  %s8451_s9 = int_to_ptr.vmem [resolvable:$true] %s8450_s9 }
 0xf96   : > { %s8449_s3 = scalar_lea.hbm %s15574_s10, %s9152_s17  ;;  %s9154_s27 = sshll.u32 %s10836_s22, 4 }
 0xf97   : > { %s8452_s21 = sshll.u32 %s8449_s3, 4  ;;  %s8483_s16 = scalar_lea.hbm %s15576_s12, %s9154_s27  ;;  %s8453_s21 = int_to_ptr.hbm [resolvable:$true] %s8452_s21 }
 0xf98   : > { %s8416_s29 = scalar_lea.sflag [#allocation4], %s12162_s18  ;;  %s10607_s8 = sshra.s32 %s8453_s21, 4  ;;  %s10608_s8 = int_to_ptr.hbm [resolvable:$true] %s10607_s8 }
 0xf99   : > { %s10609_s4 = scalar_lea.hbm %s10608_s8, 256  ;;  %s10613_s25 = scalar_lea.hbm %s15574_s10, 512 }
 0xf9a   : > { %p10610_p13 = scmp.ne.s32.totalorder %s10608_s8, %s10609_s4  ;;  %p10614_p2 = scmp.lt.s32.totalorder %s10608_s8, %s15574_s10 }
 0xf9b   : > { %p10615_p3 = scmp.lt.s32.totalorder %s10613_s25, %s10609_s4 }
 0xf9c   : > { %p10611_p0 = pnand %p10610_p13, %p10855_p5 }
 0xf9d   : > { %p10616_p4 = por %p10615_p3, %p10614_p2 }
 0xf9e   : > { %p10612_p1 = pneg %p10611_p0 }
 0xfa0   : > { %p10617_p7 = pnand %p10616_p4, %p10612_p1 }
 0xfa2   : > { %10620 = shalt.err (!%p10617_p7)
}
 0xfa3   : > { %s17015_s26 = smov 128   ;;  %s8484_s3 = sshll.u32 %s15188_s19, 4  ;;  %s8485_s3 = int_to_ptr.vmem [resolvable:$true] %s8484_s3 }
 0xfa4   : > { %9155 = dma.vmem_to_hbm [thread:$0]  (%p10855_p5), %s8451_s9, 4096, %s8453_s21, %s8416_s29, %s17015_s26, %s17015_s26, %s15863_s23  }
 0xfa5   : > { %s8486_s27 = sshll.u32 %s8483_s16, 4  ;;  %s10641_s1 = scalar_lea.hbm %s15576_s12, 32  ;;  %s8487_s27 = int_to_ptr.hbm [resolvable:$true] %s8486_s27 }
 0xfa6   : > { %s10635_s0 = sshra.s32 %s8487_s27, 4  ;;  %s10636_s0 = int_to_ptr.hbm [resolvable:$true] %s10635_s0 }
 0xfa7   : > { %s10637_s20 = scalar_lea.hbm %s10636_s0, 16  ;;  %p10642_p11 = scmp.lt.s32.totalorder %s10636_s0, %s15576_s12 }
 0xfa8   : > { %p10638_p8 = scmp.ne.s32.totalorder %s10636_s0, %s10637_s20  ;;  %p10643_p12 = scmp.lt.s32.totalorder %s10641_s1, %s10637_s20 }
 0xfaa   : > { %p10639_p9 = pnand %p10638_p8, %p10855_p5  ;;  %p10644_p13 = por %p10643_p12, %p10642_p11 }
 0xfac   : > { %p10640_p10 = pneg %p10639_p9 }
 0xfae   : > { %p10645_p0 = pnand %p10644_p13, %p10640_p10 }
 0xfb0   : > { %10648 = shalt.err (!%p10645_p0)
}
 0xfb1   : > { %9157 = dma.vmem_to_hbm [thread:$0]  (%p10855_p5), %s8485_s3, 256, %s8487_s27, %s15460_s30, %s17015_s26, %s17015_s26, %s15863_s23   ;;  %vm8413_vm7 = vcmask 73728  }
 0xfb2   : > { %s17016_s21 = sld [smem:[#allocation93_spill]]  ;;  %s526_s17 = scalar_lea.vmem [#allocation10], %s12162_s18 }
 0xfb3   : > { %s8516_s24 = sshll.u32 %s526_s17, 4  ;;  %s8517_s24 = int_to_ptr.vmem [resolvable:$true] %s8516_s24 }
 0xfb8   : > { %s17017_s16 = smov %s17016_s21  ;;  %s8514_s29 = scalar_lea.hbm %s17016_s21, %s10836_s22 }
 0xfb9   : > { %s8518_s0 = sshll.u32 %s8514_s29, 4  ;;  %s10669_s26 = scalar_lea.hbm %s17017_s16, 2  ;;  %s8519_s0 = int_to_ptr.hbm [resolvable:$true] %s8518_s0 }
 0xfba   : > { %s10663_s20 = sshra.s32 %s8519_s0, 4  ;;  %s10664_s20 = int_to_ptr.hbm [resolvable:$true] %s10663_s20 }
 0xfbb   : > { %s10665_s4 = scalar_lea.hbm %s10664_s20, 1  ;;  %p10670_p4 = scmp.lt.s32.totalorder %s10664_s20, %s17017_s16 }
 0xfbc   : > { %p10666_p1 = scmp.ne.s32.totalorder %s10664_s20, %s10665_s4  ;;  %p10671_p7 = scmp.lt.s32.totalorder %s10669_s26, %s10665_s4 }
 0xfbe   : > { %p10667_p2 = pnand %p10666_p1, %p10855_p5  ;;  %p10672_p8 = por %p10671_p7, %p10670_p4 }
 0xfc0   : > { %p10668_p3 = pneg %p10667_p2 }
 0xfc2   : > { %p10673_p9 = pnand %p10672_p8, %p10668_p3 }
0x1001   : > { %v8409_v19 = vpop.f32.mrf.mxu0 }
0x1002   : > { %8414 = vst.msk [vmem:[%s526_s17] sm:$0x1] %vm8413_vm7, %v8409_v19 }
0x1003   : > { %10676 = shalt.err (!%p10673_p9)
}
0x1004   : > { %9159 = dma.vmem_to_hbm [thread:$0]  (%p10855_p5), %s8517_s24, 16, %s8519_s0, %s15478_s2  }
0x1005 PF: > { %s17018_s3 = sld [smem:[#allocation17_spill]] }
0x1006   : > { %s17019_s27 = sld [smem:[#allocation14_spill]] }
0x100b   : > { %p9181_p10 = scmp.ge.s32.totalorder %s17018_s3, 2 }
0x100c   : > { %s8530_s1 = sand.u32 1, %s17019_s27  }
0x100d   : > { %p9166_p11 = pnand %p9181_p10, %p10859_p6  ;;  %s8531_s15 = scalar_lea.sflag [#allocation4], %s8530_s1 }
0x100f   : > { %p9167_p12 = pneg %p9166_p11 }
0x1011   : > { %10694 = dma.done.wait (%p9167_p12), %s8531_s15, 4096  }
0x1012   : > { %10696 = vsyncadd (%p9167_p12), %s8531_s15, 4294963200  ;;  %s17021_s25 = sadd.s32 4294967294, %s17018_s3  }
0x1013   : > { %s8540_s19 = sand.u32 1, %s17021_s25  }
0x1014   : > { %s8541_s9 = scalar_lea.sflag [#allocation6], %s8540_s19 }
0x1015   : > { %10698 = dma.done.wait (%p9167_p12), %s8541_s9, 1280  }
0x1016   : > { %10700 = vsyncadd (%p9167_p12), %s8541_s9, 4294966016  ;;  %s8568_s28 = scalar_lea.sflag [#allocation9], %s8540_s19 }
0x1017   : > { %10702 = dma.done.wait (%p9167_p12), %s8568_s28, 32  }
0x1018   : > { %10704 = vsyncadd (%p9167_p12), %s8568_s28, 4294967264  ;;  %s17022_s21 = sld [smem:[#allocation18_spill]] }
0x1019   : > { %s17023_s18 = sld [smem:[#allocation15_spill]] }
0x101a   : > { %s17024_s19 = sld [smem:[#allocation16_spill]] }
0x101b   : > { %s17025_s20 = sld [smem:[#allocation19_spill]] }
0x101e   : > { %p32_p5 = scmp.ge.s32.totalorder %s17022_s21, 4  }
0x1020   :  { %34 = sbr.rel (!%p32_p5) target bundleno = 16 (0x10), region = 185 }
0x1025   :  { %8582 = vsyncpa [#allocation4], 1 }
0x1026   :  { %8584 = vsyncpa [#allocation4 + $0x1], 1 }
0x1027   :  { %8585 = vsyncpa [#allocation6], 1 }
0x1028   :  { %8587 = vsyncpa [#allocation6 + $0x1], 1 }
0x1029   :  { %8588 = vsyncpa [#allocation9], 1 }
0x102a   :  { %8590 = vsyncpa [#allocation9 + $0x1], 1 }

</bundles_post_ra>
